<compile_context>
chip_gen: v5e
topology: v5e:2x2
jax: 0.10.0
libtpu: 0.0.40
codegen_flags: <defaults>
</compile_context>

<pallas_src>
import functools

import jax
import jax.numpy as jnp
from jax.experimental import pallas as pl
from jax.experimental.pallas import tpu as pltpu


# --------------------------------------------------------------------------- #
# Weight packing for the fused bidirectional LSTM
# --------------------------------------------------------------------------- #
def pack_bilstm(wih_f, whh_f, bias_f, wih_b, whh_b, bias_b, H):
    """Pack per-direction PyTorch-layout LSTM weights into the fused kernel layout.

    Per-direction inputs are already transposed to (Din, 4H) / (H, 4H) with PyTorch gate
    column order [i, f, g, o]; biases are the combined b_ih + b_hh, shape (1, 4H).

    Fused 8H gate-column layout: [i_f, f_f, o_f, i_b, f_b, o_b, g_f, g_b], so the sigmoid
    gates occupy lanes [0, 6H) and the tanh gates lanes [6H, 8H) (128-lane aligned at
    H=64), and the recurrent weight is one block-"diagonal" (2H, 8H) matrix acting on
    h_cat = [h_fwd | h_bwd].
    """
    def split(w):
        return w[..., 0:H], w[..., H:2 * H], w[..., 2 * H:3 * H], w[..., 3 * H:4 * H]

    i_f, f_f, g_f, o_f = split(wih_f)
    i_b, f_b, g_b, o_b = split(wih_b)
    w_ih = jnp.concatenate([i_f, f_f, o_f, i_b, f_b, o_b, g_f, g_b], axis=-1)

    hi_f, hf_f, hg_f, ho_f = split(whh_f)
    hi_b, hf_b, hg_b, ho_b = split(whh_b)
    z = jnp.zeros((H, H), whh_f.dtype)
    top = lambda w: jnp.concatenate([w, z], axis=0)   # rows 0:H  (h_fwd) active
    bot = lambda w: jnp.concatenate([z, w], axis=0)   # rows H:2H (h_bwd) active
    w_hh = jnp.concatenate([top(hi_f), top(hf_f), top(ho_f),
                            bot(hi_b), bot(hf_b), bot(ho_b),
                            top(hg_f), bot(hg_b)], axis=-1)          # (2H, 8H)

    bi_f, bf_f, bg_f, bo_f = split(bias_f)
    bi_b, bf_b, bg_b, bo_b = split(bias_b)
    b = jnp.concatenate([bi_f, bf_f, bo_f, bi_b, bf_b, bo_b, bg_f, bg_b], axis=-1)
    return w_ih, w_hh, b


# --------------------------------------------------------------------------- #
# Single fused forward kernel (one grid program per batch element)
# --------------------------------------------------------------------------- #
def fused_forward_kernel(*refs, num_layers, num_heads, hidden_half):
    H = hidden_half
    n_in = 1 + 3 * num_layers + 16
    in_refs = refs[:n_in]
    logits_ref, hncn_ref, attnw_ref = refs[n_in:]

    emb_ref = in_refs[0]
    lstm_refs = in_refs[1:1 + 3 * num_layers]
    (wqkv_ref, bqkv_ref, wo_ref, bo_ref, ln1g_ref, ln1b_ref,
     fw1_ref, fb1_ref, fw2_ref, fb2_ref, ln2g_ref, ln2b_ref,
     cw1_ref, cb1_ref, cw2_ref, cb2_ref) = in_refs[1 + 3 * num_layers:]

    x = emb_ref[0]                                   # (T, E_in) f32, this batch row
    T = x.shape[0]

    # Lanes belonging to the forward direction in the fused 8H gate layout.
    lane = jax.lax.broadcasted_iota(jnp.int32, (1, 8 * H), 1)
    fwd_mask = (lane < 3 * H) | ((lane >= 6 * H) & (lane < 7 * H))

    def layernorm(z, g, b):
        mean = jnp.mean(z, axis=-1, keepdims=True)
        var = jnp.mean((z - mean) ** 2, axis=-1, keepdims=True)
        return (z - mean) * jax.lax.rsqrt(var + 1e-5) * g + b

    def bilstm(x_in, wih_ref, whh_ref, b_ref):
        # Hoisted input projection for BOTH directions (+ bias): one matmul, M = T rows.
        gx = jnp.dot(x_in.astype(jnp.bfloat16), wih_ref[...],
                     preferred_element_type=jnp.float32) + b_ref[...]     # (T, 8H)
        whh = whh_ref[...]                                                # (2H, 8H) bf16
        h_cat = jnp.zeros((1, 2 * H), jnp.float32)                        # [h_fwd | h_bwd]
        c_f = jnp.zeros((1, H), jnp.float32)
        c_b = jnp.zeros((1, H), jnp.float32)
        ys_f = [None] * T
        ys_b = [None] * T
        # TODO(synk): for realistic T (~125) switch to lax.fori_loop with (h, c) carry.
        for t in range(T):
            tb = T - 1 - t
            # Forward direction consumes x[t], backward x[T-1-t]: one lane-select.
            gates = jnp.where(fwd_mask, gx[t:t + 1, :], gx[tb:tb + 1, :])
            # Single fused recurrent matmul for both directions (block-diagonal W_hh).
            # TODO(synk): W_hh could be staged in the MXU across steps via
            #             pltpu.matmul_push_rhs / matmul_acc_lhs / matmul_pop.
            gates = gates + jnp.dot(h_cat.astype(jnp.bfloat16), whh,
                                    preferred_element_type=jnp.float32)
            sig = jax.nn.sigmoid(gates[:, 0:6 * H])      # [i_f f_f o_f i_b f_b o_b]
            tnh = jnp.tanh(gates[:, 6 * H:8 * H])        # [g_f g_b]
            i_f, f_f, o_f = sig[:, 0:H], sig[:, H:2 * H], sig[:, 2 * H:3 * H]
            i_b, f_b, o_b = sig[:, 3 * H:4 * H], sig[:, 4 * H:5 * H], sig[:, 5 * H:6 * H]
            g_f, g_b = tnh[:, 0:H], tnh[:, H:2 * H]
            c_f = f_f * c_f + i_f * g_f
            c_b = f_b * c_b + i_b * g_b
            h_f = o_f * jnp.tanh(c_f)
            h_b = o_b * jnp.tanh(c_b)
            h_cat = jnp.concatenate([h_f, h_b], axis=1)
            ys_f[t] = h_f
            ys_b[tb] = h_b
        # Lane-dense layer output assembled once in registers (last dim = 2H = 128).
        y = jnp.concatenate([jnp.concatenate(ys_f, axis=0),
                             jnp.concatenate(ys_b, axis=0)], axis=1)      # (T, 2H)
        return y, h_f, c_f, h_b, c_b

    # --- multi-layer bidirectional LSTM (zero initial state, eval-mode dropout) ---
    hc_rows = []
    for l in range(num_layers):
        wih_ref, whh_ref, b_ref = lstm_refs[3 * l:3 * l + 3]
        x, h_f, c_f, h_b, c_b = bilstm(x, wih_ref, whh_ref, b_ref)
        hc_rows.append(jnp.concatenate([h_f, c_f], axis=1))   # (1, 2H) lane-dense [h|c]
        hc_rows.append(jnp.concatenate([h_b, c_b], axis=1))
        # TODO(synk): inter-layer LSTM dropout omitted (eval-mode identity).
    hncn_ref[0] = jnp.concatenate(hc_rows, axis=0)             # (2L, 2H)

    lstm_out = x                                               # (T, E), E = 2H = hidden
    E = 2 * H
    hd = E // num_heads

    # --- multi-head self-attention + residual + LayerNorm1 ---
    qkv = jnp.dot(lstm_out.astype(jnp.bfloat16), wqkv_ref[...],
                  preferred_element_type=jnp.float32) + bqkv_ref[...]      # (T, 3E)
    scale = 1.0 / (float(hd) ** 0.5)
    q = qkv[:, 0:E] * scale                  # fold scale into q: T*E elems, not H*T*T
    k = qkv[:, E:2 * E]
    v = qkv[:, 2 * E:3 * E]
    qh = q.reshape(T, num_heads, hd).astype(jnp.bfloat16)
    kh = k.reshape(T, num_heads, hd).astype(jnp.bfloat16)
    vh = v.reshape(T, num_heads, hd).astype(jnp.bfloat16)
    # Head-batched scores: (heads, T, T), f32 accumulation.
    s = jax.lax.dot_general(qh, kh, (((2,), (2,)), ((1,), (1,))),
                            preferred_element_type=jnp.float32)
    s = s - jnp.max(s, axis=-1, keepdims=True)
    p = jnp.exp(s)
    p = p * pl.reciprocal(jnp.sum(p, axis=-1, keepdims=True), approx=True)
    # Head-batched context: (heads, T, hd).
    ctx = jax.lax.dot_general(p.astype(jnp.bfloat16), vh,
                              (((2,), (0,)), ((0,), (1,))),
                              preferred_element_type=jnp.float32)
    ctx2d = ctx.transpose(1, 0, 2).reshape(T, E)               # merge heads -> (T, E)
    attn = jnp.dot(ctx2d.astype(jnp.bfloat16), wo_ref[...],
                   preferred_element_type=jnp.float32) + bo_ref[...]

    # Head-averaged attention weights (torch default), stored lane-padded to 128.
    p_avg = jnp.mean(p, axis=0)                                # (T, T)
    pad = attnw_ref.shape[2] - T
    if pad:
        p_avg = jnp.concatenate([p_avg, jnp.zeros((T, pad), jnp.float32)], axis=-1)
    attnw_ref[0] = p_avg

    out1 = layernorm(lstm_out + attn, ln1g_ref[...], ln1b_ref[...])

    # --- FFN + residual + LayerNorm2 + FC head ---
    h1 = jnp.maximum(jnp.dot(out1.astype(jnp.bfloat16), fw1_ref[...],
                             preferred_element_type=jnp.float32) + fb1_ref[...], 0.0)
    ffn = jnp.dot(h1.astype(jnp.bfloat16), fw2_ref[...],
                  preferred_element_type=jnp.float32) + fb2_ref[...]
    out2 = layernorm(out1 + ffn, ln2g_ref[...], ln2b_ref[...])
    f1 = jnp.maximum(jnp.dot(out2.astype(jnp.bfloat16), cw1_ref[...],
                             preferred_element_type=jnp.float32) + cb1_ref[...], 0.0)
    logits_ref[0] = jnp.dot(f1.astype(jnp.bfloat16), cw2_ref[...],
                            preferred_element_type=jnp.float32) + cb2_ref[...]


def _fused_forward(embeds, params, num_layers, num_heads):
    B, T, E_in = embeds.shape
    hid = params["wqkv"].shape[0]
    H = hid // 2
    V = params["fc_w2"].shape[1]
    attn_lanes = ((T + 127) // 128) * 128      # lane-dense attention-weight buffer

    weights = []
    for l in range(num_layers):
        lw = params["lstm"][l]
        weights += [lw["w_ih"], lw["w_hh"], lw["b"]]
    weights += [params["wqkv"], params["bqkv"], params["wo"], params["bo"],
                params["ln1_g"], params["ln1_b"],
                params["ffn_w1"], params["ffn_b1"], params["ffn_w2"], params["ffn_b2"],
                params["ln2_g"], params["ln2_b"],
                params["fc_w1"], params["fc_b1"], params["fc_w2"], params["fc_b2"]]

    def bcast_spec(arr):
        nd = arr.ndim
        return pl.BlockSpec(arr.shape, lambda b, _nd=nd: (0,) * _nd)

    in_specs = ([pl.BlockSpec((1, T, E_in), lambda b: (b, 0, 0))]
                + [bcast_spec(w) for w in weights])

    kern = functools.partial(fused_forward_kernel, num_layers=num_layers,
                             num_heads=num_heads, hidden_half=H)
    logits, hncn, attnw_pad = pl.pallas_call(
        kern,
        grid=(B,),
        out_shape=(jax.ShapeDtypeStruct((B, T, V), jnp.float32),
                   jax.ShapeDtypeStruct((B, 2 * num_layers, 2 * H), jnp.float32),
                   jax.ShapeDtypeStruct((B, T, attn_lanes), jnp.float32)),
        in_specs=in_specs,
        out_specs=(pl.BlockSpec((1, T, V), lambda b: (b, 0, 0)),
                   pl.BlockSpec((1, 2 * num_layers, 2 * H), lambda b: (b, 0, 0)),
                   pl.BlockSpec((1, T, attn_lanes), lambda b: (b, 0, 0))),
        compiler_params=pltpu.CompilerParams(dimension_semantics=("parallel",)),
    )(embeds, *weights)
    return logits, hncn, attnw_pad


# --------------------------------------------------------------------------- #
# Parameters + full forward
# --------------------------------------------------------------------------- #
def init_params(key, vocab, emb, hid, num_layers):
    H = hid // 2
    keys = iter(jax.random.split(key, 64))

    def nrm(shape, s=0.05):
        return jax.random.normal(next(keys), shape, jnp.float32) * s

    bf16 = jnp.bfloat16
    p = {"embedding": nrm((vocab, emb), 0.1)}
    lstm = []
    din = emb
    for _ in range(num_layers):
        # Synthetic per-direction weights in PyTorch layout (transposed, gate order
        # i,f,g,o); bias is the combined b_ih + b_hh.  A real checkpoint is packed the
        # same way via pack_bilstm.
        wih_f, whh_f, bias_f = nrm((din, 4 * H)), nrm((H, 4 * H)), nrm((1, 4 * H))
        wih_b, whh_b, bias_b = nrm((din, 4 * H)), nrm((H, 4 * H)), nrm((1, 4 * H))
        w_ih, w_hh, b = pack_bilstm(wih_f, whh_f, bias_f, wih_b, whh_b, bias_b, H)
        lstm.append({"w_ih": w_ih.astype(bf16), "w_hh": w_hh.astype(bf16), "b": b})
        din = hid
    p["lstm"] = lstm
    # Multi-head attention: fused in_proj (q|k|v) stored transposed, bf16 weights.
    p["wqkv"], p["bqkv"] = nrm((hid, 3 * hid)).astype(bf16), nrm((1, 3 * hid))
    p["wo"], p["bo"] = nrm((hid, hid)).astype(bf16), nrm((1, hid))
    # FFN.
    p["ffn_w1"], p["ffn_b1"] = nrm((hid, 2 * hid)).astype(bf16), nrm((1, 2 * hid))
    p["ffn_w2"], p["ffn_b2"] = nrm((2 * hid, hid)).astype(bf16), nrm((1, hid))
    # LayerNorms (torch default init).
    p["ln1_g"], p["ln1_b"] = jnp.ones((1, hid), jnp.float32), jnp.zeros((1, hid), jnp.float32)
    p["ln2_g"], p["ln2_b"] = jnp.ones((1, hid), jnp.float32), jnp.zeros((1, hid), jnp.float32)
    # FC head.
    p["fc_w1"], p["fc_b1"] = nrm((hid, hid)).astype(bf16), nrm((1, hid))
    p["fc_w2"], p["fc_b2"] = nrm((hid, vocab)).astype(bf16), nrm((1, vocab))
    return p


@functools.partial(jax.jit, static_argnums=(2, 3))
def poetry_forward(x_tokens, params, num_layers, num_heads):
    B, T = x_tokens.shape
    hid = params["wqkv"].shape[0]
    H = hid // 2
    # Embedding lookup (gather) is glue, done in plain JAX.
    embeds = jnp.take(params["embedding"], x_tokens, axis=0)            # (B, T, emb)
    logits, hncn, attnw_pad = _fused_forward(embeds, params, num_layers, num_heads)
    # Unpack lane-dense (B, 2L, [h|c]) into torch-style (2L, B, H) h_n / c_n.
    h_n = jnp.transpose(hncn[:, :, :H], (1, 0, 2))
    c_n = jnp.transpose(hncn[:, :, H:], (1, 0, 2))
    attn_w = attnw_pad[:, :, :T]
    return logits, (h_n, c_n), attn_w


if __name__ == "__main__":
    VOCAB, EMB, HID, LAYERS, HEADS = 128, 64, 128, 2, 8
    B, T = 2, 8

    key = jax.random.PRNGKey(0)
    pkey, xkey = jax.random.split(key)
    params = init_params(pkey, VOCAB, EMB, HID, LAYERS)
    x = jax.random.randint(xkey, (B, T), 0, VOCAB, dtype=jnp.int32)

    logits, (h_n, c_n), attn_w = poetry_forward(x, params, LAYERS, HEADS)
    jax.block_until_ready((logits, h_n, c_n, attn_w))

    assert logits.shape == (B, T, VOCAB)
    assert h_n.shape == (LAYERS * 2, B, HID // 2)
    assert c_n.shape == (LAYERS * 2, B, HID // 2)
    assert attn_w.shape == (B, T, T)
    assert bool(jnp.isfinite(logits).all())
    assert bool(jnp.isfinite(attn_w).all())
    # Attention rows sum to ~1 (approx reciprocal in the softmax normalization).
    assert bool(jnp.allclose(attn_w.sum(-1), 1.0, atol=2e-2))
    print("KERNEL_OK")
</pallas_src>

<mosaic_0001>
module attributes {stable_mosaic.version = 11 : i64} {
  func.func @fused_forward_kernel(%arg0: i32, %arg1: memref<1x8x64xf32, #tpu.memory_space<vmem>>, %arg2: memref<64x512xbf16, #tpu.memory_space<vmem>>, %arg3: memref<128x512xbf16, #tpu.memory_space<vmem>>, %arg4: memref<1x512xf32, #tpu.memory_space<vmem>>, %arg5: memref<128x512xbf16, #tpu.memory_space<vmem>>, %arg6: memref<128x512xbf16, #tpu.memory_space<vmem>>, %arg7: memref<1x512xf32, #tpu.memory_space<vmem>>, %arg8: memref<128x384xbf16, #tpu.memory_space<vmem>>, %arg9: memref<1x384xf32, #tpu.memory_space<vmem>>, %arg10: memref<128x128xbf16, #tpu.memory_space<vmem>>, %arg11: memref<1x128xf32, #tpu.memory_space<vmem>>, %arg12: memref<1x128xf32, #tpu.memory_space<vmem>>, %arg13: memref<1x128xf32, #tpu.memory_space<vmem>>, %arg14: memref<128x256xbf16, #tpu.memory_space<vmem>>, %arg15: memref<1x256xf32, #tpu.memory_space<vmem>>, %arg16: memref<256x128xbf16, #tpu.memory_space<vmem>>, %arg17: memref<1x128xf32, #tpu.memory_space<vmem>>, %arg18: memref<1x128xf32, #tpu.memory_space<vmem>>, %arg19: memref<1x128xf32, #tpu.memory_space<vmem>>, %arg20: memref<128x128xbf16, #tpu.memory_space<vmem>>, %arg21: memref<1x128xf32, #tpu.memory_space<vmem>>, %arg22: memref<128x128xbf16, #tpu.memory_space<vmem>>, %arg23: memref<1x128xf32, #tpu.memory_space<vmem>>, %arg24: memref<1x8x128xf32, #tpu.memory_space<vmem>>, %arg25: memref<1x4x128xf32, #tpu.memory_space<vmem>>, %arg26: memref<1x8x128xf32, #tpu.memory_space<vmem>>) attributes {dimension_semantics = [#tpu.dimension_semantics<parallel>], iteration_bounds = array<i64: 2>, scalar_prefetch = 0 : i64, scratch_operands = 0 : i64, tpu.core_type = #tpu.core_type<tc>, window_params = [{transform_indices = @transform_0, window_bounds = array<i64: 1, 8, 64>}, {pipeline_mode = #tpu.pipeline_mode<synchronous>, transform_indices = @transform_1, window_bounds = array<i64: 64, 512>}, {pipeline_mode = #tpu.pipeline_mode<synchronous>, transform_indices = @transform_2, window_bounds = array<i64: 128, 512>}, {pipeline_mode = #tpu.pipeline_mode<synchronous>, transform_indices = @transform_3, window_bounds = array<i64: 1, 512>}, {pipeline_mode = #tpu.pipeline_mode<synchronous>, transform_indices = @transform_4, window_bounds = array<i64: 128, 512>}, {pipeline_mode = #tpu.pipeline_mode<synchronous>, transform_indices = @transform_5, window_bounds = array<i64: 128, 512>}, {pipeline_mode = #tpu.pipeline_mode<synchronous>, transform_indices = @transform_6, window_bounds = array<i64: 1, 512>}, {pipeline_mode = #tpu.pipeline_mode<synchronous>, transform_indices = @transform_7, window_bounds = array<i64: 128, 384>}, {pipeline_mode = #tpu.pipeline_mode<synchronous>, transform_indices = @transform_8, window_bounds = array<i64: 1, 384>}, {pipeline_mode = #tpu.pipeline_mode<synchronous>, transform_indices = @transform_9, window_bounds = array<i64: 128, 128>}, {pipeline_mode = #tpu.pipeline_mode<synchronous>, transform_indices = @transform_10, window_bounds = array<i64: 1, 128>}, {pipeline_mode = #tpu.pipeline_mode<synchronous>, transform_indices = @transform_11, window_bounds = array<i64: 1, 128>}, {pipeline_mode = #tpu.pipeline_mode<synchronous>, transform_indices = @transform_12, window_bounds = array<i64: 1, 128>}, {pipeline_mode = #tpu.pipeline_mode<synchronous>, transform_indices = @transform_13, window_bounds = array<i64: 128, 256>}, {pipeline_mode = #tpu.pipeline_mode<synchronous>, transform_indices = @transform_14, window_bounds = array<i64: 1, 256>}, {pipeline_mode = #tpu.pipeline_mode<synchronous>, transform_indices = @transform_15, window_bounds = array<i64: 256, 128>}, {pipeline_mode = #tpu.pipeline_mode<synchronous>, transform_indices = @transform_16, window_bounds = array<i64: 1, 128>}, {pipeline_mode = #tpu.pipeline_mode<synchronous>, transform_indices = @transform_17, window_bounds = array<i64: 1, 128>}, {pipeline_mode = #tpu.pipeline_mode<synchronous>, transform_indices = @transform_18, window_bounds = array<i64: 1, 128>}, {pipeline_mode = #tpu.pipeline_mode<synchronous>, transform_indices = @transform_19, window_bounds = array<i64: 128, 128>}, {pipeline_mode = #tpu.pipeline_mode<synchronous>, transform_indices = @transform_20, window_bounds = array<i64: 1, 128>}, {pipeline_mode = #tpu.pipeline_mode<synchronous>, transform_indices = @transform_21, window_bounds = array<i64: 128, 128>}, {pipeline_mode = #tpu.pipeline_mode<synchronous>, transform_indices = @transform_22, window_bounds = array<i64: 1, 128>}, {transform_indices = @transform_23, window_bounds = array<i64: 1, 8, 128>}, {transform_indices = @transform_24, window_bounds = array<i64: 1, 4, 128>}, {transform_indices = @transform_25, window_bounds = array<i64: 1, 8, 128>}]} {
    %c0 = arith.constant 0 : index
    %c0_0 = arith.constant 0 : index
    %c0_1 = arith.constant 0 : index
    %0 = vector.load %arg1[%c0, %c0_0, %c0_1] : memref<1x8x64xf32, #tpu.memory_space<vmem>>, vector<1x8x64xf32>
    %1 = vector.shape_cast %0 : vector<1x8x64xf32> to vector<8x64xf32>
    %2 = tpu.iota {dimensions = array<i32: 1>} : vector<1x512xi32>
    %c192_i32 = arith.constant 192 : i32
    %3 = vector.broadcast %c192_i32 : i32 to vector<1x512xi32>
    %4 = arith.cmpi slt, %2, %3 : vector<1x512xi32>
    %c384_i32 = arith.constant 384 : i32
    %5 = vector.broadcast %c384_i32 : i32 to vector<1x512xi32>
    %6 = arith.cmpi sge, %2, %5 : vector<1x512xi32>
    %c448_i32 = arith.constant 448 : i32
    %7 = vector.broadcast %c448_i32 : i32 to vector<1x512xi32>
    %8 = arith.cmpi slt, %2, %7 : vector<1x512xi32>
    %9 = arith.andi %6, %8 : vector<1x512xi1>
    %10 = arith.ori %4, %9 : vector<1x512xi1>
    %11 = arith.truncf %1 : vector<8x64xf32> to vector<8x64xbf16>
    %c0_2 = arith.constant 0 : index
    %c0_3 = arith.constant 0 : index
    %12 = vector.load %arg2[%c0_2, %c0_3] : memref<64x512xbf16, #tpu.memory_space<vmem>>, vector<64x512xbf16>
    %cst = arith.constant dense<0.000000e+00> : vector<8x512xf32>
    %13 = tpu.matmul %11, %12, %cst {dimension_numbers = #tpu.dot_dimension_numbers<[1], [0], [0], [1], [0, 0, 1, 1], [], []>} : vector<8x64xbf16>, vector<64x512xbf16>, vector<8x512xf32> -> vector<8x512xf32>
    %c0_4 = arith.constant 0 : index
    %c0_5 = arith.constant 0 : index
    %14 = vector.load %arg4[%c0_4, %c0_5] : memref<1x512xf32, #tpu.memory_space<vmem>>, vector<1x512xf32>
    %15 = vector.broadcast %14 : vector<1x512xf32> to vector<8x512xf32>
    %16 = arith.addf %13, %15 : vector<8x512xf32>
    %c0_6 = arith.constant 0 : index
    %c0_7 = arith.constant 0 : index
    %17 = vector.load %arg3[%c0_6, %c0_7] : memref<128x512xbf16, #tpu.memory_space<vmem>>, vector<128x512xbf16>
    %cst_8 = arith.constant 0.000000e+00 : f32
    %18 = vector.broadcast %cst_8 : f32 to vector<1x128xf32>
    %cst_9 = arith.constant 0.000000e+00 : f32
    %19 = vector.broadcast %cst_9 : f32 to vector<1x64xf32>
    %cst_10 = arith.constant 0.000000e+00 : f32
    %20 = vector.broadcast %cst_10 : f32 to vector<1x64xf32>
    %21 = vector.extract_strided_slice %16 {offsets = [0, 0], sizes = [1, 512], strides = [1, 1]} : vector<8x512xf32> to vector<1x512xf32>
    %22 = vector.extract_strided_slice %16 {offsets = [7, 0], sizes = [1, 512], strides = [1, 1]} : vector<8x512xf32> to vector<1x512xf32>
    %23 = arith.select %10, %21, %22 : vector<1x512xi1>, vector<1x512xf32>
    %24 = arith.truncf %18 : vector<1x128xf32> to vector<1x128xbf16>
    %cst_11 = arith.constant dense<0.000000e+00> : vector<1x512xf32>
    %25 = tpu.matmul %24, %17, %cst_11 {dimension_numbers = #tpu.dot_dimension_numbers<[1], [0], [0], [1], [0, 0, 1, 1], [], []>} : vector<1x128xbf16>, vector<128x512xbf16>, vector<1x512xf32> -> vector<1x512xf32>
    %26 = arith.addf %23, %25 : vector<1x512xf32>
    %27 = vector.extract_strided_slice %26 {offsets = [0, 0], sizes = [1, 384], strides = [1, 1]} : vector<1x512xf32> to vector<1x384xf32>
    %28 = arith.negf %27 : vector<1x384xf32>
    %29 = math.exp %28 : vector<1x384xf32>
    %cst_12 = arith.constant 1.000000e+00 : f32
    %30 = vector.broadcast %cst_12 : f32 to vector<1x384xf32>
    %31 = arith.addf %30, %29 : vector<1x384xf32>
    %32 = arith.divf %30, %31 : vector<1x384xf32>
    %33 = vector.extract_strided_slice %26 {offsets = [0, 384], sizes = [1, 128], strides = [1, 1]} : vector<1x512xf32> to vector<1x128xf32>
    %34 = math.tanh %33 : vector<1x128xf32>
    %35 = vector.extract_strided_slice %32 {offsets = [0, 0], sizes = [1, 64], strides = [1, 1]} : vector<1x384xf32> to vector<1x64xf32>
    %36 = vector.extract_strided_slice %32 {offsets = [0, 64], sizes = [1, 64], strides = [1, 1]} : vector<1x384xf32> to vector<1x64xf32>
    %37 = vector.extract_strided_slice %32 {offsets = [0, 128], sizes = [1, 64], strides = [1, 1]} : vector<1x384xf32> to vector<1x64xf32>
    %38 = vector.extract_strided_slice %32 {offsets = [0, 192], sizes = [1, 64], strides = [1, 1]} : vector<1x384xf32> to vector<1x64xf32>
    %39 = vector.extract_strided_slice %32 {offsets = [0, 256], sizes = [1, 64], strides = [1, 1]} : vector<1x384xf32> to vector<1x64xf32>
    %40 = vector.extract_strided_slice %32 {offsets = [0, 320], sizes = [1, 64], strides = [1, 1]} : vector<1x384xf32> to vector<1x64xf32>
    %41 = vector.extract_strided_slice %34 {offsets = [0, 0], sizes = [1, 64], strides = [1, 1]} : vector<1x128xf32> to vector<1x64xf32>
    %42 = vector.extract_strided_slice %34 {offsets = [0, 64], sizes = [1, 64], strides = [1, 1]} : vector<1x128xf32> to vector<1x64xf32>
    %43 = arith.mulf %36, %19 : vector<1x64xf32>
    %44 = arith.mulf %35, %41 : vector<1x64xf32>
    %45 = arith.addf %43, %44 : vector<1x64xf32>
    %46 = arith.mulf %39, %20 : vector<1x64xf32>
    %47 = arith.mulf %38, %42 : vector<1x64xf32>
    %48 = arith.addf %46, %47 : vector<1x64xf32>
    %49 = math.tanh %45 : vector<1x64xf32>
    %50 = arith.mulf %37, %49 : vector<1x64xf32>
    %51 = math.tanh %48 : vector<1x64xf32>
    %52 = arith.mulf %40, %51 : vector<1x64xf32>
    %53 = tpu.concatenate %50, %52 in 1 : vector<1x64xf32>, vector<1x64xf32> -> vector<1x128xf32>
    %54 = vector.extract_strided_slice %16 {offsets = [1, 0], sizes = [1, 512], strides = [1, 1]} : vector<8x512xf32> to vector<1x512xf32>
    %55 = vector.extract_strided_slice %16 {offsets = [6, 0], sizes = [1, 512], strides = [1, 1]} : vector<8x512xf32> to vector<1x512xf32>
    %56 = arith.select %10, %54, %55 : vector<1x512xi1>, vector<1x512xf32>
    %57 = arith.truncf %53 : vector<1x128xf32> to vector<1x128xbf16>
    %cst_13 = arith.constant dense<0.000000e+00> : vector<1x512xf32>
    %58 = tpu.matmul %57, %17, %cst_13 {dimension_numbers = #tpu.dot_dimension_numbers<[1], [0], [0], [1], [0, 0, 1, 1], [], []>} : vector<1x128xbf16>, vector<128x512xbf16>, vector<1x512xf32> -> vector<1x512xf32>
    %59 = arith.addf %56, %58 : vector<1x512xf32>
    %60 = vector.extract_strided_slice %59 {offsets = [0, 0], sizes = [1, 384], strides = [1, 1]} : vector<1x512xf32> to vector<1x384xf32>
    %61 = arith.negf %60 : vector<1x384xf32>
    %62 = math.exp %61 : vector<1x384xf32>
    %cst_14 = arith.constant 1.000000e+00 : f32
    %63 = vector.broadcast %cst_14 : f32 to vector<1x384xf32>
    %64 = arith.addf %63, %62 : vector<1x384xf32>
    %65 = arith.divf %63, %64 : vector<1x384xf32>
    %66 = vector.extract_strided_slice %59 {offsets = [0, 384], sizes = [1, 128], strides = [1, 1]} : vector<1x512xf32> to vector<1x128xf32>
    %67 = math.tanh %66 : vector<1x128xf32>
    %68 = vector.extract_strided_slice %65 {offsets = [0, 0], sizes = [1, 64], strides = [1, 1]} : vector<1x384xf32> to vector<1x64xf32>
    %69 = vector.extract_strided_slice %65 {offsets = [0, 64], sizes = [1, 64], strides = [1, 1]} : vector<1x384xf32> to vector<1x64xf32>
    %70 = vector.extract_strided_slice %65 {offsets = [0, 128], sizes = [1, 64], strides = [1, 1]} : vector<1x384xf32> to vector<1x64xf32>
    %71 = vector.extract_strided_slice %65 {offsets = [0, 192], sizes = [1, 64], strides = [1, 1]} : vector<1x384xf32> to vector<1x64xf32>
    %72 = vector.extract_strided_slice %65 {offsets = [0, 256], sizes = [1, 64], strides = [1, 1]} : vector<1x384xf32> to vector<1x64xf32>
    %73 = vector.extract_strided_slice %65 {offsets = [0, 320], sizes = [1, 64], strides = [1, 1]} : vector<1x384xf32> to vector<1x64xf32>
    %74 = vector.extract_strided_slice %67 {offsets = [0, 0], sizes = [1, 64], strides = [1, 1]} : vector<1x128xf32> to vector<1x64xf32>
    %75 = vector.extract_strided_slice %67 {offsets = [0, 64], sizes = [1, 64], strides = [1, 1]} : vector<1x128xf32> to vector<1x64xf32>
    %76 = arith.mulf %69, %45 : vector<1x64xf32>
    %77 = arith.mulf %68, %74 : vector<1x64xf32>
    %78 = arith.addf %76, %77 : vector<1x64xf32>
    %79 = arith.mulf %72, %48 : vector<1x64xf32>
    %80 = arith.mulf %71, %75 : vector<1x64xf32>
    %81 = arith.addf %79, %80 : vector<1x64xf32>
    %82 = math.tanh %78 : vector<1x64xf32>
    %83 = arith.mulf %70, %82 : vector<1x64xf32>
    %84 = math.tanh %81 : vector<1x64xf32>
    %85 = arith.mulf %73, %84 : vector<1x64xf32>
    %86 = tpu.concatenate %83, %85 in 1 : vector<1x64xf32>, vector<1x64xf32> -> vector<1x128xf32>
    %87 = vector.extract_strided_slice %16 {offsets = [2, 0], sizes = [1, 512], strides = [1, 1]} : vector<8x512xf32> to vector<1x512xf32>
    %88 = vector.extract_strided_slice %16 {offsets = [5, 0], sizes = [1, 512], strides = [1, 1]} : vector<8x512xf32> to vector<1x512xf32>
    %89 = arith.select %10, %87, %88 : vector<1x512xi1>, vector<1x512xf32>
    %90 = arith.truncf %86 : vector<1x128xf32> to vector<1x128xbf16>
    %cst_15 = arith.constant dense<0.000000e+00> : vector<1x512xf32>
    %91 = tpu.matmul %90, %17, %cst_15 {dimension_numbers = #tpu.dot_dimension_numbers<[1], [0], [0], [1], [0, 0, 1, 1], [], []>} : vector<1x128xbf16>, vector<128x512xbf16>, vector<1x512xf32> -> vector<1x512xf32>
    %92 = arith.addf %89, %91 : vector<1x512xf32>
    %93 = vector.extract_strided_slice %92 {offsets = [0, 0], sizes = [1, 384], strides = [1, 1]} : vector<1x512xf32> to vector<1x384xf32>
    %94 = arith.negf %93 : vector<1x384xf32>
    %95 = math.exp %94 : vector<1x384xf32>
    %cst_16 = arith.constant 1.000000e+00 : f32
    %96 = vector.broadcast %cst_16 : f32 to vector<1x384xf32>
    %97 = arith.addf %96, %95 : vector<1x384xf32>
    %98 = arith.divf %96, %97 : vector<1x384xf32>
    %99 = vector.extract_strided_slice %92 {offsets = [0, 384], sizes = [1, 128], strides = [1, 1]} : vector<1x512xf32> to vector<1x128xf32>
    %100 = math.tanh %99 : vector<1x128xf32>
    %101 = vector.extract_strided_slice %98 {offsets = [0, 0], sizes = [1, 64], strides = [1, 1]} : vector<1x384xf32> to vector<1x64xf32>
    %102 = vector.extract_strided_slice %98 {offsets = [0, 64], sizes = [1, 64], strides = [1, 1]} : vector<1x384xf32> to vector<1x64xf32>
    %103 = vector.extract_strided_slice %98 {offsets = [0, 128], sizes = [1, 64], strides = [1, 1]} : vector<1x384xf32> to vector<1x64xf32>
    %104 = vector.extract_strided_slice %98 {offsets = [0, 192], sizes = [1, 64], strides = [1, 1]} : vector<1x384xf32> to vector<1x64xf32>
    %105 = vector.extract_strided_slice %98 {offsets = [0, 256], sizes = [1, 64], strides = [1, 1]} : vector<1x384xf32> to vector<1x64xf32>
    %106 = vector.extract_strided_slice %98 {offsets = [0, 320], sizes = [1, 64], strides = [1, 1]} : vector<1x384xf32> to vector<1x64xf32>
    %107 = vector.extract_strided_slice %100 {offsets = [0, 0], sizes = [1, 64], strides = [1, 1]} : vector<1x128xf32> to vector<1x64xf32>
    %108 = vector.extract_strided_slice %100 {offsets = [0, 64], sizes = [1, 64], strides = [1, 1]} : vector<1x128xf32> to vector<1x64xf32>
    %109 = arith.mulf %102, %78 : vector<1x64xf32>
    %110 = arith.mulf %101, %107 : vector<1x64xf32>
    %111 = arith.addf %109, %110 : vector<1x64xf32>
    %112 = arith.mulf %105, %81 : vector<1x64xf32>
    %113 = arith.mulf %104, %108 : vector<1x64xf32>
    %114 = arith.addf %112, %113 : vector<1x64xf32>
    %115 = math.tanh %111 : vector<1x64xf32>
    %116 = arith.mulf %103, %115 : vector<1x64xf32>
    %117 = math.tanh %114 : vector<1x64xf32>
    %118 = arith.mulf %106, %117 : vector<1x64xf32>
    %119 = tpu.concatenate %116, %118 in 1 : vector<1x64xf32>, vector<1x64xf32> -> vector<1x128xf32>
    %120 = vector.extract_strided_slice %16 {offsets = [3, 0], sizes = [1, 512], strides = [1, 1]} : vector<8x512xf32> to vector<1x512xf32>
    %121 = vector.extract_strided_slice %16 {offsets = [4, 0], sizes = [1, 512], strides = [1, 1]} : vector<8x512xf32> to vector<1x512xf32>
    %122 = arith.select %10, %120, %121 : vector<1x512xi1>, vector<1x512xf32>
    %123 = arith.truncf %119 : vector<1x128xf32> to vector<1x128xbf16>
    %cst_17 = arith.constant dense<0.000000e+00> : vector<1x512xf32>
    %124 = tpu.matmul %123, %17, %cst_17 {dimension_numbers = #tpu.dot_dimension_numbers<[1], [0], [0], [1], [0, 0, 1, 1], [], []>} : vector<1x128xbf16>, vector<128x512xbf16>, vector<1x512xf32> -> vector<1x512xf32>
    %125 = arith.addf %122, %124 : vector<1x512xf32>
    %126 = vector.extract_strided_slice %125 {offsets = [0, 0], sizes = [1, 384], strides = [1, 1]} : vector<1x512xf32> to vector<1x384xf32>
    %127 = arith.negf %126 : vector<1x384xf32>
    %128 = math.exp %127 : vector<1x384xf32>
    %cst_18 = arith.constant 1.000000e+00 : f32
    %129 = vector.broadcast %cst_18 : f32 to vector<1x384xf32>
    %130 = arith.addf %129, %128 : vector<1x384xf32>
    %131 = arith.divf %129, %130 : vector<1x384xf32>
    %132 = vector.extract_strided_slice %125 {offsets = [0, 384], sizes = [1, 128], strides = [1, 1]} : vector<1x512xf32> to vector<1x128xf32>
    %133 = math.tanh %132 : vector<1x128xf32>
    %134 = vector.extract_strided_slice %131 {offsets = [0, 0], sizes = [1, 64], strides = [1, 1]} : vector<1x384xf32> to vector<1x64xf32>
    %135 = vector.extract_strided_slice %131 {offsets = [0, 64], sizes = [1, 64], strides = [1, 1]} : vector<1x384xf32> to vector<1x64xf32>
    %136 = vector.extract_strided_slice %131 {offsets = [0, 128], sizes = [1, 64], strides = [1, 1]} : vector<1x384xf32> to vector<1x64xf32>
    %137 = vector.extract_strided_slice %131 {offsets = [0, 192], sizes = [1, 64], strides = [1, 1]} : vector<1x384xf32> to vector<1x64xf32>
    %138 = vector.extract_strided_slice %131 {offsets = [0, 256], sizes = [1, 64], strides = [1, 1]} : vector<1x384xf32> to vector<1x64xf32>
    %139 = vector.extract_strided_slice %131 {offsets = [0, 320], sizes = [1, 64], strides = [1, 1]} : vector<1x384xf32> to vector<1x64xf32>
    %140 = vector.extract_strided_slice %133 {offsets = [0, 0], sizes = [1, 64], strides = [1, 1]} : vector<1x128xf32> to vector<1x64xf32>
    %141 = vector.extract_strided_slice %133 {offsets = [0, 64], sizes = [1, 64], strides = [1, 1]} : vector<1x128xf32> to vector<1x64xf32>
    %142 = arith.mulf %135, %111 : vector<1x64xf32>
    %143 = arith.mulf %134, %140 : vector<1x64xf32>
    %144 = arith.addf %142, %143 : vector<1x64xf32>
    %145 = arith.mulf %138, %114 : vector<1x64xf32>
    %146 = arith.mulf %137, %141 : vector<1x64xf32>
    %147 = arith.addf %145, %146 : vector<1x64xf32>
    %148 = math.tanh %144 : vector<1x64xf32>
    %149 = arith.mulf %136, %148 : vector<1x64xf32>
    %150 = math.tanh %147 : vector<1x64xf32>
    %151 = arith.mulf %139, %150 : vector<1x64xf32>
    %152 = tpu.concatenate %149, %151 in 1 : vector<1x64xf32>, vector<1x64xf32> -> vector<1x128xf32>
    %153 = vector.extract_strided_slice %16 {offsets = [4, 0], sizes = [1, 512], strides = [1, 1]} : vector<8x512xf32> to vector<1x512xf32>
    %154 = vector.extract_strided_slice %16 {offsets = [3, 0], sizes = [1, 512], strides = [1, 1]} : vector<8x512xf32> to vector<1x512xf32>
    %155 = arith.select %10, %153, %154 : vector<1x512xi1>, vector<1x512xf32>
    %156 = arith.truncf %152 : vector<1x128xf32> to vector<1x128xbf16>
    %cst_19 = arith.constant dense<0.000000e+00> : vector<1x512xf32>
    %157 = tpu.matmul %156, %17, %cst_19 {dimension_numbers = #tpu.dot_dimension_numbers<[1], [0], [0], [1], [0, 0, 1, 1], [], []>} : vector<1x128xbf16>, vector<128x512xbf16>, vector<1x512xf32> -> vector<1x512xf32>
    %158 = arith.addf %155, %157 : vector<1x512xf32>
    %159 = vector.extract_strided_slice %158 {offsets = [0, 0], sizes = [1, 384], strides = [1, 1]} : vector<1x512xf32> to vector<1x384xf32>
    %160 = arith.negf %159 : vector<1x384xf32>
    %161 = math.exp %160 : vector<1x384xf32>
    %cst_20 = arith.constant 1.000000e+00 : f32
    %162 = vector.broadcast %cst_20 : f32 to vector<1x384xf32>
    %163 = arith.addf %162, %161 : vector<1x384xf32>
    %164 = arith.divf %162, %163 : vector<1x384xf32>
    %165 = vector.extract_strided_slice %158 {offsets = [0, 384], sizes = [1, 128], strides = [1, 1]} : vector<1x512xf32> to vector<1x128xf32>
    %166 = math.tanh %165 : vector<1x128xf32>
    %167 = vector.extract_strided_slice %164 {offsets = [0, 0], sizes = [1, 64], strides = [1, 1]} : vector<1x384xf32> to vector<1x64xf32>
    %168 = vector.extract_strided_slice %164 {offsets = [0, 64], sizes = [1, 64], strides = [1, 1]} : vector<1x384xf32> to vector<1x64xf32>
    %169 = vector.extract_strided_slice %164 {offsets = [0, 128], sizes = [1, 64], strides = [1, 1]} : vector<1x384xf32> to vector<1x64xf32>
    %170 = vector.extract_strided_slice %164 {offsets = [0, 192], sizes = [1, 64], strides = [1, 1]} : vector<1x384xf32> to vector<1x64xf32>
    %171 = vector.extract_strided_slice %164 {offsets = [0, 256], sizes = [1, 64], strides = [1, 1]} : vector<1x384xf32> to vector<1x64xf32>
    %172 = vector.extract_strided_slice %164 {offsets = [0, 320], sizes = [1, 64], strides = [1, 1]} : vector<1x384xf32> to vector<1x64xf32>
    %173 = vector.extract_strided_slice %166 {offsets = [0, 0], sizes = [1, 64], strides = [1, 1]} : vector<1x128xf32> to vector<1x64xf32>
    %174 = vector.extract_strided_slice %166 {offsets = [0, 64], sizes = [1, 64], strides = [1, 1]} : vector<1x128xf32> to vector<1x64xf32>
    %175 = arith.mulf %168, %144 : vector<1x64xf32>
    %176 = arith.mulf %167, %173 : vector<1x64xf32>
    %177 = arith.addf %175, %176 : vector<1x64xf32>
    %178 = arith.mulf %171, %147 : vector<1x64xf32>
    %179 = arith.mulf %170, %174 : vector<1x64xf32>
    %180 = arith.addf %178, %179 : vector<1x64xf32>
    %181 = math.tanh %177 : vector<1x64xf32>
    %182 = arith.mulf %169, %181 : vector<1x64xf32>
    %183 = math.tanh %180 : vector<1x64xf32>
    %184 = arith.mulf %172, %183 : vector<1x64xf32>
    %185 = tpu.concatenate %182, %184 in 1 : vector<1x64xf32>, vector<1x64xf32> -> vector<1x128xf32>
    %186 = vector.extract_strided_slice %16 {offsets = [5, 0], sizes = [1, 512], strides = [1, 1]} : vector<8x512xf32> to vector<1x512xf32>
    %187 = vector.extract_strided_slice %16 {offsets = [2, 0], sizes = [1, 512], strides = [1, 1]} : vector<8x512xf32> to vector<1x512xf32>
    %188 = arith.select %10, %186, %187 : vector<1x512xi1>, vector<1x512xf32>
    %189 = arith.truncf %185 : vector<1x128xf32> to vector<1x128xbf16>
    %cst_21 = arith.constant dense<0.000000e+00> : vector<1x512xf32>
    %190 = tpu.matmul %189, %17, %cst_21 {dimension_numbers = #tpu.dot_dimension_numbers<[1], [0], [0], [1], [0, 0, 1, 1], [], []>} : vector<1x128xbf16>, vector<128x512xbf16>, vector<1x512xf32> -> vector<1x512xf32>
    %191 = arith.addf %188, %190 : vector<1x512xf32>
    %192 = vector.extract_strided_slice %191 {offsets = [0, 0], sizes = [1, 384], strides = [1, 1]} : vector<1x512xf32> to vector<1x384xf32>
    %193 = arith.negf %192 : vector<1x384xf32>
    %194 = math.exp %193 : vector<1x384xf32>
    %cst_22 = arith.constant 1.000000e+00 : f32
    %195 = vector.broadcast %cst_22 : f32 to vector<1x384xf32>
    %196 = arith.addf %195, %194 : vector<1x384xf32>
    %197 = arith.divf %195, %196 : vector<1x384xf32>
    %198 = vector.extract_strided_slice %191 {offsets = [0, 384], sizes = [1, 128], strides = [1, 1]} : vector<1x512xf32> to vector<1x128xf32>
    %199 = math.tanh %198 : vector<1x128xf32>
    %200 = vector.extract_strided_slice %197 {offsets = [0, 0], sizes = [1, 64], strides = [1, 1]} : vector<1x384xf32> to vector<1x64xf32>
    %201 = vector.extract_strided_slice %197 {offsets = [0, 64], sizes = [1, 64], strides = [1, 1]} : vector<1x384xf32> to vector<1x64xf32>
    %202 = vector.extract_strided_slice %197 {offsets = [0, 128], sizes = [1, 64], strides = [1, 1]} : vector<1x384xf32> to vector<1x64xf32>
    %203 = vector.extract_strided_slice %197 {offsets = [0, 192], sizes = [1, 64], strides = [1, 1]} : vector<1x384xf32> to vector<1x64xf32>
    %204 = vector.extract_strided_slice %197 {offsets = [0, 256], sizes = [1, 64], strides = [1, 1]} : vector<1x384xf32> to vector<1x64xf32>
    %205 = vector.extract_strided_slice %197 {offsets = [0, 320], sizes = [1, 64], strides = [1, 1]} : vector<1x384xf32> to vector<1x64xf32>
    %206 = vector.extract_strided_slice %199 {offsets = [0, 0], sizes = [1, 64], strides = [1, 1]} : vector<1x128xf32> to vector<1x64xf32>
    %207 = vector.extract_strided_slice %199 {offsets = [0, 64], sizes = [1, 64], strides = [1, 1]} : vector<1x128xf32> to vector<1x64xf32>
    %208 = arith.mulf %201, %177 : vector<1x64xf32>
    %209 = arith.mulf %200, %206 : vector<1x64xf32>
    %210 = arith.addf %208, %209 : vector<1x64xf32>
    %211 = arith.mulf %204, %180 : vector<1x64xf32>
    %212 = arith.mulf %203, %207 : vector<1x64xf32>
    %213 = arith.addf %211, %212 : vector<1x64xf32>
    %214 = math.tanh %210 : vector<1x64xf32>
    %215 = arith.mulf %202, %214 : vector<1x64xf32>
    %216 = math.tanh %213 : vector<1x64xf32>
    %217 = arith.mulf %205, %216 : vector<1x64xf32>
    %218 = tpu.concatenate %215, %217 in 1 : vector<1x64xf32>, vector<1x64xf32> -> vector<1x128xf32>
    %219 = vector.extract_strided_slice %16 {offsets = [6, 0], sizes = [1, 512], strides = [1, 1]} : vector<8x512xf32> to vector<1x512xf32>
    %220 = vector.extract_strided_slice %16 {offsets = [1, 0], sizes = [1, 512], strides = [1, 1]} : vector<8x512xf32> to vector<1x512xf32>
    %221 = arith.select %10, %219, %220 : vector<1x512xi1>, vector<1x512xf32>
    %222 = arith.truncf %218 : vector<1x128xf32> to vector<1x128xbf16>
    %cst_23 = arith.constant dense<0.000000e+00> : vector<1x512xf32>
    %223 = tpu.matmul %222, %17, %cst_23 {dimension_numbers = #tpu.dot_dimension_numbers<[1], [0], [0], [1], [0, 0, 1, 1], [], []>} : vector<1x128xbf16>, vector<128x512xbf16>, vector<1x512xf32> -> vector<1x512xf32>
    %224 = arith.addf %221, %223 : vector<1x512xf32>
    %225 = vector.extract_strided_slice %224 {offsets = [0, 0], sizes = [1, 384], strides = [1, 1]} : vector<1x512xf32> to vector<1x384xf32>
    %226 = arith.negf %225 : vector<1x384xf32>
    %227 = math.exp %226 : vector<1x384xf32>
    %cst_24 = arith.constant 1.000000e+00 : f32
    %228 = vector.broadcast %cst_24 : f32 to vector<1x384xf32>
    %229 = arith.addf %228, %227 : vector<1x384xf32>
    %230 = arith.divf %228, %229 : vector<1x384xf32>
    %231 = vector.extract_strided_slice %224 {offsets = [0, 384], sizes = [1, 128], strides = [1, 1]} : vector<1x512xf32> to vector<1x128xf32>
    %232 = math.tanh %231 : vector<1x128xf32>
    %233 = vector.extract_strided_slice %230 {offsets = [0, 0], sizes = [1, 64], strides = [1, 1]} : vector<1x384xf32> to vector<1x64xf32>
    %234 = vector.extract_strided_slice %230 {offsets = [0, 64], sizes = [1, 64], strides = [1, 1]} : vector<1x384xf32> to vector<1x64xf32>
    %235 = vector.extract_strided_slice %230 {offsets = [0, 128], sizes = [1, 64], strides = [1, 1]} : vector<1x384xf32> to vector<1x64xf32>
    %236 = vector.extract_strided_slice %230 {offsets = [0, 192], sizes = [1, 64], strides = [1, 1]} : vector<1x384xf32> to vector<1x64xf32>
    %237 = vector.extract_strided_slice %230 {offsets = [0, 256], sizes = [1, 64], strides = [1, 1]} : vector<1x384xf32> to vector<1x64xf32>
    %238 = vector.extract_strided_slice %230 {offsets = [0, 320], sizes = [1, 64], strides = [1, 1]} : vector<1x384xf32> to vector<1x64xf32>
    %239 = vector.extract_strided_slice %232 {offsets = [0, 0], sizes = [1, 64], strides = [1, 1]} : vector<1x128xf32> to vector<1x64xf32>
    %240 = vector.extract_strided_slice %232 {offsets = [0, 64], sizes = [1, 64], strides = [1, 1]} : vector<1x128xf32> to vector<1x64xf32>
    %241 = arith.mulf %234, %210 : vector<1x64xf32>
    %242 = arith.mulf %233, %239 : vector<1x64xf32>
    %243 = arith.addf %241, %242 : vector<1x64xf32>
    %244 = arith.mulf %237, %213 : vector<1x64xf32>
    %245 = arith.mulf %236, %240 : vector<1x64xf32>
    %246 = arith.addf %244, %245 : vector<1x64xf32>
    %247 = math.tanh %243 : vector<1x64xf32>
    %248 = arith.mulf %235, %247 : vector<1x64xf32>
    %249 = math.tanh %246 : vector<1x64xf32>
    %250 = arith.mulf %238, %249 : vector<1x64xf32>
    %251 = tpu.concatenate %248, %250 in 1 : vector<1x64xf32>, vector<1x64xf32> -> vector<1x128xf32>
    %252 = vector.extract_strided_slice %16 {offsets = [7, 0], sizes = [1, 512], strides = [1, 1]} : vector<8x512xf32> to vector<1x512xf32>
    %253 = vector.extract_strided_slice %16 {offsets = [0, 0], sizes = [1, 512], strides = [1, 1]} : vector<8x512xf32> to vector<1x512xf32>
    %254 = arith.select %10, %252, %253 : vector<1x512xi1>, vector<1x512xf32>
    %255 = arith.truncf %251 : vector<1x128xf32> to vector<1x128xbf16>
    %cst_25 = arith.constant dense<0.000000e+00> : vector<1x512xf32>
    %256 = tpu.matmul %255, %17, %cst_25 {dimension_numbers = #tpu.dot_dimension_numbers<[1], [0], [0], [1], [0, 0, 1, 1], [], []>} : vector<1x128xbf16>, vector<128x512xbf16>, vector<1x512xf32> -> vector<1x512xf32>
    %257 = arith.addf %254, %256 : vector<1x512xf32>
    %258 = vector.extract_strided_slice %257 {offsets = [0, 0], sizes = [1, 384], strides = [1, 1]} : vector<1x512xf32> to vector<1x384xf32>
    %259 = arith.negf %258 : vector<1x384xf32>
    %260 = math.exp %259 : vector<1x384xf32>
    %cst_26 = arith.constant 1.000000e+00 : f32
    %261 = vector.broadcast %cst_26 : f32 to vector<1x384xf32>
    %262 = arith.addf %261, %260 : vector<1x384xf32>
    %263 = arith.divf %261, %262 : vector<1x384xf32>
    %264 = vector.extract_strided_slice %257 {offsets = [0, 384], sizes = [1, 128], strides = [1, 1]} : vector<1x512xf32> to vector<1x128xf32>
    %265 = math.tanh %264 : vector<1x128xf32>
    %266 = vector.extract_strided_slice %263 {offsets = [0, 0], sizes = [1, 64], strides = [1, 1]} : vector<1x384xf32> to vector<1x64xf32>
    %267 = vector.extract_strided_slice %263 {offsets = [0, 64], sizes = [1, 64], strides = [1, 1]} : vector<1x384xf32> to vector<1x64xf32>
    %268 = vector.extract_strided_slice %263 {offsets = [0, 128], sizes = [1, 64], strides = [1, 1]} : vector<1x384xf32> to vector<1x64xf32>
    %269 = vector.extract_strided_slice %263 {offsets = [0, 192], sizes = [1, 64], strides = [1, 1]} : vector<1x384xf32> to vector<1x64xf32>
    %270 = vector.extract_strided_slice %263 {offsets = [0, 256], sizes = [1, 64], strides = [1, 1]} : vector<1x384xf32> to vector<1x64xf32>
    %271 = vector.extract_strided_slice %263 {offsets = [0, 320], sizes = [1, 64], strides = [1, 1]} : vector<1x384xf32> to vector<1x64xf32>
    %272 = vector.extract_strided_slice %265 {offsets = [0, 0], sizes = [1, 64], strides = [1, 1]} : vector<1x128xf32> to vector<1x64xf32>
    %273 = vector.extract_strided_slice %265 {offsets = [0, 64], sizes = [1, 64], strides = [1, 1]} : vector<1x128xf32> to vector<1x64xf32>
    %274 = arith.mulf %267, %243 : vector<1x64xf32>
    %275 = arith.mulf %266, %272 : vector<1x64xf32>
    %276 = arith.addf %274, %275 : vector<1x64xf32>
    %277 = arith.mulf %270, %246 : vector<1x64xf32>
    %278 = arith.mulf %269, %273 : vector<1x64xf32>
    %279 = arith.addf %277, %278 : vector<1x64xf32>
    %280 = math.tanh %276 : vector<1x64xf32>
    %281 = arith.mulf %268, %280 : vector<1x64xf32>
    %282 = math.tanh %279 : vector<1x64xf32>
    %283 = arith.mulf %271, %282 : vector<1x64xf32>
    %284 = tpu.concatenate %50, %83, %116, %149, %182, %215, %248, %281 in 0 : vector<1x64xf32>, vector<1x64xf32>, vector<1x64xf32>, vector<1x64xf32>, vector<1x64xf32>, vector<1x64xf32>, vector<1x64xf32>, vector<1x64xf32> -> vector<8x64xf32>
    %285 = tpu.concatenate %283, %250, %217, %184, %151, %118, %85, %52 in 0 : vector<1x64xf32>, vector<1x64xf32>, vector<1x64xf32>, vector<1x64xf32>, vector<1x64xf32>, vector<1x64xf32>, vector<1x64xf32>, vector<1x64xf32> -> vector<8x64xf32>
    %286 = tpu.concatenate %284, %285 in 1 : vector<8x64xf32>, vector<8x64xf32> -> vector<8x128xf32>
    %287 = tpu.concatenate %281, %276 in 1 : vector<1x64xf32>, vector<1x64xf32> -> vector<1x128xf32>
    %288 = tpu.concatenate %283, %279 in 1 : vector<1x64xf32>, vector<1x64xf32> -> vector<1x128xf32>
    %289 = arith.truncf %286 : vector<8x128xf32> to vector<8x128xbf16>
    %c0_27 = arith.constant 0 : index
    %c0_28 = arith.constant 0 : index
    %290 = vector.load %arg5[%c0_27, %c0_28] : memref<128x512xbf16, #tpu.memory_space<vmem>>, vector<128x512xbf16>
    %cst_29 = arith.constant dense<0.000000e+00> : vector<8x512xf32>
    %291 = tpu.matmul %289, %290, %cst_29 {dimension_numbers = #tpu.dot_dimension_numbers<[1], [0], [0], [1], [0, 0, 1, 1], [], []>} : vector<8x128xbf16>, vector<128x512xbf16>, vector<8x512xf32> -> vector<8x512xf32>
    %c0_30 = arith.constant 0 : index
    %c0_31 = arith.constant 0 : index
    %292 = vector.load %arg7[%c0_30, %c0_31] : memref<1x512xf32, #tpu.memory_space<vmem>>, vector<1x512xf32>
    %293 = vector.broadcast %292 : vector<1x512xf32> to vector<8x512xf32>
    %294 = arith.addf %291, %293 : vector<8x512xf32>
    %c0_32 = arith.constant 0 : index
    %c0_33 = arith.constant 0 : index
    %295 = vector.load %arg6[%c0_32, %c0_33] : memref<128x512xbf16, #tpu.memory_space<vmem>>, vector<128x512xbf16>
    %cst_34 = arith.constant 0.000000e+00 : f32
    %296 = vector.broadcast %cst_34 : f32 to vector<1x128xf32>
    %cst_35 = arith.constant 0.000000e+00 : f32
    %297 = vector.broadcast %cst_35 : f32 to vector<1x64xf32>
    %cst_36 = arith.constant 0.000000e+00 : f32
    %298 = vector.broadcast %cst_36 : f32 to vector<1x64xf32>
    %299 = vector.extract_strided_slice %294 {offsets = [0, 0], sizes = [1, 512], strides = [1, 1]} : vector<8x512xf32> to vector<1x512xf32>
    %300 = vector.extract_strided_slice %294 {offsets = [7, 0], sizes = [1, 512], strides = [1, 1]} : vector<8x512xf32> to vector<1x512xf32>
    %301 = arith.select %10, %299, %300 : vector<1x512xi1>, vector<1x512xf32>
    %302 = arith.truncf %296 : vector<1x128xf32> to vector<1x128xbf16>
    %cst_37 = arith.constant dense<0.000000e+00> : vector<1x512xf32>
    %303 = tpu.matmul %302, %295, %cst_37 {dimension_numbers = #tpu.dot_dimension_numbers<[1], [0], [0], [1], [0, 0, 1, 1], [], []>} : vector<1x128xbf16>, vector<128x512xbf16>, vector<1x512xf32> -> vector<1x512xf32>
    %304 = arith.addf %301, %303 : vector<1x512xf32>
    %305 = vector.extract_strided_slice %304 {offsets = [0, 0], sizes = [1, 384], strides = [1, 1]} : vector<1x512xf32> to vector<1x384xf32>
    %306 = arith.negf %305 : vector<1x384xf32>
    %307 = math.exp %306 : vector<1x384xf32>
    %cst_38 = arith.constant 1.000000e+00 : f32
    %308 = vector.broadcast %cst_38 : f32 to vector<1x384xf32>
    %309 = arith.addf %308, %307 : vector<1x384xf32>
    %310 = arith.divf %308, %309 : vector<1x384xf32>
    %311 = vector.extract_strided_slice %304 {offsets = [0, 384], sizes = [1, 128], strides = [1, 1]} : vector<1x512xf32> to vector<1x128xf32>
    %312 = math.tanh %311 : vector<1x128xf32>
    %313 = vector.extract_strided_slice %310 {offsets = [0, 0], sizes = [1, 64], strides = [1, 1]} : vector<1x384xf32> to vector<1x64xf32>
    %314 = vector.extract_strided_slice %310 {offsets = [0, 64], sizes = [1, 64], strides = [1, 1]} : vector<1x384xf32> to vector<1x64xf32>
    %315 = vector.extract_strided_slice %310 {offsets = [0, 128], sizes = [1, 64], strides = [1, 1]} : vector<1x384xf32> to vector<1x64xf32>
    %316 = vector.extract_strided_slice %310 {offsets = [0, 192], sizes = [1, 64], strides = [1, 1]} : vector<1x384xf32> to vector<1x64xf32>
    %317 = vector.extract_strided_slice %310 {offsets = [0, 256], sizes = [1, 64], strides = [1, 1]} : vector<1x384xf32> to vector<1x64xf32>
    %318 = vector.extract_strided_slice %310 {offsets = [0, 320], sizes = [1, 64], strides = [1, 1]} : vector<1x384xf32> to vector<1x64xf32>
    %319 = vector.extract_strided_slice %312 {offsets = [0, 0], sizes = [1, 64], strides = [1, 1]} : vector<1x128xf32> to vector<1x64xf32>
    %320 = vector.extract_strided_slice %312 {offsets = [0, 64], sizes = [1, 64], strides = [1, 1]} : vector<1x128xf32> to vector<1x64xf32>
    %321 = arith.mulf %314, %297 : vector<1x64xf32>
    %322 = arith.mulf %313, %319 : vector<1x64xf32>
    %323 = arith.addf %321, %322 : vector<1x64xf32>
    %324 = arith.mulf %317, %298 : vector<1x64xf32>
    %325 = arith.mulf %316, %320 : vector<1x64xf32>
    %326 = arith.addf %324, %325 : vector<1x64xf32>
    %327 = math.tanh %323 : vector<1x64xf32>
    %328 = arith.mulf %315, %327 : vector<1x64xf32>
    %329 = math.tanh %326 : vector<1x64xf32>
    %330 = arith.mulf %318, %329 : vector<1x64xf32>
    %331 = tpu.concatenate %328, %330 in 1 : vector<1x64xf32>, vector<1x64xf32> -> vector<1x128xf32>
    %332 = vector.extract_strided_slice %294 {offsets = [1, 0], sizes = [1, 512], strides = [1, 1]} : vector<8x512xf32> to vector<1x512xf32>
    %333 = vector.extract_strided_slice %294 {offsets = [6, 0], sizes = [1, 512], strides = [1, 1]} : vector<8x512xf32> to vector<1x512xf32>
    %334 = arith.select %10, %332, %333 : vector<1x512xi1>, vector<1x512xf32>
    %335 = arith.truncf %331 : vector<1x128xf32> to vector<1x128xbf16>
    %cst_39 = arith.constant dense<0.000000e+00> : vector<1x512xf32>
    %336 = tpu.matmul %335, %295, %cst_39 {dimension_numbers = #tpu.dot_dimension_numbers<[1], [0], [0], [1], [0, 0, 1, 1], [], []>} : vector<1x128xbf16>, vector<128x512xbf16>, vector<1x512xf32> -> vector<1x512xf32>
    %337 = arith.addf %334, %336 : vector<1x512xf32>
    %338 = vector.extract_strided_slice %337 {offsets = [0, 0], sizes = [1, 384], strides = [1, 1]} : vector<1x512xf32> to vector<1x384xf32>
    %339 = arith.negf %338 : vector<1x384xf32>
    %340 = math.exp %339 : vector<1x384xf32>
    %cst_40 = arith.constant 1.000000e+00 : f32
    %341 = vector.broadcast %cst_40 : f32 to vector<1x384xf32>
    %342 = arith.addf %341, %340 : vector<1x384xf32>
    %343 = arith.divf %341, %342 : vector<1x384xf32>
    %344 = vector.extract_strided_slice %337 {offsets = [0, 384], sizes = [1, 128], strides = [1, 1]} : vector<1x512xf32> to vector<1x128xf32>
    %345 = math.tanh %344 : vector<1x128xf32>
    %346 = vector.extract_strided_slice %343 {offsets = [0, 0], sizes = [1, 64], strides = [1, 1]} : vector<1x384xf32> to vector<1x64xf32>
    %347 = vector.extract_strided_slice %343 {offsets = [0, 64], sizes = [1, 64], strides = [1, 1]} : vector<1x384xf32> to vector<1x64xf32>
    %348 = vector.extract_strided_slice %343 {offsets = [0, 128], sizes = [1, 64], strides = [1, 1]} : vector<1x384xf32> to vector<1x64xf32>
    %349 = vector.extract_strided_slice %343 {offsets = [0, 192], sizes = [1, 64], strides = [1, 1]} : vector<1x384xf32> to vector<1x64xf32>
    %350 = vector.extract_strided_slice %343 {offsets = [0, 256], sizes = [1, 64], strides = [1, 1]} : vector<1x384xf32> to vector<1x64xf32>
    %351 = vector.extract_strided_slice %343 {offsets = [0, 320], sizes = [1, 64], strides = [1, 1]} : vector<1x384xf32> to vector<1x64xf32>
    %352 = vector.extract_strided_slice %345 {offsets = [0, 0], sizes = [1, 64], strides = [1, 1]} : vector<1x128xf32> to vector<1x64xf32>
    %353 = vector.extract_strided_slice %345 {offsets = [0, 64], sizes = [1, 64], strides = [1, 1]} : vector<1x128xf32> to vector<1x64xf32>
    %354 = arith.mulf %347, %323 : vector<1x64xf32>
    %355 = arith.mulf %346, %352 : vector<1x64xf32>
    %356 = arith.addf %354, %355 : vector<1x64xf32>
    %357 = arith.mulf %350, %326 : vector<1x64xf32>
    %358 = arith.mulf %349, %353 : vector<1x64xf32>
    %359 = arith.addf %357, %358 : vector<1x64xf32>
    %360 = math.tanh %356 : vector<1x64xf32>
    %361 = arith.mulf %348, %360 : vector<1x64xf32>
    %362 = math.tanh %359 : vector<1x64xf32>
    %363 = arith.mulf %351, %362 : vector<1x64xf32>
    %364 = tpu.concatenate %361, %363 in 1 : vector<1x64xf32>, vector<1x64xf32> -> vector<1x128xf32>
    %365 = vector.extract_strided_slice %294 {offsets = [2, 0], sizes = [1, 512], strides = [1, 1]} : vector<8x512xf32> to vector<1x512xf32>
    %366 = vector.extract_strided_slice %294 {offsets = [5, 0], sizes = [1, 512], strides = [1, 1]} : vector<8x512xf32> to vector<1x512xf32>
    %367 = arith.select %10, %365, %366 : vector<1x512xi1>, vector<1x512xf32>
    %368 = arith.truncf %364 : vector<1x128xf32> to vector<1x128xbf16>
    %cst_41 = arith.constant dense<0.000000e+00> : vector<1x512xf32>
    %369 = tpu.matmul %368, %295, %cst_41 {dimension_numbers = #tpu.dot_dimension_numbers<[1], [0], [0], [1], [0, 0, 1, 1], [], []>} : vector<1x128xbf16>, vector<128x512xbf16>, vector<1x512xf32> -> vector<1x512xf32>
    %370 = arith.addf %367, %369 : vector<1x512xf32>
    %371 = vector.extract_strided_slice %370 {offsets = [0, 0], sizes = [1, 384], strides = [1, 1]} : vector<1x512xf32> to vector<1x384xf32>
    %372 = arith.negf %371 : vector<1x384xf32>
    %373 = math.exp %372 : vector<1x384xf32>
    %cst_42 = arith.constant 1.000000e+00 : f32
    %374 = vector.broadcast %cst_42 : f32 to vector<1x384xf32>
    %375 = arith.addf %374, %373 : vector<1x384xf32>
    %376 = arith.divf %374, %375 : vector<1x384xf32>
    %377 = vector.extract_strided_slice %370 {offsets = [0, 384], sizes = [1, 128], strides = [1, 1]} : vector<1x512xf32> to vector<1x128xf32>
    %378 = math.tanh %377 : vector<1x128xf32>
    %379 = vector.extract_strided_slice %376 {offsets = [0, 0], sizes = [1, 64], strides = [1, 1]} : vector<1x384xf32> to vector<1x64xf32>
    %380 = vector.extract_strided_slice %376 {offsets = [0, 64], sizes = [1, 64], strides = [1, 1]} : vector<1x384xf32> to vector<1x64xf32>
    %381 = vector.extract_strided_slice %376 {offsets = [0, 128], sizes = [1, 64], strides = [1, 1]} : vector<1x384xf32> to vector<1x64xf32>
    %382 = vector.extract_strided_slice %376 {offsets = [0, 192], sizes = [1, 64], strides = [1, 1]} : vector<1x384xf32> to vector<1x64xf32>
    %383 = vector.extract_strided_slice %376 {offsets = [0, 256], sizes = [1, 64], strides = [1, 1]} : vector<1x384xf32> to vector<1x64xf32>
    %384 = vector.extract_strided_slice %376 {offsets = [0, 320], sizes = [1, 64], strides = [1, 1]} : vector<1x384xf32> to vector<1x64xf32>
    %385 = vector.extract_strided_slice %378 {offsets = [0, 0], sizes = [1, 64], strides = [1, 1]} : vector<1x128xf32> to vector<1x64xf32>
    %386 = vector.extract_strided_slice %378 {offsets = [0, 64], sizes = [1, 64], strides = [1, 1]} : vector<1x128xf32> to vector<1x64xf32>
    %387 = arith.mulf %380, %356 : vector<1x64xf32>
    %388 = arith.mulf %379, %385 : vector<1x64xf32>
    %389 = arith.addf %387, %388 : vector<1x64xf32>
    %390 = arith.mulf %383, %359 : vector<1x64xf32>
    %391 = arith.mulf %382, %386 : vector<1x64xf32>
    %392 = arith.addf %390, %391 : vector<1x64xf32>
    %393 = math.tanh %389 : vector<1x64xf32>
    %394 = arith.mulf %381, %393 : vector<1x64xf32>
    %395 = math.tanh %392 : vector<1x64xf32>
    %396 = arith.mulf %384, %395 : vector<1x64xf32>
    %397 = tpu.concatenate %394, %396 in 1 : vector<1x64xf32>, vector<1x64xf32> -> vector<1x128xf32>
    %398 = vector.extract_strided_slice %294 {offsets = [3, 0], sizes = [1, 512], strides = [1, 1]} : vector<8x512xf32> to vector<1x512xf32>
    %399 = vector.extract_strided_slice %294 {offsets = [4, 0], sizes = [1, 512], strides = [1, 1]} : vector<8x512xf32> to vector<1x512xf32>
    %400 = arith.select %10, %398, %399 : vector<1x512xi1>, vector<1x512xf32>
    %401 = arith.truncf %397 : vector<1x128xf32> to vector<1x128xbf16>
    %cst_43 = arith.constant dense<0.000000e+00> : vector<1x512xf32>
    %402 = tpu.matmul %401, %295, %cst_43 {dimension_numbers = #tpu.dot_dimension_numbers<[1], [0], [0], [1], [0, 0, 1, 1], [], []>} : vector<1x128xbf16>, vector<128x512xbf16>, vector<1x512xf32> -> vector<1x512xf32>
    %403 = arith.addf %400, %402 : vector<1x512xf32>
    %404 = vector.extract_strided_slice %403 {offsets = [0, 0], sizes = [1, 384], strides = [1, 1]} : vector<1x512xf32> to vector<1x384xf32>
    %405 = arith.negf %404 : vector<1x384xf32>
    %406 = math.exp %405 : vector<1x384xf32>
    %cst_44 = arith.constant 1.000000e+00 : f32
    %407 = vector.broadcast %cst_44 : f32 to vector<1x384xf32>
    %408 = arith.addf %407, %406 : vector<1x384xf32>
    %409 = arith.divf %407, %408 : vector<1x384xf32>
    %410 = vector.extract_strided_slice %403 {offsets = [0, 384], sizes = [1, 128], strides = [1, 1]} : vector<1x512xf32> to vector<1x128xf32>
    %411 = math.tanh %410 : vector<1x128xf32>
    %412 = vector.extract_strided_slice %409 {offsets = [0, 0], sizes = [1, 64], strides = [1, 1]} : vector<1x384xf32> to vector<1x64xf32>
    %413 = vector.extract_strided_slice %409 {offsets = [0, 64], sizes = [1, 64], strides = [1, 1]} : vector<1x384xf32> to vector<1x64xf32>
    %414 = vector.extract_strided_slice %409 {offsets = [0, 128], sizes = [1, 64], strides = [1, 1]} : vector<1x384xf32> to vector<1x64xf32>
    %415 = vector.extract_strided_slice %409 {offsets = [0, 192], sizes = [1, 64], strides = [1, 1]} : vector<1x384xf32> to vector<1x64xf32>
    %416 = vector.extract_strided_slice %409 {offsets = [0, 256], sizes = [1, 64], strides = [1, 1]} : vector<1x384xf32> to vector<1x64xf32>
    %417 = vector.extract_strided_slice %409 {offsets = [0, 320], sizes = [1, 64], strides = [1, 1]} : vector<1x384xf32> to vector<1x64xf32>
    %418 = vector.extract_strided_slice %411 {offsets = [0, 0], sizes = [1, 64], strides = [1, 1]} : vector<1x128xf32> to vector<1x64xf32>
    %419 = vector.extract_strided_slice %411 {offsets = [0, 64], sizes = [1, 64], strides = [1, 1]} : vector<1x128xf32> to vector<1x64xf32>
    %420 = arith.mulf %413, %389 : vector<1x64xf32>
    %421 = arith.mulf %412, %418 : vector<1x64xf32>
    %422 = arith.addf %420, %421 : vector<1x64xf32>
    %423 = arith.mulf %416, %392 : vector<1x64xf32>
    %424 = arith.mulf %415, %419 : vector<1x64xf32>
    %425 = arith.addf %423, %424 : vector<1x64xf32>
    %426 = math.tanh %422 : vector<1x64xf32>
    %427 = arith.mulf %414, %426 : vector<1x64xf32>
    %428 = math.tanh %425 : vector<1x64xf32>
    %429 = arith.mulf %417, %428 : vector<1x64xf32>
    %430 = tpu.concatenate %427, %429 in 1 : vector<1x64xf32>, vector<1x64xf32> -> vector<1x128xf32>
    %431 = vector.extract_strided_slice %294 {offsets = [4, 0], sizes = [1, 512], strides = [1, 1]} : vector<8x512xf32> to vector<1x512xf32>
    %432 = vector.extract_strided_slice %294 {offsets = [3, 0], sizes = [1, 512], strides = [1, 1]} : vector<8x512xf32> to vector<1x512xf32>
    %433 = arith.select %10, %431, %432 : vector<1x512xi1>, vector<1x512xf32>
    %434 = arith.truncf %430 : vector<1x128xf32> to vector<1x128xbf16>
    %cst_45 = arith.constant dense<0.000000e+00> : vector<1x512xf32>
    %435 = tpu.matmul %434, %295, %cst_45 {dimension_numbers = #tpu.dot_dimension_numbers<[1], [0], [0], [1], [0, 0, 1, 1], [], []>} : vector<1x128xbf16>, vector<128x512xbf16>, vector<1x512xf32> -> vector<1x512xf32>
    %436 = arith.addf %433, %435 : vector<1x512xf32>
    %437 = vector.extract_strided_slice %436 {offsets = [0, 0], sizes = [1, 384], strides = [1, 1]} : vector<1x512xf32> to vector<1x384xf32>
    %438 = arith.negf %437 : vector<1x384xf32>
    %439 = math.exp %438 : vector<1x384xf32>
    %cst_46 = arith.constant 1.000000e+00 : f32
    %440 = vector.broadcast %cst_46 : f32 to vector<1x384xf32>
    %441 = arith.addf %440, %439 : vector<1x384xf32>
    %442 = arith.divf %440, %441 : vector<1x384xf32>
    %443 = vector.extract_strided_slice %436 {offsets = [0, 384], sizes = [1, 128], strides = [1, 1]} : vector<1x512xf32> to vector<1x128xf32>
    %444 = math.tanh %443 : vector<1x128xf32>
    %445 = vector.extract_strided_slice %442 {offsets = [0, 0], sizes = [1, 64], strides = [1, 1]} : vector<1x384xf32> to vector<1x64xf32>
    %446 = vector.extract_strided_slice %442 {offsets = [0, 64], sizes = [1, 64], strides = [1, 1]} : vector<1x384xf32> to vector<1x64xf32>
    %447 = vector.extract_strided_slice %442 {offsets = [0, 128], sizes = [1, 64], strides = [1, 1]} : vector<1x384xf32> to vector<1x64xf32>
    %448 = vector.extract_strided_slice %442 {offsets = [0, 192], sizes = [1, 64], strides = [1, 1]} : vector<1x384xf32> to vector<1x64xf32>
    %449 = vector.extract_strided_slice %442 {offsets = [0, 256], sizes = [1, 64], strides = [1, 1]} : vector<1x384xf32> to vector<1x64xf32>
    %450 = vector.extract_strided_slice %442 {offsets = [0, 320], sizes = [1, 64], strides = [1, 1]} : vector<1x384xf32> to vector<1x64xf32>
    %451 = vector.extract_strided_slice %444 {offsets = [0, 0], sizes = [1, 64], strides = [1, 1]} : vector<1x128xf32> to vector<1x64xf32>
    %452 = vector.extract_strided_slice %444 {offsets = [0, 64], sizes = [1, 64], strides = [1, 1]} : vector<1x128xf32> to vector<1x64xf32>
    %453 = arith.mulf %446, %422 : vector<1x64xf32>
    %454 = arith.mulf %445, %451 : vector<1x64xf32>
    %455 = arith.addf %453, %454 : vector<1x64xf32>
    %456 = arith.mulf %449, %425 : vector<1x64xf32>
    %457 = arith.mulf %448, %452 : vector<1x64xf32>
    %458 = arith.addf %456, %457 : vector<1x64xf32>
    %459 = math.tanh %455 : vector<1x64xf32>
    %460 = arith.mulf %447, %459 : vector<1x64xf32>
    %461 = math.tanh %458 : vector<1x64xf32>
    %462 = arith.mulf %450, %461 : vector<1x64xf32>
    %463 = tpu.concatenate %460, %462 in 1 : vector<1x64xf32>, vector<1x64xf32> -> vector<1x128xf32>
    %464 = vector.extract_strided_slice %294 {offsets = [5, 0], sizes = [1, 512], strides = [1, 1]} : vector<8x512xf32> to vector<1x512xf32>
    %465 = vector.extract_strided_slice %294 {offsets = [2, 0], sizes = [1, 512], strides = [1, 1]} : vector<8x512xf32> to vector<1x512xf32>
    %466 = arith.select %10, %464, %465 : vector<1x512xi1>, vector<1x512xf32>
    %467 = arith.truncf %463 : vector<1x128xf32> to vector<1x128xbf16>
    %cst_47 = arith.constant dense<0.000000e+00> : vector<1x512xf32>
    %468 = tpu.matmul %467, %295, %cst_47 {dimension_numbers = #tpu.dot_dimension_numbers<[1], [0], [0], [1], [0, 0, 1, 1], [], []>} : vector<1x128xbf16>, vector<128x512xbf16>, vector<1x512xf32> -> vector<1x512xf32>
    %469 = arith.addf %466, %468 : vector<1x512xf32>
    %470 = vector.extract_strided_slice %469 {offsets = [0, 0], sizes = [1, 384], strides = [1, 1]} : vector<1x512xf32> to vector<1x384xf32>
    %471 = arith.negf %470 : vector<1x384xf32>
    %472 = math.exp %471 : vector<1x384xf32>
    %cst_48 = arith.constant 1.000000e+00 : f32
    %473 = vector.broadcast %cst_48 : f32 to vector<1x384xf32>
    %474 = arith.addf %473, %472 : vector<1x384xf32>
    %475 = arith.divf %473, %474 : vector<1x384xf32>
    %476 = vector.extract_strided_slice %469 {offsets = [0, 384], sizes = [1, 128], strides = [1, 1]} : vector<1x512xf32> to vector<1x128xf32>
    %477 = math.tanh %476 : vector<1x128xf32>
    %478 = vector.extract_strided_slice %475 {offsets = [0, 0], sizes = [1, 64], strides = [1, 1]} : vector<1x384xf32> to vector<1x64xf32>
    %479 = vector.extract_strided_slice %475 {offsets = [0, 64], sizes = [1, 64], strides = [1, 1]} : vector<1x384xf32> to vector<1x64xf32>
    %480 = vector.extract_strided_slice %475 {offsets = [0, 128], sizes = [1, 64], strides = [1, 1]} : vector<1x384xf32> to vector<1x64xf32>
    %481 = vector.extract_strided_slice %475 {offsets = [0, 192], sizes = [1, 64], strides = [1, 1]} : vector<1x384xf32> to vector<1x64xf32>
    %482 = vector.extract_strided_slice %475 {offsets = [0, 256], sizes = [1, 64], strides = [1, 1]} : vector<1x384xf32> to vector<1x64xf32>
    %483 = vector.extract_strided_slice %475 {offsets = [0, 320], sizes = [1, 64], strides = [1, 1]} : vector<1x384xf32> to vector<1x64xf32>
    %484 = vector.extract_strided_slice %477 {offsets = [0, 0], sizes = [1, 64], strides = [1, 1]} : vector<1x128xf32> to vector<1x64xf32>
    %485 = vector.extract_strided_slice %477 {offsets = [0, 64], sizes = [1, 64], strides = [1, 1]} : vector<1x128xf32> to vector<1x64xf32>
    %486 = arith.mulf %479, %455 : vector<1x64xf32>
    %487 = arith.mulf %478, %484 : vector<1x64xf32>
    %488 = arith.addf %486, %487 : vector<1x64xf32>
    %489 = arith.mulf %482, %458 : vector<1x64xf32>
    %490 = arith.mulf %481, %485 : vector<1x64xf32>
    %491 = arith.addf %489, %490 : vector<1x64xf32>
    %492 = math.tanh %488 : vector<1x64xf32>
    %493 = arith.mulf %480, %492 : vector<1x64xf32>
    %494 = math.tanh %491 : vector<1x64xf32>
    %495 = arith.mulf %483, %494 : vector<1x64xf32>
    %496 = tpu.concatenate %493, %495 in 1 : vector<1x64xf32>, vector<1x64xf32> -> vector<1x128xf32>
    %497 = vector.extract_strided_slice %294 {offsets = [6, 0], sizes = [1, 512], strides = [1, 1]} : vector<8x512xf32> to vector<1x512xf32>
    %498 = vector.extract_strided_slice %294 {offsets = [1, 0], sizes = [1, 512], strides = [1, 1]} : vector<8x512xf32> to vector<1x512xf32>
    %499 = arith.select %10, %497, %498 : vector<1x512xi1>, vector<1x512xf32>
    %500 = arith.truncf %496 : vector<1x128xf32> to vector<1x128xbf16>
    %cst_49 = arith.constant dense<0.000000e+00> : vector<1x512xf32>
    %501 = tpu.matmul %500, %295, %cst_49 {dimension_numbers = #tpu.dot_dimension_numbers<[1], [0], [0], [1], [0, 0, 1, 1], [], []>} : vector<1x128xbf16>, vector<128x512xbf16>, vector<1x512xf32> -> vector<1x512xf32>
    %502 = arith.addf %499, %501 : vector<1x512xf32>
    %503 = vector.extract_strided_slice %502 {offsets = [0, 0], sizes = [1, 384], strides = [1, 1]} : vector<1x512xf32> to vector<1x384xf32>
    %504 = arith.negf %503 : vector<1x384xf32>
    %505 = math.exp %504 : vector<1x384xf32>
    %cst_50 = arith.constant 1.000000e+00 : f32
    %506 = vector.broadcast %cst_50 : f32 to vector<1x384xf32>
    %507 = arith.addf %506, %505 : vector<1x384xf32>
    %508 = arith.divf %506, %507 : vector<1x384xf32>
    %509 = vector.extract_strided_slice %502 {offsets = [0, 384], sizes = [1, 128], strides = [1, 1]} : vector<1x512xf32> to vector<1x128xf32>
    %510 = math.tanh %509 : vector<1x128xf32>
    %511 = vector.extract_strided_slice %508 {offsets = [0, 0], sizes = [1, 64], strides = [1, 1]} : vector<1x384xf32> to vector<1x64xf32>
    %512 = vector.extract_strided_slice %508 {offsets = [0, 64], sizes = [1, 64], strides = [1, 1]} : vector<1x384xf32> to vector<1x64xf32>
    %513 = vector.extract_strided_slice %508 {offsets = [0, 128], sizes = [1, 64], strides = [1, 1]} : vector<1x384xf32> to vector<1x64xf32>
    %514 = vector.extract_strided_slice %508 {offsets = [0, 192], sizes = [1, 64], strides = [1, 1]} : vector<1x384xf32> to vector<1x64xf32>
    %515 = vector.extract_strided_slice %508 {offsets = [0, 256], sizes = [1, 64], strides = [1, 1]} : vector<1x384xf32> to vector<1x64xf32>
    %516 = vector.extract_strided_slice %508 {offsets = [0, 320], sizes = [1, 64], strides = [1, 1]} : vector<1x384xf32> to vector<1x64xf32>
    %517 = vector.extract_strided_slice %510 {offsets = [0, 0], sizes = [1, 64], strides = [1, 1]} : vector<1x128xf32> to vector<1x64xf32>
    %518 = vector.extract_strided_slice %510 {offsets = [0, 64], sizes = [1, 64], strides = [1, 1]} : vector<1x128xf32> to vector<1x64xf32>
    %519 = arith.mulf %512, %488 : vector<1x64xf32>
    %520 = arith.mulf %511, %517 : vector<1x64xf32>
    %521 = arith.addf %519, %520 : vector<1x64xf32>
    %522 = arith.mulf %515, %491 : vector<1x64xf32>
    %523 = arith.mulf %514, %518 : vector<1x64xf32>
    %524 = arith.addf %522, %523 : vector<1x64xf32>
    %525 = math.tanh %521 : vector<1x64xf32>
    %526 = arith.mulf %513, %525 : vector<1x64xf32>
    %527 = math.tanh %524 : vector<1x64xf32>
    %528 = arith.mulf %516, %527 : vector<1x64xf32>
    %529 = tpu.concatenate %526, %528 in 1 : vector<1x64xf32>, vector<1x64xf32> -> vector<1x128xf32>
    %530 = vector.extract_strided_slice %294 {offsets = [7, 0], sizes = [1, 512], strides = [1, 1]} : vector<8x512xf32> to vector<1x512xf32>
    %531 = vector.extract_strided_slice %294 {offsets = [0, 0], sizes = [1, 512], strides = [1, 1]} : vector<8x512xf32> to vector<1x512xf32>
    %532 = arith.select %10, %530, %531 : vector<1x512xi1>, vector<1x512xf32>
    %533 = arith.truncf %529 : vector<1x128xf32> to vector<1x128xbf16>
    %cst_51 = arith.constant dense<0.000000e+00> : vector<1x512xf32>
    %534 = tpu.matmul %533, %295, %cst_51 {dimension_numbers = #tpu.dot_dimension_numbers<[1], [0], [0], [1], [0, 0, 1, 1], [], []>} : vector<1x128xbf16>, vector<128x512xbf16>, vector<1x512xf32> -> vector<1x512xf32>
    %535 = arith.addf %532, %534 : vector<1x512xf32>
    %536 = vector.extract_strided_slice %535 {offsets = [0, 0], sizes = [1, 384], strides = [1, 1]} : vector<1x512xf32> to vector<1x384xf32>
    %537 = arith.negf %536 : vector<1x384xf32>
    %538 = math.exp %537 : vector<1x384xf32>
    %cst_52 = arith.constant 1.000000e+00 : f32
    %539 = vector.broadcast %cst_52 : f32 to vector<1x384xf32>
    %540 = arith.addf %539, %538 : vector<1x384xf32>
    %541 = arith.divf %539, %540 : vector<1x384xf32>
    %542 = vector.extract_strided_slice %535 {offsets = [0, 384], sizes = [1, 128], strides = [1, 1]} : vector<1x512xf32> to vector<1x128xf32>
    %543 = math.tanh %542 : vector<1x128xf32>
    %544 = vector.extract_strided_slice %541 {offsets = [0, 0], sizes = [1, 64], strides = [1, 1]} : vector<1x384xf32> to vector<1x64xf32>
    %545 = vector.extract_strided_slice %541 {offsets = [0, 64], sizes = [1, 64], strides = [1, 1]} : vector<1x384xf32> to vector<1x64xf32>
    %546 = vector.extract_strided_slice %541 {offsets = [0, 128], sizes = [1, 64], strides = [1, 1]} : vector<1x384xf32> to vector<1x64xf32>
    %547 = vector.extract_strided_slice %541 {offsets = [0, 192], sizes = [1, 64], strides = [1, 1]} : vector<1x384xf32> to vector<1x64xf32>
    %548 = vector.extract_strided_slice %541 {offsets = [0, 256], sizes = [1, 64], strides = [1, 1]} : vector<1x384xf32> to vector<1x64xf32>
    %549 = vector.extract_strided_slice %541 {offsets = [0, 320], sizes = [1, 64], strides = [1, 1]} : vector<1x384xf32> to vector<1x64xf32>
    %550 = vector.extract_strided_slice %543 {offsets = [0, 0], sizes = [1, 64], strides = [1, 1]} : vector<1x128xf32> to vector<1x64xf32>
    %551 = vector.extract_strided_slice %543 {offsets = [0, 64], sizes = [1, 64], strides = [1, 1]} : vector<1x128xf32> to vector<1x64xf32>
    %552 = arith.mulf %545, %521 : vector<1x64xf32>
    %553 = arith.mulf %544, %550 : vector<1x64xf32>
    %554 = arith.addf %552, %553 : vector<1x64xf32>
    %555 = arith.mulf %548, %524 : vector<1x64xf32>
    %556 = arith.mulf %547, %551 : vector<1x64xf32>
    %557 = arith.addf %555, %556 : vector<1x64xf32>
    %558 = math.tanh %554 : vector<1x64xf32>
    %559 = arith.mulf %546, %558 : vector<1x64xf32>
    %560 = math.tanh %557 : vector<1x64xf32>
    %561 = arith.mulf %549, %560 : vector<1x64xf32>
    %562 = tpu.concatenate %328, %361, %394, %427, %460, %493, %526, %559 in 0 : vector<1x64xf32>, vector<1x64xf32>, vector<1x64xf32>, vector<1x64xf32>, vector<1x64xf32>, vector<1x64xf32>, vector<1x64xf32>, vector<1x64xf32> -> vector<8x64xf32>
    %563 = tpu.concatenate %561, %528, %495, %462, %429, %396, %363, %330 in 0 : vector<1x64xf32>, vector<1x64xf32>, vector<1x64xf32>, vector<1x64xf32>, vector<1x64xf32>, vector<1x64xf32>, vector<1x64xf32>, vector<1x64xf32> -> vector<8x64xf32>
    %564 = tpu.concatenate %562, %563 in 1 : vector<8x64xf32>, vector<8x64xf32> -> vector<8x128xf32>
    %565 = tpu.concatenate %559, %554 in 1 : vector<1x64xf32>, vector<1x64xf32> -> vector<1x128xf32>
    %566 = tpu.concatenate %561, %557 in 1 : vector<1x64xf32>, vector<1x64xf32> -> vector<1x128xf32>
    %567 = tpu.concatenate %287, %288, %565, %566 in 0 : vector<1x128xf32>, vector<1x128xf32>, vector<1x128xf32>, vector<1x128xf32> -> vector<4x128xf32>
    %c0_53 = arith.constant 0 : index
    %c0_54 = arith.constant 0 : index
    %c0_55 = arith.constant 0 : index
    %568 = vector.load %arg25[%c0_53, %c0_54, %c0_55] : memref<1x4x128xf32, #tpu.memory_space<vmem>>, vector<1x4x128xf32>
    %569 = vector.shape_cast %568 : vector<1x4x128xf32> to vector<4x128xf32>
    %570 = vector.shape_cast %567 : vector<4x128xf32> to vector<1x4x128xf32>
    tpu.vector_store %arg25[%c0_53, %c0_54, %c0_55], %570 {strides = array<i32>} : memref<1x4x128xf32, #tpu.memory_space<vmem>>, vector<1x4x128xf32>,
    %571 = arith.truncf %564 : vector<8x128xf32> to vector<8x128xbf16>
    %c0_56 = arith.constant 0 : index
    %c0_57 = arith.constant 0 : index
    %572 = vector.load %arg8[%c0_56, %c0_57] : memref<128x384xbf16, #tpu.memory_space<vmem>>, vector<128x384xbf16>
    %cst_58 = arith.constant dense<0.000000e+00> : vector<8x384xf32>
    %573 = tpu.matmul %571, %572, %cst_58 {dimension_numbers = #tpu.dot_dimension_numbers<[1], [0], [0], [1], [0, 0, 1, 1], [], []>} : vector<8x128xbf16>, vector<128x384xbf16>, vector<8x384xf32> -> vector<8x384xf32>
    %c0_59 = arith.constant 0 : index
    %c0_60 = arith.constant 0 : index
    %574 = vector.load %arg9[%c0_59, %c0_60] : memref<1x384xf32, #tpu.memory_space<vmem>>, vector<1x384xf32>
    %575 = vector.broadcast %574 : vector<1x384xf32> to vector<8x384xf32>
    %576 = arith.addf %573, %575 : vector<8x384xf32>
    %577 = vector.extract_strided_slice %576 {offsets = [0, 0], sizes = [8, 128], strides = [1, 1]} : vector<8x384xf32> to vector<8x128xf32>
    %cst_61 = arith.constant 2.500000e-01 : f32
    %578 = vector.broadcast %cst_61 : f32 to vector<8x128xf32>
    %579 = arith.mulf %577, %578 : vector<8x128xf32>
    %580 = vector.extract_strided_slice %576 {offsets = [0, 128], sizes = [8, 128], strides = [1, 1]} : vector<8x384xf32> to vector<8x128xf32>
    %581 = vector.extract_strided_slice %576 {offsets = [0, 256], sizes = [8, 128], strides = [1, 1]} : vector<8x384xf32> to vector<8x128xf32>
    %582 = vector.shape_cast %579 : vector<8x128xf32> to vector<8x8x16xf32>
    %583 = arith.truncf %582 : vector<8x8x16xf32> to vector<8x8x16xbf16>
    %584 = vector.shape_cast %580 : vector<8x128xf32> to vector<8x8x16xf32>
    %585 = arith.truncf %584 : vector<8x8x16xf32> to vector<8x8x16xbf16>
    %586 = vector.shape_cast %581 : vector<8x128xf32> to vector<8x8x16xf32>
    %587 = arith.truncf %586 : vector<8x8x16xf32> to vector<8x8x16xbf16>
    %cst_62 = arith.constant dense<0.000000e+00> : vector<8x8x8xf32>
    %588 = tpu.matmul %583, %585, %cst_62 {dimension_numbers = #tpu.dot_dimension_numbers<[2], [2], [0], [0], [0, 1, 0, 0, 1, 0], [1], [1]>} : vector<8x8x16xbf16>, vector<8x8x16xbf16>, vector<8x8x8xf32> -> vector<8x8x8xf32>
    %cst_63 = arith.constant dense<0xFF800000> : vector<8x8xf32>
    %589 = vector.multi_reduction <maximumf>, %588, %cst_63 [2] : vector<8x8x8xf32> to vector<8x8xf32>
    %590 = vector.shape_cast %589 : vector<8x8xf32> to vector<8x8x1xf32>
    %591 = vector.broadcast %590 : vector<8x8x1xf32> to vector<8x8x8xf32>
    %592 = arith.subf %588, %591 : vector<8x8x8xf32>
    %593 = math.exp %592 : vector<8x8x8xf32>
    %cst_64 = arith.constant dense<0.000000e+00> : vector<8x8xf32>
    %594 = vector.multi_reduction <add>, %593, %cst_64 [2] : vector<8x8x8xf32> to vector<8x8xf32>
    %595 = vector.shape_cast %594 : vector<8x8xf32> to vector<8x8x1xf32>
    %596 = tpu.reciprocal %595 {approx = true} : vector<8x8x1xf32> -> vector<8x8x1xf32>
    %597 = vector.broadcast %596 : vector<8x8x1xf32> to vector<8x8x8xf32>
    %598 = arith.mulf %593, %597 : vector<8x8x8xf32>
    %599 = arith.truncf %598 : vector<8x8x8xf32> to vector<8x8x8xbf16>
    %cst_65 = arith.constant dense<0.000000e+00> : vector<8x8x16xf32>
    %600 = tpu.matmul %599, %587, %cst_65 {dimension_numbers = #tpu.dot_dimension_numbers<[2], [0], [1], [2], [0, 0, 0, 1, 1, 2], [0], [1]>} : vector<8x8x8xbf16>, vector<8x8x16xbf16>, vector<8x8x16xf32> -> vector<8x8x16xf32>
    %601 = tpu.transpose %600, [1, 0, 2] : vector<8x8x16xf32> -> vector<8x8x16xf32>
    %602 = vector.shape_cast %601 : vector<8x8x16xf32> to vector<8x128xf32>
    %603 = arith.truncf %602 : vector<8x128xf32> to vector<8x128xbf16>
    %c0_66 = arith.constant 0 : index
    %c0_67 = arith.constant 0 : index
    %604 = vector.load %arg10[%c0_66, %c0_67] : memref<128x128xbf16, #tpu.memory_space<vmem>>, vector<128x128xbf16>
    %cst_68 = arith.constant dense<0.000000e+00> : vector<8x128xf32>
    %605 = tpu.matmul %603, %604, %cst_68 {dimension_numbers = #tpu.dot_dimension_numbers<[1], [0], [0], [1], [0, 0, 1, 1], [], []>} : vector<8x128xbf16>, vector<128x128xbf16>, vector<8x128xf32> -> vector<8x128xf32>
    %c0_69 = arith.constant 0 : index
    %c0_70 = arith.constant 0 : index
    %606 = vector.load %arg11[%c0_69, %c0_70] : memref<1x128xf32, #tpu.memory_space<vmem>>, vector<1x128xf32>
    %607 = vector.broadcast %606 : vector<1x128xf32> to vector<8x128xf32>
    %608 = arith.addf %605, %607 : vector<8x128xf32>
    %cst_71 = arith.constant dense<0.000000e+00> : vector<8x8xf32>
    %609 = vector.multi_reduction <add>, %598, %cst_71 [0] : vector<8x8x8xf32> to vector<8x8xf32>
    %cst_72 = arith.constant 8.000000e+00 : f32
    %610 = vector.broadcast %cst_72 : f32 to vector<8x8xf32>
    %611 = arith.divf %609, %610 : vector<8x8xf32>
    %cst_73 = arith.constant 0.000000e+00 : f32
    %612 = vector.broadcast %cst_73 : f32 to vector<8x120xf32>
    %613 = tpu.concatenate %611, %612 in 1 : vector<8x8xf32>, vector<8x120xf32> -> vector<8x128xf32>
    %c0_74 = arith.constant 0 : index
    %c0_75 = arith.constant 0 : index
    %c0_76 = arith.constant 0 : index
    %614 = vector.load %arg26[%c0_74, %c0_75, %c0_76] : memref<1x8x128xf32, #tpu.memory_space<vmem>>, vector<1x8x128xf32>
    %615 = vector.shape_cast %614 : vector<1x8x128xf32> to vector<8x128xf32>
    %616 = vector.shape_cast %613 : vector<8x128xf32> to vector<1x8x128xf32>
    tpu.vector_store %arg26[%c0_74, %c0_75, %c0_76], %616 {strides = array<i32>} : memref<1x8x128xf32, #tpu.memory_space<vmem>>, vector<1x8x128xf32>,
    %617 = arith.addf %564, %608 : vector<8x128xf32>
    %c0_77 = arith.constant 0 : index
    %c0_78 = arith.constant 0 : index
    %618 = vector.load %arg12[%c0_77, %c0_78] : memref<1x128xf32, #tpu.memory_space<vmem>>, vector<1x128xf32>
    %c0_79 = arith.constant 0 : index
    %c0_80 = arith.constant 0 : index
    %619 = vector.load %arg13[%c0_79, %c0_80] : memref<1x128xf32, #tpu.memory_space<vmem>>, vector<1x128xf32>
    %cst_81 = arith.constant dense<0.000000e+00> : vector<8xf32>
    %620 = vector.multi_reduction <add>, %617, %cst_81 [1] : vector<8x128xf32> to vector<8xf32>
    %621 = vector.shape_cast %620 : vector<8xf32> to vector<8x1xf32>
    %cst_82 = arith.constant 1.280000e+02 : f32
    %622 = vector.broadcast %cst_82 : f32 to vector<8x1xf32>
    %623 = arith.divf %621, %622 : vector<8x1xf32>
    %624 = vector.broadcast %623 : vector<8x1xf32> to vector<8x128xf32>
    %625 = arith.subf %617, %624 : vector<8x128xf32>
    %626 = arith.mulf %625, %625 : vector<8x128xf32>
    %cst_83 = arith.constant dense<0.000000e+00> : vector<8xf32>
    %627 = vector.multi_reduction <add>, %626, %cst_83 [1] : vector<8x128xf32> to vector<8xf32>
    %628 = vector.shape_cast %627 : vector<8xf32> to vector<8x1xf32>
    %cst_84 = arith.constant 1.280000e+02 : f32
    %629 = vector.broadcast %cst_84 : f32 to vector<8x1xf32>
    %630 = arith.divf %628, %629 : vector<8x1xf32>
    %631 = vector.broadcast %623 : vector<8x1xf32> to vector<8x128xf32>
    %632 = arith.subf %617, %631 : vector<8x128xf32>
    %cst_85 = arith.constant 9.99999974E-6 : f32
    %633 = vector.broadcast %cst_85 : f32 to vector<8x1xf32>
    %634 = arith.addf %630, %633 : vector<8x1xf32>
    %635 = math.rsqrt %634 : vector<8x1xf32>
    %636 = vector.broadcast %635 : vector<8x1xf32> to vector<8x128xf32>
    %637 = arith.mulf %632, %636 : vector<8x128xf32>
    %638 = vector.broadcast %618 : vector<1x128xf32> to vector<8x128xf32>
    %639 = arith.mulf %637, %638 : vector<8x128xf32>
    %640 = vector.broadcast %619 : vector<1x128xf32> to vector<8x128xf32>
    %641 = arith.addf %639, %640 : vector<8x128xf32>
    %642 = arith.truncf %641 : vector<8x128xf32> to vector<8x128xbf16>
    %c0_86 = arith.constant 0 : index
    %c0_87 = arith.constant 0 : index
    %643 = vector.load %arg14[%c0_86, %c0_87] : memref<128x256xbf16, #tpu.memory_space<vmem>>, vector<128x256xbf16>
    %cst_88 = arith.constant dense<0.000000e+00> : vector<8x256xf32>
    %644 = tpu.matmul %642, %643, %cst_88 {dimension_numbers = #tpu.dot_dimension_numbers<[1], [0], [0], [1], [0, 0, 1, 1], [], []>} : vector<8x128xbf16>, vector<128x256xbf16>, vector<8x256xf32> -> vector<8x256xf32>
    %c0_89 = arith.constant 0 : index
    %c0_90 = arith.constant 0 : index
    %645 = vector.load %arg15[%c0_89, %c0_90] : memref<1x256xf32, #tpu.memory_space<vmem>>, vector<1x256xf32>
    %646 = vector.broadcast %645 : vector<1x256xf32> to vector<8x256xf32>
    %647 = arith.addf %644, %646 : vector<8x256xf32>
    %cst_91 = arith.constant 0.000000e+00 : f32
    %648 = vector.broadcast %cst_91 : f32 to vector<8x256xf32>
    %649 = arith.maximumf %647, %648 : vector<8x256xf32>
    %650 = arith.truncf %649 : vector<8x256xf32> to vector<8x256xbf16>
    %c0_92 = arith.constant 0 : index
    %c0_93 = arith.constant 0 : index
    %651 = vector.load %arg16[%c0_92, %c0_93] : memref<256x128xbf16, #tpu.memory_space<vmem>>, vector<256x128xbf16>
    %cst_94 = arith.constant dense<0.000000e+00> : vector<8x128xf32>
    %652 = tpu.matmul %650, %651, %cst_94 {dimension_numbers = #tpu.dot_dimension_numbers<[1], [0], [0], [1], [0, 0, 1, 1], [], []>} : vector<8x256xbf16>, vector<256x128xbf16>, vector<8x128xf32> -> vector<8x128xf32>
    %c0_95 = arith.constant 0 : index
    %c0_96 = arith.constant 0 : index
    %653 = vector.load %arg17[%c0_95, %c0_96] : memref<1x128xf32, #tpu.memory_space<vmem>>, vector<1x128xf32>
    %654 = vector.broadcast %653 : vector<1x128xf32> to vector<8x128xf32>
    %655 = arith.addf %652, %654 : vector<8x128xf32>
    %656 = arith.addf %641, %655 : vector<8x128xf32>
    %c0_97 = arith.constant 0 : index
    %c0_98 = arith.constant 0 : index
    %657 = vector.load %arg18[%c0_97, %c0_98] : memref<1x128xf32, #tpu.memory_space<vmem>>, vector<1x128xf32>
    %c0_99 = arith.constant 0 : index
    %c0_100 = arith.constant 0 : index
    %658 = vector.load %arg19[%c0_99, %c0_100] : memref<1x128xf32, #tpu.memory_space<vmem>>, vector<1x128xf32>
    %cst_101 = arith.constant dense<0.000000e+00> : vector<8xf32>
    %659 = vector.multi_reduction <add>, %656, %cst_101 [1] : vector<8x128xf32> to vector<8xf32>
    %660 = vector.shape_cast %659 : vector<8xf32> to vector<8x1xf32>
    %cst_102 = arith.constant 1.280000e+02 : f32
    %661 = vector.broadcast %cst_102 : f32 to vector<8x1xf32>
    %662 = arith.divf %660, %661 : vector<8x1xf32>
    %663 = vector.broadcast %662 : vector<8x1xf32> to vector<8x128xf32>
    %664 = arith.subf %656, %663 : vector<8x128xf32>
    %665 = arith.mulf %664, %664 : vector<8x128xf32>
    %cst_103 = arith.constant dense<0.000000e+00> : vector<8xf32>
    %666 = vector.multi_reduction <add>, %665, %cst_103 [1] : vector<8x128xf32> to vector<8xf32>
    %667 = vector.shape_cast %666 : vector<8xf32> to vector<8x1xf32>
    %cst_104 = arith.constant 1.280000e+02 : f32
    %668 = vector.broadcast %cst_104 : f32 to vector<8x1xf32>
    %669 = arith.divf %667, %668 : vector<8x1xf32>
    %670 = vector.broadcast %662 : vector<8x1xf32> to vector<8x128xf32>
    %671 = arith.subf %656, %670 : vector<8x128xf32>
    %cst_105 = arith.constant 9.99999974E-6 : f32
    %672 = vector.broadcast %cst_105 : f32 to vector<8x1xf32>
    %673 = arith.addf %669, %672 : vector<8x1xf32>
    %674 = math.rsqrt %673 : vector<8x1xf32>
    %675 = vector.broadcast %674 : vector<8x1xf32> to vector<8x128xf32>
    %676 = arith.mulf %671, %675 : vector<8x128xf32>
    %677 = vector.broadcast %657 : vector<1x128xf32> to vector<8x128xf32>
    %678 = arith.mulf %676, %677 : vector<8x128xf32>
    %679 = vector.broadcast %658 : vector<1x128xf32> to vector<8x128xf32>
    %680 = arith.addf %678, %679 : vector<8x128xf32>
    %681 = arith.truncf %680 : vector<8x128xf32> to vector<8x128xbf16>
    %c0_106 = arith.constant 0 : index
    %c0_107 = arith.constant 0 : index
    %682 = vector.load %arg20[%c0_106, %c0_107] : memref<128x128xbf16, #tpu.memory_space<vmem>>, vector<128x128xbf16>
    %cst_108 = arith.constant dense<0.000000e+00> : vector<8x128xf32>
    %683 = tpu.matmul %681, %682, %cst_108 {dimension_numbers = #tpu.dot_dimension_numbers<[1], [0], [0], [1], [0, 0, 1, 1], [], []>} : vector<8x128xbf16>, vector<128x128xbf16>, vector<8x128xf32> -> vector<8x128xf32>
    %c0_109 = arith.constant 0 : index
    %c0_110 = arith.constant 0 : index
    %684 = vector.load %arg21[%c0_109, %c0_110] : memref<1x128xf32, #tpu.memory_space<vmem>>, vector<1x128xf32>
    %685 = vector.broadcast %684 : vector<1x128xf32> to vector<8x128xf32>
    %686 = arith.addf %683, %685 : vector<8x128xf32>
    %cst_111 = arith.constant 0.000000e+00 : f32
    %687 = vector.broadcast %cst_111 : f32 to vector<8x128xf32>
    %688 = arith.maximumf %686, %687 : vector<8x128xf32>
    %689 = arith.truncf %688 : vector<8x128xf32> to vector<8x128xbf16>
    %c0_112 = arith.constant 0 : index
    %c0_113 = arith.constant 0 : index
    %690 = vector.load %arg22[%c0_112, %c0_113] : memref<128x128xbf16, #tpu.memory_space<vmem>>, vector<128x128xbf16>
    %cst_114 = arith.constant dense<0.000000e+00> : vector<8x128xf32>
    %691 = tpu.matmul %689, %690, %cst_114 {dimension_numbers = #tpu.dot_dimension_numbers<[1], [0], [0], [1], [0, 0, 1, 1], [], []>} : vector<8x128xbf16>, vector<128x128xbf16>, vector<8x128xf32> -> vector<8x128xf32>
    %c0_115 = arith.constant 0 : index
    %c0_116 = arith.constant 0 : index
    %692 = vector.load %arg23[%c0_115, %c0_116] : memref<1x128xf32, #tpu.memory_space<vmem>>, vector<1x128xf32>
    %693 = vector.broadcast %692 : vector<1x128xf32> to vector<8x128xf32>
    %694 = arith.addf %691, %693 : vector<8x128xf32>
    %c0_117 = arith.constant 0 : index
    %c0_118 = arith.constant 0 : index
    %c0_119 = arith.constant 0 : index
    %695 = vector.load %arg24[%c0_117, %c0_118, %c0_119] : memref<1x8x128xf32, #tpu.memory_space<vmem>>, vector<1x8x128xf32>
    %696 = vector.shape_cast %695 : vector<1x8x128xf32> to vector<8x128xf32>
    %697 = vector.shape_cast %694 : vector<8x128xf32> to vector<1x8x128xf32>
    tpu.vector_store %arg24[%c0_117, %c0_118, %c0_119], %697 {strides = array<i32>} : memref<1x8x128xf32, #tpu.memory_space<vmem>>, vector<1x8x128xf32>,
    return
  }
  func.func @transform_0(%arg0: i32) -> (i32, i32, i32) {
    %c0_i32 = arith.constant 0 : i32
    %c0_i32_0 = arith.constant 0 : i32
    %c0_i32_1 = arith.constant 0 : i32
    return %arg0, %c0_i32, %c0_i32_0 : i32, i32, i32
  }
  func.func @transform_1(%arg0: i32) -> (i32, i32) {
    %c0_i32 = arith.constant 0 : i32
    %c0_i32_0 = arith.constant 0 : i32
    %c0_i32_1 = arith.constant 0 : i32
    return %c0_i32, %c0_i32_0 : i32, i32
  }
  func.func @transform_2(%arg0: i32) -> (i32, i32) {
    %c0_i32 = arith.constant 0 : i32
    %c0_i32_0 = arith.constant 0 : i32
    %c0_i32_1 = arith.constant 0 : i32
    return %c0_i32, %c0_i32_0 : i32, i32
  }
  func.func @transform_3(%arg0: i32) -> (i32, i32) {
    %c0_i32 = arith.constant 0 : i32
    %c0_i32_0 = arith.constant 0 : i32
    %c0_i32_1 = arith.constant 0 : i32
    return %c0_i32, %c0_i32_0 : i32, i32
  }
  func.func @transform_4(%arg0: i32) -> (i32, i32) {
    %c0_i32 = arith.constant 0 : i32
    %c0_i32_0 = arith.constant 0 : i32
    %c0_i32_1 = arith.constant 0 : i32
    return %c0_i32, %c0_i32_0 : i32, i32
  }
  func.func @transform_5(%arg0: i32) -> (i32, i32) {
    %c0_i32 = arith.constant 0 : i32
    %c0_i32_0 = arith.constant 0 : i32
    %c0_i32_1 = arith.constant 0 : i32
    return %c0_i32, %c0_i32_0 : i32, i32
  }
  func.func @transform_6(%arg0: i32) -> (i32, i32) {
    %c0_i32 = arith.constant 0 : i32
    %c0_i32_0 = arith.constant 0 : i32
    %c0_i32_1 = arith.constant 0 : i32
    return %c0_i32, %c0_i32_0 : i32, i32
  }
  func.func @transform_7(%arg0: i32) -> (i32, i32) {
    %c0_i32 = arith.constant 0 : i32
    %c0_i32_0 = arith.constant 0 : i32
    %c0_i32_1 = arith.constant 0 : i32
    return %c0_i32, %c0_i32_0 : i32, i32
  }
  func.func @transform_8(%arg0: i32) -> (i32, i32) {
    %c0_i32 = arith.constant 0 : i32
    %c0_i32_0 = arith.constant 0 : i32
    %c0_i32_1 = arith.constant 0 : i32
    return %c0_i32, %c0_i32_0 : i32, i32
  }
  func.func @transform_9(%arg0: i32) -> (i32, i32) {
    %c0_i32 = arith.constant 0 : i32
    %c0_i32_0 = arith.constant 0 : i32
    %c0_i32_1 = arith.constant 0 : i32
    return %c0_i32, %c0_i32_0 : i32, i32
  }
  func.func @transform_10(%arg0: i32) -> (i32, i32) {
    %c0_i32 = arith.constant 0 : i32
    %c0_i32_0 = arith.constant 0 : i32
    %c0_i32_1 = arith.constant 0 : i32
    return %c0_i32, %c0_i32_0 : i32, i32
  }
  func.func @transform_11(%arg0: i32) -> (i32, i32) {
    %c0_i32 = arith.constant 0 : i32
    %c0_i32_0 = arith.constant 0 : i32
    %c0_i32_1 = arith.constant 0 : i32
    return %c0_i32, %c0_i32_0 : i32, i32
  }
  func.func @transform_12(%arg0: i32) -> (i32, i32) {
    %c0_i32 = arith.constant 0 : i32
    %c0_i32_0 = arith.constant 0 : i32
    %c0_i32_1 = arith.constant 0 : i32
    return %c0_i32, %c0_i32_0 : i32, i32
  }
  func.func @transform_13(%arg0: i32) -> (i32, i32) {
    %c0_i32 = arith.constant 0 : i32
    %c0_i32_0 = arith.constant 0 : i32
    %c0_i32_1 = arith.constant 0 : i32
    return %c0_i32, %c0_i32_0 : i32, i32
  }
  func.func @transform_14(%arg0: i32) -> (i32, i32) {
    %c0_i32 = arith.constant 0 : i32
    %c0_i32_0 = arith.constant 0 : i32
    %c0_i32_1 = arith.constant 0 : i32
    return %c0_i32, %c0_i32_0 : i32, i32
  }
  func.func @transform_15(%arg0: i32) -> (i32, i32) {
    %c0_i32 = arith.constant 0 : i32
    %c0_i32_0 = arith.constant 0 : i32
    %c0_i32_1 = arith.constant 0 : i32
    return %c0_i32, %c0_i32_0 : i32, i32
  }
  func.func @transform_16(%arg0: i32) -> (i32, i32) {
    %c0_i32 = arith.constant 0 : i32
    %c0_i32_0 = arith.constant 0 : i32
    %c0_i32_1 = arith.constant 0 : i32
    return %c0_i32, %c0_i32_0 : i32, i32
  }
  func.func @transform_17(%arg0: i32) -> (i32, i32) {
    %c0_i32 = arith.constant 0 : i32
    %c0_i32_0 = arith.constant 0 : i32
    %c0_i32_1 = arith.constant 0 : i32
    return %c0_i32, %c0_i32_0 : i32, i32
  }
  func.func @transform_18(%arg0: i32) -> (i32, i32) {
    %c0_i32 = arith.constant 0 : i32
    %c0_i32_0 = arith.constant 0 : i32
    %c0_i32_1 = arith.constant 0 : i32
    return %c0_i32, %c0_i32_0 : i32, i32
  }
  func.func @transform_19(%arg0: i32) -> (i32, i32) {
    %c0_i32 = arith.constant 0 : i32
    %c0_i32_0 = arith.constant 0 : i32
    %c0_i32_1 = arith.constant 0 : i32
    return %c0_i32, %c0_i32_0 : i32, i32
  }
  func.func @transform_20(%arg0: i32) -> (i32, i32) {
    %c0_i32 = arith.constant 0 : i32
    %c0_i32_0 = arith.constant 0 : i32
    %c0_i32_1 = arith.constant 0 : i32
    return %c0_i32, %c0_i32_0 : i32, i32
  }
  func.func @transform_21(%arg0: i32) -> (i32, i32) {
    %c0_i32 = arith.constant 0 : i32
    %c0_i32_0 = arith.constant 0 : i32
    %c0_i32_1 = arith.constant 0 : i32
    return %c0_i32, %c0_i32_0 : i32, i32
  }
  func.func @transform_22(%arg0: i32) -> (i32, i32) {
    %c0_i32 = arith.constant 0 : i32
    %c0_i32_0 = arith.constant 0 : i32
    %c0_i32_1 = arith.constant 0 : i32
    return %c0_i32, %c0_i32_0 : i32, i32
  }
  func.func @transform_23(%arg0: i32) -> (i32, i32, i32) {
    %c0_i32 = arith.constant 0 : i32
    %c0_i32_0 = arith.constant 0 : i32
    %c0_i32_1 = arith.constant 0 : i32
    return %arg0, %c0_i32, %c0_i32_0 : i32, i32, i32
  }
  func.func @transform_24(%arg0: i32) -> (i32, i32, i32) {
    %c0_i32 = arith.constant 0 : i32
    %c0_i32_0 = arith.constant 0 : i32
    %c0_i32_1 = arith.constant 0 : i32
    return %arg0, %c0_i32, %c0_i32_0 : i32, i32, i32
  }
  func.func @transform_25(%arg0: i32) -> (i32, i32, i32) {
    %c0_i32 = arith.constant 0 : i32
    %c0_i32_0 = arith.constant 0 : i32
    %c0_i32_1 = arith.constant 0 : i32
    return %arg0, %c0_i32, %c0_i32_0 : i32, i32, i32
  }
}

</mosaic_0001>

<bundles_post_ra>
// kernel: poetry_forward.1
= control target key start
LH: loop header
LB: loop body
LE: loop exit
PB: predicated region body
PF: predicated region fallthrough
CT: control target
= control target key end

     0   :  { %s12256_s0 = inlined_call_operand.vmem [shape: f32[2,8,64], index: 0, kind: input, shape index: {}]   ;;  %s12257_s1 = inlined_call_operand.vmem [shape: bf16[64,512], index: 1, kind: input, shape index: {}]   ;;  %s12258_s2 = inlined_call_operand.vmem [shape: bf16[128,512], index: 2, kind: input, shape index: {}]   ;;  %s12259_s3 = inlined_call_operand.vmem [shape: f32[1,512], index: 3, kind: input, shape index: {}]   ;;  %s12260_s4 = inlined_call_operand.hbm [shape: bf16[128,512], index: 4, kind: input, shape index: {}]   ;;  %s12261_s5 = inlined_call_operand.hbm [shape: bf16[128,512], index: 5, kind: input, shape index: {}]   ;;  %s12262_s6 = inlined_call_operand.hbm [shape: f32[1,512], index: 6, kind: input, shape index: {}]   ;;  %s12263_s7 = inlined_call_operand.hbm [shape: bf16[128,384], index: 7, kind: input, shape index: {}]   ;;  %s12264_s8 = inlined_call_operand.vmem [shape: f32[1,384], index: 8, kind: input, shape index: {}]   ;;  %s12265_s9 = inlined_call_operand.hbm [shape: bf16[128,128], index: 9, kind: input, shape index: {}]   ;;  %s12266_s10 = inlined_call_operand.vmem [shape: f32[1,128], index: 10, kind: input, shape index: {}]   ;;  %s12267_s11 = inlined_call_operand.vmem [shape: f32[1,128], index: 11, kind: input, shape index: {}]   ;;  %s12268_s12 = inlined_call_operand.vmem [shape: f32[1,128], index: 12, kind: input, shape index: {}]   ;;  %s12269_s13 = inlined_call_operand.hbm [shape: bf16[128,256], index: 13, kind: input, shape index: {}]   ;;  %s12270_s14 = inlined_call_operand.vmem [shape: f32[1,256], index: 14, kind: input, shape index: {}]   ;;  %s12271_s15 = inlined_call_operand.hbm [shape: bf16[256,128], index: 15, kind: input, shape index: {}]   ;;  %s12272_s16 = inlined_call_operand.vmem [shape: f32[1,128], index: 16, kind: input, shape index: {}]   ;;  %s12273_s17 = inlined_call_operand.hbm [shape: f32[1,128], index: 17, kind: input, shape index: {}]   ;;  %s12274_s18 = inlined_call_operand.hbm [shape: f32[1,128], index: 18, kind: input, shape index: {}]   ;;  %s12275_s19 = inlined_call_operand.hbm [shape: bf16[128,128], index: 19, kind: input, shape index: {}]   ;;  %s12276_s20 = inlined_call_operand.vmem [shape: f32[1,128], index: 20, kind: input, shape index: {}]   ;;  %s12277_s21 = inlined_call_operand.hbm [shape: bf16[128,128], index: 21, kind: input, shape index: {}]   ;;  %s12278_s22 = inlined_call_operand.vmem [shape: f32[1,128], index: 22, kind: input, shape index: {}]   ;;  %s12279_s23 = inlined_call_operand.hbm [shape: f32[2,8,128], index: 23, kind: output, shape index: {0}]   ;;  %s12280_s24 = inlined_call_operand.vmem [shape: f32[2,4,128], index: 24, kind: output, shape index: {1}]   ;;  %s12281_s25 = inlined_call_operand.hbm [shape: f32[2,8,128], index: 25, kind: output, shape index: {2}]  }
   0x1   :  { %12341 = sst [smem:[#allocation53_spill]] %s12256_s0 }
   0x2   :  { %12342 = sst [smem:[#allocation54_spill]] %s12257_s1 }
   0x3   :  { %12343 = sst [smem:[#allocation55_spill]] %s12258_s2 }
   0x4   :  { %12344 = sst [smem:[#allocation56_spill]] %s12259_s3 }
   0x5   :  { %12345 = sst [smem:[#allocation57_spill]] %s12260_s4 }
   0x6   :  { %12346 = sst [smem:[#allocation58_spill]] %s12261_s5 }
   0x7   :  { %12347 = sst [smem:[#allocation59_spill]] %s12262_s6 }
   0x8   :  { %12348 = sst [smem:[#allocation60_spill]] %s12263_s7 }
   0x9   :  { %12349 = sst [smem:[#allocation61_spill]] %s12264_s8 }
   0xa   :  { %12350 = sst [smem:[#allocation62_spill]] %s12265_s9 }
   0xb   :  { %12351 = sst [smem:[#allocation63_spill]] %s12266_s10 }
   0xc   :  { %12352 = sst [smem:[#allocation64_spill]] %s12269_s13 }
   0xd   :  { %12353 = sst [smem:[#allocation65_spill]] %s12276_s20 }
   0xe   :  { %12354 = sst [smem:[#allocation66_spill]] %s12278_s22 }
   0xf   :  { %12355 = sst [smem:[#allocation67_spill]] %s12279_s23 }
  0x10   :  { %12356 = sst [smem:[#allocation68_spill]] %s12280_s24 }
  0x11   :  { %12357 = sst [smem:[#allocation69_spill]] %s12281_s25 }
  0x12   :  { %31 = vsyncpa [#allocation3], 0 }
  0x13   :  { %32 = vsyncpa [#allocation6], 0 }
  0x14   :  { %33 = vsyncpa [#allocation9], 0 }
  0x15   :  { %34 = vsyncpa [#allocation12], 0 }
  0x16   :  { %35 = vsyncpa [#allocation15], 0 }
  0x17   :  { %36 = vsyncpa [#allocation18], 0 }
  0x18   :  { %37 = vsyncpa [#allocation4], 0 }
  0x19   :  { %39 = vsyncpa [#allocation4 + $0x1], 0 }
  0x1a   :  { %40 = vsyncpa [#allocation22], 0 }
  0x1b   :  { %42 = vsyncpa [#allocation22 + $0x1], 0  ;;  %s9841_s29 = smov 0   ;;  %s9843_s2 = smov 0  }
  0x1c   :  { %s9845_s6 = smov 0   ;;  %s9847_s30 = smov 0  }
  0x1d LB: > { %12358 = sst [smem:[#allocation31_spill]] %s9666_s29  ;;  %s9862_s7 = sadd.s32 4294967295, %s9678_s30   ;;  %s9678_s30 = sphi %s9847_s30, %s12465_s30   ;;  %s9674_s6 = sphi %s9845_s6, %s12467_s6   ;;  %s9670_s2 = sphi %s9843_s2, %s12469_s2   ;;  %s9666_s29 = sphi %s9841_s29, %s12468_s29  }
  0x1e   : > { %12359 = sst [smem:[#allocation32_spill]] %s9674_s6  ;;  %s7584_s3 = sadd.s32 4294967294, %s9678_s30  }
  0x1f   : > { %12360 = sst [smem:[#allocation33_spill]] %s9678_s30  ;;  %s9866_s26 = sadd.s32 1, %s9678_s30  }
  0x20   : > { %12361 = sst [smem:[#allocation34_spill]] %s9866_s26  ;;  %s543_s1 = sadd.s32 1, %s9674_s6 }
  0x21   : > { %s540_s8 = ssub.s32 %s9678_s30, %s9866_s26  ;;  %p553_p0 = scmp.ne.s32.totalorder %s9674_s6, %s9670_s2 }
  0x22   : > { %p541_p1 = scmp.eq.s32.totalorder %s540_s8, 0  ;;  %p554_p2 = scmp.eq.s32.totalorder %s9862_s7, 1 }
  0x23   : > { %p559_p3 = scmp.ne.s32.totalorder %s9670_s2, %s9666_s29  ;;  %p560_p4 = scmp.eq.s32.totalorder %s7584_s3, 1 }
  0x24   : > { %s9877_s27 = scalar_select %p541_p1, %s9674_s6, %s543_s1  }
  0x25   : > { %p9879_p5 = por %p554_p2, %p553_p0  ;;  %p9883_p6 = por %p560_p4, %p559_p3 }
  0x26   : > { %12362 = sst [smem:[#allocation35_spill]] %s9877_s27  ;;  %p7585_p7 = scmp.ge.s32.totalorder %s9678_s30, 1 }
  0x27   : > { %s12363_s4 = scalar_select %p9879_p5, 1, 0 }
  0x28   : > { %s12365_s28 = scalar_select %p9883_p6, 1, 0 }
  0x29   : > { %12364 = sst [smem:[#allocation36_spill]] %s12363_s4  ;;  %p619_p8 = scmp.lt.s32.totalorder %s9678_s30, 3 }
  0x2a   : > { %12366 = sst [smem:[#allocation37_spill]] %s12365_s28  ;;  %p8737_p9 = scmp.eq.s32.totalorder %s9862_s7, 0 }
  0x2b   : > { %p9890_p10 = pnand %p7585_p7, %p619_p8  ;;  %s12368_s3 = sld [smem:[#allocation58_spill]] }
  0x2c   : > { %s12369_s6 = sld [smem:[#allocation60_spill]]  ;;  %s9680_s29 = smov [#allocation5]  }
  0x2d   : > { %p8696_p11 = pneg %p9890_p10  ;;  %s655_s30 = sshll.u32 %s9680_s29, 4  ;;  %s656_s30 = int_to_ptr.vmem [resolvable:$true] %s655_s30 }
  0x2e   : > { %s12294_s5 = smov 256   ;;  %s12295_s0 = smov 16  }
  0x2f   : > { %p9904_p12 = pnand %p8737_p9, %p8696_p11  ;;  %s9685_s8 = smov 12  }
  0x30   : > { %s12371_s13 = sld [smem:[#allocation64_spill]]  ;;  %s9686_s25 = smov [#allocation11]  }
  0x31   : > { %s653_s1 = sshll.u32 %s12368_s3, 4  ;;  %s9684_s3 = smov 192   ;;  %s654_s1 = int_to_ptr.hbm [resolvable:$true] %s653_s1 }
  0x32   : > { %s679_s26 = sshll.u32 %s12369_s6, 4  ;;  %s9683_s6 = smov [#allocation8]   ;;  %s680_s26 = int_to_ptr.hbm [resolvable:$true] %s679_s26 }
  0x33   : > { %8702 = dma.hbm_to_vmem [thread:$0]  (!%p9904_p12), %s654_s1, 4096, %s656_s30, [#allocation6], %s12294_s5, %s12294_s5, %s12295_s0  }
  0x34   : > { %s681_s27 = sshll.u32 %s9683_s6, 4  ;;  %s721_s4 = sshll.u32 %s9686_s25, 4  ;;  %s682_s27 = int_to_ptr.vmem [resolvable:$true] %s681_s27  ;;  %s722_s4 = int_to_ptr.vmem [resolvable:$true] %s721_s4 }
  0x35   : > { %8708 = dma.hbm_to_vmem [thread:$0]  (!%p9904_p12), %s680_s26, 3072, %s682_s27, [#allocation9], %s9684_s3, %s9684_s3, %s9685_s8  }
  0x36   : > { %s719_s23 = sshll.u32 %s12371_s13, 4  ;;  %s754_s30 = sshll.u32 %s12273_s17, 4  ;;  %s720_s23 = int_to_ptr.hbm [resolvable:$true] %s719_s23  ;;  %s755_s30 = int_to_ptr.hbm [resolvable:$true] %s754_s30 }
  0x37   : > { %s9687_s1 = smov 128   ;;  %s9688_s6 = smov 8  }
  0x38   : > { %8714 = dma.hbm_to_vmem [thread:$0]  (!%p9904_p12), %s720_s23, 2048, %s722_s4, [#allocation12], %s9687_s1, %s9687_s1, %s9688_s6  }
  0x39   : > { %s9689_s5 = smov [#allocation14]   ;;  %s777_s25 = sshll.u32 %s12275_s19, 4  ;;  %s778_s25 = int_to_ptr.hbm [resolvable:$true] %s777_s25 }
  0x3a   : > { %s756_s26 = sshll.u32 %s9689_s5, 4  ;;  %s9690_s3 = smov [#allocation17]   ;;  %s757_s26 = int_to_ptr.vmem [resolvable:$true] %s756_s26 }
  0x3b   : > { %8720 = dma.hbm_to_vmem [thread:$0]  (!%p9904_p12), %s755_s30, 16, %s757_s26, [#allocation15]  }
  0x3c   : > { %s779_s20 = sshll.u32 %s9690_s3, 4  ;;  %s12372_s29 = sld [smem:[#allocation57_spill]]  ;;  %s780_s20 = int_to_ptr.vmem [resolvable:$true] %s779_s20 }
  0x3d   : > { %s12296_s23 = smov 64   ;;  %s9692_s4 = smov 4  }
  0x3e   : > { %8726 = dma.hbm_to_vmem [thread:$0]  (!%p9904_p12), %s778_s25, 1024, %s780_s20, [#allocation18], %s12296_s23, %s12296_s23, %s9692_s4  }
  0x3f   : > { %s9693_s5 = smov [#allocation2]   ;;  %s12373_s26 = sld [smem:[#allocation59_spill]] }
  0x40   : > { %s641_s30 = sshll.u32 %s9693_s5, 4  ;;  %s12374_s27 = smov 16   ;;  %s642_s30 = int_to_ptr.vmem [resolvable:$true] %s641_s30 }
  0x41   : > { %s12375_s3 = smov 256   ;;  %s9694_s25 = smov [#allocation7]  }
  0x42   : > { %s639_s0 = sshll.u32 %s12372_s29, 4  ;;  %s12376_s29 = sld [smem:[#allocation62_spill]]  ;;  %s640_s0 = int_to_ptr.hbm [resolvable:$true] %s639_s0 }
  0x43   : > { %8699 = dma.hbm_to_vmem [thread:$0]  (!%p9904_p12), %s640_s0, 4096, %s642_s30, [#allocation3], %s12375_s3, %s12375_s3, %s12374_s27  }
  0x44   : > { %s670_s20 = sshll.u32 %s9694_s25, 4  ;;  %s9695_s5 = smov [#allocation10]   ;;  %s671_s20 = int_to_ptr.vmem [resolvable:$true] %s670_s20 }
  0x45   : > { %s668_s22 = sshll.u32 %s12373_s26, 4  ;;  %s698_s1 = sshll.u32 %s9695_s5, 4  ;;  %s669_s22 = int_to_ptr.hbm [resolvable:$true] %s668_s22  ;;  %s699_s1 = int_to_ptr.vmem [resolvable:$true] %s698_s1 }
  0x46   : > { %8705 = dma.hbm_to_vmem [thread:$0]  (!%p9904_p12), %s669_s22, 64, %s671_s20, [#allocation6]  }
  0x47   : > { %s736_s23 = sshll.u32 %s12271_s15, 4  ;;  %s12377_s0 = smov 64   ;;  %s737_s23 = int_to_ptr.hbm [resolvable:$true] %s736_s23 }
  0x48   : > { %s696_s13 = sshll.u32 %s12376_s29, 4  ;;  %s766_s3 = sshll.u32 %s12274_s18, 4  ;;  %s697_s13 = int_to_ptr.hbm [resolvable:$true] %s696_s13  ;;  %s767_s3 = int_to_ptr.hbm [resolvable:$true] %s766_s3 }
  0x49   : > { %8711 = dma.hbm_to_vmem [thread:$0]  (!%p9904_p12), %s697_s13, 1024, %s699_s1, [#allocation9], %s12377_s0, %s12377_s0, %s9692_s4  }
  0x4a   : > { %s9696_s22 = smov [#allocation13]   ;;  %s9697_s8 = smov [#allocation16]  }
  0x4b   : > { %s738_s24 = sshll.u32 %s9696_s22, 4  ;;  %s768_s29 = sshll.u32 %s9697_s8, 4  ;;  %s739_s24 = int_to_ptr.vmem [resolvable:$true] %s738_s24  ;;  %s769_s29 = int_to_ptr.vmem [resolvable:$true] %s768_s29 }
  0x4c   : > { %8717 = dma.hbm_to_vmem [thread:$0]  (!%p9904_p12), %s737_s23, 2048, %s739_s24, [#allocation12], %s12377_s0, %s12377_s0, %s9692_s4  }
  0x4d   : > { %s794_s13 = sshll.u32 %s12277_s21, 4  ;;  %s9698_s5 = smov [#allocation19]   ;;  %s795_s13 = int_to_ptr.hbm [resolvable:$true] %s794_s13 }
  0x4e   : > { %8723 = dma.hbm_to_vmem [thread:$0]  (!%p9904_p12), %s767_s3, 16, %s769_s29, [#allocation15]  }
  0x4f   : > { %s796_s1 = sshll.u32 %s9698_s5, 4  ;;  %822 = sbr.rel (%p9890_p10) target bundleno = 9208 (0x23f8), region = 112  ;;  %s797_s1 = int_to_ptr.vmem [resolvable:$true] %s796_s1 }
  0x50   : > { %8729 = dma.hbm_to_vmem [thread:$0]  (!%p9904_p12), %s795_s13, 1024, %s797_s1, [#allocation18], %s12377_s0, %s12377_s0, %s9692_s4  }
  0x54   : > { %9633 = dma.done.wait (%p8737_p9), [#allocation3], 4096  }
  0x55   : > { %9635 = vsyncadd (%p8737_p9), [#allocation3], 4294963200 }
  0x56   : > { %9637 = dma.done.wait (%p8737_p9), [#allocation6], 4160  }
  0x57   : > { %9639 = vsyncadd (%p8737_p9), [#allocation6], 4294963136 }
  0x58   : > { %9641 = dma.done.wait (%p8737_p9), [#allocation9], 4096  }
  0x59   : > { %9643 = vsyncadd (%p8737_p9), [#allocation9], 4294963200 }
  0x5a   : > { %9645 = dma.done.wait (%p8737_p9), [#allocation12], 4096  }
  0x5b   : > { %9647 = vsyncadd (%p8737_p9), [#allocation12], 4294963200 }
  0x5c   : > { %9649 = dma.done.wait (%p8737_p9), [#allocation15], 32  }
  0x5d   : > { %9651 = vsyncadd (%p8737_p9), [#allocation15], 4294967264 }
  0x5e   : > { %9653 = dma.done.wait (%p8737_p9), [#allocation18], 2048  }
  0x5f   : > { %9655 = vsyncadd (%p8737_p9), [#allocation18], 4294965248  ;;  %p949_p13 = scmp.lt.s32.totalorder %s9862_s7, 1  ;;  %s12378_s6 = sld [smem:[#allocation54_spill]]  ;;  %vm1091_vm0 = vcmask 523264  }
  0x60   : > { %s12380_s22 = sld [smem:[#allocation55_spill]]  ;;  %s9700_s20 = smov 64  }
  0x61   : > { %s10003_s28 = scalar_select %p949_p13, %s9862_s7, 1 }
  0x62   : > { %s12381_s23 = sld [smem:[#allocation53_spill]]  ;;  %s9701_s1 = smov 112  }
  0x63   : > { %s7612_s9 = sshll.u32 %s10003_s28, 3  ;;  %s12382_s25 = sld [smem:[#allocation56_spill]] }
  0x64   : > { %s12448_s5 = sld [smem:[#allocation61_spill]]  ;;  %s9704_s0 = smov 32  }
  0x65   : > { %s12379_s26 = smov %s12378_s6  ;;  %v7664_v0 = vld [vmem:[%s12378_s6 + $0x60] sm:$0xf]  ;;  %s9703_s6 = smov 80  }
  0x66   : > { %v8470_v1 = vld [vmem:[%s12379_s26 + $0x6c] sm:$0xf0]  ;;  %v7796_v2 = vld [vmem:[%s12380_s22 + $0xe0] sm:$0xf]  ;;  %v8469_v5 = vld [vmem:[%s12379_s26 + $0x6c] sm:$0xf] }
  0x67   : > { %v7665_v3 = vor.u32 %v8470_v1, %v7664_v0  ;;  %v8502_v4 = vld [vmem:[%s12380_s22 + $0xec] sm:$0xf0]  ;;  %v7674_v6 = vld [vmem:[%s12379_s26 + $0x78] sm:$0xf0]  ;;  %v7648_v9 = vld [vmem:[%s12379_s26 + $0x40] sm:$0xf] }
  0x68   : > { %v10024_v7 = vor.u32 %v8502_v4, %v7796_v2  ;;  %v7677_v8 = vor.u32 %v8469_v5, %v7674_v6  ;;  %v8466_v10 = vld [vmem:[%s12379_s26 + $0x4c] sm:$0xf0]  ;;  %v7780_v11 = vld [vmem:[%s12380_s22 + $0xc0] sm:$0xf]  ;;  %v8465_v14 = vld [vmem:[%s12379_s26 + $0x4c] sm:$0xf]  ;;  %s952_s4 = scalar_lea.vmem %s12381_s23, %s7612_s9 }
  0x69   : > { %1099 = vmatpush.bf16.msra.mxu1 %v7665_v3  ;;  %v7649_v12 = vor.u32 %v8466_v10, %v7648_v9  ;;  %v8498_v13 = vld [vmem:[%s12380_s22 + $0xcc] sm:$0xf0]  ;;  %v7658_v15 = vld [vmem:[%s12379_s26 + $0x58] sm:$0xf0]  ;;  %v7632_v18 = vld [vmem:[%s12379_s26 + $0x20] sm:$0xf] }
  0x6a   : > { %1355 = vmatpush.bf16.msra.mxu0 %v10024_v7  ;;  %1138 = vmatpush.bf16.msra.mxu3 %v7677_v8  ;;  %v10045_v16 = vor.u32 %v8498_v13, %v7780_v11  ;;  %v7661_v17 = vor.u32 %v8465_v14, %v7658_v15  ;;  %v8462_v19 = vld [vmem:[%s12379_s26 + $0x2c] sm:$0xf0]  ;;  %v7764_v20 = vld [vmem:[%s12380_s22 + $0xa0] sm:$0xf]  ;;  %v8461_v22 = vld [vmem:[%s12379_s26 + $0x2c] sm:$0xf] }
  0x6b   : > { %v8494_v21 = vld [vmem:[%s12380_s22 + $0xac] sm:$0xf0]  ;;  %v7642_v23 = vld [vmem:[%s12379_s26 + $0x38] sm:$0xf0]  ;;  %v7633_v24 = vor.u32 %v8462_v19, %v7632_v18  ;;  %v7616_v27 = vld [vmem:[%s12379_s26] sm:$0xf] }
  0x6c   : > { %v10066_v25 = vor.u32 %v8494_v21, %v7764_v20  ;;  %v7645_v26 = vor.u32 %v8461_v22, %v7642_v23  ;;  %v8458_v28 = vld [vmem:[%s12379_s26 + $0xc] sm:$0xf0]  ;;  %v7748_v29 = vld [vmem:[%s12380_s22 + $0x80] sm:$0xf]  ;;  %v8468_v31 = vld [vmem:[%s12379_s26 + $0x64] sm:$0xf] }
  0x6d   : > { %1100 = vmatpush.bf16.msra.mxu1 %v7649_v12  ;;  %v8490_v30 = vld [vmem:[%s12380_s22 + $0x8c] sm:$0xf0]  ;;  %v7666_v32 = vld [vmem:[%s12379_s26 + $0x70] sm:$0xf0]  ;;  %v8457_v33 = vld [vmem:[%s12379_s26 + $0xc] sm:$0xf]  ;;  %v7617_v35 = vor.u32 %v8458_v28, %v7616_v27 }
  0x6e   : > { %1356 = vmatpush.bf16.msra.mxu0 %v10045_v16  ;;  %1139 = vmatpush.bf16.msra.mxu3 %v7661_v17  ;;  %v7626_v34 = vld [vmem:[%s12379_s26 + $0x18] sm:$0xf0]  ;;  %v8501_v36 = vld [vmem:[%s12380_s22 + $0xec] sm:$0xf]  ;;  %v958_v38 = vld [vmem:[%s952_s4] sm:$0xff]  ;;  %v10104_v39 = vor.u32 %v8490_v30, %v7748_v29  ;;  %v7669_v40 = vor.u32 %v8468_v31, %v7666_v32  ;;  %s9702_s23 = smov 16  }
  0x6f   : > { %v7806_v37 = vld [vmem:[%s12380_s22 + $0xf8] sm:$0xf0]  ;;  %v7732_v41 = vld [vmem:[%s12380_s22 + $0x60] sm:$0xf]  ;;  %v7629_v42 = vor.u32 %v8457_v33, %v7626_v34  ;;  %v8486_v43 = vld [vmem:[%s12380_s22 + $0x6c] sm:$0xf0]  ;;  %v10120_v47 = vpack.c.bf16 %v958_v38, %v958_v38 }
  0x70   : > { %v8464_v44 = vld [vmem:[%s12379_s26 + $0x44] sm:$0xf]  ;;  %v7650_v45 = vld [vmem:[%s12379_s26 + $0x50] sm:$0xf0]  ;;  %v10118_v46 = vor.u32 %v8501_v36, %v7806_v37  ;;  %v8497_v48 = vld [vmem:[%s12380_s22 + $0xcc] sm:$0xf]  ;;  %v10129_v50 = vor.u32 %v8486_v43, %v7732_v41 }
  0x71   : > { %1101 = vmatpush.bf16.msra.mxu1 %v7633_v24  ;;  %v7790_v49 = vld [vmem:[%s12380_s22 + $0xd8] sm:$0xf0]  ;;  %v7653_v51 = vor.u32 %v8464_v44, %v7650_v45  ;;  %v7716_v52 = vld [vmem:[%s12380_s22 + $0x40] sm:$0xf]  ;;  %v8482_v53 = vld [vmem:[%s12380_s22 + $0x4c] sm:$0xf0] }
  0x72   : > { %1357 = vmatpush.bf16.msra.mxu0 %v10066_v25  ;;  %1140 = vmatpush.bf16.msra.mxu3 %v7645_v26  ;;  %v8460_v54 = vld [vmem:[%s12379_s26 + $0x24] sm:$0xf]  ;;  %v7634_v55 = vld [vmem:[%s12379_s26 + $0x30] sm:$0xf0]  ;;  %v10146_v56 = vor.u32 %v8497_v48, %v7790_v49  ;;  %v8493_v57 = vld [vmem:[%s12380_s22 + $0xac] sm:$0xf]  ;;  %v10155_v59 = vor.u32 %v8482_v53, %v7716_v52 }
  0x73   : > { %v7774_v58 = vld [vmem:[%s12380_s22 + $0xb8] sm:$0xf0]  ;;  %v7637_v60 = vor.u32 %v8460_v54, %v7634_v55  ;;  %v7700_v61 = vld [vmem:[%s12380_s22 + $0x20] sm:$0xf]  ;;  %v8478_v62 = vld [vmem:[%s12380_s22 + $0x2c] sm:$0xf0] }
  0x74   : > { %v8456_v63 = vld [vmem:[%s12379_s26 + $0x4] sm:$0xf]  ;;  %v7618_v0 = vld [vmem:[%s12379_s26 + $0x10] sm:$0xf0]  ;;  %v10172_v1 = vor.u32 %v8493_v57, %v7774_v58  ;;  %v8489_v4 = vld [vmem:[%s12380_s22 + $0x8c] sm:$0xf]  ;;  %v10193_v9 = vor.u32 %v8478_v62, %v7700_v61 }
  0x75   : > { %1102 = vmatpush.bf16.msra.mxu1 %v7617_v35  ;;  %v8500_v2 = vld [vmem:[%s12380_s22 + $0xe4] sm:$0xf]  ;;  %v7798_v3 = vld [vmem:[%s12380_s22 + $0xf0] sm:$0xf0]  ;;  %v7758_v5 = vld [vmem:[%s12380_s22 + $0x98] sm:$0xf0]  ;;  %v7621_v10 = vor.u32 %v8456_v63, %v7618_v0 }
  0x76   : > { %1358 = vmatpush.bf16.msra.mxu0 %v10104_v39  ;;  %1141 = vmatpush.bf16.msra.mxu3 %v7629_v42  ;;  %v7684_v6 = vld [vmem:[%s12380_s22] sm:$0xf]  ;;  %v8474_v8 = vld [vmem:[%s12380_s22 + $0xc] sm:$0xf0]  ;;  %v8496_v11 = vld [vmem:[%s12380_s22 + $0xc4] sm:$0xf]  ;;  %v10201_v13 = vor.u32 %v8500_v2, %v7798_v3  ;;  %v10204_v14 = vor.u32 %v8489_v4, %v7758_v5 }
  0x77   : > { %v7782_v12 = vld [vmem:[%s12380_s22 + $0xd0] sm:$0xf0]  ;;  %v8485_v15 = vld [vmem:[%s12380_s22 + $0x6c] sm:$0xf]  ;;  %v7742_v17 = vld [vmem:[%s12380_s22 + $0x78] sm:$0xf0]  ;;  %v10213_v18 = vor.u32 %v8474_v8, %v7684_v6 }
  0x78   : > { %7678 = vmatmul.msk.bf16.vlgmr.msra.gmra.mxu1 %vm1091_vm0, %v10120_v47  ;;  %v7672_v19 = vld [vmem:[%s12379_s26 + $0x68] sm:$0xf]  ;;  %v8471_v20 = vld [vmem:[%s12379_s26 + $0x74] sm:$0xf0]  ;;  %v10225_v22 = vor.u32 %v8496_v11, %v7782_v12  ;;  %v10231_v26 = vor.u32 %v8485_v15, %v7742_v17  ;;  %v8492_v27 = vld [vmem:[%s12380_s22 + $0xa4] sm:$0xf] }
  0x79   : > { %1112 = vmatpush.bf16.msrb.mxu1 %v7669_v40  ;;  %7681 = vmatmul.msk.bf16.vlgmr.msra.gmra.mxu3 %vm1091_vm0, %v10120_v47  ;;  %v7656_v21 = vld [vmem:[%s12379_s26 + $0x48] sm:$0xf]  ;;  %v7673_v23 = vor.u32 %v8471_v20, %v7672_v19  ;;  %v8467_v24 = vld [vmem:[%s12379_s26 + $0x54] sm:$0xf0]  ;;  %v7766_v28 = vld [vmem:[%s12380_s22 + $0xb0] sm:$0xf0] }
  0x7a   : > { %1394 = vmatpush.bf16.msrb.mxu3 %v10118_v46  ;;  %1359 = vmatpush.bf16.msra.mxu0 %v10129_v50  ;;  %v8481_v29 = vld [vmem:[%s12380_s22 + $0x4c] sm:$0xf]  ;;  %v7726_v30 = vld [vmem:[%s12380_s22 + $0x58] sm:$0xf0]  ;;  %v7657_v31 = vor.u32 %v8467_v24, %v7656_v21  ;;  %v7640_v32 = vld [vmem:[%s12379_s26 + $0x28] sm:$0xf]  ;;  %v10253_v34 = vor.u32 %v8492_v27, %v7766_v28 }
  0x7b   : > { %1125 = vmatpush.bf16.msra.mxu2 %v7673_v23  ;;  %v8463_v33 = vld [vmem:[%s12379_s26 + $0x34] sm:$0xf0]  ;;  %v10259_v35 = vor.u32 %v8481_v29, %v7726_v30  ;;  %v8488_v36 = vld [vmem:[%s12380_s22 + $0x84] sm:$0xf]  ;;  %v7750_v37 = vld [vmem:[%s12380_s22 + $0x90] sm:$0xf0] }
  0x7c   : > { %v12298_v38 = vmov 0   ;;  %v8477_v40 = vld [vmem:[%s12380_s22 + $0x2c] sm:$0xf]  ;;  %v7710_v41 = vld [vmem:[%s12380_s22 + $0x38] sm:$0xf0]  ;;  %v7641_v42 = vor.u32 %v8463_v33, %v7640_v32  ;;  %v10281_v45 = vor.u32 %v8488_v36, %v7750_v37  ;;  %s9705_s30 = smov 48  }
  0x7d   : > { %1113 = vmatpush.bf16.msrb.mxu1 %v7653_v51  ;;  %v7624_v43 = vld [vmem:[%s12379_s26 + $0x8] sm:$0xf]  ;;  %v8459_v44 = vld [vmem:[%s12379_s26 + $0x14] sm:$0xf0]  ;;  %v10291_v51 = vor.u32 %v8477_v40, %v7710_v41  ;;  %v8484_v52 = vld [vmem:[%s12380_s22 + $0x64] sm:$0xf] }
  0x7e   : > { %1395 = vmatpush.bf16.msrb.mxu3 %v10146_v56  ;;  %1360 = vmatpush.bf16.msra.mxu0 %v10155_v59  ;;  %v7804_v48 = vld [vmem:[%s12380_s22 + $0xe8] sm:$0xf]  ;;  %v8503_v49 = vld [vmem:[%s12380_s22 + $0xf4] sm:$0xf0]  ;;  %v7734_v53 = vld [vmem:[%s12380_s22 + $0x70] sm:$0xf0]  ;;  %v7625_v57 = vor.u32 %v8459_v44, %v7624_v43 }
  0x7f   : > { %1126 = vmatpush.bf16.msra.mxu2 %v7657_v31  ;;  %v8473_v54 = vld [vmem:[%s12380_s22 + $0xc] sm:$0xf]  ;;  %v7694_v55 = vld [vmem:[%s12380_s22 + $0x18] sm:$0xf0]  ;;  %v10305_v58 = vor.u32 %v8503_v49, %v7804_v48  ;;  %v7788_v61 = vld [vmem:[%s12380_s22 + $0xc8] sm:$0xf] }
  0x80   : > { %v8499_v62 = vld [vmem:[%s12380_s22 + $0xd4] sm:$0xf0]  ;;  %v10318_v63 = vor.u32 %v8473_v54, %v7694_v55  ;;  %v8480_v0 = vld [vmem:[%s12380_s22 + $0x44] sm:$0xf]  ;;  %v7718_v2 = vld [vmem:[%s12380_s22 + $0x50] sm:$0xf0] }
  0x81   : > { %1114 = vmatpush.bf16.msrb.mxu1 %v7637_v60  ;;  %v10308_v60 = vor.u32 %v8484_v52, %v7734_v53  ;;  %v10327_v3 = vor.u32 %v8499_v62, %v7788_v61  ;;  %v10330_v4 = vor.u32 %v8480_v0, %v7718_v2  ;;  %v7772_v5 = vld [vmem:[%s12380_s22 + $0xa8] sm:$0xf]  ;;  %v8495_v6 = vld [vmem:[%s12380_s22 + $0xb4] sm:$0xf0]  ;;  %v8476_v8 = vld [vmem:[%s12380_s22 + $0x24] sm:$0xf]  ;;  %v959_v61 = vlaneseq }
  0x82   : > { %1396 = vmatpush.bf16.msrb.mxu3 %v10172_v1  ;;  %1361 = vmatpush.bf16.msra.mxu0 %v10193_v9  ;;  %v10350_v11 = vor.u32 %v8495_v6, %v7772_v5  ;;  %v7756_v15 = vld [vmem:[%s12380_s22 + $0x88] sm:$0xf]  ;;  %v8472_v17 = vld [vmem:[%s12380_s22 + $0x4] sm:$0xf]  ;;  %v7686_v19 = vld [vmem:[%s12380_s22 + $0x10] sm:$0xf0] }
  0x83   : > { %1127 = vmatpush.bf16.msra.mxu2 %v7641_v42  ;;  %v10374_v21 = vor.u32 %v8472_v17, %v7686_v19  ;;  %v7740_v23 = vld [vmem:[%s12380_s22 + $0x68] sm:$0xf]  ;;  %v8487_v24 = vld [vmem:[%s12380_s22 + $0x74] sm:$0xf0]  ;;  %v10476_v43 = vld [vmem:[%s12382_s25] sm:$0xf] }
  0x84   : > { %v10385_v27 = vor.u32 %v8487_v24, %v7740_v23  ;;  %v7724_v28 = vld [vmem:[%s12380_s22 + $0x48] sm:$0xf]  ;;  %v8483_v29 = vld [vmem:[%s12380_s22 + $0x54] sm:$0xf0]  ;;  %v1003_v48 = vperm.slane %v10476_v43, 0  ;;  %v1006_v62 = vperm.slane %v10476_v43, 3 }
  0x85   : > { %1115 = vmatpush.bf16.msrb.mxu1 %v7621_v10  ;;  %v7702_v10 = vld [vmem:[%s12380_s22 + $0x30] sm:$0xf0]  ;;  %v10399_v30 = vor.u32 %v8483_v29, %v7724_v28  ;;  %v7708_v31 = vld [vmem:[%s12380_s22 + $0x28] sm:$0xf]  ;;  %v8479_v32 = vld [vmem:[%s12380_s22 + $0x34] sm:$0xf0] }
  0x86   : > { %1397 = vmatpush.bf16.msrb.mxu3 %v10204_v14  ;;  %1362 = vmatpush.bf16.msra.mxu0 %v10213_v18  ;;  %v10354_v12 = vor.u32 %v8476_v8, %v7702_v10  ;;  %v10412_v33 = vor.u32 %v8479_v32, %v7708_v31  ;;  %v7692_v36 = vld [vmem:[%s12380_s22 + $0x8] sm:$0xf]  ;;  %v8475_v37 = vld [vmem:[%s12380_s22 + $0x14] sm:$0xf0]  ;;  %v960_v5 = vand.u32 127, %v959_v61  ;;  %s9706_s27 = smov 96  }
  0x87   : > { %1128 = vmatpush.bf16.msra.mxu2 %v7625_v57  ;;  %v10424_v40 = vor.u32 %v8475_v37, %v7692_v36  ;;  %s12043_s3 = sand.u32 1, %s9670_s2   ;;  %s12449_s10 = sld [smem:[#allocation63_spill]] }
  0x88   : > { %7679 = vmatmul.msk.bf16.vlgmr.msrb.gmra.mxu1 %vm1091_vm0, %v10120_v47  ;;  %v10485_v10 = vadd.s32 384, %v960_v5  ;;  %v10497_v24 = vadd.s32 128, %v960_v5  ;;  %s12340_s4 = sshll.u32 %s12043_s3, 3  ;;  %s12454_s8 = sld [smem:[#allocation68_spill]] }
  0x89   : > { %1368 = vmatpush.bf16.msra.mxu1 %v10201_v13  ;;  %1363 = vmatmul.bf16.vlgmr.msra.gmra.mxu0 %v12298_v38  ;;  %s12053_s24 = scalar_lea.vmem [#allocation21], %s12340_s4  ;;  %s12455_s9 = sld [smem:[#allocation65_spill]] }
  0x8a   : > { %1509 = vmatpush.bf16.msrb.mxu0 %v10024_v7  ;;  %1398 = vmatpush.bf16.msrb.mxu3 %v10231_v26  ;;  %12384 = vst [vmem:[#allocation39_spill] sm:$0xff] %v10485_v10  ;;  %vm12319_vm1 = vcmp.lt.s32.totalorder %v10485_v10, 448  ;;  %vm965_vm2 = vcmp.lt.s32.totalorder %v10497_v24, 192 }
  0x8b   : > { %1381 = vmatpush.bf16.msrb.mxu2 %v10305_v58  ;;  %12386 = vst [vmem:[#allocation41_spill] sm:$0xff] %v10497_v24 }
  0x8c   : > { %7680 = vmatmul.msk.bf16.vlgmr.msra.gmra.mxu2 %vm1091_vm0, %v10120_v47  ;;  %v8491_v47 = vld [vmem:[%s12380_s22 + $0x94] sm:$0xf0] }
  0x8d   : > { %1369 = vmatpush.bf16.msra.mxu1 %v10225_v22  ;;  %v10371_v20 = vor.u32 %v8491_v47, %v7756_v15  ;;  %v1004_v47 = vperm.slane %v10476_v43, 1 }
  0x8e   : > { %1510 = vmatpush.bf16.msrb.mxu0 %v10045_v16  ;;  %1399 = vmatpush.bf16.msrb.mxu3 %v10259_v35 }
  0x8f   : > { %1382 = vmatpush.bf16.msrb.mxu2 %v10327_v3 }
  0x91   : > { %1370 = vmatpush.bf16.msra.mxu1 %v10253_v34 }
  0x92   : > { %1511 = vmatpush.bf16.msrb.mxu0 %v10066_v25  ;;  %1400 = vmatpush.bf16.msrb.mxu3 %v10291_v51 }
  0x93   : > { %1383 = vmatpush.bf16.msrb.mxu2 %v10350_v11 }
  0x95   : > { %1371 = vmatpush.bf16.msra.mxu1 %v10281_v45 }
  0x96   : > { %1512 = vmatpush.bf16.msrb.mxu0 %v10104_v39  ;;  %1401 = vmatpush.bf16.msrb.mxu3 %v10318_v63 }
  0x97   : > { %1384 = vmatpush.bf16.msrb.mxu2 %v10371_v20 }
  0x99   : > { %1372 = vmatpush.bf16.msra.mxu1 %v10308_v60  ;;  %1402 = vmatmul.bf16.vlgmr.msrb.gmra.mxu3 %v12298_v38 }
  0x9a   : > { %1548 = vmatpush.bf16.msra.mxu3 %v10118_v46  ;;  %1513 = vmatpush.bf16.msrb.mxu0 %v10129_v50 }
  0x9b   : > { %1385 = vmatpush.bf16.msrb.mxu2 %v10385_v27 }
  0x9d   : > { %1373 = vmatpush.bf16.msra.mxu1 %v10330_v4 }
  0x9e   : > { %1549 = vmatpush.bf16.msra.mxu3 %v10146_v56  ;;  %1514 = vmatpush.bf16.msrb.mxu0 %v10155_v59 }
  0x9f   : > { %1386 = vmatpush.bf16.msrb.mxu2 %v10399_v30 }
  0xa1   : > { %1374 = vmatpush.bf16.msra.mxu1 %v10354_v12 }
  0xa2   : > { %1550 = vmatpush.bf16.msra.mxu3 %v10172_v1  ;;  %1515 = vmatpush.bf16.msrb.mxu0 %v10193_v9 }
  0xa3   : > { %1387 = vmatpush.bf16.msrb.mxu2 %v10412_v33 }
  0xa5   : > { %1375 = vmatpush.bf16.msra.mxu1 %v10374_v21 }
  0xa6   : > { %1551 = vmatpush.bf16.msra.mxu3 %v10204_v14  ;;  %1516 = vmatpush.bf16.msrb.mxu0 %v10213_v18 }
  0xa7   : > { %1388 = vmatpush.bf16.msrb.mxu2 %v10424_v40 }
  0xa8   : > { %1376 = vmatmul.bf16.vlgmr.msra.gmra.mxu1 %v12298_v38 }
  0xa9   : > { %1522 = vmatpush.bf16.msrb.mxu1 %v10201_v13 }
  0xaa   : > { %1552 = vmatpush.bf16.msra.mxu3 %v10231_v26  ;;  %1685 = vmatpush.bf16.msra.mxu0 %v10024_v7 }
  0xab   : > { %1535 = vmatpush.bf16.msra.mxu2 %v10305_v58 }
  0xac   : > { %1389 = vmatmul.bf16.vlgmr.msrb.gmra.mxu2 %v12298_v38 }
  0xad   : > { %1523 = vmatpush.bf16.msrb.mxu1 %v10225_v22 }
  0xae   : > { %1553 = vmatpush.bf16.msra.mxu3 %v10259_v35  ;;  %1686 = vmatpush.bf16.msra.mxu0 %v10045_v16 }
  0xaf   : > { %1536 = vmatpush.bf16.msra.mxu2 %v10327_v3 }
  0xb1   : > { %1524 = vmatpush.bf16.msrb.mxu1 %v10253_v34 }
  0xb2   : > { %1554 = vmatpush.bf16.msra.mxu3 %v10291_v51  ;;  %1687 = vmatpush.bf16.msra.mxu0 %v10066_v25 }
  0xb3   : > { %1537 = vmatpush.bf16.msra.mxu2 %v10350_v11 }
  0xb5   : > { %1525 = vmatpush.bf16.msrb.mxu1 %v10281_v45 }
  0xb6   : > { %1555 = vmatpush.bf16.msra.mxu3 %v10318_v63  ;;  %1688 = vmatpush.bf16.msra.mxu0 %v10104_v39 }
  0xb7   : > { %1538 = vmatpush.bf16.msra.mxu2 %v10371_v20 }
  0xb9   : > { %1526 = vmatpush.bf16.msrb.mxu1 %v10308_v60 }
  0xba   : > { %1724 = vmatpush.bf16.msrb.mxu3 %v10118_v46  ;;  %1689 = vmatpush.bf16.msra.mxu0 %v10129_v50 }
  0xbb   : > { %1539 = vmatpush.bf16.msra.mxu2 %v10385_v27 }
  0xbd   : > { %1527 = vmatpush.bf16.msrb.mxu1 %v10330_v4 }
  0xbe   : > { %1725 = vmatpush.bf16.msrb.mxu3 %v10146_v56  ;;  %1690 = vmatpush.bf16.msra.mxu0 %v10155_v59 }
  0xbf   : > { %1540 = vmatpush.bf16.msra.mxu2 %v10399_v30 }
  0xc1   : > { %1528 = vmatpush.bf16.msrb.mxu1 %v10354_v12 }
  0xc2   : > { %1726 = vmatpush.bf16.msrb.mxu3 %v10172_v1  ;;  %1691 = vmatpush.bf16.msra.mxu0 %v10193_v9 }
  0xc3   : > { %1541 = vmatpush.bf16.msra.mxu2 %v10412_v33 }
  0xc5   : > { %1529 = vmatpush.bf16.msrb.mxu1 %v10374_v21 }
  0xc6   : > { %1727 = vmatpush.bf16.msrb.mxu3 %v10204_v14  ;;  %1692 = vmatpush.bf16.msra.mxu0 %v10213_v18 }
  0xc7   : > { %1542 = vmatpush.bf16.msra.mxu2 %v10424_v40 }
  0xc9   : > { %1698 = vmatpush.bf16.msra.mxu1 %v10201_v13 }
  0xca   : > { %1728 = vmatpush.bf16.msrb.mxu3 %v10231_v26 }
  0xcb   : > { %1711 = vmatpush.bf16.msrb.mxu2 %v10305_v58 }
  0xcd   : > { %1699 = vmatpush.bf16.msra.mxu1 %v10225_v22 }
  0xce   : > { %1729 = vmatpush.bf16.msrb.mxu3 %v10259_v35 }
  0xcf   : > { %1712 = vmatpush.bf16.msrb.mxu2 %v10327_v3 }
  0xd1   : > { %1700 = vmatpush.bf16.msra.mxu1 %v10253_v34 }
  0xd2   : > { %1730 = vmatpush.bf16.msrb.mxu3 %v10291_v51 }
  0xd3   : > { %1713 = vmatpush.bf16.msrb.mxu2 %v10350_v11 }
  0xd5   : > { %1701 = vmatpush.bf16.msra.mxu1 %v10281_v45 }
  0xd6   : > { %1731 = vmatpush.bf16.msrb.mxu3 %v10318_v63 }
  0xd7   : > { %1714 = vmatpush.bf16.msrb.mxu2 %v10371_v20 }
  0xd9   : > { %1702 = vmatpush.bf16.msra.mxu1 %v10308_v60 }
  0xdb   : > { %1715 = vmatpush.bf16.msrb.mxu2 %v10385_v27 }
  0xdd   : > { %1703 = vmatpush.bf16.msra.mxu1 %v10330_v4 }
  0xdf   : > { %1716 = vmatpush.bf16.msrb.mxu2 %v10399_v30 }
  0xe1   : > { %1704 = vmatpush.bf16.msra.mxu1 %v10354_v12 }
  0xe3   : > { %1717 = vmatpush.bf16.msrb.mxu2 %v10412_v33 }
  0xe5   : > { %1705 = vmatpush.bf16.msra.mxu1 %v10374_v21 }
  0xe7   : > { %1718 = vmatpush.bf16.msrb.mxu2 %v10424_v40 }
  0xf5   : > { %v1104_v41 = vpop.f32.mrf.mxu1 }
  0xf6   : > { %v10479_v49 = vadd.f32 %v1104_v41, %v1003_v48 }
  0xfc   : > { %v1143_v44 = vpop.f32.mrf.mxu3 }
  0xfd   : > { %v1106_v42 = vpop.f32.mrf.mxu1  ;;  %v10483_v6 = vadd.f32 %v1143_v44, %v1006_v62 }
  0xff   : > { %12383 = vst [vmem:[#allocation38_spill] sm:$0xff] %v10483_v6  ;;  %v1186_v17 = vrot.slane %v10483_v6, 7 }
 0x101   : > { %v10495_v23 = vsel %vm12319_vm1, %v10483_v6, %v1186_v17 }
 0x102   : > { %12385 = vst [vmem:[#allocation40_spill] sm:$0xff] %v10495_v23 }
 0x104   : > { %v1145_v54 = vpop.f32.mrf.mxu3 }
 0x105   : > { %v1117_v52 = vpop.f32.mrf.mxu1 }
 0x106   : > { %v1364_v53 = vpop.f32.mrf.mxu0  ;;  %v10490_v19 = vadd.f32 %v1117_v52, %v1004_v47 }
 0x107   : > { %v1407_v55 = vadd.f32 %v1364_v53, %v10479_v49 }
 0x108   : > { %v1184_v32 = vrot.slane %v10490_v19, 7 }
 0x109   : > { %v7810_v57 = vmul.f32 -1.442695, %v1407_v55 }
 0x10a   : > { %v10505_v42 = vsel %vm965_vm2, %v10490_v19, %v1184_v32 }
 0x10b   : > { %8902 = vpow2.f32 %v7810_v57  ;;  %12387 = vst [vmem:[#allocation42_spill] sm:$0xff] %v10505_v42 }
 0x10d   : > { %v1119_v0 = vpop.f32.mrf.mxu1 }
 0x10e   : > { %v1366_v2 = vpop.f32.mrf.mxu0 }
 0x10f   : > { %v1130_v54 = vpop.f32.mrf.mxu2 }
 0x111   : > { %v8903_v8 = vpop.eup %8902 }
 0x112   : > { %v1420_v15 = vadd.f32 1.0, %v8903_v8 }
 0x114   : > { %8904 = vrcp.f32 %v1420_v15  ;;  %v1434_v41 = vand.u32 2147483648, %v1420_v15  ;;  %v1432_v52 = vand.u32 2147483647, %v1420_v15  ;;  %vm1428_vm4 = vweird.f32 %v1420_v15 }
 0x116   : > { %v1435_v61 = vor.u32 1.1754944e-38, %v1434_v41  ;;  %vm1433_vm6 = vcmp.eq.f32.partialorder %v1432_v52, 8.507059e+37 }
 0x117   : > { %v1132_v17 = vpop.f32.mrf.mxu2 }
 0x11a   : > { %v8905_v28 = vpop.eup %8904 }
 0x11b   : > { %v1424_v36 = vmul.f32 %v8905_v28, %v1420_v15  ;;  %vm1429_vm3 = vweird.f32 %v8905_v28 }
 0x11c   : > { %v1403_v29 = vpop.f32.mrf.mxu3  ;;  %vm1430_vm5 = vmor %vm1428_vm4, %vm1429_vm3 }
 0x11d   : > { %v1410_v31 = vadd.f32 %v1403_v29, %v10495_v23  ;;  %v1425_v37 = vsub.f32 1.0, %v1424_v36 }
 0x11f   : > { %8906 = vtanh.f32 %v1410_v31  ;;  %v1426_v48 = vmul.f32 %v8905_v28, %v1425_v37 }
 0x121   : > { %v1427_v55 = vadd.f32 %v8905_v28, %v1426_v48 }
 0x123   : > { %v1431_v2 = vsel %vm1430_vm5, %v8905_v28, %v1427_v55 }
 0x124   : > { %v1405_v62 = vpop.f32.mrf.mxu3  ;;  %v1436_v5 = vsel %vm1433_vm6, %v1435_v61, %v1431_v2 }
 0x125   : > { %v1377_v44 = vpop.f32.mrf.mxu1  ;;  %v8907_v0 = vpop.eup %8906  ;;  %v1005_v62 = vperm.slane %v10476_v43, 2 }
 0x126   : > { %v1408_v53 = vadd.f32 %v1377_v44, %v10505_v42  ;;  %v1470_v8 = vmul.f32 %v8907_v0, %v1436_v5 }
 0x127   : > { %v10511_v2 = vadd.f32 %v1130_v54, %v1005_v62 }
 0x128   : > { %v7811_v57 = vmul.f32 -1.442695, %v1408_v53  ;;  %1472 = vrot.lane.b32.xlu0 %v1470_v8, %s9700_s20 }
 0x129   : > { %v12300_v8 = vrot.slane %v10511_v2, 7 }
 0x12a   : > { %8908 = vpow2.f32 %v7811_v57 }
 0x12d   : > { %v1379_v47 = vpop.f32.mrf.mxu1 }
 0x12f   : > { %v1390_v36 = vpop.f32.mrf.mxu2 }
 0x130   : > { %v8909_v29 = vpop.eup %8908  ;;  %v1409_v47 = vadd.f32 %v1390_v36, %v12300_v8 }
 0x131   : > { %v1421_v31 = vadd.f32 1.0, %v8909_v29 }
 0x132   : > { %v7812_v17 = vmul.f32 -1.442695, %v1409_v47 }
 0x133   : > { %8910 = vrcp.f32 %v1421_v31  ;;  %v1449_v41 = vand.u32 2147483648, %v1421_v31  ;;  %v1447_v28 = vand.u32 2147483647, %v1421_v31  ;;  %vm1443_vm8 = vweird.f32 %v1421_v31 }
 0x134   : > { %8912 = vpow2.f32 %v7812_v17 }
 0x135   : > { %v1450_v52 = vor.u32 1.1754944e-38, %v1449_v41  ;;  %vm1448_vm10 = vcmp.eq.f32.partialorder %v1447_v28, 8.507059e+37 }
 0x137   : > { %v1392_v55 = vpop.f32.mrf.mxu2 }
 0x139   : > { %v8911_v32 = vpop.eup %8910 }
 0x13a   : > { %v1439_v15 = vmul.f32 %v8911_v32, %v1421_v31  ;;  %vm1444_vm7 = vweird.f32 %v8911_v32  ;;  %v8913_v29 = vpop.eup %8912 }
 0x13b   : > { %vm1445_vm9 = vmor %vm1443_vm8, %vm1444_vm7  ;;  %v1422_v31 = vadd.f32 1.0, %v8913_v29 }
 0x13c   : > { %v1440_v37 = vsub.f32 1.0, %v1439_v15  ;;  %v1469_v15 = vmul.f32 0.0, %v1436_v5 }
 0x13d   : > { %8914 = vrcp.f32 %v1422_v31  ;;  %vm1458_vm11 = vweird.f32 %v1422_v31  ;;  %v1464_v36 = vand.u32 2147483648, %v1422_v31 }
 0x13e   : > { %v1441_v44 = vmul.f32 %v8911_v32, %v1440_v37 }
 0x140   : > { %v1442_v48 = vadd.f32 %v8911_v32, %v1441_v44 }
 0x142   : > { %v1446_v53 = vsel %vm1445_vm9, %v8911_v32, %v1442_v48  ;;  %v1462_v48 = vand.u32 2147483647, %v1422_v31 }
 0x143   : > { %v1451_v57 = vsel %vm1448_vm10, %v1450_v52, %v1446_v53  ;;  %v8915_v32 = vpop.eup %8914  ;;  %v1465_v52 = vor.u32 1.1754944e-38, %v1464_v36 }
 0x144   : > { %v1477_v61 = vmul.f32 %v8907_v0, %v1451_v57  ;;  %v1454_v41 = vmul.f32 %v8915_v32, %v1422_v31  ;;  %vm1459_vm12 = vweird.f32 %v8915_v32  ;;  %vm1463_vm14 = vcmp.eq.f32.partialorder %v1462_v48, 8.507059e+37 }
 0x145   : > { %vm1460_vm13 = vmor %vm1458_vm11, %vm1459_vm12 }
 0x146   : > { %1479 = vrot.lane.b32.xlu0 %v1477_v61, %s9700_s20  ;;  %v1455_v43 = vsub.f32 1.0, %v1454_v41 }
 0x148   : > { %v1456_v44 = vmul.f32 %v8915_v32, %v1455_v43 }
 0x14a   : > { %v1457_v28 = vadd.f32 %v8915_v32, %v1456_v44 }
 0x14c   : > { %v1461_v53 = vsel %vm1460_vm13, %v8915_v32, %v1457_v28 }
 0x14d   : > { %v1466_v5 = vsel %vm1463_vm14, %v1465_v52, %v1461_v53 }
 0x14e   : > { %v1476_v55 = vmul.f32 0.0, %v1466_v5 }
 0x19a   : > { %v1473_v37 = vpop.permute.xlu0 %1472 }
 0x19b   : > { %v10516_v0 = vadd.f32 %v1473_v37, %v1469_v15 }
 0x19d   : > { %8916 = vtanh.f32 %v10516_v0  ;;  %v1636_v8 = vrot.slane %v10516_v0, 7 }
 0x1a3   : > { %v8917_v54 = vpop.eup %8916 }
 0x1a4   : > { %1485 = vrot.lane.b32.xlu1 %v8917_v54, %s9700_s20 }
 0x1b8   : > { %v1480_v61 = vpop.permute.xlu0 %1479 }
 0x1b9   : > { %v10520_v62 = vadd.f32 %v1480_v61, %v1476_v55 }
 0x1bb   : > { %8918 = vtanh.f32 %v10520_v62 }
 0x1c1   : > { %v8919_v47 = vpop.eup %8918 }
 0x1c2   : > { %1491 = vrot.lane.b32.xlu1 %v8919_v47, %s9700_s20 }
 0x216   : > { %v1486_v17 = vpop.permute.xlu1 %1485 }
 0x217   : > { %v10524_v15 = vmul.f32 %v1486_v17, %v1451_v57  ;;  %v1497_v57 = vrot.slane %v10490_v19, 5 }
 0x219   : > { %v10567_v36 = vsel %vm965_vm2, %v10490_v19, %v1497_v57  ;;  %v1499_v57 = vrot.slane %v10483_v6, 5 }
 0x21a   : > { %12389 = vst [vmem:[#allocation44_spill] sm:$0xff] %v10567_v36 }
 0x234   : > { %v1492_v29 = vpop.permute.xlu1 %1491 }
 0x235   : > { %v10526_v37 = vmul.f32 %v1492_v29, %v1466_v5 }
 0x237   : > { %12388 = vst [vmem:[#allocation43_spill] sm:$0xff] %v10526_v37  ;;  %v1495_v31 = vsel %vm1091_vm0, %v10524_v15, %v10526_v37 }
 0x238   : > { %v1508_v32 = vpack.c.bf16 %v1495_v31, %v1495_v31 }
 0x23a   : > { %1517 = vmatmul.bf16.vlgmr.msrb.gmra.mxu0 %v1508_v32  ;;  %1530 = vmatmul.bf16.vlgmr.msrb.gmra.mxu1 %v1508_v32 }
 0x23b   : > { %1543 = vmatmul.bf16.vlgmr.msra.gmra.mxu2 %v1508_v32  ;;  %1556 = vmatmul.bf16.vlgmr.msra.gmra.mxu3 %v1508_v32 }
 0x23c   : > { %1860 = vmatpush.bf16.msrb.mxu0 %v10024_v7  ;;  %1873 = vmatpush.bf16.msrb.mxu1 %v10201_v13 }
 0x23d   : > { %1886 = vmatpush.bf16.msra.mxu2 %v10305_v58  ;;  %1899 = vmatpush.bf16.msra.mxu3 %v10118_v46 }
 0x240   : > { %1861 = vmatpush.bf16.msrb.mxu0 %v10045_v16  ;;  %1874 = vmatpush.bf16.msrb.mxu1 %v10225_v22 }
 0x241   : > { %1887 = vmatpush.bf16.msra.mxu2 %v10327_v3  ;;  %1900 = vmatpush.bf16.msra.mxu3 %v10146_v56 }
 0x244   : > { %1862 = vmatpush.bf16.msrb.mxu0 %v10066_v25  ;;  %1875 = vmatpush.bf16.msrb.mxu1 %v10253_v34 }
 0x245   : > { %1888 = vmatpush.bf16.msra.mxu2 %v10350_v11  ;;  %1901 = vmatpush.bf16.msra.mxu3 %v10172_v1 }
 0x248   : > { %1863 = vmatpush.bf16.msrb.mxu0 %v10104_v39  ;;  %1876 = vmatpush.bf16.msrb.mxu1 %v10281_v45 }
 0x249   : > { %1889 = vmatpush.bf16.msra.mxu2 %v10371_v20  ;;  %1902 = vmatpush.bf16.msra.mxu3 %v10204_v14 }
 0x24c   : > { %1864 = vmatpush.bf16.msrb.mxu0 %v10129_v50  ;;  %1877 = vmatpush.bf16.msrb.mxu1 %v10308_v60 }
 0x24d   : > { %1890 = vmatpush.bf16.msra.mxu2 %v10385_v27  ;;  %1903 = vmatpush.bf16.msra.mxu3 %v10231_v26 }
 0x250   : > { %1865 = vmatpush.bf16.msrb.mxu0 %v10155_v59  ;;  %1878 = vmatpush.bf16.msrb.mxu1 %v10330_v4 }
 0x251   : > { %1891 = vmatpush.bf16.msra.mxu2 %v10399_v30  ;;  %1904 = vmatpush.bf16.msra.mxu3 %v10259_v35 }
 0x254   : > { %1866 = vmatpush.bf16.msrb.mxu0 %v10193_v9  ;;  %1879 = vmatpush.bf16.msrb.mxu1 %v10354_v12 }
 0x255   : > { %1892 = vmatpush.bf16.msra.mxu2 %v10412_v33  ;;  %1905 = vmatpush.bf16.msra.mxu3 %v10291_v51 }
 0x258   : > { %1867 = vmatpush.bf16.msrb.mxu0 %v10213_v18  ;;  %1880 = vmatpush.bf16.msrb.mxu1 %v10374_v21 }
 0x259   : > { %1893 = vmatpush.bf16.msra.mxu2 %v10424_v40  ;;  %1906 = vmatpush.bf16.msra.mxu3 %v10318_v63 }
 0x2b7   : > { %v1518_v41 = vpop.f32.mrf.mxu0  ;;  %v1531_v43 = vpop.f32.mrf.mxu1 }
 0x2b8   : > { %v1565_v54 = vrot.slane %v1518_v41, 7  ;;  %v1566_v44 = vrot.slane %v1531_v43, 7 }
 0x2ba   : > { %v1573_v28 = vadd.f32 %v1565_v54, %v10479_v49  ;;  %v1574_v48 = vadd.f32 %v1566_v44, %v10567_v36  ;;  %v10575_v44 = vsel %vm12319_vm1, %v10483_v6, %v1499_v57 }
 0x2bb   : > { %12390 = vst [vmem:[#allocation45_spill] sm:$0xff] %v10575_v44 }
 0x2bc   : > { %v7813_v52 = vmul.f32 -1.442695, %v1573_v28  ;;  %v7814_v53 = vmul.f32 -1.442695, %v1574_v48 }
 0x2be   : > { %8920 = vpow2.f32 %v7813_v52  ;;  %v1544_v5 = vpop.f32.mrf.mxu2  ;;  %v1557_v55 = vpop.f32.mrf.mxu3 }
 0x2bf   : > { %8922 = vpow2.f32 %v7814_v53  ;;  %v1520_v61 = vpop.f32.mrf.mxu0  ;;  %v1533_v47 = vpop.f32.mrf.mxu1  ;;  %v1568_v54 = vrot.slane %v1557_v55, 7 }
 0x2c1   : > { %v1576_v48 = vadd.f32 %v1568_v54, %v10575_v44 }
 0x2c4   : > { %v8921_v17 = vpop.eup %8920 }
 0x2c5   : > { %v8923_v29 = vpop.eup %8922  ;;  %v1586_v31 = vadd.f32 1.0, %v8921_v17 }
 0x2c6   : > { %v1587_v32 = vadd.f32 1.0, %v8923_v29  ;;  %v1546_v41 = vpop.f32.mrf.mxu2  ;;  %v1559_v43 = vpop.f32.mrf.mxu3 }
 0x2c7   : > { %8924 = vrcp.f32 %v1586_v31  ;;  %v1600_v17 = vand.u32 2147483648, %v1586_v31  ;;  %v1598_v43 = vand.u32 2147483647, %v1586_v31  ;;  %vm1594_vm3 = vweird.f32 %v1586_v31 }
 0x2c8   : > { %8926 = vrcp.f32 %v1587_v32  ;;  %vm1609_vm7 = vweird.f32 %v1587_v32 }
 0x2c9   : > { %8928 = vtanh.f32 %v1576_v48  ;;  %v1601_v57 = vor.u32 1.1754944e-38, %v1600_v17  ;;  %vm1599_vm5 = vcmp.eq.f32.partialorder %v1598_v43, 8.507059e+37 }
 0x2cd   : > { %v8925_v28 = vpop.eup %8924 }
 0x2ce   : > { %v8927_v52 = vpop.eup %8926  ;;  %v1590_v53 = vmul.f32 %v8925_v28, %v1586_v31  ;;  %vm1595_vm15 = vweird.f32 %v8925_v28 }
 0x2cf   : > { %v1605_v61 = vmul.f32 %v8927_v52, %v1587_v32  ;;  %vm1596_vm4 = vmor %vm1594_vm3, %vm1595_vm15  ;;  %vm1610_vm6 = vweird.f32 %v8927_v52  ;;  %v8929_v44 = vpop.eup %8928 }
 0x2d0   : > { %v1591_v47 = vsub.f32 1.0, %v1590_v53  ;;  %v1615_v53 = vand.u32 2147483648, %v1587_v32  ;;  %vm1611_vm8 = vmor %vm1609_vm7, %vm1610_vm6 }
 0x2d1   : > { %v1606_v29 = vsub.f32 1.0, %v1605_v61  ;;  %v1613_v61 = vand.u32 2147483647, %v1587_v32 }
 0x2d2   : > { %v1592_v41 = vmul.f32 %v8925_v28, %v1591_v47  ;;  %v1616_v31 = vor.u32 1.1754944e-38, %v1615_v53 }
 0x2d3   : > { %v1607_v38 = vmul.f32 %v8927_v52, %v1606_v29  ;;  %vm1614_vm9 = vcmp.eq.f32.partialorder %v1613_v61, 8.507059e+37 }
 0x2d4   : > { %v1593_v55 = vadd.f32 %v8925_v28, %v1592_v41 }
 0x2d5   : > { %v1608_v54 = vadd.f32 %v8927_v52, %v1607_v38  ;;  %v12304_v38 = vrot.slane %v10511_v2, 5 }
 0x2d6   : > { %v1597_v37 = vsel %vm1596_vm4, %v8925_v28, %v1593_v55  ;;  %v1567_v28 = vrot.slane %v1544_v5, 7 }
 0x2d7   : > { %v1602_v36 = vsel %vm1599_vm5, %v1601_v57, %v1597_v37  ;;  %v1612_v29 = vsel %vm1611_vm8, %v8927_v52, %v1608_v54 }
 0x2d8   : > { %v1639_v48 = vmul.f32 %v8929_v44, %v1602_v36  ;;  %v1638_v47 = vmul.f32 %v1636_v8, %v1602_v36  ;;  %v1617_v0 = vsel %vm1614_vm9, %v1616_v31, %v1612_v29  ;;  %v1575_v37 = vadd.f32 %v1567_v28, %v12304_v38 }
 0x2d9   : > { %v1649_v41 = vmul.f32 %v8929_v44, %v1617_v0  ;;  %v1646_v31 = vrot.slane %v10520_v62, 7 }
 0x2da   : > { %1641 = vrot.lane.b32.xlu2 %v1639_v48, %s9700_s20  ;;  %v7815_v17 = vmul.f32 -1.442695, %v1575_v37 }
 0x2dc   : > { %8930 = vpow2.f32 %v7815_v17 }
 0x2e2   : > { %1651 = vrot.lane.b32.xlu2 %v1649_v41, %s9700_s20  ;;  %v8931_v32 = vpop.eup %8930 }
 0x2e3   : > { %v1588_v8 = vadd.f32 1.0, %v8931_v32 }
 0x2e5   : > { %8932 = vrcp.f32 %v1588_v8  ;;  %v1630_v44 = vand.u32 2147483648, %v1588_v8  ;;  %vm1624_vm11 = vweird.f32 %v1588_v8  ;;  %v1628_v54 = vand.u32 2147483647, %v1588_v8 }
 0x2e7   : > { %v1631_v61 = vor.u32 1.1754944e-38, %v1630_v44  ;;  %vm1629_vm13 = vcmp.eq.f32.partialorder %v1628_v54, 8.507059e+37 }
 0x2eb   : > { %v8933_v36 = vpop.eup %8932 }
 0x2ec   : > { %v1620_v43 = vmul.f32 %v8933_v36, %v1588_v8  ;;  %vm1625_vm10 = vweird.f32 %v8933_v36 }
 0x2ed   : > { %vm1626_vm12 = vmor %vm1624_vm11, %vm1625_vm10 }
 0x2ee   : > { %v1621_v52 = vsub.f32 1.0, %v1620_v43 }
 0x2f0   : > { %v1622_v55 = vmul.f32 %v8933_v36, %v1621_v52 }
 0x2f2   : > { %v1623_v57 = vadd.f32 %v8933_v36, %v1622_v55 }
 0x2f4   : > { %v1627_v48 = vsel %vm1626_vm12, %v8933_v36, %v1623_v57 }
 0x2f5   : > { %v1632_v29 = vsel %vm1629_vm13, %v1631_v61, %v1627_v48  ;;  %vm2674_vm13 = vcmask 1040384  }
 0x2f6   : > { %v1648_v41 = vmul.f32 %v1646_v31, %v1632_v29 }
 0x334   : > { %v1642_v5 = vpop.permute.xlu2 %1641 }
 0x335   : > { %v10584_v53 = vadd.f32 %v1642_v5, %v1638_v47 }
 0x337   : > { %8934 = vtanh.f32 %v10584_v53 }
 0x33c   : > { %v1652_v28 = vpop.permute.xlu2 %1651 }
 0x33d   : > { %v8935_v37 = vpop.eup %8934  ;;  %v10588_v17 = vadd.f32 %v1652_v28, %v1648_v41 }
 0x33e   : > { %1657 = vrot.lane.b32.xlu0 %v8935_v37, %s9700_s20 }
 0x33f   : > { %8936 = vtanh.f32 %v10588_v17 }
 0x345   : > { %v8937_v32 = vpop.eup %8936 }
 0x346   : > { %1663 = vrot.lane.b32.xlu1 %v8937_v32, %s9700_s20 }
 0x3b0   : > { %v1658_v47 = vpop.permute.xlu0 %1657 }
 0x3b1   : > { %v10593_v36 = vmul.f32 %v1658_v47, %v1617_v0  ;;  %v1669_v0 = vrot.slane %v10490_v19, 3 }
 0x3b3   : > { %v10636_v48 = vsel %vm965_vm2, %v10490_v19, %v1669_v0  ;;  %v1671_v0 = vrot.slane %v10483_v6, 3 }
 0x3b4   : > { %12392 = vst [vmem:[#allocation47_spill] sm:$0xff] %v10636_v48 }
 0x3b8   : > { %v1664_v8 = vpop.permute.xlu1 %1663 }
 0x3b9   : > { %v10595_v43 = vmul.f32 %v1664_v8, %v1632_v29 }
 0x3bb   : > { %12391 = vst [vmem:[#allocation46_spill] sm:$0xff] %v10595_v43  ;;  %v1667_v62 = vsel %vm1091_vm0, %v10593_v36, %v10595_v43 }
 0x3bc   : > { %v1680_v52 = vpack.c.bf16 %v1667_v62, %v1667_v62 }
 0x3be   : > { %v1682_v55 = vshrl.u32 %v1680_v52, 16 }
 0x3c0   : > { %1693 = vmatmul.bf16.vlgmr.msra.gmra.mxu0 %v1682_v55  ;;  %1706 = vmatmul.bf16.vlgmr.msra.gmra.mxu1 %v1682_v55 }
 0x3c1   : > { %1719 = vmatmul.bf16.vlgmr.msrb.gmra.mxu2 %v1682_v55  ;;  %1732 = vmatmul.bf16.vlgmr.msrb.gmra.mxu3 %v1682_v55 }
 0x3c2   : > { %2025 = vmatpush.bf16.msra.mxu0 %v10024_v7  ;;  %2038 = vmatpush.bf16.msra.mxu1 %v10201_v13 }
 0x3c3   : > { %2051 = vmatpush.bf16.msrb.mxu2 %v10305_v58  ;;  %2064 = vmatpush.bf16.msrb.mxu3 %v10118_v46 }
 0x3c6   : > { %2026 = vmatpush.bf16.msra.mxu0 %v10045_v16  ;;  %2039 = vmatpush.bf16.msra.mxu1 %v10225_v22 }
 0x3c7   : > { %2052 = vmatpush.bf16.msrb.mxu2 %v10327_v3  ;;  %2065 = vmatpush.bf16.msrb.mxu3 %v10146_v56 }
 0x3ca   : > { %2027 = vmatpush.bf16.msra.mxu0 %v10066_v25  ;;  %2040 = vmatpush.bf16.msra.mxu1 %v10253_v34 }
 0x3cb   : > { %2053 = vmatpush.bf16.msrb.mxu2 %v10350_v11  ;;  %2066 = vmatpush.bf16.msrb.mxu3 %v10172_v1 }
 0x3ce   : > { %2028 = vmatpush.bf16.msra.mxu0 %v10104_v39  ;;  %2041 = vmatpush.bf16.msra.mxu1 %v10281_v45 }
 0x3cf   : > { %2054 = vmatpush.bf16.msrb.mxu2 %v10371_v20  ;;  %2067 = vmatpush.bf16.msrb.mxu3 %v10204_v14 }
 0x3d2   : > { %2029 = vmatpush.bf16.msra.mxu0 %v10129_v50  ;;  %2042 = vmatpush.bf16.msra.mxu1 %v10308_v60 }
 0x3d3   : > { %2055 = vmatpush.bf16.msrb.mxu2 %v10385_v27  ;;  %2068 = vmatpush.bf16.msrb.mxu3 %v10231_v26 }
 0x3d6   : > { %2030 = vmatpush.bf16.msra.mxu0 %v10155_v59  ;;  %2043 = vmatpush.bf16.msra.mxu1 %v10330_v4 }
 0x3d7   : > { %2056 = vmatpush.bf16.msrb.mxu2 %v10399_v30  ;;  %2069 = vmatpush.bf16.msrb.mxu3 %v10259_v35 }
 0x3da   : > { %2031 = vmatpush.bf16.msra.mxu0 %v10193_v9  ;;  %2044 = vmatpush.bf16.msra.mxu1 %v10354_v12 }
 0x3db   : > { %2057 = vmatpush.bf16.msrb.mxu2 %v10412_v33  ;;  %2070 = vmatpush.bf16.msrb.mxu3 %v10291_v51 }
 0x3de   : > { %2032 = vmatpush.bf16.msra.mxu0 %v10213_v18  ;;  %2045 = vmatpush.bf16.msra.mxu1 %v10374_v21 }
 0x3df   : > { %2058 = vmatpush.bf16.msrb.mxu2 %v10424_v40  ;;  %2071 = vmatpush.bf16.msrb.mxu3 %v10318_v63 }
 0x43d   : > { %v1694_v57 = vpop.f32.mrf.mxu0  ;;  %v1707_v44 = vpop.f32.mrf.mxu1 }
 0x43e   : > { %v1741_v54 = vrot.slane %v1694_v57, 6  ;;  %v1742_v5 = vrot.slane %v1707_v44, 6 }
 0x440   : > { %v1749_v61 = vadd.f32 %v1741_v54, %v10479_v49  ;;  %v1750_v29 = vadd.f32 %v1742_v5, %v10636_v48  ;;  %v10644_v5 = vsel %vm12319_vm1, %v10483_v6, %v1671_v0 }
 0x441   : > { %12393 = vst [vmem:[#allocation48_spill] sm:$0xff] %v10644_v5 }
 0x442   : > { %v7816_v31 = vmul.f32 -1.442695, %v1749_v61  ;;  %v7817_v41 = vmul.f32 -1.442695, %v1750_v29 }
 0x444   : > { %8938 = vpow2.f32 %v7816_v31  ;;  %v1720_v28 = vpop.f32.mrf.mxu2  ;;  %v1733_v37 = vpop.f32.mrf.mxu3 }
 0x445   : > { %8940 = vpow2.f32 %v7817_v41  ;;  %v1696_v32 = vpop.f32.mrf.mxu0  ;;  %v1709_v47 = vpop.f32.mrf.mxu1  ;;  %v1744_v54 = vrot.slane %v1733_v37, 6 }
 0x447   : > { %v1752_v29 = vadd.f32 %v1744_v54, %v10644_v5  ;;  %v1812_v5 = vrot.slane %v10584_v53, 7 }
 0x44a   : > { %v8939_v8 = vpop.eup %8938 }
 0x44b   : > { %v8941_v62 = vpop.eup %8940  ;;  %v1762_v52 = vadd.f32 1.0, %v8939_v8 }
 0x44c   : > { %v1763_v55 = vadd.f32 1.0, %v8941_v62  ;;  %v1722_v57 = vpop.f32.mrf.mxu2  ;;  %v1735_v44 = vpop.f32.mrf.mxu3 }
 0x44d   : > { %8942 = vrcp.f32 %v1762_v52  ;;  %v1776_v62 = vand.u32 2147483648, %v1762_v52  ;;  %v1774_v38 = vand.u32 2147483647, %v1762_v52  ;;  %vm1770_vm3 = vweird.f32 %v1762_v52 }
 0x44e   : > { %8944 = vrcp.f32 %v1763_v55  ;;  %v1791_v57 = vand.u32 2147483648, %v1763_v55  ;;  %v1789_v43 = vand.u32 2147483647, %v1763_v55  ;;  %vm1785_vm4 = vweird.f32 %v1763_v55 }
 0x44f   : > { %8946 = vtanh.f32 %v1752_v29  ;;  %v1777_v54 = vor.u32 1.1754944e-38, %v1776_v62  ;;  %vm1775_vm7 = vcmp.eq.f32.partialorder %v1774_v38, 8.507059e+37 }
 0x450   : > { %vm1790_vm8 = vcmp.eq.f32.partialorder %v1789_v43, 8.507059e+37 }
 0x453   : > { %v8943_v61 = vpop.eup %8942 }
 0x454   : > { %v8945_v31 = vpop.eup %8944  ;;  %v1766_v41 = vmul.f32 %v8943_v61, %v1762_v52  ;;  %vm1771_vm14 = vweird.f32 %v8943_v61  ;;  %v1743_v52 = vrot.slane %v1720_v28, 6 }
 0x455   : > { %v1781_v32 = vmul.f32 %v8945_v31, %v1763_v55  ;;  %vm1786_vm15 = vweird.f32 %v8945_v31  ;;  %vm1772_vm5 = vmor %vm1770_vm3, %vm1771_vm14  ;;  %v12314_v55 = vrot.slane %v10511_v2, 3  ;;  %vm2676_vm14 = vcmask 1041408  }
 0x456   : > { %v1767_v47 = vsub.f32 1.0, %v1766_v41  ;;  %vm1787_vm6 = vmor %vm1785_vm4, %vm1786_vm15  ;;  %v1792_v41 = vor.u32 1.1754944e-38, %v1791_v57 }
 0x457   : > { %v1782_v8 = vsub.f32 1.0, %v1781_v32  ;;  %v8947_v32 = vpop.eup %8946  ;;  %v1751_v53 = vadd.f32 %v1743_v52, %v12314_v55 }
 0x458   : > { %v1768_v44 = vmul.f32 %v8943_v61, %v1767_v47 }
 0x459   : > { %v1783_v37 = vmul.f32 %v8945_v31, %v1782_v8 }
 0x45a   : > { %v1769_v48 = vadd.f32 %v8943_v61, %v1768_v44 }
 0x45b   : > { %v1784_v0 = vadd.f32 %v8945_v31, %v1783_v37 }
 0x45c   : > { %v1773_v29 = vsel %vm1772_vm5, %v8943_v61, %v1769_v48  ;;  %v7818_v48 = vmul.f32 -1.442695, %v1751_v53 }
 0x45d   : > { %v1788_v23 = vsel %vm1787_vm6, %v8945_v31, %v1784_v0  ;;  %v1778_v47 = vsel %vm1775_vm7, %v1777_v54, %v1773_v29 }
 0x45e   : > { %v1793_v42 = vsel %vm1790_vm8, %v1792_v41, %v1788_v23  ;;  %v1815_v8 = vmul.f32 %v8947_v32, %v1778_v47  ;;  %v1814_v10 = vmul.f32 %v1812_v5, %v1778_v47  ;;  %8948 = vpow2.f32 %v7818_v48 }
 0x45f   : > { %v1825_v6 = vmul.f32 %v8947_v32, %v1793_v42 }
 0x460   : > { %1817 = vrot.lane.b32.xlu2 %v1815_v8, %s9700_s20 }
 0x461   : > { %1827 = vrot.lane.b32.xlu0 %v1825_v6, %s9700_s20 }
 0x464   : > { %v8949_v38 = vpop.eup %8948 }
 0x465   : > { %v1764_v61 = vadd.f32 1.0, %v8949_v38  ;;  %v2675_v38 = vsel %vm2674_vm13, %v10524_v15, %v10593_v36 }
 0x467   : > { %8950 = vrcp.f32 %v1764_v61  ;;  %v1806_v44 = vand.u32 2147483648, %v1764_v61  ;;  %vm1800_vm10 = vweird.f32 %v1764_v61  ;;  %v1804_v37 = vand.u32 2147483647, %v1764_v61 }
 0x469   : > { %v1807_v54 = vor.u32 1.1754944e-38, %v1806_v44  ;;  %vm1805_vm12 = vcmp.eq.f32.partialorder %v1804_v37, 8.507059e+37 }
 0x46d   : > { %v8951_v43 = vpop.eup %8950 }
 0x46e   : > { %v1796_v5 = vmul.f32 %v8951_v43, %v1764_v61  ;;  %vm1801_vm9 = vweird.f32 %v8951_v43 }
 0x46f   : > { %vm1802_vm11 = vmor %vm1800_vm10, %vm1801_vm9 }
 0x470   : > { %v1797_v62 = vsub.f32 1.0, %v1796_v5 }
 0x472   : > { %v1798_v28 = vmul.f32 %v8951_v43, %v1797_v62 }
 0x474   : > { %v1799_v57 = vadd.f32 %v8951_v43, %v1798_v28 }
 0x476   : > { %v1803_v0 = vsel %vm1802_vm11, %v8951_v43, %v1799_v57 }
 0x477   : > { %v1808_v41 = vsel %vm1805_vm12, %v1807_v54, %v1803_v0 }
 0x4ba   : > { %v1818_v23 = vpop.permute.xlu2 %1817 }
 0x4bb   : > { %v10653_v31 = vadd.f32 %v1818_v23, %v1814_v10  ;;  %v1822_v10 = vrot.slane %v10588_v17, 7 }
 0x4bd   : > { %8952 = vtanh.f32 %v10653_v31  ;;  %v1824_v29 = vmul.f32 %v1822_v10, %v1808_v41 }
 0x4c3   : > { %v8953_v6 = vpop.eup %8952 }
 0x4c4   : > { %1833 = vrot.lane.b32.xlu1 %v8953_v6, %s9700_s20 }
 0x4d3   : > { %v1828_v32 = vpop.permute.xlu0 %1827 }
 0x4d4   : > { %v10658_v47 = vadd.f32 %v1828_v32, %v1824_v29 }
 0x4d6   : > { %8954 = vtanh.f32 %v10658_v47 }
 0x4dc   : > { %v8955_v8 = vpop.eup %8954 }
 0x4dd   : > { %1839 = vrot.lane.b32.xlu2 %v8955_v8, %s9700_s20 }
 0x536   : > { %v1834_v52 = vpop.permute.xlu1 %1833 }
 0x537   : > { %v1840_v53 = vpop.permute.xlu2 %1839  ;;  %v1836_v48 = vmul.f32 %v1834_v52, %v1793_v42  ;;  %v1845_v42 = vrot.slane %v10490_v19, 1 }
 0x538   : > { %v10665_v61 = vmul.f32 %v1840_v53, %v1808_v41 }
 0x539   : > { %v10668_v17 = vsel %vm2676_vm14, %v2675_v38, %v1836_v48  ;;  %v10708_v28 = vsel %vm965_vm2, %v10490_v19, %v1845_v42  ;;  %v12395_v19 = vld [vmem:[#allocation38_spill] sm:$0xff] }
 0x53a   : > { %12394 = vst [vmem:[#allocation49_spill] sm:$0xff] %v10665_v61  ;;  %v1843_v43 = vsel %vm1091_vm0, %v1836_v48, %v10665_v61 }
 0x53b   : > { %v1856_v23 = vpack.c.bf16 %v1843_v43, %v1843_v43  ;;  %v1847_v43 = vrot.slane %v12395_v19, 1 }
 0x53d   : > { %v1858_v5 = vrot.slane %v1856_v23, 1  ;;  %v10716_v42 = vsel %vm12319_vm1, %v12395_v19, %v1847_v43  ;;  %v1987_v43 = vrot.slane %v10653_v31, 7 }
 0x53f   : > { %1868 = vmatmul.bf16.vlgmr.msrb.gmra.mxu0 %v1858_v5  ;;  %1881 = vmatmul.bf16.vlgmr.msrb.gmra.mxu1 %v1858_v5 }
 0x540   : > { %1894 = vmatmul.bf16.vlgmr.msra.gmra.mxu2 %v1858_v5  ;;  %1907 = vmatmul.bf16.vlgmr.msra.gmra.mxu3 %v1858_v5 }
 0x541   : > { %2188 = vmatpush.bf16.msrb.mxu0 %v10024_v7  ;;  %2201 = vmatpush.bf16.msrb.mxu1 %v10201_v13 }
 0x542   : > { %2214 = vmatpush.bf16.msra.mxu2 %v10305_v58  ;;  %2227 = vmatpush.bf16.msra.mxu3 %v10118_v46 }
 0x545   : > { %2189 = vmatpush.bf16.msrb.mxu0 %v10045_v16  ;;  %2202 = vmatpush.bf16.msrb.mxu1 %v10225_v22 }
 0x546   : > { %2215 = vmatpush.bf16.msra.mxu2 %v10327_v3  ;;  %2228 = vmatpush.bf16.msra.mxu3 %v10146_v56 }
 0x549   : > { %2190 = vmatpush.bf16.msrb.mxu0 %v10066_v25  ;;  %2203 = vmatpush.bf16.msrb.mxu1 %v10253_v34 }
 0x54a   : > { %2216 = vmatpush.bf16.msra.mxu2 %v10350_v11  ;;  %2229 = vmatpush.bf16.msra.mxu3 %v10172_v1 }
 0x54d   : > { %2191 = vmatpush.bf16.msrb.mxu0 %v10104_v39  ;;  %2204 = vmatpush.bf16.msrb.mxu1 %v10281_v45 }
 0x54e   : > { %2217 = vmatpush.bf16.msra.mxu2 %v10371_v20  ;;  %2230 = vmatpush.bf16.msra.mxu3 %v10204_v14 }
 0x551   : > { %2192 = vmatpush.bf16.msrb.mxu0 %v10129_v50  ;;  %2205 = vmatpush.bf16.msrb.mxu1 %v10308_v60 }
 0x552   : > { %2218 = vmatpush.bf16.msra.mxu2 %v10385_v27  ;;  %2231 = vmatpush.bf16.msra.mxu3 %v10231_v26 }
 0x555   : > { %2193 = vmatpush.bf16.msrb.mxu0 %v10155_v59  ;;  %2206 = vmatpush.bf16.msrb.mxu1 %v10330_v4 }
 0x556   : > { %2219 = vmatpush.bf16.msra.mxu2 %v10399_v30  ;;  %2232 = vmatpush.bf16.msra.mxu3 %v10259_v35 }
 0x559   : > { %2194 = vmatpush.bf16.msrb.mxu0 %v10193_v9  ;;  %2207 = vmatpush.bf16.msrb.mxu1 %v10354_v12 }
 0x55a   : > { %2220 = vmatpush.bf16.msra.mxu2 %v10412_v33  ;;  %2233 = vmatpush.bf16.msra.mxu3 %v10291_v51 }
 0x55d   : > { %2195 = vmatpush.bf16.msrb.mxu0 %v10213_v18  ;;  %2208 = vmatpush.bf16.msrb.mxu1 %v10374_v21 }
 0x55e   : > { %2221 = vmatpush.bf16.msra.mxu2 %v10424_v40  ;;  %2234 = vmatpush.bf16.msra.mxu3 %v10318_v63 }
 0x5bc   : > { %v1869_v15 = vpop.f32.mrf.mxu0  ;;  %v1882_v36 = vpop.f32.mrf.mxu1 }
 0x5bd   : > { %v1916_v62 = vrot.slane %v1869_v15, 5  ;;  %v1917_v6 = vrot.slane %v1882_v36, 5 }
 0x5bf   : > { %v1924_v57 = vadd.f32 %v1916_v62, %v10479_v49  ;;  %v1925_v44 = vadd.f32 %v1917_v6, %v10708_v28 }
 0x5c1   : > { %v7819_v37 = vmul.f32 -1.442695, %v1924_v57  ;;  %v7820_v0 = vmul.f32 -1.442695, %v1925_v44 }
 0x5c3   : > { %8956 = vpow2.f32 %v7819_v37  ;;  %v1895_v54 = vpop.f32.mrf.mxu2  ;;  %v1908_v41 = vpop.f32.mrf.mxu3 }
 0x5c4   : > { %8958 = vpow2.f32 %v7820_v0  ;;  %v1871_v10 = vpop.f32.mrf.mxu0  ;;  %v1884_v29 = vpop.f32.mrf.mxu1  ;;  %v1919_v23 = vrot.slane %v1908_v41, 5 }
 0x5c6   : > { %v1927_v36 = vadd.f32 %v1919_v23, %v10716_v42 }
 0x5c9   : > { %v8957_v32 = vpop.eup %8956 }
 0x5ca   : > { %v8959_v8 = vpop.eup %8958  ;;  %v1937_v52 = vadd.f32 1.0, %v8957_v32 }
 0x5cb   : > { %v1938_v53 = vadd.f32 1.0, %v8959_v8  ;;  %v1897_v48 = vpop.f32.mrf.mxu2  ;;  %v1910_v38 = vpop.f32.mrf.mxu3 }
 0x5cc   : > { %8960 = vrcp.f32 %v1937_v52  ;;  %v1951_v0 = vand.u32 2147483648, %v1937_v52  ;;  %v1949_v32 = vand.u32 2147483647, %v1937_v52  ;;  %vm1945_vm4 = vweird.f32 %v1937_v52 }
 0x5cd   : > { %8962 = vrcp.f32 %v1938_v53  ;;  %v1966_v10 = vand.u32 2147483648, %v1938_v53  ;;  %v1964_v8 = vand.u32 2147483647, %v1938_v53  ;;  %vm1960_vm5 = vweird.f32 %v1938_v53 }
 0x5ce   : > { %8964 = vtanh.f32 %v1927_v36  ;;  %v1952_v19 = vor.u32 1.1754944e-38, %v1951_v0  ;;  %vm1950_vm8 = vcmp.eq.f32.partialorder %v1949_v32, 8.507059e+37 }
 0x5cf   : > { %v1967_v23 = vor.u32 1.1754944e-38, %v1966_v10  ;;  %vm1965_vm9 = vcmp.eq.f32.partialorder %v1964_v8, 8.507059e+37 }
 0x5d2   : > { %v8961_v15 = vpop.eup %8960 }
 0x5d3   : > { %v8963_v62 = vpop.eup %8962  ;;  %v1941_v6 = vmul.f32 %v8961_v15, %v1937_v52  ;;  %vm1946_vm15 = vweird.f32 %v8961_v15  ;;  %v1918_v52 = vrot.slane %v1895_v54, 5 }
 0x5d4   : > { %v1956_v57 = vmul.f32 %v8963_v62, %v1938_v53  ;;  %vm1961_vm3 = vweird.f32 %v8963_v62  ;;  %vm1947_vm6 = vmor %vm1945_vm4, %vm1946_vm15  ;;  %v12317_v53 = vrot.slane %v10511_v2, 1 }
 0x5d5   : > { %v1942_v44 = vsub.f32 1.0, %v1941_v6  ;;  %vm1962_vm7 = vmor %vm1960_vm5, %vm1961_vm3  ;;  %v8965_v6 = vpop.eup %8964  ;;  %vm2678_vm3 = vcmask 1042432  }
 0x5d6   : > { %v1957_v37 = vsub.f32 1.0, %v1956_v57  ;;  %v1926_v31 = vadd.f32 %v1918_v52, %v12317_v53 }
 0x5d7   : > { %v1943_v29 = vmul.f32 %v8961_v15, %v1942_v44 }
 0x5d8   : > { %v1958_v41 = vmul.f32 %v8963_v62, %v1957_v37 }
 0x5d9   : > { %v1944_v48 = vadd.f32 %v8961_v15, %v1943_v29 }
 0x5da   : > { %v1959_v38 = vadd.f32 %v8963_v62, %v1958_v41 }
 0x5db   : > { %v1948_v36 = vsel %vm1947_vm6, %v8961_v15, %v1944_v48  ;;  %v7821_v15 = vmul.f32 -1.442695, %v1926_v31 }
 0x5dc   : > { %v1963_v57 = vsel %vm1962_vm7, %v8963_v62, %v1959_v38  ;;  %v1953_v44 = vsel %vm1950_vm8, %v1952_v19, %v1948_v36 }
 0x5dd   : > { %v1968_v55 = vsel %vm1965_vm9, %v1967_v23, %v1963_v57  ;;  %v1990_v37 = vmul.f32 %v8965_v6, %v1953_v44  ;;  %v1989_v5 = vmul.f32 %v1987_v43, %v1953_v44  ;;  %8966 = vpow2.f32 %v7821_v15 }
 0x5de   : > { %v2000_v24 = vmul.f32 %v8965_v6, %v1968_v55  ;;  %v1997_v43 = vrot.slane %v10658_v47, 7 }
 0x5df   : > { %1992 = vrot.lane.b32.xlu0 %v1990_v37, %s9700_s20 }
 0x5e0   : > { %2002 = vrot.lane.b32.xlu1 %v2000_v24, %s9700_s20 }
 0x5e3   : > { %v8967_v0 = vpop.eup %8966 }
 0x5e4   : > { %v1939_v62 = vadd.f32 1.0, %v8967_v0 }
 0x5e6   : > { %8968 = vrcp.f32 %v1939_v62  ;;  %v1981_v48 = vand.u32 2147483648, %v1939_v62  ;;  %vm1975_vm11 = vweird.f32 %v1939_v62  ;;  %v1979_v24 = vand.u32 2147483647, %v1939_v62 }
 0x5e8   : > { %v1982_v38 = vor.u32 1.1754944e-38, %v1981_v48  ;;  %vm1980_vm15 = vcmp.eq.f32.partialorder %v1979_v24, 8.507059e+37  ;;  %v12397_v24 = vld [vmem:[#allocation42_spill] sm:$0xff] }
 0x5ec   : > { %v8969_v10 = vpop.eup %8968 }
 0x5ed   : > { %v1971_v29 = vmul.f32 %v8969_v10, %v1939_v62  ;;  %vm1976_vm10 = vweird.f32 %v8969_v10 }
 0x5ee   : > { %vm1977_vm12 = vmor %vm1975_vm11, %vm1976_vm10 }
 0x5ef   : > { %v1972_v32 = vsub.f32 1.0, %v1971_v29 }
 0x5f1   : > { %v1973_v41 = vmul.f32 %v8969_v10, %v1972_v32 }
 0x5f3   : > { %v1974_v8 = vadd.f32 %v8969_v10, %v1973_v41 }
 0x5f5   : > { %v1978_v54 = vsel %vm1977_vm12, %v8969_v10, %v1974_v8 }
 0x5f6   : > { %v1983_v19 = vsel %vm1980_vm15, %v1982_v38, %v1978_v54 }
 0x5f7   : > { %v1999_v23 = vmul.f32 %v1997_v43, %v1983_v19 }
 0x651   : > { %v1993_v36 = vpop.permute.xlu0 %1992 }
 0x652   : > { %v2003_v6 = vpop.permute.xlu1 %2002  ;;  %v10726_v57 = vadd.f32 %v1993_v36, %v1989_v5 }
 0x653   : > { %v10728_v44 = vadd.f32 %v2003_v6, %v1999_v23 }
 0x654   : > { %8970 = vtanh.f32 %v10726_v57 }
 0x655   : > { %8972 = vtanh.f32 %v10728_v44 }
 0x65a   : > { %v8971_v37 = vpop.eup %8970 }
 0x65b   : > { %v8973_v52 = vpop.eup %8972  ;;  %2008 = vrot.lane.b32.xlu2 %v8971_v37, %s9700_s20 }
 0x65c   : > { %2014 = vrot.lane.b32.xlu0 %v8973_v52, %s9700_s20 }
 0x6b5   : > { %v2009_v31 = vpop.permute.xlu2 %2008 }
 0x6b6   : > { %v2011_v47 = vmul.f32 %v2009_v31, %v1968_v55 }
 0x6b8   : > { %v10736_v15 = vsel %vm2678_vm3, %v10668_v17, %v2011_v47 }
 0x6ce   : > { %v2015_v5 = vpop.permute.xlu0 %2014 }
 0x6cf   : > { %v10738_v0 = vmul.f32 %v2015_v5, %v1983_v19 }
 0x6d1   : > { %v2018_v62 = vsel %vm1091_vm0, %v2011_v47, %v10738_v0 }
 0x6d2   : > { %v2019_v10 = vpack.c.bf16 %v2018_v62, %v2018_v62 }
 0x6d4   : > { %v2021_v29 = vshrl.u32 %v2019_v10, 16 }
 0x6d6   : > { %v2023_v32 = vrot.slane %v2021_v29, 1 }
 0x6d8   : > { %2033 = vmatmul.bf16.vlgmr.msra.gmra.mxu0 %v2023_v32  ;;  %2046 = vmatmul.bf16.vlgmr.msra.gmra.mxu1 %v2023_v32 }
 0x6d9   : > { %2059 = vmatmul.bf16.vlgmr.msrb.gmra.mxu2 %v2023_v32  ;;  %2072 = vmatmul.bf16.vlgmr.msrb.gmra.mxu3 %v2023_v32  ;;  %v12398_v32 = vld [vmem:[#allocation40_spill] sm:$0xff] }
 0x6da   : > { %2353 = vmatpush.bf16.msra.mxu0 %v10024_v7  ;;  %2366 = vmatpush.bf16.msra.mxu1 %v10201_v13 }
 0x6db   : > { %2379 = vmatpush.bf16.msrb.mxu2 %v10305_v58  ;;  %2392 = vmatpush.bf16.msrb.mxu3 %v10118_v46 }
 0x6de   : > { %2354 = vmatpush.bf16.msra.mxu0 %v10045_v16  ;;  %2367 = vmatpush.bf16.msra.mxu1 %v10225_v22 }
 0x6df   : > { %2380 = vmatpush.bf16.msrb.mxu2 %v10327_v3  ;;  %2393 = vmatpush.bf16.msrb.mxu3 %v10146_v56 }
 0x6e2   : > { %2355 = vmatpush.bf16.msra.mxu0 %v10066_v25  ;;  %2368 = vmatpush.bf16.msra.mxu1 %v10253_v34 }
 0x6e3   : > { %2381 = vmatpush.bf16.msrb.mxu2 %v10350_v11  ;;  %2394 = vmatpush.bf16.msrb.mxu3 %v10172_v1 }
 0x6e6   : > { %2356 = vmatpush.bf16.msra.mxu0 %v10104_v39  ;;  %2369 = vmatpush.bf16.msra.mxu1 %v10281_v45 }
 0x6e7   : > { %2382 = vmatpush.bf16.msrb.mxu2 %v10371_v20  ;;  %2395 = vmatpush.bf16.msrb.mxu3 %v10204_v14 }
 0x6ea   : > { %2357 = vmatpush.bf16.msra.mxu0 %v10129_v50  ;;  %2370 = vmatpush.bf16.msra.mxu1 %v10308_v60 }
 0x6eb   : > { %2383 = vmatpush.bf16.msrb.mxu2 %v10385_v27  ;;  %2396 = vmatpush.bf16.msrb.mxu3 %v10231_v26 }
 0x6ee   : > { %2358 = vmatpush.bf16.msra.mxu0 %v10155_v59  ;;  %2371 = vmatpush.bf16.msra.mxu1 %v10330_v4 }
 0x6ef   : > { %2384 = vmatpush.bf16.msrb.mxu2 %v10399_v30  ;;  %2397 = vmatpush.bf16.msrb.mxu3 %v10259_v35 }
 0x6f2   : > { %2359 = vmatpush.bf16.msra.mxu0 %v10193_v9  ;;  %2372 = vmatpush.bf16.msra.mxu1 %v10354_v12 }
 0x6f3   : > { %2385 = vmatpush.bf16.msrb.mxu2 %v10412_v33  ;;  %2398 = vmatpush.bf16.msrb.mxu3 %v10291_v51 }
 0x6f6   : > { %2360 = vmatpush.bf16.msra.mxu0 %v10213_v18  ;;  %2373 = vmatpush.bf16.msra.mxu1 %v10374_v21 }
 0x6f7   : > { %2386 = vmatpush.bf16.msrb.mxu2 %v10424_v40  ;;  %2399 = vmatpush.bf16.msrb.mxu3 %v10318_v63 }
 0x755   : > { %v2034_v55 = vpop.f32.mrf.mxu0  ;;  %v2047_v17 = vpop.f32.mrf.mxu1 }
 0x756   : > { %v2081_v41 = vrot.slane %v2034_v55, 4  ;;  %v2082_v8 = vrot.slane %v2047_v17, 4 }
 0x758   : > { %v2089_v48 = vadd.f32 %v2081_v41, %v10479_v49  ;;  %v2090_v54 = vadd.f32 %v2082_v8, %v12397_v24 }
 0x75a   : > { %v7822_v38 = vmul.f32 -1.442695, %v2089_v48  ;;  %v7823_v19 = vmul.f32 -1.442695, %v2090_v54 }
 0x75c   : > { %8974 = vpow2.f32 %v7822_v38  ;;  %v2060_v43 = vpop.f32.mrf.mxu2  ;;  %v2073_v23 = vpop.f32.mrf.mxu3 }
 0x75d   : > { %8976 = vpow2.f32 %v7823_v19  ;;  %v2036_v36 = vpop.f32.mrf.mxu0  ;;  %v2049_v6 = vpop.f32.mrf.mxu1  ;;  %v2084_v10 = vrot.slane %v2073_v23, 4 }
 0x75f   : > { %v2092_v55 = vadd.f32 %v2084_v10, %v12398_v32 }
 0x762   : > { %v8975_v37 = vpop.eup %8974 }
 0x763   : > { %v8977_v52 = vpop.eup %8976  ;;  %v2102_v31 = vadd.f32 1.0, %v8975_v37 }
 0x764   : > { %v2103_v47 = vadd.f32 1.0, %v8977_v52  ;;  %v2062_v5 = vpop.f32.mrf.mxu2  ;;  %v2075_v62 = vpop.f32.mrf.mxu3 }
 0x765   : > { %8978 = vrcp.f32 %v2102_v31  ;;  %v2116_v54 = vand.u32 2147483648, %v2102_v31  ;;  %v2114_v36 = vand.u32 2147483647, %v2102_v31  ;;  %vm2110_vm6 = vweird.f32 %v2102_v31 }
 0x766   : > { %8980 = vrcp.f32 %v2103_v47  ;;  %v2131_v38 = vand.u32 2147483648, %v2103_v47  ;;  %v2129_v37 = vand.u32 2147483647, %v2103_v47  ;;  %vm2125_vm7 = vweird.f32 %v2103_v47 }
 0x767   : > { %8982 = vtanh.f32 %v2092_v55  ;;  %v2117_v5 = vor.u32 1.1754944e-38, %v2116_v54  ;;  %v2152_v62 = vrot.slane %v10726_v57, 7  ;;  %vm2115_vm10 = vcmp.eq.f32.partialorder %v2114_v36, 8.507059e+37 }
 0x768   : > { %v2132_v10 = vor.u32 1.1754944e-38, %v2131_v38  ;;  %vm2130_vm11 = vcmp.eq.f32.partialorder %v2129_v37, 8.507059e+37 }
 0x76b   : > { %v8979_v29 = vpop.eup %8978 }
 0x76c   : > { %v8981_v17 = vpop.eup %8980  ;;  %v2106_v41 = vmul.f32 %v8979_v29, %v2102_v31  ;;  %vm2111_vm4 = vweird.f32 %v8979_v29  ;;  %v2083_v31 = vrot.slane %v2060_v43, 4 }
 0x76d   : > { %v2121_v8 = vmul.f32 %v8981_v17, %v2103_v47  ;;  %vm2126_vm5 = vweird.f32 %v8981_v17  ;;  %vm2112_vm8 = vmor %vm2110_vm6, %vm2111_vm4  ;;  %v8983_v55 = vpop.eup %8982  ;;  %v12399_v47 = vrot.slane %v10511_v2, 7  ;;  %vm2680_vm6 = vcmask 1043456  }
 0x76e   : > { %v2107_v48 = vsub.f32 1.0, %v2106_v41  ;;  %vm2127_vm9 = vmor %vm2125_vm7, %vm2126_vm5 }
 0x76f   : > { %v2122_v24 = vsub.f32 1.0, %v2121_v8  ;;  %v2091_v57 = vadd.f32 %v2083_v31, %v12399_v47 }
 0x770   : > { %v2108_v19 = vmul.f32 %v8979_v29, %v2107_v48 }
 0x771   : > { %v2123_v6 = vmul.f32 %v8981_v17, %v2122_v24  ;;  %v7824_v54 = vmul.f32 -1.442695, %v2091_v57 }
 0x772   : > { %v2109_v52 = vadd.f32 %v8979_v29, %v2108_v19 }
 0x773   : > { %v2124_v23 = vadd.f32 %v8981_v17, %v2123_v6  ;;  %8984 = vpow2.f32 %v7824_v54 }
 0x774   : > { %v2113_v32 = vsel %vm2112_vm8, %v8979_v29, %v2109_v52 }
 0x775   : > { %v2128_v41 = vsel %vm2127_vm9, %v8981_v17, %v2124_v23  ;;  %v2118_v8 = vsel %vm2115_vm10, %v2117_v5, %v2113_v32 }
 0x776   : > { %v2133_v48 = vsel %vm2130_vm11, %v2132_v10, %v2128_v41  ;;  %v2155_v24 = vmul.f32 %v8983_v55, %v2118_v8  ;;  %v2154_v53 = vmul.f32 %v2152_v62, %v2118_v8  ;;  %v2162_v62 = vrot.slane %v10728_v44, 7 }
 0x777   : > { %v2165_v61 = vmul.f32 %v8983_v55, %v2133_v48 }
 0x778   : > { %2157 = vrot.lane.b32.xlu1 %v2155_v24, %s9700_s20 }
 0x779   : > { %2167 = vrot.lane.b32.xlu2 %v2165_v61, %s9700_s20  ;;  %v8985_v29 = vpop.eup %8984 }
 0x77a   : > { %v2104_v38 = vadd.f32 1.0, %v8985_v29 }
 0x77c   : > { %8986 = vrcp.f32 %v2104_v38  ;;  %v2146_v52 = vand.u32 2147483648, %v2104_v38  ;;  %vm2140_vm15 = vweird.f32 %v2104_v38  ;;  %v2144_v23 = vand.u32 2147483647, %v2104_v38 }
 0x77e   : > { %v2147_v43 = vor.u32 1.1754944e-38, %v2146_v52  ;;  %vm2145_vm5 = vcmp.eq.f32.partialorder %v2144_v23, 8.507059e+37 }
 0x782   : > { %v8987_v17 = vpop.eup %8986 }
 0x783   : > { %v2136_v19 = vmul.f32 %v8987_v17, %v2104_v38  ;;  %vm2141_vm12 = vweird.f32 %v8987_v17 }
 0x784   : > { %vm2142_vm4 = vmor %vm2140_vm15, %vm2141_vm12 }
 0x785   : > { %v2137_v36 = vsub.f32 1.0, %v2136_v19 }
 0x787   : > { %v2138_v6 = vmul.f32 %v8987_v17, %v2137_v36 }
 0x789   : > { %v2139_v37 = vadd.f32 %v8987_v17, %v2138_v6 }
 0x78b   : > { %v2143_v61 = vsel %vm2142_vm4, %v8987_v17, %v2139_v37 }
 0x78c   : > { %v2148_v5 = vsel %vm2145_vm5, %v2147_v43, %v2143_v61 }
 0x78d   : > { %v2164_v10 = vmul.f32 %v2162_v62, %v2148_v5 }
 0x7d3   : > { %v2168_v32 = vpop.permute.xlu2 %2167 }
 0x7d4   : > { %v10783_v55 = vadd.f32 %v2168_v32, %v2164_v10 }
 0x7d6   : > { %8988 = vtanh.f32 %v10783_v55 }
 0x7dc   : > { %v8989_v41 = vpop.eup %8988 }
 0x7dd   : > { %2179 = vrot.lane.b32.xlu1 %v8989_v41, %s9700_s20 }
 0x7ea   : > { %v2158_v8 = vpop.permute.xlu1 %2157 }
 0x7eb   : > { %v10787_v24 = vadd.f32 %v2158_v8, %v2154_v53 }
 0x7ed   : > { %8990 = vtanh.f32 %v10787_v24  ;;  %v2315_v37 = vrot.slane %v10787_v24, 7 }
 0x7f3   : > { %v8991_v31 = vpop.eup %8990 }
 0x7f4   : > { %2173 = vrot.lane.b32.xlu0 %v8991_v31, %s9700_s20  ;;  %v12402_v31 = vrot.slane %v10511_v2, 5 }
 0x84f   : > { %v2180_v47 = vpop.permute.xlu1 %2179 }
 0x850   : > { %v10791_v57 = vmul.f32 %v2180_v47, %v2148_v5 }
 0x866   : > { %v2174_v44 = vpop.permute.xlu0 %2173 }
 0x867   : > { %v2176_v54 = vmul.f32 %v2174_v44, %v2133_v48 }
 0x869   : > { %v2183_v29 = vsel %vm1091_vm0, %v2176_v54, %v10791_v57  ;;  %v10797_v38 = vsel %vm2680_vm6, %v10736_v15, %v2176_v54 }
 0x86a   : > { %v2184_v53 = vpack.c.bf16 %v2183_v29, %v2183_v29 }
 0x86c   : > { %v2186_v17 = vrot.slane %v2184_v53, 2 }
 0x86e   : > { %2196 = vmatmul.bf16.vlgmr.msrb.gmra.mxu0 %v2186_v17  ;;  %2209 = vmatmul.bf16.vlgmr.msrb.gmra.mxu1 %v2186_v17 }
 0x86f   : > { %2222 = vmatmul.bf16.vlgmr.msra.gmra.mxu2 %v2186_v17  ;;  %2235 = vmatmul.bf16.vlgmr.msra.gmra.mxu3 %v2186_v17 }
 0x870   : > { %2516 = vmatpush.bf16.msrb.mxu0 %v10024_v7  ;;  %2529 = vmatpush.bf16.msrb.mxu1 %v10201_v13 }
 0x871   : > { %2542 = vmatpush.bf16.msra.mxu2 %v10305_v58  ;;  %2555 = vmatpush.bf16.msra.mxu3 %v10118_v46 }
 0x874   : > { %2517 = vmatpush.bf16.msrb.mxu0 %v10045_v16  ;;  %2530 = vmatpush.bf16.msrb.mxu1 %v10225_v22 }
 0x875   : > { %2543 = vmatpush.bf16.msra.mxu2 %v10327_v3  ;;  %2556 = vmatpush.bf16.msra.mxu3 %v10146_v56 }
 0x878   : > { %2518 = vmatpush.bf16.msrb.mxu0 %v10066_v25  ;;  %2531 = vmatpush.bf16.msrb.mxu1 %v10253_v34 }
 0x879   : > { %2544 = vmatpush.bf16.msra.mxu2 %v10350_v11  ;;  %2557 = vmatpush.bf16.msra.mxu3 %v10172_v1 }
 0x87c   : > { %2519 = vmatpush.bf16.msrb.mxu0 %v10104_v39  ;;  %2532 = vmatpush.bf16.msrb.mxu1 %v10281_v45 }
 0x87d   : > { %2545 = vmatpush.bf16.msra.mxu2 %v10371_v20  ;;  %2558 = vmatpush.bf16.msra.mxu3 %v10204_v14 }
 0x880   : > { %2520 = vmatpush.bf16.msrb.mxu0 %v10129_v50  ;;  %2533 = vmatpush.bf16.msrb.mxu1 %v10308_v60  ;;  %v12400_v50 = vld [vmem:[#allocation44_spill] sm:$0xff] }
 0x881   : > { %2546 = vmatpush.bf16.msra.mxu2 %v10385_v27  ;;  %2559 = vmatpush.bf16.msra.mxu3 %v10231_v26 }
 0x884   : > { %2521 = vmatpush.bf16.msrb.mxu0 %v10155_v59  ;;  %2534 = vmatpush.bf16.msrb.mxu1 %v10330_v4 }
 0x885   : > { %2547 = vmatpush.bf16.msra.mxu2 %v10399_v30  ;;  %2560 = vmatpush.bf16.msra.mxu3 %v10259_v35 }
 0x888   : > { %2522 = vmatpush.bf16.msrb.mxu0 %v10193_v9  ;;  %2535 = vmatpush.bf16.msrb.mxu1 %v10354_v12 }
 0x889   : > { %2548 = vmatpush.bf16.msra.mxu2 %v10412_v33  ;;  %2561 = vmatpush.bf16.msra.mxu3 %v10291_v51 }
 0x88c   : > { %2523 = vmatpush.bf16.msrb.mxu0 %v10213_v18  ;;  %2536 = vmatpush.bf16.msrb.mxu1 %v10374_v21 }
 0x88d   : > { %2549 = vmatpush.bf16.msra.mxu2 %v10424_v40  ;;  %2562 = vmatpush.bf16.msra.mxu3 %v10318_v63  ;;  %v12401_v63 = vld [vmem:[#allocation45_spill] sm:$0xff] }
 0x8eb   : > { %v2197_v7 = vpop.f32.mrf.mxu0  ;;  %v2210_v16 = vpop.f32.mrf.mxu1 }
 0x8ec   : > { %v2244_v25 = vrot.slane %v2197_v7, 3  ;;  %v2245_v39 = vrot.slane %v2210_v16, 3 }
 0x8ee   : > { %v2252_v46 = vadd.f32 %v2244_v25, %v10479_v49  ;;  %v2253_v56 = vadd.f32 %v2245_v39, %v12400_v50 }
 0x8f0   : > { %v7825_v59 = vmul.f32 -1.442695, %v2252_v46  ;;  %v7826_v1 = vmul.f32 -1.442695, %v2253_v56 }
 0x8f2   : > { %8992 = vpow2.f32 %v7825_v59  ;;  %v2223_v9 = vpop.f32.mrf.mxu2  ;;  %v2236_v13 = vpop.f32.mrf.mxu3 }
 0x8f3   : > { %8994 = vpow2.f32 %v7826_v1  ;;  %v2199_v14 = vpop.f32.mrf.mxu0  ;;  %v2212_v18 = vpop.f32.mrf.mxu1  ;;  %v2247_v58 = vrot.slane %v2236_v13, 3  ;;  %v2246_v8 = vrot.slane %v2223_v9, 3  ;;  %v2325_v13 = vrot.slane %v10783_v55, 7 }
 0x8f5   : > { %v2255_v3 = vadd.f32 %v2247_v58, %v12401_v63  ;;  %v2254_v24 = vadd.f32 %v2246_v8, %v12402_v31 }
 0x8f7   : > { %v7827_v47 = vmul.f32 -1.442695, %v2254_v24 }
 0x8f8   : > { %v8993_v22 = vpop.eup %8992 }
 0x8f9   : > { %v8995_v26 = vpop.eup %8994  ;;  %v2265_v34 = vadd.f32 1.0, %v8993_v22 }
 0x8fa   : > { %v2266_v35 = vadd.f32 1.0, %v8995_v26  ;;  %v2225_v45 = vpop.f32.mrf.mxu2  ;;  %v2238_v51 = vpop.f32.mrf.mxu3 }
 0x8fb   : > { %8996 = vrcp.f32 %v2265_v34  ;;  %v2279_v27 = vand.u32 2147483648, %v2265_v34  ;;  %v2277_v40 = vand.u32 2147483647, %v2265_v34  ;;  %vm2273_vm9 = vweird.f32 %v2265_v34 }
 0x8fc   : > { %8998 = vrcp.f32 %v2266_v35  ;;  %v2294_v30 = vand.u32 2147483648, %v2266_v35  ;;  %v2292_v48 = vand.u32 2147483647, %v2266_v35  ;;  %vm2288_vm10 = vweird.f32 %v2266_v35 }
 0x8fd   : > { %9000 = vtanh.f32 %v2255_v3  ;;  %v2280_v6 = vor.u32 1.1754944e-38, %v2279_v27  ;;  %vm2278_vm15 = vcmp.eq.f32.partialorder %v2277_v40, 8.507059e+37  ;;  %v12403_v27 = vld [vmem:[#allocation47_spill] sm:$0xff] }
 0x8fe   : > { %v2295_v52 = vor.u32 1.1754944e-38, %v2294_v30  ;;  %vm2293_vm4 = vcmp.eq.f32.partialorder %v2292_v48, 8.507059e+37  ;;  %9002 = vpow2.f32 %v7827_v47 }
 0x901   : > { %v8997_v60 = vpop.eup %8996 }
 0x902   : > { %v8999_v4 = vpop.eup %8998  ;;  %v2269_v11 = vmul.f32 %v8997_v60, %v2265_v34  ;;  %vm2274_vm7 = vweird.f32 %v8997_v60 }
 0x903   : > { %v2284_v12 = vmul.f32 %v8999_v4, %v2266_v35  ;;  %vm2289_vm8 = vweird.f32 %v8999_v4  ;;  %vm2275_vm11 = vmor %vm2273_vm9, %vm2274_vm7  ;;  %v9001_v61 = vpop.eup %9000 }
 0x904   : > { %v2270_v20 = vsub.f32 1.0, %v2269_v11  ;;  %vm2290_vm12 = vmor %vm2288_vm10, %vm2289_vm8  ;;  %v9003_v44 = vpop.eup %9002  ;;  %vm2682_vm10 = vcmask 1044480  }
 0x905   : > { %v2285_v21 = vsub.f32 1.0, %v2284_v12  ;;  %v2267_v54 = vadd.f32 1.0, %v9003_v44 }
 0x906   : > { %v2271_v33 = vmul.f32 %v8997_v60, %v2270_v20 }
 0x907   : > { %v2286_v15 = vmul.f32 %v8999_v4, %v2285_v21  ;;  %9004 = vrcp.f32 %v2267_v54  ;;  %v2309_v50 = vand.u32 2147483648, %v2267_v54  ;;  %vm2303_vm7 = vweird.f32 %v2267_v54 }
 0x908   : > { %v2272_v19 = vadd.f32 %v8997_v60, %v2271_v33  ;;  %v2307_v56 = vand.u32 2147483647, %v2267_v54 }
 0x909   : > { %v2287_v36 = vadd.f32 %v8999_v4, %v2286_v15  ;;  %v2310_v1 = vor.u32 1.1754944e-38, %v2309_v50 }
 0x90a   : > { %v2276_v23 = vsel %vm2275_vm11, %v8997_v60, %v2272_v19  ;;  %vm2308_vm9 = vcmp.eq.f32.partialorder %v2307_v56, 8.507059e+37 }
 0x90b   : > { %v2291_v43 = vsel %vm2290_vm12, %v8999_v4, %v2287_v36  ;;  %v2281_v5 = vsel %vm2278_vm15, %v2280_v6, %v2276_v23 }
 0x90c   : > { %v2296_v62 = vsel %vm2293_vm4, %v2295_v52, %v2291_v43  ;;  %v2318_v10 = vmul.f32 %v9001_v61, %v2281_v5  ;;  %v2317_v32 = vmul.f32 %v2315_v37, %v2281_v5 }
 0x90d   : > { %v2328_v41 = vmul.f32 %v9001_v61, %v2296_v62  ;;  %v9005_v29 = vpop.eup %9004 }
 0x90e   : > { %2320 = vrot.lane.b32.xlu2 %v2318_v10, %s9700_s20  ;;  %v2299_v7 = vmul.f32 %v9005_v29, %v2267_v54  ;;  %vm2304_vm5 = vweird.f32 %v9005_v29 }
 0x90f   : > { %2330 = vrot.lane.b32.xlu0 %v2328_v41, %s9700_s20  ;;  %vm2305_vm8 = vmor %vm2303_vm7, %vm2304_vm5 }
 0x910   : > { %v2300_v16 = vsub.f32 1.0, %v2299_v7 }
 0x912   : > { %v2301_v39 = vmul.f32 %v9005_v29, %v2300_v16 }
 0x914   : > { %v2302_v46 = vadd.f32 %v9005_v29, %v2301_v39 }
 0x916   : > { %v2306_v59 = vsel %vm2305_vm8, %v9005_v29, %v2302_v46 }
 0x917   : > { %v2311_v9 = vsel %vm2308_vm9, %v2310_v1, %v2306_v59 }
 0x918   : > { %v2327_v14 = vmul.f32 %v2325_v13, %v2311_v9 }
 0x968   : > { %v2321_v53 = vpop.permute.xlu2 %2320 }
 0x969   : > { %v10839_v17 = vadd.f32 %v2321_v53, %v2317_v32 }
 0x96b   : > { %9006 = vtanh.f32 %v10839_v17  ;;  %v2480_v46 = vrot.slane %v10839_v17, 7 }
 0x971   : > { %v9007_v25 = vpop.eup %9006 }
 0x972   : > { %2336 = vrot.lane.b32.xlu1 %v9007_v25, %s9700_s20 }
 0x981   : > { %v2331_v18 = vpop.permute.xlu0 %2330 }
 0x982   : > { %v10844_v22 = vadd.f32 %v2331_v18, %v2327_v14 }
 0x984   : > { %9008 = vtanh.f32 %v10844_v22 }
 0x98a   : > { %v9009_v26 = vpop.eup %9008 }
 0x98b   : > { %2342 = vrot.lane.b32.xlu2 %v9009_v26, %s9700_s20 }
 0x9e4   : > { %v2337_v34 = vpop.permute.xlu1 %2336 }
 0x9e5   : > { %v2343_v35 = vpop.permute.xlu2 %2342  ;;  %v2339_v45 = vmul.f32 %v2337_v34, %v2296_v62  ;;  %v12404_v62 = vld [vmem:[#allocation48_spill] sm:$0xff] }
 0x9e6   : > { %v10848_v51 = vmul.f32 %v2343_v35, %v2311_v9  ;;  %v12405_v35 = vrot.slane %v10511_v2, 3 }
 0x9e7   : > { %v10852_v58 = vsel %vm2682_vm10, %v10797_v38, %v2339_v45 }
 0x9e8   : > { %v2346_v55 = vsel %vm1091_vm0, %v2339_v45, %v10848_v51 }
 0x9e9   : > { %v2347_v60 = vpack.c.bf16 %v2346_v55, %v2346_v55 }
 0x9eb   : > { %v2349_v63 = vshrl.u32 %v2347_v60, 16 }
 0x9ed   : > { %v2351_v3 = vrot.slane %v2349_v63, 2 }
 0x9ef   : > { %2361 = vmatmul.bf16.vlgmr.msra.gmra.mxu0 %v2351_v3  ;;  %2374 = vmatmul.bf16.vlgmr.msra.gmra.mxu1 %v2351_v3 }
 0x9f0   : > { %2387 = vmatmul.bf16.vlgmr.msrb.gmra.mxu2 %v2351_v3  ;;  %2400 = vmatmul.bf16.vlgmr.msrb.gmra.mxu3 %v2351_v3 }
 0xa6c   : > { %v2362_v4 = vpop.f32.mrf.mxu0  ;;  %v2375_v11 = vpop.f32.mrf.mxu1 }
 0xa6d   : > { %v2409_v12 = vrot.slane %v2362_v4, 2  ;;  %v2410_v20 = vrot.slane %v2375_v11, 2 }
 0xa6f   : > { %v2417_v21 = vadd.f32 %v2409_v12, %v10479_v49  ;;  %v2418_v30 = vadd.f32 %v2410_v20, %v12403_v27 }
 0xa71   : > { %v7828_v38 = vmul.f32 -1.442695, %v2417_v21  ;;  %v7829_v33 = vmul.f32 -1.442695, %v2418_v30 }
 0xa73   : > { %9010 = vpow2.f32 %v7828_v38  ;;  %v2388_v40 = vpop.f32.mrf.mxu2  ;;  %v2401_v15 = vpop.f32.mrf.mxu3 }
 0xa74   : > { %9012 = vpow2.f32 %v7829_v33  ;;  %v2364_v48 = vpop.f32.mrf.mxu0  ;;  %v2377_v19 = vpop.f32.mrf.mxu1  ;;  %v2412_v43 = vrot.slane %v2401_v15, 2  ;;  %v2411_v34 = vrot.slane %v2388_v40, 2  ;;  %v2490_v33 = vrot.slane %v10844_v22, 7 }
 0xa76   : > { %v2420_v10 = vadd.f32 %v2412_v43, %v12404_v62  ;;  %v2419_v17 = vadd.f32 %v2411_v34, %v12405_v35 }
 0xa78   : > { %v7830_v45 = vmul.f32 -1.442695, %v2419_v17 }
 0xa79   : > { %v9011_v36 = vpop.eup %9010 }
 0xa7a   : > { %v9013_v6 = vpop.eup %9012  ;;  %v2430_v37 = vadd.f32 1.0, %v9011_v36 }
 0xa7b   : > { %v2431_v52 = vadd.f32 1.0, %v9013_v6  ;;  %v2390_v23 = vpop.f32.mrf.mxu2  ;;  %v2403_v61 = vpop.f32.mrf.mxu3 }
 0xa7c   : > { %9014 = vrcp.f32 %v2430_v37  ;;  %v2444_v47 = vand.u32 2147483648, %v2430_v37  ;;  %v2442_v29 = vand.u32 2147483647, %v2430_v37  ;;  %vm2438_vm15 = vweird.f32 %v2430_v37 }
 0xa7d   : > { %9016 = vrcp.f32 %v2431_v52  ;;  %v2459_v44 = vand.u32 2147483648, %v2431_v52  ;;  %v2457_v7 = vand.u32 2147483647, %v2431_v52  ;;  %vm2453_vm4 = vweird.f32 %v2431_v52 }
 0xa7e   : > { %9018 = vtanh.f32 %v2420_v10  ;;  %v2445_v39 = vor.u32 1.1754944e-38, %v2444_v47  ;;  %vm2443_vm8 = vcmp.eq.f32.partialorder %v2442_v29, 8.507059e+37 }
 0xa7f   : > { %v2460_v50 = vor.u32 1.1754944e-38, %v2459_v44  ;;  %vm2458_vm9 = vcmp.eq.f32.partialorder %v2457_v7, 8.507059e+37  ;;  %9020 = vpow2.f32 %v7830_v45 }
 0xa82   : > { %v9015_v5 = vpop.eup %9014 }
 0xa83   : > { %v9017_v32 = vpop.eup %9016  ;;  %v2434_v41 = vmul.f32 %v9015_v5, %v2430_v37  ;;  %vm2439_vm11 = vweird.f32 %v9015_v5 }
 0xa84   : > { %v2449_v8 = vmul.f32 %v9017_v32, %v2431_v52  ;;  %vm2454_vm12 = vweird.f32 %v9017_v32  ;;  %vm2440_vm5 = vmor %vm2438_vm15, %vm2439_vm11  ;;  %v9019_v59 = vpop.eup %9018 }
 0xa85   : > { %v2435_v31 = vsub.f32 1.0, %v2434_v41  ;;  %vm2455_vm7 = vmor %vm2453_vm4, %vm2454_vm12  ;;  %v9021_v55 = vpop.eup %9020 }
 0xa86   : > { %v2450_v24 = vsub.f32 1.0, %v2449_v8  ;;  %v2432_v60 = vadd.f32 1.0, %v9021_v55 }
 0xa87   : > { %v2436_v54 = vmul.f32 %v9015_v5, %v2435_v31 }
 0xa88   : > { %v2451_v53 = vmul.f32 %v9017_v32, %v2450_v24  ;;  %9022 = vrcp.f32 %v2432_v60  ;;  %v2474_v20 = vand.u32 2147483648, %v2432_v60  ;;  %vm2468_vm12 = vweird.f32 %v2432_v60 }
 0xa89   : > { %v2437_v16 = vadd.f32 %v9015_v5, %v2436_v54  ;;  %v2472_v21 = vand.u32 2147483647, %v2432_v60 }
 0xa8a   : > { %v2452_v25 = vadd.f32 %v9017_v32, %v2451_v53  ;;  %v2475_v30 = vor.u32 1.1754944e-38, %v2474_v20 }
 0xa8b   : > { %v2441_v56 = vsel %vm2440_vm5, %v9015_v5, %v2437_v16  ;;  %vm2473_vm4 = vcmp.eq.f32.partialorder %v2472_v21, 8.507059e+37  ;;  %vm2684_vm5 = vcmask 1045504  }
 0xa8c   : > { %v2456_v1 = vsel %vm2455_vm7, %v9017_v32, %v2452_v25  ;;  %v2446_v9 = vsel %vm2443_vm8, %v2445_v39, %v2441_v56 }
 0xa8d   : > { %v2461_v13 = vsel %vm2458_vm9, %v2460_v50, %v2456_v1  ;;  %v2483_v14 = vmul.f32 %v9019_v59, %v2446_v9  ;;  %v2482_v18 = vmul.f32 %v2480_v46, %v2446_v9 }
 0xa8e   : > { %v2493_v26 = vmul.f32 %v9019_v59, %v2461_v13  ;;  %v9023_v63 = vpop.eup %9022 }
 0xa8f   : > { %2485 = vrot.lane.b32.xlu0 %v2483_v14, %s9700_s20  ;;  %v2464_v3 = vmul.f32 %v9023_v63, %v2432_v60  ;;  %vm2469_vm11 = vweird.f32 %v9023_v63 }
 0xa90   : > { %2495 = vrot.lane.b32.xlu1 %v2493_v26, %s9700_s20  ;;  %vm2470_vm15 = vmor %vm2468_vm12, %vm2469_vm11 }
 0xa91   : > { %v2465_v4 = vsub.f32 1.0, %v2464_v3 }
 0xa93   : > { %v2466_v11 = vmul.f32 %v9023_v63, %v2465_v4 }
 0xa95   : > { %v2467_v12 = vadd.f32 %v9023_v63, %v2466_v11 }
 0xa97   : > { %v2471_v27 = vsel %vm2470_vm15, %v9023_v63, %v2467_v12 }
 0xa98   : > { %v2476_v38 = vsel %vm2473_vm4, %v2475_v30, %v2471_v27 }
 0xa99   : > { %v2492_v40 = vmul.f32 %v2490_v33, %v2476_v38 }
 0xb01   : > { %v2486_v15 = vpop.permute.xlu0 %2485 }
 0xb02   : > { %v2496_v48 = vpop.permute.xlu1 %2495  ;;  %v10865_v19 = vadd.f32 %v2486_v15, %v2482_v18  ;;  %v12406_v15 = vrot.slane %v10511_v2, 1  ;;  %v7956_v2 = vld [vmem:[#allocation2 + $0xe8] sm:$0xf] }
 0xb03   : > { %v10867_v36 = vadd.f32 %v2496_v48, %v2492_v40 }
 0xb04   : > { %9024 = vtanh.f32 %v10865_v19  ;;  %v2643_v3 = vrot.slane %v10865_v19, 7 }
 0xb05   : > { %9026 = vtanh.f32 %v10867_v36 }
 0xb0a   : > { %v9025_v6 = vpop.eup %9024 }
 0xb0b   : > { %v9027_v37 = vpop.eup %9026  ;;  %2501 = vrot.lane.b32.xlu2 %v9025_v6, %s9700_s20 }
 0xb0c   : > { %2507 = vrot.lane.b32.xlu0 %v9027_v37, %s9700_s20 }
 0xb65   : > { %v2502_v52 = vpop.permute.xlu2 %2501 }
 0xb66   : > { %v2504_v22 = vmul.f32 %v2502_v52, %v2461_v13 }
 0xb68   : > { %v10875_v23 = vsel %vm2684_vm5, %v10852_v58, %v2504_v22 }
 0xb7e   : > { %v2508_v61 = vpop.permute.xlu0 %2507 }
 0xb7f   : > { %v10877_v43 = vmul.f32 %v2508_v61, %v2476_v38 }
 0xb81   : > { %v2511_v5 = vsel %vm1091_vm0, %v2504_v22, %v10877_v43 }
 0xb82   : > { %v2512_v62 = vpack.c.bf16 %v2511_v5, %v2511_v5 }
 0xb84   : > { %v2514_v10 = vrot.slane %v2512_v62, 3 }
 0xb86   : > { %2524 = vmatmul.bf16.vlgmr.msrb.gmra.mxu0 %v2514_v10  ;;  %2537 = vmatmul.bf16.vlgmr.msrb.gmra.mxu1 %v2514_v10 }
 0xb87   : > { %2550 = vmatmul.bf16.vlgmr.msra.gmra.mxu2 %v2514_v10  ;;  %2563 = vmatmul.bf16.vlgmr.msra.gmra.mxu3 %v2514_v10  ;;  %v7948_v10 = vld [vmem:[#allocation2 + $0xe0] sm:$0xf] }
 0xc03   : > { %v2525_v32 = vpop.f32.mrf.mxu0  ;;  %v2538_v41 = vpop.f32.mrf.mxu1 }
 0xc04   : > { %v2572_v8 = vrot.slane %v2525_v32, 1  ;;  %v2573_v31 = vrot.slane %v2538_v41, 1  ;;  %v8534_v32 = vld [vmem:[#allocation2 + $0xec] sm:$0xf0]  ;;  %v8532_v41 = vld [vmem:[#allocation2 + $0xe4] sm:$0xf] }
 0xc06   : > { %v2580_v24 = vadd.f32 %v2572_v8, %v10479_v49  ;;  %v2581_v58 = vadd.f32 %v2573_v31, %v10708_v28  ;;  %v7949_v8 = vor.u32 %v8534_v32, %v7948_v10  ;;  %v7950_v31 = vld [vmem:[#allocation2 + $0xf0] sm:$0xf0]  ;;  %v8521_v10 = vld [vmem:[#allocation2 + $0x8c] sm:$0xf] }
 0xc08   : > { %v7831_v47 = vmul.f32 -1.442695, %v2580_v24  ;;  %v7832_v44 = vmul.f32 -1.442695, %v2581_v58  ;;  %v8535_v24 = vld [vmem:[#allocation2 + $0xf4] sm:$0xf0]  ;;  %v7953_v58 = vor.u32 %v8532_v41, %v7950_v31  ;;  %2932 = vmatpush.bf16.msra.mxu0 %v7949_v8 }
 0xc09   : > { %v7910_v41 = vld [vmem:[#allocation2 + $0x98] sm:$0xf0]  ;;  %v7884_v8 = vld [vmem:[#allocation2 + $0x60] sm:$0xf]  ;;  %v8518_v31 = vld [vmem:[#allocation2 + $0x6c] sm:$0xf0] }
 0xc0a   : > { %9028 = vpow2.f32 %v7831_v47  ;;  %v2551_v54 = vpop.f32.mrf.mxu2  ;;  %v2564_v29 = vpop.f32.mrf.mxu3  ;;  %v7957_v47 = vor.u32 %v8535_v24, %v7956_v2  ;;  %2945 = vmatpush.bf16.msra.mxu1 %v7953_v58  ;;  %v7913_v2 = vor.u32 %v8521_v10, %v7910_v41  ;;  %v8516_v24 = vld [vmem:[#allocation2 + $0x64] sm:$0xf]  ;;  %v7886_v58 = vld [vmem:[#allocation2 + $0x70] sm:$0xf0] }
 0xc0b   : > { %9030 = vpow2.f32 %v7832_v44  ;;  %v2527_v53 = vpop.f32.mrf.mxu0  ;;  %v2540_v7 = vpop.f32.mrf.mxu1  ;;  %v2575_v59 = vrot.slane %v2564_v29, 1  ;;  %v2574_v40 = vrot.slane %v2551_v54, 1  ;;  %v8533_v44 = vld [vmem:[#allocation2 + $0xec] sm:$0xf]  ;;  %v7958_v54 = vld [vmem:[#allocation2 + $0xf8] sm:$0xf0] }
 0xc0c   : > { %v7932_v29 = vld [vmem:[#allocation2 + $0xc0] sm:$0xf]  ;;  %v7961_v53 = vor.u32 %v8533_v44, %v7958_v54  ;;  %v8530_v7 = vld [vmem:[#allocation2 + $0xcc] sm:$0xf0]  ;;  %2958 = vmatpush.bf16.msrb.mxu2 %v7957_v47  ;;  %v7892_v47 = vld [vmem:[#allocation2 + $0x68] sm:$0xf]  ;;  %v7885_v44 = vor.u32 %v8518_v31, %v7884_v8 }
 0xc0d   : > { %v2583_v28 = vadd.f32 %v2575_v59, %v10716_v42  ;;  %v2582_v48 = vadd.f32 %v2574_v40, %v12406_v15  ;;  %v8529_v59 = vld [vmem:[#allocation2 + $0xcc] sm:$0xf]  ;;  %v7926_v40 = vld [vmem:[#allocation2 + $0xb8] sm:$0xf0]  ;;  %v7900_v15 = vld [vmem:[#allocation2 + $0x80] sm:$0xf] }
 0xc0e   : > { %2971 = vmatpush.bf16.msrb.mxu3 %v7961_v53  ;;  %v8519_v54 = vld [vmem:[#allocation2 + $0x74] sm:$0xf0]  ;;  %v7894_v53 = vld [vmem:[#allocation2 + $0x78] sm:$0xf0]  ;;  %v8076_v31 = vld [vmem:[#allocation5 + $0xe0] sm:$0xf] }
 0xc0f   : > { %v7833_v19 = vmul.f32 -1.442695, %v2582_v48 }
 0xc10   : > { %v9029_v16 = vpop.eup %9028 }
 0xc11   : > { %v9031_v25 = vpop.eup %9030  ;;  %v2593_v39 = vadd.f32 1.0, %v9029_v16  ;;  %v8528_v16 = vld [vmem:[#allocation2 + $0xc4] sm:$0xf] }
 0xc12   : > { %v2594_v46 = vadd.f32 1.0, %v9031_v25  ;;  %v2553_v50 = vpop.f32.mrf.mxu2  ;;  %v2566_v56 = vpop.f32.mrf.mxu3  ;;  %v7934_v25 = vld [vmem:[#allocation2 + $0xd0] sm:$0xf0] }
 0xc13   : > { %9032 = vrcp.f32 %v2593_v39  ;;  %v2607_v26 = vand.u32 2147483648, %v2593_v39  ;;  %v2605_v17 = vand.u32 2147483647, %v2593_v39  ;;  %vm2601_vm9 = vweird.f32 %v2593_v39  ;;  %v7940_v50 = vld [vmem:[#allocation2 + $0xc8] sm:$0xf] }
 0xc14   : > { %9034 = vrcp.f32 %v2594_v46  ;;  %v2622_v34 = vand.u32 2147483648, %v2594_v46  ;;  %v2620_v55 = vand.u32 2147483647, %v2594_v46  ;;  %vm2616_vm11 = vweird.f32 %v2594_v46  ;;  %v8531_v56 = vld [vmem:[#allocation2 + $0xd4] sm:$0xf0] }
 0xc15   : > { %9036 = vtanh.f32 %v2583_v28  ;;  %v2608_v42 = vor.u32 1.1754944e-38, %v2607_v26  ;;  %vm2606_vm4 = vcmp.eq.f32.partialorder %v2605_v17, 8.507059e+37  ;;  %v7942_v28 = vld [vmem:[#allocation2 + $0xd8] sm:$0xf0] }
 0xc16   : > { %v2623_v4 = vor.u32 1.1754944e-38, %v2622_v34  ;;  %vm2621_vm1 = vcmp.eq.f32.partialorder %v2620_v55, 8.507059e+37  ;;  %9038 = vpow2.f32 %v7833_v19  ;;  %v8522_v19 = vld [vmem:[#allocation2 + $0x8c] sm:$0xf0] }
 0xc19   : > { %v9033_v49 = vpop.eup %9032 }
 0xc1a   : > { %v9035_v1 = vpop.eup %9034  ;;  %v2597_v9 = vmul.f32 %v9033_v49, %v2593_v39  ;;  %vm2602_vm7 = vweird.f32 %v9033_v49  ;;  %v7933_v39 = vor.u32 %v8530_v7, %v7932_v29  ;;  %v8517_v29 = vld [vmem:[#allocation2 + $0x6c] sm:$0xf]  ;;  %v7889_v7 = vor.u32 %v8516_v24, %v7886_v58 }
 0xc1b   : > { %v2612_v13 = vmul.f32 %v9035_v1, %v2594_v46  ;;  %vm2617_vm8 = vweird.f32 %v9035_v1  ;;  %vm2603_vm12 = vmor %vm2601_vm9, %vm2602_vm7  ;;  %v9037_v12 = vpop.eup %9036  ;;  %v7937_v46 = vor.u32 %v8528_v16, %v7934_v25  ;;  %v7893_v16 = vor.u32 %v8519_v54, %v7892_v47  ;;  %v7868_v25 = vld [vmem:[#allocation2 + $0x40] sm:$0xf]  ;;  %v8562_v54 = vld [vmem:[#allocation5 + $0xcc] sm:$0xf0] }
 0xc1c   : > { %v2598_v14 = vsub.f32 1.0, %v2597_v9  ;;  %vm2618_vm15 = vmor %vm2616_vm11, %vm2617_vm8  ;;  %v9039_v6 = vpop.eup %9038  ;;  %v7945_v9 = vor.u32 %v8529_v59, %v7942_v28  ;;  %2933 = vmatpush.bf16.msra.mxu0 %v7933_v39  ;;  %v8514_v39 = vld [vmem:[#allocation2 + $0x4c] sm:$0xf0]  ;;  %v7876_v59 = vld [vmem:[#allocation2 + $0x48] sm:$0xf]  ;;  %vm12322_vm11 = vcmask 1046528  }
 0xc1d   : > { %v2613_v18 = vsub.f32 1.0, %v2612_v13  ;;  %v2595_v37 = vadd.f32 1.0, %v9039_v6  ;;  %2946 = vmatpush.bf16.msra.mxu1 %v7937_v46  ;;  %v8520_v6 = vld [vmem:[#allocation2 + $0x84] sm:$0xf]  ;;  %v8513_v28 = vld [vmem:[#allocation2 + $0x4c] sm:$0xf] }
 0xc1e   : > { %v2599_v35 = vmul.f32 %v9033_v49, %v2598_v14  ;;  %2972 = vmatpush.bf16.msrb.mxu3 %v7945_v9  ;;  %v8512_v46 = vld [vmem:[#allocation2 + $0x44] sm:$0xf]  ;;  %v7869_v9 = vor.u32 %v8514_v39, %v7868_v25 }
 0xc1f   : > { %v2614_v45 = vmul.f32 %v9035_v1, %v2613_v18  ;;  %9040 = vrcp.f32 %v2595_v37  ;;  %v2637_v18 = vand.u32 2147483648, %v2595_v37  ;;  %vm2631_vm7 = vweird.f32 %v2595_v37 }
 0xc20   : > { %v2600_v60 = vadd.f32 %v9033_v49, %v2599_v35  ;;  %v2635_v26 = vand.u32 2147483647, %v2595_v37 }
 0xc21   : > { %v2615_v63 = vadd.f32 %v9035_v1, %v2614_v45  ;;  %v2638_v35 = vor.u32 1.1754944e-38, %v2637_v18  ;;  %v2653_v45 = vrot.slane %v10867_v36, 7  ;;  %v8525_v36 = vld [vmem:[#allocation2 + $0xac] sm:$0xf]  ;;  %v7852_v18 = vld [vmem:[#allocation2 + $0x20] sm:$0xf] }
 0xc22   : > { %v2604_v11 = vsel %vm2603_vm12, %v9033_v49, %v2600_v60  ;;  %v7941_v49 = vor.u32 %v8531_v56, %v7940_v50  ;;  %vm2636_vm9 = vcmp.eq.f32.partialorder %v2635_v26, 8.507059e+37  ;;  %v7929_v48 = vor.u32 %v8525_v36, %v7926_v40  ;;  %v7870_v56 = vld [vmem:[#allocation2 + $0x50] sm:$0xf0]  ;;  %v8510_v26 = vld [vmem:[#allocation2 + $0x2c] sm:$0xf0] }
 0xc23   : > { %v2619_v20 = vsel %vm2618_vm15, %v9035_v1, %v2615_v63  ;;  %v2609_v21 = vsel %vm2606_vm4, %v2608_v42, %v2604_v11  ;;  %v8524_v11 = vld [vmem:[#allocation2 + $0xa4] sm:$0xf]  ;;  %v7897_v50 = vor.u32 %v8517_v29, %v7894_v53  ;;  %v8507_v40 = vld [vmem:[#allocation2 + $0x14] sm:$0xf0]  ;;  %v8062_v53 = vld [vmem:[#allocation5 + $0xd0] sm:$0xf0] }
 0xc24   : > { %v10885_v27 = vsel %vm2621_vm1, %v2623_v4, %v2619_v20  ;;  %v2646_v30 = vmul.f32 %v9037_v12, %v2609_v21  ;;  %v2645_v38 = vmul.f32 %v2643_v3, %v2609_v21  ;;  %2959 = vmatpush.bf16.msrb.mxu2 %v7941_v49  ;;  %v7916_v3 = vld [vmem:[#allocation2 + $0xa0] sm:$0xf]  ;;  %v8526_v4 = vld [vmem:[#allocation2 + $0xac] sm:$0xf0]  ;;  %v7918_v20 = vld [vmem:[#allocation2 + $0xb0] sm:$0xf0]  ;;  %2973 = vmatpush.bf16.msrb.mxu3 %v7929_v48 }
 0xc25   : > { %v2656_v33 = vmul.f32 %v9037_v12, %v10885_v27  ;;  %v9041_v52 = vpop.eup %9040  ;;  %v7917_v12 = vor.u32 %v8526_v4, %v7916_v3  ;;  %v7924_v21 = vld [vmem:[#allocation2 + $0xa8] sm:$0xf]  ;;  %v8515_v49 = vld [vmem:[#allocation2 + $0x54] sm:$0xf0]  ;;  %v7862_v3 = vld [vmem:[#allocation2 + $0x38] sm:$0xf0]  ;;  %v7853_v4 = vor.u32 %v8510_v26, %v7852_v18 }
 0xc26   : > { %2648 = vrot.lane.b32.xlu2 %v2646_v30, %s9700_s20  ;;  %v2627_v22 = vmul.f32 %v9041_v52, %v2595_v37  ;;  %vm2632_vm1 = vweird.f32 %v9041_v52  ;;  %v8527_v30 = vld [vmem:[#allocation2 + $0xb4] sm:$0xf0]  ;;  %v7902_v37 = vld [vmem:[#allocation2 + $0x90] sm:$0xf0]  ;;  %v7846_v48 = vld [vmem:[#allocation2 + $0x18] sm:$0xf0] }
 0xc27   : > { %2658 = vrot.lane.b32.xlu1 %v2656_v33, %s9700_s20  ;;  %vm2633_vm8 = vmor %vm2631_vm7, %vm2632_vm1  ;;  %v7925_v33 = vor.u32 %v8527_v30, %v7924_v21  ;;  %2934 = vmatpush.bf16.msra.mxu0 %v7917_v12  ;;  %v8506_v12 = vld [vmem:[#allocation2 + $0xc] sm:$0xf0]  ;;  %v8504_v30 = vld [vmem:[#allocation2 + $0x4] sm:$0xf] }
 0xc28   : > { %v2628_v62 = vsub.f32 1.0, %v2627_v22  ;;  %v7905_v22 = vor.u32 %v8520_v6, %v7902_v37  ;;  %2974 = vmatpush.bf16.msrb.mxu3 %v7913_v2  ;;  %v8078_v6 = vld [vmem:[#allocation5 + $0xf0] sm:$0xf0]  ;;  %v8084_v37 = vld [vmem:[#allocation5 + $0xe8] sm:$0xf] }
 0xc29   : > { %2960 = vmatpush.bf16.msrb.mxu2 %v7925_v33  ;;  %v7844_v33 = vld [vmem:[#allocation2 + $0x8] sm:$0xf]  ;;  %v8566_v2 = vld [vmem:[#allocation5 + $0xec] sm:$0xf0]  ;;  %v8560_v29 = vld [vmem:[#allocation5 + $0xc4] sm:$0xf] }
 0xc2a   : > { %v2629_v13 = vmul.f32 %v9041_v52, %v2628_v62  ;;  %v8523_v62 = vld [vmem:[#allocation2 + $0x94] sm:$0xf0]  ;;  %v10910_v47 = vor.u32 %v8566_v2, %v8076_v31  ;;  %v10918_v39 = vor.u32 %v8560_v29, %v8062_v53  ;;  %v8546_v31 = vld [vmem:[#allocation5 + $0x4c] sm:$0xf0]  ;;  %v8544_v2 = vld [vmem:[#allocation5 + $0x44] sm:$0xf] }
 0xc2b   : > { %v8004_v29 = vld [vmem:[#allocation5 + $0x48] sm:$0xf]  ;;  %v8547_v53 = vld [vmem:[#allocation5 + $0x54] sm:$0xf0] }
 0xc2c   : > { %v2630_v14 = vadd.f32 %v9041_v52, %v2629_v13  ;;  %v7873_v13 = vor.u32 %v8512_v46, %v7870_v56  ;;  %2975 = vmatpush.bf16.msrb.mxu3 %v7897_v50  ;;  %v8561_v50 = vld [vmem:[#allocation5 + $0xcc] sm:$0xf]  ;;  %v8070_v56 = vld [vmem:[#allocation5 + $0xd8] sm:$0xf0] }
 0xc2e   : > { %v2634_v34 = vsel %vm2633_vm8, %v9041_v52, %v2630_v14  ;;  %v7901_v52 = vor.u32 %v8522_v19, %v7900_v15  ;;  %v7877_v14 = vor.u32 %v8515_v49, %v7876_v59  ;;  %v8505_v15 = vld [vmem:[#allocation2 + $0xc] sm:$0xf]  ;;  %v8564_v19 = vld [vmem:[#allocation5 + $0xe4] sm:$0xf]  ;;  %v10922_v59 = vor.u32 %v8561_v50, %v8070_v56  ;;  %v8044_v49 = vld [vmem:[#allocation5 + $0xa0] sm:$0xf] }
 0xc2f   : > { %v10896_v17 = vsel %vm2636_vm9, %v2638_v35, %v2634_v34  ;;  %v8508_v34 = vld [vmem:[#allocation2 + $0x24] sm:$0xf]  ;;  %v7849_v41 = vor.u32 %v8505_v15, %v7846_v48  ;;  %v10904_v8 = vor.u32 %v8564_v19, %v8078_v6  ;;  %v8550_v15 = vld [vmem:[#allocation5 + $0x6c] sm:$0xf0]  ;;  %v8014_v19 = vld [vmem:[#allocation5 + $0x70] sm:$0xf0] }
 0xc30   : > { %v2655_v55 = vmul.f32 %v2653_v45, %v10896_v17  ;;  %2935 = vmatpush.bf16.msra.mxu0 %v7901_v52  ;;  %v7854_v45 = vld [vmem:[#allocation2 + $0x30] sm:$0xf0]  ;;  %v8548_v48 = vld [vmem:[#allocation5 + $0x64] sm:$0xf]  ;;  %v8020_v6 = vld [vmem:[#allocation5 + $0x68] sm:$0xf] }
 0xc31   : > { %v8006_v50 = vld [vmem:[#allocation5 + $0x58] sm:$0xf0]  ;;  %v7980_v56 = vld [vmem:[#allocation5 + $0x20] sm:$0xf] }
 0xc34   : > { %2936 = vmatpush.bf16.msra.mxu0 %v7885_v44  ;;  %v8060_v44 = vld [vmem:[#allocation5 + $0xc0] sm:$0xf] }
 0xc35   : > { %v10916_v25 = vor.u32 %v8562_v54, %v8060_v44  ;;  %v7998_v44 = vld [vmem:[#allocation5 + $0x50] sm:$0xf0] }
 0xc36   : > { %v10961_v54 = vor.u32 %v8544_v2, %v7998_v44  ;;  %v2692_v44 = vrot.slane %v10877_v43, 5 }
 0xc38   : > { %2937 = vmatpush.bf16.msra.mxu0 %v7869_v9  ;;  %v8046_v9 = vld [vmem:[#allocation5 + $0xb0] sm:$0xf0] }
 0xc3c   : > { %2938 = vmatpush.bf16.msra.mxu0 %v7853_v4  ;;  %v8030_v4 = vld [vmem:[#allocation5 + $0x90] sm:$0xf0] }
 0xc80   : > { %v2649_v61 = vpop.permute.xlu2 %2648 }
 0xc81   : > { %v10892_v5 = vadd.f32 %v2649_v61, %v2645_v38  ;;  %v7921_v38 = vor.u32 %v8524_v11, %v7918_v20  ;;  %v7908_v61 = vld [vmem:[#allocation2 + $0x88] sm:$0xf]  ;;  %v7836_v11 = vld [vmem:[#allocation2] sm:$0xf]  ;;  %v7857_v20 = vor.u32 %v8508_v34, %v7854_v45  ;;  %v8054_v45 = vld [vmem:[#allocation5 + $0xb8] sm:$0xf0] }
 0xc82   : > { %v7909_v32 = vor.u32 %v8523_v62, %v7908_v61  ;;  %v7837_v52 = vor.u32 %v8506_v12, %v7836_v11  ;;  %v8565_v61 = vld [vmem:[#allocation5 + $0xec] sm:$0xf]  ;;  %v8086_v62 = vld [vmem:[#allocation5 + $0xf8] sm:$0xf0]  ;;  %v8036_v12 = vld [vmem:[#allocation5 + $0x88] sm:$0xf] }
 0xc83   : > { %12407 = vst [vmem:[#allocation38_spill] sm:$0xff] %v10892_v5  ;;  %9042 = vtanh.f32 %v10892_v5  ;;  %2947 = vmatpush.bf16.msra.mxu1 %v7921_v38  ;;  %v7838_v38 = vld [vmem:[#allocation2 + $0x10] sm:$0xf0]  ;;  %v10908_v58 = vor.u32 %v8565_v61, %v8086_v62  ;;  %v8549_v62 = vld [vmem:[#allocation5 + $0x6c] sm:$0xf] }
 0xc84   : > { %2961 = vmatpush.bf16.msrb.mxu2 %v7909_v32  ;;  %v7841_v10 = vor.u32 %v8504_v30, %v7838_v38  ;;  %v7845_v32 = vor.u32 %v8507_v40, %v7844_v33  ;;  %2939 = vmatpush.bf16.msra.mxu0 %v7837_v52  ;;  %v8038_v38 = vld [vmem:[#allocation5 + $0x98] sm:$0xf0]  ;;  %v8012_v40 = vld [vmem:[#allocation5 + $0x60] sm:$0xf] }
 0xc85   : > { %v10952_v52 = vor.u32 %v8550_v15, %v8012_v40  ;;  %v8539_v40 = vld [vmem:[#allocation5 + $0x14] sm:$0xf0]  ;;  %v8537_v15 = vld [vmem:[#allocation5 + $0xc] sm:$0xf] }
 0xc87   : > { %2948 = vmatpush.bf16.msra.mxu1 %v7905_v22  ;;  %v8567_v22 = vld [vmem:[#allocation5 + $0xf4] sm:$0xf0] }
 0xc88   : > { %2962 = vmatpush.bf16.msrb.mxu2 %v7893_v16  ;;  %v10906_v24 = vor.u32 %v8567_v22, %v8084_v37  ;;  %v8563_v16 = vld [vmem:[#allocation5 + $0xd4] sm:$0xf0]  ;;  %3192 = vmatpush.bf16.msrb.mxu0 %v10910_v47  ;;  %v10954_v22 = vor.u32 %v8548_v48, %v8014_v19  ;;  %v7974_v48 = vld [vmem:[#allocation5 + $0x18] sm:$0xf0]  ;;  %v7964_v19 = vld [vmem:[#allocation5] sm:$0xf] }
 0xc89   : > { %v9043_v1 = vpop.eup %9042  ;;  %v8551_v37 = vld [vmem:[#allocation5 + $0x74] sm:$0xf0] }
 0xc8a   : > { %2664 = vrot.lane.b32.xlu1 %v9043_v1, %s9700_s20  ;;  %v7878_v1 = vld [vmem:[#allocation2 + $0x58] sm:$0xf0]  ;;  %v10956_v61 = vor.u32 %v8551_v37, %v8020_v6  ;;  %v8538_v6 = vld [vmem:[#allocation5 + $0xc] sm:$0xf0] }
 0xc8b   : > { %2949 = vmatpush.bf16.msra.mxu1 %v7889_v7  ;;  %v7881_v35 = vor.u32 %v8513_v28, %v7878_v1  ;;  %v8068_v7 = vld [vmem:[#allocation5 + $0xc8] sm:$0xf]  ;;  %v8558_v28 = vld [vmem:[#allocation5 + $0xac] sm:$0xf0]  ;;  %v8556_v1 = vld [vmem:[#allocation5 + $0xa4] sm:$0xf] }
 0xc8c   : > { %2963 = vmatpush.bf16.msrb.mxu2 %v7877_v14  ;;  %v10920_v46 = vor.u32 %v8563_v16, %v8068_v7  ;;  %v8559_v14 = vld [vmem:[#allocation5 + $0xb4] sm:$0xf0]  ;;  %3193 = vmatpush.bf16.msrb.mxu0 %v10916_v25  ;;  %v10928_v18 = vor.u32 %v8558_v28, %v8044_v49  ;;  %v10930_v26 = vor.u32 %v8556_v1, %v8046_v9  ;;  %v8545_v7 = vld [vmem:[#allocation5 + $0x4c] sm:$0xf]  ;;  %v8542_v49 = vld [vmem:[#allocation5 + $0x2c] sm:$0xf0] }
 0xc8d   : > { %2976 = vmatpush.bf16.msrb.mxu3 %v7881_v35  ;;  %v8557_v35 = vld [vmem:[#allocation5 + $0xac] sm:$0xf]  ;;  %v10965_v16 = vor.u32 %v8547_v53, %v8004_v29  ;;  %v10970_v1 = vor.u32 %v8545_v7, %v8006_v50  ;;  %v8540_v9 = vld [vmem:[#allocation5 + $0x24] sm:$0xf]  ;;  %v2695_v53 = vrot.slane %v10848_v51, 3  ;;  %v2698_v50 = vrot.slane %v10791_v57, 1 }
 0xc8f   : > { %2950 = vmatpush.bf16.msra.mxu1 %v7873_v13  ;;  %v8052_v13 = vld [vmem:[#allocation5 + $0xa8] sm:$0xf] }
 0xc90   : > { %v10932_v34 = vor.u32 %v8559_v14, %v8052_v13  ;;  %3194 = vmatpush.bf16.msrb.mxu0 %v10928_v18  ;;  %v7982_v13 = vld [vmem:[#allocation5 + $0x30] sm:$0xf0]  ;;  %v7988_v14 = vld [vmem:[#allocation5 + $0x28] sm:$0xf] }
 0xc93   : > { %2951 = vmatpush.bf16.msra.mxu1 %v7857_v20  ;;  %v8555_v20 = vld [vmem:[#allocation5 + $0x94] sm:$0xf0] }
 0xc94   : > { %v10941_v30 = vor.u32 %v8555_v20, %v8036_v12  ;;  %v8536_v12 = vld [vmem:[#allocation5 + $0x4] sm:$0xf]  ;;  %v7966_v20 = vld [vmem:[#allocation5 + $0x10] sm:$0xf0] }
 0xc95   : > { %v10985_v37 = vor.u32 %v8536_v12, %v7966_v20 }
 0xc97   : > { %2952 = vmatpush.bf16.msra.mxu1 %v7841_v10  ;;  %v8022_v10 = vld [vmem:[#allocation5 + $0x78] sm:$0xf0] }
 0xc99   : > { %v2659_v60 = vpop.permute.xlu1 %2658 }
 0xc9a   : > { %v10900_v63 = vadd.f32 %v2659_v60, %v2655_v55  ;;  %v7860_v55 = vld [vmem:[#allocation2 + $0x28] sm:$0xf]  ;;  %v8511_v60 = vld [vmem:[#allocation2 + $0x34] sm:$0xf0] }
 0xc9b   : > { %v7861_v21 = vor.u32 %v8511_v60, %v7860_v55  ;;  %3205 = vmatpush.bf16.msrb.mxu1 %v10904_v8  ;;  %v8028_v55 = vld [vmem:[#allocation5 + $0x80] sm:$0xf]  ;;  %v10934_v60 = vor.u32 %v8557_v35, %v8054_v45  ;;  %v8543_v35 = vld [vmem:[#allocation5 + $0x34] sm:$0xf0]  ;;  %v8541_v45 = vld [vmem:[#allocation5 + $0x2c] sm:$0xf] }
 0xc9c   : > { %12408 = vst [vmem:[#allocation42_spill] sm:$0xff] %v10900_v63  ;;  %9044 = vtanh.f32 %v10900_v63 }
 0xc9d   : > { %2964 = vmatpush.bf16.msrb.mxu2 %v7861_v21  ;;  %v8553_v21 = vld [vmem:[#allocation5 + $0x8c] sm:$0xf] }
 0xc9f   : > { %3206 = vmatpush.bf16.msrb.mxu1 %v10918_v39 }
 0xca1   : > { %2965 = vmatpush.bf16.msrb.mxu2 %v7845_v32  ;;  %v7996_v32 = vld [vmem:[#allocation5 + $0x40] sm:$0xf] }
 0xca2   : > { %v9045_v42 = vpop.eup %9044  ;;  %v10968_v28 = vor.u32 %v8546_v31, %v7996_v32  ;;  %v10994_v32 = vor.u32 %v8538_v6, %v7964_v19  ;;  %v11093_v19 = vld [vmem:[#allocation7] sm:$0xf] }
 0xca3   : > { %2670 = vrot.lane.b32.xlu0 %v9045_v42, %s9700_s20  ;;  %v8509_v42 = vld [vmem:[#allocation2 + $0x2c] sm:$0xf]  ;;  %3207 = vmatpush.bf16.msrb.mxu1 %v10930_v26  ;;  %v2765_v6 = vperm.slane %v11093_v19, 1 }
 0xca4   : > { %v7865_v36 = vor.u32 %v8509_v42, %v7862_v3  ;;  %v8554_v42 = vld [vmem:[#allocation5 + $0x8c] sm:$0xf0]  ;;  %v8552_v3 = vld [vmem:[#allocation5 + $0x84] sm:$0xf] }
 0xca5   : > { %3218 = vmatpush.bf16.msra.mxu2 %v10906_v24  ;;  %v10937_v11 = vor.u32 %v8552_v3, %v8030_v4  ;;  %v10944_v33 = vor.u32 %v8554_v42, %v8028_v55  ;;  %v7990_v55 = vld [vmem:[#allocation5 + $0x38] sm:$0xf0]  ;;  %v10973_v42 = vor.u32 %v8540_v9, %v7982_v13  ;;  %v10977_v3 = vor.u32 %v8543_v35, %v7988_v14  ;;  %v12410_v13 = vld [vmem:[#allocation49_spill] sm:$0xff]  ;;  %v12412_v35 = vld [vmem:[#allocation46_spill] sm:$0xff] }
 0xca6   : > { %2977 = vmatpush.bf16.msrb.mxu3 %v7865_v36  ;;  %v10946_v36 = vor.u32 %v8553_v21, %v8038_v38  ;;  %v10979_v4 = vor.u32 %v8541_v45, %v7990_v55  ;;  %v7972_v21 = vld [vmem:[#allocation5 + $0x8] sm:$0xf]  ;;  %v10982_v38 = vor.u32 %v8542_v49, %v7980_v56  ;;  %v2701_v49 = vrot.slane %v10738_v0, 7  ;;  %v12413_v55 = vld [vmem:[#allocation43_spill] sm:$0xff] }
 0xca7   : > { %3208 = vmatpush.bf16.msrb.mxu1 %v10937_v11  ;;  %3195 = vmatpush.bf16.msrb.mxu0 %v10944_v33  ;;  %v2704_v14 = vrot.slane %v12410_v13, 5  ;;  %v2707_v45 = vrot.slane %v12412_v35, 3  ;;  %v2710_v57 = vrot.slane %v12413_v55, 1 }
 0xca9   : > { %3219 = vmatpush.bf16.msra.mxu2 %v10920_v46 }
 0xcaa   : > { %2978 = vmatpush.bf16.msrb.mxu3 %v7849_v41  ;;  %v10958_v41 = vor.u32 %v8549_v62, %v8022_v10  ;;  %v10989_v62 = vor.u32 %v8539_v40, %v7972_v21  ;;  %v10991_v10 = vor.u32 %v8537_v15, %v7974_v48 }
 0xcab   : > { %3209 = vmatpush.bf16.msrb.mxu1 %v10954_v22  ;;  %3196 = vmatpush.bf16.msrb.mxu0 %v10952_v52 }
 0xcad   : > { %3220 = vmatpush.bf16.msra.mxu2 %v10932_v34 }
 0xcae   : > { %3231 = vmatpush.bf16.msra.mxu3 %v10908_v58 }
 0xcaf   : > { %3210 = vmatpush.bf16.msrb.mxu1 %v10961_v54  ;;  %3197 = vmatpush.bf16.msrb.mxu0 %v10968_v28 }
 0xcb1   : > { %3221 = vmatpush.bf16.msra.mxu2 %v10941_v30 }
 0xcb2   : > { %3232 = vmatpush.bf16.msra.mxu3 %v10922_v59 }
 0xcb3   : > { %3211 = vmatpush.bf16.msrb.mxu1 %v10973_v42  ;;  %3198 = vmatpush.bf16.msrb.mxu0 %v10982_v38 }
 0xcb5   : > { %3222 = vmatpush.bf16.msra.mxu2 %v10956_v61 }
 0xcb6   : > { %3233 = vmatpush.bf16.msra.mxu3 %v10934_v60 }
 0xcb7   : > { %3212 = vmatpush.bf16.msrb.mxu1 %v10985_v37  ;;  %3199 = vmatpush.bf16.msrb.mxu0 %v10994_v32 }
 0xcb9   : > { %3223 = vmatpush.bf16.msra.mxu2 %v10965_v16 }
 0xcba   : > { %3234 = vmatpush.bf16.msra.mxu3 %v10946_v36 }
 0xcbd   : > { %3224 = vmatpush.bf16.msra.mxu2 %v10977_v3 }
 0xcbe   : > { %3235 = vmatpush.bf16.msra.mxu3 %v10958_v41 }
 0xcc1   : > { %3225 = vmatpush.bf16.msra.mxu2 %v10989_v62 }
 0xcc2   : > { %3236 = vmatpush.bf16.msra.mxu3 %v10970_v1 }
 0xcc6   : > { %3237 = vmatpush.bf16.msra.mxu3 %v10979_v4 }
 0xcca   : > { %3238 = vmatpush.bf16.msra.mxu3 %v10991_v10 }
 0xcfc   : > { %v2665_v7 = vpop.permute.xlu1 %2664 }
 0xd15   : > { %v2671_v31 = vpop.permute.xlu0 %2670 }
 0xd16   : > { %v11001_v2 = vmul.f32 %v2671_v31, %v10896_v17  ;;  %v11012_v17 = vmul.f32 %v2665_v7, %v10885_v27 }
 0xd18   : > { %12409 = vst [vmem:[#allocation40_spill] sm:$0xff] %v11001_v2  ;;  %v2689_v29 = vrot.slane %v11001_v2, 7  ;;  %v2687_v20 = vsel %vm12322_vm11, %v10875_v23, %v11012_v17  ;;  %v12414_v23 = vmov 0  }
 0xd19   : > { %12411 = vst [vmem:[#allocation44_spill] sm:$0xff] %v11012_v17 }
 0xd1a   : > { %v2712_v56 = vsel %vm2674_vm13, %v2689_v29, %v2692_v44 }
 0xd1b   : > { %v2713_v9 = vsel %vm2676_vm14, %v2712_v56, %v2695_v53 }
 0xd1c   : > { %v2714_v43 = vsel %vm2678_vm3, %v2713_v9, %v2698_v50  ;;  %v2764_v50 = vperm.slane %v11093_v19, 0 }
 0xd1d   : > { %v2715_v51 = vsel %vm2680_vm6, %v2714_v43, %v2701_v49 }
 0xd1e   : > { %v2716_v12 = vsel %vm2682_vm10, %v2715_v51, %v2704_v14 }
 0xd1f   : > { %v2717_v0 = vsel %vm2684_vm5, %v2716_v12, %v2707_v45 }
 0xd20   : > { %v2718_v27 = vsel %vm12322_vm11, %v2717_v0, %v2710_v57  ;;  %v2767_v0 = vperm.slane %v11093_v19, 3 }
 0xd21   : > { %v2719_v21 = vsel %vm1091_vm0, %v2687_v20, %v2718_v27 }
 0xd22   : > { %v2729_v40 = vpack.c.bf16 %v2719_v21, %v2719_v21 }
 0xd24   : > { %2940 = vmatmul.bf16.vlgmr.msra.gmra.mxu0 %v2729_v40  ;;  %2953 = vmatmul.bf16.vlgmr.msra.gmra.mxu1 %v2729_v40 }
 0xd25   : > { %2966 = vmatmul.bf16.vlgmr.msrb.gmra.mxu2 %v2729_v40  ;;  %2979 = vmatmul.bf16.vlgmr.msrb.gmra.mxu3 %v2729_v40 }
 0xd26   : > { %3346 = vmatpush.bf16.msra.mxu0 %v10910_v47  ;;  %3359 = vmatpush.bf16.msra.mxu1 %v10904_v8 }
 0xd27   : > { %3372 = vmatpush.bf16.msrb.mxu2 %v10906_v24  ;;  %3385 = vmatpush.bf16.msrb.mxu3 %v10908_v58 }
 0xd2a   : > { %3347 = vmatpush.bf16.msra.mxu0 %v10916_v25  ;;  %3360 = vmatpush.bf16.msra.mxu1 %v10918_v39 }
 0xd2b   : > { %3373 = vmatpush.bf16.msrb.mxu2 %v10920_v46  ;;  %3386 = vmatpush.bf16.msrb.mxu3 %v10922_v59 }
 0xd2e   : > { %3348 = vmatpush.bf16.msra.mxu0 %v10928_v18  ;;  %3361 = vmatpush.bf16.msra.mxu1 %v10930_v26 }
 0xd2f   : > { %3374 = vmatpush.bf16.msrb.mxu2 %v10932_v34  ;;  %3387 = vmatpush.bf16.msrb.mxu3 %v10934_v60 }
 0xd32   : > { %3349 = vmatpush.bf16.msra.mxu0 %v10944_v33  ;;  %3362 = vmatpush.bf16.msra.mxu1 %v10937_v11 }
 0xd33   : > { %3375 = vmatpush.bf16.msrb.mxu2 %v10941_v30  ;;  %3388 = vmatpush.bf16.msrb.mxu3 %v10946_v36 }
 0xd34   : > { %3200 = vmatmul.bf16.vlgmr.msrb.gmra.mxu0 %v12414_v23  ;;  %3213 = vmatmul.bf16.vlgmr.msrb.gmra.mxu1 %v12414_v23 }
 0xd35   : > { %3226 = vmatmul.bf16.vlgmr.msra.gmra.mxu2 %v12414_v23  ;;  %3239 = vmatmul.bf16.vlgmr.msra.gmra.mxu3 %v12414_v23 }
 0xd36   : > { %3350 = vmatpush.bf16.msra.mxu0 %v10952_v52  ;;  %3363 = vmatpush.bf16.msra.mxu1 %v10954_v22 }
 0xd37   : > { %3376 = vmatpush.bf16.msrb.mxu2 %v10956_v61  ;;  %3389 = vmatpush.bf16.msrb.mxu3 %v10958_v41 }
 0xd3a   : > { %3351 = vmatpush.bf16.msra.mxu0 %v10968_v28  ;;  %3364 = vmatpush.bf16.msra.mxu1 %v10961_v54 }
 0xd3b   : > { %3377 = vmatpush.bf16.msrb.mxu2 %v10965_v16  ;;  %3390 = vmatpush.bf16.msrb.mxu3 %v10970_v1 }
 0xd3e   : > { %3352 = vmatpush.bf16.msra.mxu0 %v10982_v38  ;;  %3365 = vmatpush.bf16.msra.mxu1 %v10973_v42 }
 0xd3f   : > { %3378 = vmatpush.bf16.msrb.mxu2 %v10977_v3  ;;  %3391 = vmatpush.bf16.msrb.mxu3 %v10979_v4 }
 0xd42   : > { %3353 = vmatpush.bf16.msra.mxu0 %v10994_v32  ;;  %3366 = vmatpush.bf16.msra.mxu1 %v10985_v37 }
 0xd43   : > { %3379 = vmatpush.bf16.msrb.mxu2 %v10989_v62  ;;  %3392 = vmatpush.bf16.msrb.mxu3 %v10991_v10 }
 0xd46   : > { %3522 = vmatpush.bf16.msrb.mxu0 %v10910_v47  ;;  %3535 = vmatpush.bf16.msrb.mxu1 %v10904_v8 }
 0xd47   : > { %3548 = vmatpush.bf16.msra.mxu2 %v10906_v24  ;;  %3561 = vmatpush.bf16.msra.mxu3 %v10908_v58 }
 0xd4a   : > { %3523 = vmatpush.bf16.msrb.mxu0 %v10916_v25  ;;  %3536 = vmatpush.bf16.msrb.mxu1 %v10918_v39 }
 0xd4b   : > { %3549 = vmatpush.bf16.msra.mxu2 %v10920_v46  ;;  %3562 = vmatpush.bf16.msra.mxu3 %v10922_v59 }
 0xd4e   : > { %3524 = vmatpush.bf16.msrb.mxu0 %v10928_v18  ;;  %3537 = vmatpush.bf16.msrb.mxu1 %v10930_v26 }
 0xd4f   : > { %3550 = vmatpush.bf16.msra.mxu2 %v10932_v34  ;;  %3563 = vmatpush.bf16.msra.mxu3 %v10934_v60 }
 0xd52   : > { %3525 = vmatpush.bf16.msrb.mxu0 %v10944_v33  ;;  %3538 = vmatpush.bf16.msrb.mxu1 %v10937_v11 }
 0xd53   : > { %3551 = vmatpush.bf16.msra.mxu2 %v10941_v30  ;;  %3564 = vmatpush.bf16.msra.mxu3 %v10946_v36 }
 0xd56   : > { %3526 = vmatpush.bf16.msrb.mxu0 %v10952_v52  ;;  %3539 = vmatpush.bf16.msrb.mxu1 %v10954_v22 }
 0xd57   : > { %3552 = vmatpush.bf16.msra.mxu2 %v10956_v61  ;;  %3565 = vmatpush.bf16.msra.mxu3 %v10958_v41 }
 0xd5a   : > { %3527 = vmatpush.bf16.msrb.mxu0 %v10968_v28  ;;  %3540 = vmatpush.bf16.msrb.mxu1 %v10961_v54 }
 0xd5b   : > { %3553 = vmatpush.bf16.msra.mxu2 %v10965_v16  ;;  %3566 = vmatpush.bf16.msra.mxu3 %v10970_v1 }
 0xd5e   : > { %3528 = vmatpush.bf16.msrb.mxu0 %v10982_v38  ;;  %3541 = vmatpush.bf16.msrb.mxu1 %v10973_v42 }
 0xd5f   : > { %3554 = vmatpush.bf16.msra.mxu2 %v10977_v3  ;;  %3567 = vmatpush.bf16.msra.mxu3 %v10979_v4 }
 0xd62   : > { %3529 = vmatpush.bf16.msrb.mxu0 %v10994_v32  ;;  %3542 = vmatpush.bf16.msrb.mxu1 %v10985_v37 }
 0xd63   : > { %3555 = vmatpush.bf16.msra.mxu2 %v10989_v62  ;;  %3568 = vmatpush.bf16.msra.mxu3 %v10991_v10 }
 0xda1   : > { %v2941_v15 = vpop.f32.mrf.mxu0  ;;  %v2954_v48 = vpop.f32.mrf.mxu1 }
 0xda2   : > { %v11098_v29 = vadd.f32 %v2954_v48, %v2765_v6  ;;  %v11102_v49 = vadd.f32 %v2941_v15, %v2764_v50 }
 0xda4   : > { %v3021_v56 = vrot.slane %v11098_v29, 7 }
 0xda6   : > { %v11107_v35 = vsel %vm965_vm2, %v11098_v29, %v3021_v56 }
 0xda7   : > { %12416 = vst [vmem:[#allocation45_spill] sm:$0xff] %v11107_v35 }
 0xda8   : > { %v11096_v31 = vpop.f32.mrf.mxu2  ;;  %v2980_v44 = vpop.f32.mrf.mxu3 }
 0xda9   : > { %v2943_v53 = vpop.f32.mrf.mxu0  ;;  %v2956_v7 = vpop.f32.mrf.mxu1  ;;  %v11112_v15 = vadd.f32 %v2980_v44, %v2767_v0 }
 0xdab   : > { %v3023_v7 = vrot.slane %v11112_v15, 7 }
 0xdb0   : > { %v2969_v9 = vpop.f32.mrf.mxu2  ;;  %v2982_v13 = vpop.f32.mrf.mxu3 }
 0xdb1   : > { %v3201_v14 = vpop.f32.mrf.mxu0  ;;  %v3214_v45 = vpop.f32.mrf.mxu1  ;;  %v12417_v9 = vld [vmem:[#allocation39_spill] sm:$0xff] }
 0xdb2   : > { %v3244_v51 = vadd.f32 %v3201_v14, %v11102_v49  ;;  %v3245_v55 = vadd.f32 %v3214_v45, %v11107_v35  ;;  %vm12418_vm12 = vcmp.lt.s32.totalorder %v12417_v9, 448 }
 0xdb3   : > { %v11118_v13 = vsel %vm12418_vm12, %v11112_v15, %v3023_v7 }
 0xdb4   : > { %v8090_v57 = vmul.f32 -1.442695, %v3244_v51  ;;  %v8091_v12 = vmul.f32 -1.442695, %v3245_v55  ;;  %12419 = vst [vmem:[#allocation47_spill] sm:$0xff] %v11118_v13 }
 0xdb6   : > { %9046 = vpow2.f32 %v8090_v57 }
 0xdb7   : > { %9048 = vpow2.f32 %v8091_v12 }
 0xdb8   : > { %v3227_v20 = vpop.f32.mrf.mxu2  ;;  %v3240_v27 = vpop.f32.mrf.mxu3 }
 0xdb9   : > { %v3203_v21 = vpop.f32.mrf.mxu0  ;;  %v3216_v40 = vpop.f32.mrf.mxu1  ;;  %v3247_v45 = vadd.f32 %v3240_v27, %v11118_v13 }
 0xdbc   : > { %v9047_v23 = vpop.eup %9046 }
 0xdbd   : > { %v9049_v48 = vpop.eup %9048  ;;  %v3257_v6 = vadd.f32 1.0, %v9047_v23 }
 0xdbe   : > { %v3258_v53 = vadd.f32 1.0, %v9049_v48 }
 0xdbf   : > { %9050 = vrcp.f32 %v3257_v6  ;;  %v3271_v0 = vand.u32 2147483648, %v3257_v6  ;;  %v3269_v23 = vand.u32 2147483647, %v3257_v6  ;;  %vm3265_vm1 = vweird.f32 %v3257_v6 }
 0xdc0   : > { %9052 = vrcp.f32 %v3258_v53  ;;  %v3242_v50 = vpop.f32.mrf.mxu3  ;;  %v3229_v56 = vpop.f32.mrf.mxu2  ;;  %v3286_v21 = vand.u32 2147483648, %v3258_v53  ;;  %vm3280_vm7 = vweird.f32 %v3258_v53 }
 0xdc1   : > { %9054 = vtanh.f32 %v3247_v45  ;;  %v3284_v50 = vand.u32 2147483647, %v3258_v53  ;;  %v3272_v27 = vor.u32 1.1754944e-38, %v3271_v0  ;;  %vm3270_vm12 = vcmp.eq.f32.partialorder %v3269_v23, 8.507059e+37 }
 0xdc2   : > { %v3287_v17 = vor.u32 1.1754944e-38, %v3286_v21 }
 0xdc3   : > { %vm3285_vm11 = vcmp.eq.f32.partialorder %v3284_v50, 8.507059e+37 }
 0xdc5   : > { %v9051_v14 = vpop.eup %9050 }
 0xdc6   : > { %v9053_v51 = vpop.eup %9052  ;;  %v3261_v44 = vmul.f32 %v9051_v14, %v3257_v6  ;;  %vm3266_vm15 = vweird.f32 %v9051_v14  ;;  %v2766_v6 = vperm.slane %v11093_v19, 2 }
 0xdc7   : > { %v3276_v55 = vmul.f32 %v9053_v51, %v3258_v53  ;;  %vm3281_vm4 = vweird.f32 %v9053_v51  ;;  %vm3267_vm8 = vmor %vm3265_vm1, %vm3266_vm15  ;;  %v9055_v45 = vpop.eup %9054 }
 0xdc8   : > { %v3262_v57 = vsub.f32 1.0, %v3261_v44  ;;  %vm3282_vm9 = vmor %vm3280_vm7, %vm3281_vm4  ;;  %v11125_v53 = vadd.f32 %v11096_v31, %v2766_v6  ;;  %vm12423_vm7 = vcmp.lt.s32.totalorder %v12417_v9, 448 }
 0xdc9   : > { %v3277_v12 = vsub.f32 1.0, %v3276_v55 }
 0xdca   : > { %v3263_v40 = vmul.f32 %v9051_v14, %v3262_v57 }
 0xdcb   : > { %v3278_v48 = vmul.f32 %v9053_v51, %v3277_v12  ;;  %v12325_v12 = vrot.slane %v11125_v53, 7 }
 0xdcc   : > { %v3264_v56 = vadd.f32 %v9051_v14, %v3263_v40 }
 0xdcd   : > { %v3279_v7 = vadd.f32 %v9053_v51, %v3278_v48 }
 0xdce   : > { %v3268_v5 = vsel %vm3267_vm8, %v9051_v14, %v3264_v56  ;;  %v3246_v14 = vadd.f32 %v3227_v20, %v12325_v12 }
 0xdcf   : > { %v3283_v44 = vsel %vm3282_vm9, %v9053_v51, %v3279_v7  ;;  %v3273_v55 = vsel %vm3270_vm12, %v3272_v27, %v3268_v5 }
 0xdd0   : > { %v3288_v57 = vsel %vm3285_vm11, %v3287_v17, %v3283_v44  ;;  %v3307_v63 = vmul.f32 %v9055_v45, %v3273_v55  ;;  %v8092_v51 = vmul.f32 -1.442695, %v3246_v14  ;;  %v3306_v21 = vmul.f32 0.0, %v3273_v55 }
 0xdd1   : > { %v3314_v2 = vmul.f32 %v9055_v45, %v3288_v57 }
 0xdd2   : > { %3309 = vrot.lane.b32.xlu2 %v3307_v63, %s9700_s20  ;;  %9056 = vpow2.f32 %v8092_v51 }
 0xdd3   : > { %3316 = vrot.lane.b32.xlu0 %v3314_v2, %s9700_s20 }
 0xdd8   : > { %v9057_v5 = vpop.eup %9056 }
 0xdd9   : > { %v3259_v17 = vadd.f32 1.0, %v9057_v5 }
 0xddb   : > { %9058 = vrcp.f32 %v3259_v17  ;;  %v3301_v20 = vand.u32 2147483648, %v3259_v17  ;;  %vm3295_vm15 = vweird.f32 %v3259_v17  ;;  %v3299_v50 = vand.u32 2147483647, %v3259_v17 }
 0xddd   : > { %v3302_v7 = vor.u32 1.1754944e-38, %v3301_v20  ;;  %vm3300_vm1 = vcmp.eq.f32.partialorder %v3299_v50, 8.507059e+37 }
 0xde1   : > { %v9059_v0 = vpop.eup %9058 }
 0xde2   : > { %v3291_v2 = vmul.f32 %v9059_v0, %v3259_v17  ;;  %vm3296_vm11 = vweird.f32 %v9059_v0 }
 0xde3   : > { %vm3297_vm4 = vmor %vm3295_vm15, %vm3296_vm11 }
 0xde4   : > { %v3292_v19 = vsub.f32 1.0, %v3291_v2 }
 0xde6   : > { %v3293_v23 = vmul.f32 %v9059_v0, %v3292_v19 }
 0xde8   : > { %v3294_v48 = vadd.f32 %v9059_v0, %v3293_v23 }
 0xdea   : > { %v3298_v56 = vsel %vm3297_vm4, %v9059_v0, %v3294_v48 }
 0xdeb   : > { %v3303_v27 = vsel %vm3300_vm1, %v3302_v7, %v3298_v56 }
 0xdec   : > { %v3313_v45 = vmul.f32 0.0, %v3303_v27 }
 0xe2c   : > { %v3310_v63 = vpop.permute.xlu2 %3309 }
 0xe2d   : > { %v11130_v40 = vadd.f32 %v3310_v63, %v3306_v21 }
 0xe2f   : > { %9060 = vtanh.f32 %v11130_v40 }
 0xe35   : > { %v9061_v31 = vpop.eup %9060 }
 0xe36   : > { %3322 = vrot.lane.b32.xlu1 %v9061_v31, %s9700_s20 }
 0xe45   : > { %v3317_v44 = vpop.permute.xlu0 %3316 }
 0xe46   : > { %v11134_v55 = vadd.f32 %v3317_v44, %v3313_v45 }
 0xe48   : > { %9062 = vtanh.f32 %v11134_v55 }
 0xe4e   : > { %v9063_v6 = vpop.eup %9062 }
 0xe4f   : > { %3328 = vrot.lane.b32.xlu2 %v9063_v6, %s9700_s20 }
 0xea8   : > { %v3323_v14 = vpop.permute.xlu1 %3322 }
 0xea9   : > { %v3329_v51 = vpop.permute.xlu2 %3328  ;;  %v11138_v5 = vmul.f32 %v3323_v14, %v3288_v57  ;;  %v3334_v57 = vrot.slane %v11098_v29, 5 }
 0xeaa   : > { %v11140_v21 = vmul.f32 %v3329_v51, %v3303_v27 }
 0xeab   : > { %12420 = vst [vmem:[#allocation48_spill] sm:$0xff] %v11138_v5  ;;  %v11181_v23 = vsel %vm965_vm2, %v11098_v29, %v3334_v57  ;;  %v3336_v57 = vrot.slane %v11112_v15, 5 }
 0xeac   : > { %12421 = vst [vmem:[#allocation49_spill] sm:$0xff] %v11140_v21  ;;  %v3332_v17 = vsel %vm1091_vm0, %v11138_v5, %v11140_v21 }
 0xead   : > { %v3345_v0 = vpack.c.bf16 %v3332_v17, %v3332_v17  ;;  %12422 = vst [vmem:[#allocation46_spill] sm:$0xff] %v11181_v23 }
 0xeaf   : > { %3354 = vmatmul.bf16.vlgmr.msra.gmra.mxu0 %v3345_v0  ;;  %3367 = vmatmul.bf16.vlgmr.msra.gmra.mxu1 %v3345_v0 }
 0xeb0   : > { %3380 = vmatmul.bf16.vlgmr.msrb.gmra.mxu2 %v3345_v0  ;;  %3393 = vmatmul.bf16.vlgmr.msrb.gmra.mxu3 %v3345_v0 }
 0xeb1   : > { %3697 = vmatpush.bf16.msra.mxu0 %v10910_v47  ;;  %3710 = vmatpush.bf16.msra.mxu1 %v10904_v8 }
 0xeb2   : > { %3723 = vmatpush.bf16.msrb.mxu2 %v10906_v24  ;;  %3736 = vmatpush.bf16.msrb.mxu3 %v10908_v58 }
 0xeb5   : > { %3698 = vmatpush.bf16.msra.mxu0 %v10916_v25  ;;  %3711 = vmatpush.bf16.msra.mxu1 %v10918_v39 }
 0xeb6   : > { %3724 = vmatpush.bf16.msrb.mxu2 %v10920_v46  ;;  %3737 = vmatpush.bf16.msrb.mxu3 %v10922_v59 }
 0xeb9   : > { %3699 = vmatpush.bf16.msra.mxu0 %v10928_v18  ;;  %3712 = vmatpush.bf16.msra.mxu1 %v10930_v26 }
 0xeba   : > { %3725 = vmatpush.bf16.msrb.mxu2 %v10932_v34  ;;  %3738 = vmatpush.bf16.msrb.mxu3 %v10934_v60 }
 0xebd   : > { %3700 = vmatpush.bf16.msra.mxu0 %v10944_v33  ;;  %3713 = vmatpush.bf16.msra.mxu1 %v10937_v11 }
 0xebe   : > { %3726 = vmatpush.bf16.msrb.mxu2 %v10941_v30  ;;  %3739 = vmatpush.bf16.msrb.mxu3 %v10946_v36 }
 0xec1   : > { %3701 = vmatpush.bf16.msra.mxu0 %v10952_v52  ;;  %3714 = vmatpush.bf16.msra.mxu1 %v10954_v22 }
 0xec2   : > { %3727 = vmatpush.bf16.msrb.mxu2 %v10956_v61  ;;  %3740 = vmatpush.bf16.msrb.mxu3 %v10958_v41 }
 0xec5   : > { %3702 = vmatpush.bf16.msra.mxu0 %v10968_v28  ;;  %3715 = vmatpush.bf16.msra.mxu1 %v10961_v54 }
 0xec6   : > { %3728 = vmatpush.bf16.msrb.mxu2 %v10965_v16  ;;  %3741 = vmatpush.bf16.msrb.mxu3 %v10970_v1 }
 0xec9   : > { %3703 = vmatpush.bf16.msra.mxu0 %v10982_v38  ;;  %3716 = vmatpush.bf16.msra.mxu1 %v10973_v42 }
 0xeca   : > { %3729 = vmatpush.bf16.msrb.mxu2 %v10977_v3  ;;  %3742 = vmatpush.bf16.msrb.mxu3 %v10979_v4 }
 0xecd   : > { %3704 = vmatpush.bf16.msra.mxu0 %v10994_v32  ;;  %3717 = vmatpush.bf16.msra.mxu1 %v10985_v37 }
 0xece   : > { %3730 = vmatpush.bf16.msrb.mxu2 %v10989_v62  ;;  %3743 = vmatpush.bf16.msrb.mxu3 %v10991_v10 }
 0xf2c   : > { %v3355_v63 = vpop.f32.mrf.mxu0  ;;  %v3368_v2 = vpop.f32.mrf.mxu1 }
 0xf2d   : > { %v3402_v19 = vrot.slane %v3355_v63, 7  ;;  %v3403_v31 = vrot.slane %v3368_v2, 7 }
 0xf2f   : > { %v3410_v48 = vadd.f32 %v3402_v19, %v11102_v49  ;;  %v3411_v20 = vadd.f32 %v3403_v31, %v11181_v23  ;;  %v11189_v19 = vsel %vm12423_vm7, %v11112_v15, %v3336_v57 }
 0xf30   : > { %12424 = vst [vmem:[#allocation43_spill] sm:$0xff] %v11189_v19 }
 0xf31   : > { %v8093_v50 = vmul.f32 -1.442695, %v3410_v48  ;;  %v8094_v56 = vmul.f32 -1.442695, %v3411_v20 }
 0xf33   : > { %9064 = vpow2.f32 %v8093_v50  ;;  %v3381_v7 = vpop.f32.mrf.mxu2  ;;  %v3394_v27 = vpop.f32.mrf.mxu3 }
 0xf34   : > { %9066 = vpow2.f32 %v8094_v56  ;;  %v3357_v45 = vpop.f32.mrf.mxu0  ;;  %v3370_v44 = vpop.f32.mrf.mxu1  ;;  %v3405_v2 = vrot.slane %v3394_v27, 7 }
 0xf36   : > { %v3413_v48 = vadd.f32 %v3405_v2, %v11189_v19  ;;  %v3473_v19 = vrot.slane %v11130_v40, 7 }
 0xf39   : > { %v9065_v6 = vpop.eup %9064 }
 0xf3a   : > { %v9067_v14 = vpop.eup %9066  ;;  %v3423_v51 = vadd.f32 1.0, %v9065_v6 }
 0xf3b   : > { %v3424_v17 = vadd.f32 1.0, %v9067_v14  ;;  %v3383_v0 = vpop.f32.mrf.mxu2  ;;  %v3396_v63 = vpop.f32.mrf.mxu3 }
 0xf3c   : > { %9068 = vrcp.f32 %v3423_v51  ;;  %v3437_v6 = vand.u32 2147483648, %v3423_v51  ;;  %v3435_v63 = vand.u32 2147483647, %v3423_v51  ;;  %vm3431_vm12 = vweird.f32 %v3423_v51 }
 0xf3d   : > { %9070 = vrcp.f32 %v3424_v17  ;;  %v3452_v14 = vand.u32 2147483648, %v3424_v17  ;;  %v3450_v12 = vand.u32 2147483647, %v3424_v17  ;;  %vm3446_vm11 = vweird.f32 %v3424_v17 }
 0xf3e   : > { %9072 = vtanh.f32 %v3413_v48  ;;  %v3438_v2 = vor.u32 1.1754944e-38, %v3437_v6  ;;  %vm3436_vm1 = vcmp.eq.f32.partialorder %v3435_v63, 8.507059e+37 }
 0xf3f   : > { %vm3451_vm7 = vcmp.eq.f32.partialorder %v3450_v12, 8.507059e+37 }
 0xf42   : > { %v9069_v31 = vpop.eup %9068 }
 0xf43   : > { %v9071_v20 = vpop.eup %9070  ;;  %v3427_v50 = vmul.f32 %v9069_v31, %v3423_v51  ;;  %vm3432_vm8 = vweird.f32 %v9069_v31  ;;  %v3404_v51 = vrot.slane %v3381_v7, 7 }
 0xf44   : > { %v3442_v56 = vmul.f32 %v9071_v20, %v3424_v17  ;;  %vm3447_vm9 = vweird.f32 %v9071_v20  ;;  %vm3433_vm15 = vmor %vm3431_vm12, %vm3432_vm8  ;;  %v12332_v17 = vrot.slane %v11125_v53, 5 }
 0xf45   : > { %v3428_v45 = vsub.f32 1.0, %v3427_v50  ;;  %vm3448_vm4 = vmor %vm3446_vm11, %vm3447_vm9  ;;  %v3453_v50 = vor.u32 1.1754944e-38, %v3452_v14 }
 0xf46   : > { %v3443_v44 = vsub.f32 1.0, %v3442_v56  ;;  %v9073_v56 = vpop.eup %9072  ;;  %v3412_v40 = vadd.f32 %v3404_v51, %v12332_v17 }
 0xf47   : > { %v3429_v0 = vmul.f32 %v9069_v31, %v3428_v45 }
 0xf48   : > { %v3444_v27 = vmul.f32 %v9071_v20, %v3443_v44 }
 0xf49   : > { %v3430_v21 = vadd.f32 %v9069_v31, %v3429_v0 }
 0xf4a   : > { %v3445_v57 = vadd.f32 %v9071_v20, %v3444_v27 }
 0xf4b   : > { %v3434_v48 = vsel %vm3433_vm15, %v9069_v31, %v3430_v21  ;;  %v8095_v21 = vmul.f32 -1.442695, %v3412_v40  ;;  %vm12427_vm15 = vcmp.lt.s32.totalorder %v12417_v9, 448 }
 0xf4c   : > { %v3449_v23 = vsel %vm3448_vm4, %v9071_v20, %v3445_v57  ;;  %v3439_v45 = vsel %vm3436_vm1, %v3438_v2, %v3434_v48  ;;  %v3483_v57 = vrot.slane %v11134_v55, 7 }
 0xf4d   : > { %v3454_v13 = vsel %vm3451_vm7, %v3453_v50, %v3449_v23  ;;  %v3476_v44 = vmul.f32 %v9073_v56, %v3439_v45  ;;  %v3475_v35 = vmul.f32 %v3473_v19, %v3439_v45  ;;  %9074 = vpow2.f32 %v8095_v21 }
 0xf4e   : > { %v3486_v5 = vmul.f32 %v9073_v56, %v3454_v13 }
 0xf4f   : > { %3478 = vrot.lane.b32.xlu0 %v3476_v44, %s9700_s20 }
 0xf50   : > { %3488 = vrot.lane.b32.xlu1 %v3486_v5, %s9700_s20 }
 0xf53   : > { %v9075_v31 = vpop.eup %9074 }
 0xf54   : > { %v3425_v20 = vadd.f32 1.0, %v9075_v31 }
 0xf56   : > { %9076 = vrcp.f32 %v3425_v20  ;;  %v3467_v0 = vand.u32 2147483648, %v3425_v20  ;;  %vm3461_vm9 = vweird.f32 %v3425_v20  ;;  %v3465_v5 = vand.u32 2147483647, %v3425_v20 }
 0xf58   : > { %v3468_v63 = vor.u32 1.1754944e-38, %v3467_v0  ;;  %vm3466_vm11 = vcmp.eq.f32.partialorder %v3465_v5, 8.507059e+37 }
 0xf5c   : > { %v9077_v12 = vpop.eup %9076 }
 0xf5d   : > { %v3457_v23 = vmul.f32 %v9077_v12, %v3425_v20  ;;  %vm3462_vm8 = vweird.f32 %v9077_v12 }
 0xf5e   : > { %vm3463_vm12 = vmor %vm3461_vm9, %vm3462_vm8 }
 0xf5f   : > { %v3458_v6 = vsub.f32 1.0, %v3457_v23 }
 0xf61   : > { %v3459_v19 = vmul.f32 %v9077_v12, %v3458_v6 }
 0xf63   : > { %v3460_v14 = vadd.f32 %v9077_v12, %v3459_v19 }
 0xf65   : > { %v3464_v7 = vsel %vm3463_vm12, %v9077_v12, %v3460_v14 }
 0xf66   : > { %v3469_v27 = vsel %vm3466_vm11, %v3468_v63, %v3464_v7 }
 0xf67   : > { %v3485_v2 = vmul.f32 %v3483_v57, %v3469_v27 }
 0xfc1   : > { %v3479_v50 = vpop.permute.xlu0 %3478 }
 0xfc2   : > { %v3489_v48 = vpop.permute.xlu1 %3488  ;;  %v11199_v56 = vadd.f32 %v3479_v50, %v3475_v35 }
 0xfc3   : > { %v11201_v45 = vadd.f32 %v3489_v48, %v3485_v2 }
 0xfc4   : > { %9078 = vtanh.f32 %v11199_v56  ;;  %v3649_v17 = vrot.slane %v11199_v56, 7 }
 0xfc5   : > { %9080 = vtanh.f32 %v11201_v45 }
 0xfca   : > { %v9079_v44 = vpop.eup %9078 }
 0xfcb   : > { %v9081_v51 = vpop.eup %9080  ;;  %3494 = vrot.lane.b32.xlu2 %v9079_v44, %s9700_s20 }
 0xfcc   : > { %3500 = vrot.lane.b32.xlu0 %v9081_v51, %s9700_s20 }
0x1025   : > { %v3495_v40 = vpop.permute.xlu2 %3494 }
0x1026   : > { %v11207_v55 = vmul.f32 %v3495_v40, %v3454_v13  ;;  %v3506_v13 = vrot.slane %v11098_v29, 3 }
0x1028   : > { %v11250_v0 = vsel %vm965_vm2, %v11098_v29, %v3506_v13 }
0x1029   : > { %12426 = vst [vmem:[#allocation50_spill] sm:$0xff] %v11250_v0 }
0x103e   : > { %v3501_v21 = vpop.permute.xlu0 %3500 }
0x103f   : > { %v11209_v31 = vmul.f32 %v3501_v21, %v3469_v27 }
0x1041   : > { %12425 = vst [vmem:[#allocation41_spill] sm:$0xff] %v11209_v31  ;;  %v3504_v35 = vsel %vm1091_vm0, %v11207_v55, %v11209_v31 }
0x1042   : > { %v3517_v20 = vpack.c.bf16 %v3504_v35, %v3504_v35 }
0x1044   : > { %v3519_v12 = vshrl.u32 %v3517_v20, 16 }
0x1046   : > { %3530 = vmatmul.bf16.vlgmr.msrb.gmra.mxu0 %v3519_v12  ;;  %3543 = vmatmul.bf16.vlgmr.msrb.gmra.mxu1 %v3519_v12 }
0x1047   : > { %3556 = vmatmul.bf16.vlgmr.msra.gmra.mxu2 %v3519_v12  ;;  %3569 = vmatmul.bf16.vlgmr.msra.gmra.mxu3 %v3519_v12  ;;  %v3508_v12 = vrot.slane %v11112_v15, 3 }
0x1048   : > { %3862 = vmatpush.bf16.msrb.mxu0 %v10910_v47  ;;  %3875 = vmatpush.bf16.msrb.mxu1 %v10904_v8 }
0x1049   : > { %3888 = vmatpush.bf16.msra.mxu2 %v10906_v24  ;;  %3901 = vmatpush.bf16.msra.mxu3 %v10908_v58 }
0x104c   : > { %3863 = vmatpush.bf16.msrb.mxu0 %v10916_v25  ;;  %3876 = vmatpush.bf16.msrb.mxu1 %v10918_v39 }
0x104d   : > { %3889 = vmatpush.bf16.msra.mxu2 %v10920_v46  ;;  %3902 = vmatpush.bf16.msra.mxu3 %v10922_v59 }
0x1050   : > { %3864 = vmatpush.bf16.msrb.mxu0 %v10928_v18  ;;  %3877 = vmatpush.bf16.msrb.mxu1 %v10930_v26 }
0x1051   : > { %3890 = vmatpush.bf16.msra.mxu2 %v10932_v34  ;;  %3903 = vmatpush.bf16.msra.mxu3 %v10934_v60 }
0x1054   : > { %3865 = vmatpush.bf16.msrb.mxu0 %v10944_v33  ;;  %3878 = vmatpush.bf16.msrb.mxu1 %v10937_v11 }
0x1055   : > { %3891 = vmatpush.bf16.msra.mxu2 %v10941_v30  ;;  %3904 = vmatpush.bf16.msra.mxu3 %v10946_v36 }
0x1058   : > { %3866 = vmatpush.bf16.msrb.mxu0 %v10952_v52  ;;  %3879 = vmatpush.bf16.msrb.mxu1 %v10954_v22 }
0x1059   : > { %3892 = vmatpush.bf16.msra.mxu2 %v10956_v61  ;;  %3905 = vmatpush.bf16.msra.mxu3 %v10958_v41 }
0x105c   : > { %3867 = vmatpush.bf16.msrb.mxu0 %v10968_v28  ;;  %3880 = vmatpush.bf16.msrb.mxu1 %v10961_v54 }
0x105d   : > { %3893 = vmatpush.bf16.msra.mxu2 %v10965_v16  ;;  %3906 = vmatpush.bf16.msra.mxu3 %v10970_v1 }
0x1060   : > { %3868 = vmatpush.bf16.msrb.mxu0 %v10982_v38  ;;  %3881 = vmatpush.bf16.msrb.mxu1 %v10973_v42 }
0x1061   : > { %3894 = vmatpush.bf16.msra.mxu2 %v10977_v3  ;;  %3907 = vmatpush.bf16.msra.mxu3 %v10979_v4 }
0x1064   : > { %3869 = vmatpush.bf16.msrb.mxu0 %v10994_v32  ;;  %3882 = vmatpush.bf16.msrb.mxu1 %v10985_v37 }
0x1065   : > { %3895 = vmatpush.bf16.msra.mxu2 %v10989_v62  ;;  %3908 = vmatpush.bf16.msra.mxu3 %v10991_v10 }
0x10c3   : > { %v3531_v23 = vpop.f32.mrf.mxu0  ;;  %v3544_v6 = vpop.f32.mrf.mxu1 }
0x10c4   : > { %v3578_v19 = vrot.slane %v3531_v23, 6  ;;  %v3579_v14 = vrot.slane %v3544_v6, 6  ;;  %v11258_v23 = vsel %vm12427_vm15, %v11112_v15, %v3508_v12 }
0x10c5   : > { %12428 = vst [vmem:[#allocation51_spill] sm:$0xff] %v11258_v23 }
0x10c6   : > { %v3586_v5 = vadd.f32 %v3578_v19, %v11102_v49  ;;  %v3587_v7 = vadd.f32 %v3579_v14, %v11250_v0 }
0x10c8   : > { %v8096_v63 = vmul.f32 -1.442695, %v3586_v5  ;;  %v8097_v27 = vmul.f32 -1.442695, %v3587_v7 }
0x10ca   : > { %9082 = vpow2.f32 %v8096_v63  ;;  %v3557_v57 = vpop.f32.mrf.mxu2  ;;  %v3570_v2 = vpop.f32.mrf.mxu3 }
0x10cb   : > { %9084 = vpow2.f32 %v8097_v27  ;;  %v3533_v50 = vpop.f32.mrf.mxu0  ;;  %v3546_v48 = vpop.f32.mrf.mxu1  ;;  %v3581_v13 = vrot.slane %v3570_v2, 6 }
0x10cd   : > { %v3589_v19 = vadd.f32 %v3581_v13, %v11258_v23 }
0x10d0   : > { %v9083_v44 = vpop.eup %9082 }
0x10d1   : > { %v9085_v51 = vpop.eup %9084  ;;  %v3599_v40 = vadd.f32 1.0, %v9083_v44 }
0x10d2   : > { %v3600_v21 = vadd.f32 1.0, %v9085_v51  ;;  %v3559_v35 = vpop.f32.mrf.mxu2  ;;  %v3572_v20 = vpop.f32.mrf.mxu3 }
0x10d3   : > { %9086 = vrcp.f32 %v3599_v40  ;;  %v3613_v50 = vand.u32 2147483648, %v3599_v40  ;;  %v3611_v51 = vand.u32 2147483647, %v3599_v40  ;;  %vm3607_vm7 = vweird.f32 %v3599_v40 }
0x10d4   : > { %9088 = vrcp.f32 %v3600_v21  ;;  %v3628_v48 = vand.u32 2147483648, %v3600_v21  ;;  %v3626_v35 = vand.u32 2147483647, %v3600_v21  ;;  %vm3622_vm8 = vweird.f32 %v3600_v21 }
0x10d5   : > { %9090 = vtanh.f32 %v3589_v19  ;;  %v3614_v13 = vor.u32 1.1754944e-38, %v3613_v50  ;;  %vm3612_vm11 = vcmp.eq.f32.partialorder %v3611_v51, 8.507059e+37 }
0x10d6   : > { %vm3627_vm15 = vcmp.eq.f32.partialorder %v3626_v35, 8.507059e+37 }
0x10d9   : > { %v9087_v6 = vpop.eup %9086 }
0x10da   : > { %v9089_v14 = vpop.eup %9088  ;;  %v3603_v5 = vmul.f32 %v9087_v6, %v3599_v40  ;;  %vm3608_vm4 = vweird.f32 %v9087_v6  ;;  %v3580_v40 = vrot.slane %v3557_v57, 6 }
0x10db   : > { %v3618_v7 = vmul.f32 %v9089_v14, %v3600_v21  ;;  %vm3623_vm1 = vweird.f32 %v9089_v14  ;;  %vm3609_vm9 = vmor %vm3607_vm7, %vm3608_vm4  ;;  %v12337_v21 = vrot.slane %v11125_v53, 3 }
0x10dc   : > { %v3604_v63 = vsub.f32 1.0, %v3603_v5  ;;  %vm3624_vm12 = vmor %vm3622_vm8, %vm3623_vm1  ;;  %v3629_v5 = vor.u32 1.1754944e-38, %v3628_v48 }
0x10dd   : > { %v3619_v27 = vsub.f32 1.0, %v3618_v7  ;;  %v9091_v7 = vpop.eup %9090  ;;  %v3588_v56 = vadd.f32 %v3580_v40, %v12337_v21 }
0x10de   : > { %v3605_v44 = vmul.f32 %v9087_v6, %v3604_v63 }
0x10df   : > { %v3620_v2 = vmul.f32 %v9089_v14, %v3619_v27 }
0x10e0   : > { %v3606_v20 = vadd.f32 %v9087_v6, %v3605_v44 }
0x10e1   : > { %v3621_v12 = vadd.f32 %v9089_v14, %v3620_v2 }
0x10e2   : > { %v3610_v19 = vsel %vm3609_vm9, %v9087_v6, %v3606_v20  ;;  %v8098_v6 = vmul.f32 -1.442695, %v3588_v56 }
0x10e3   : > { %v3625_v31 = vsel %vm3624_vm12, %v9089_v14, %v3621_v12  ;;  %v3615_v63 = vsel %vm3612_vm11, %v3614_v13, %v3610_v19  ;;  %v3659_v12 = vrot.slane %v11201_v45, 7 }
0x10e4   : > { %v3630_v23 = vsel %vm3627_vm15, %v3629_v5, %v3625_v31  ;;  %v3652_v27 = vmul.f32 %v9091_v7, %v3615_v63  ;;  %v3651_v0 = vmul.f32 %v3649_v17, %v3615_v63  ;;  %9092 = vpow2.f32 %v8098_v6 }
0x10e5   : > { %v3662_v9 = vmul.f32 %v9091_v7, %v3630_v23 }
0x10e6   : > { %3654 = vrot.lane.b32.xlu1 %v3652_v27, %s9700_s20 }
0x10e7   : > { %3664 = vrot.lane.b32.xlu2 %v3662_v9, %s9700_s20 }
0x10ea   : > { %v9093_v50 = vpop.eup %9092 }
0x10eb   : > { %v3601_v14 = vadd.f32 1.0, %v9093_v50 }
0x10ed   : > { %9094 = vrcp.f32 %v3601_v14  ;;  %v3643_v2 = vand.u32 2147483648, %v3601_v14  ;;  %vm3637_vm1 = vweird.f32 %v3601_v14  ;;  %v3641_v9 = vand.u32 2147483647, %v3601_v14 }
0x10ef   : > { %v3644_v35 = vor.u32 1.1754944e-38, %v3643_v2  ;;  %vm3642_vm8 = vcmp.eq.f32.partialorder %v3641_v9, 8.507059e+37 }
0x10f3   : > { %v9095_v48 = vpop.eup %9094 }
0x10f4   : > { %v3633_v31 = vmul.f32 %v9095_v48, %v3601_v14  ;;  %vm3638_vm4 = vweird.f32 %v9095_v48  ;;  %v12430_v14 = vld [vmem:[#allocation48_spill] sm:$0xff] }
0x10f5   : > { %vm3639_vm7 = vmor %vm3637_vm1, %vm3638_vm4 }
0x10f6   : > { %v3634_v44 = vsub.f32 1.0, %v3633_v31 }
0x10f8   : > { %v3635_v17 = vmul.f32 %v9095_v48, %v3634_v44 }
0x10fa   : > { %v3636_v51 = vadd.f32 %v9095_v48, %v3635_v17 }
0x10fc   : > { %v3640_v57 = vsel %vm3639_vm7, %v9095_v48, %v3636_v51  ;;  %v4511_v48 = vsel %vm2674_vm13, %v12430_v14, %v11207_v55  ;;  %v3682_v55 = vrot.slane %v11098_v29, 1 }
0x10fd   : > { %v3645_v20 = vsel %vm3642_vm8, %v3644_v35, %v3640_v57 }
0x10fe   : > { %v3661_v13 = vmul.f32 %v3659_v12, %v3645_v20  ;;  %v11322_v57 = vsel %vm965_vm2, %v11098_v29, %v3682_v55  ;;  %v3684_v29 = vrot.slane %v11112_v15, 1 }
0x1141   : > { %v3665_v5 = vpop.permute.xlu2 %3664 }
0x1142   : > { %v11268_v19 = vadd.f32 %v3665_v5, %v3661_v13 }
0x1144   : > { %9096 = vtanh.f32 %v11268_v19 }
0x114a   : > { %v9097_v7 = vpop.eup %9096 }
0x114b   : > { %3676 = vrot.lane.b32.xlu1 %v9097_v7, %s9700_s20 }
0x1158   : > { %v3655_v63 = vpop.permute.xlu1 %3654 }
0x1159   : > { %v11272_v27 = vadd.f32 %v3655_v63, %v3651_v0 }
0x115b   : > { %9098 = vtanh.f32 %v11272_v27 }
0x1161   : > { %v9099_v40 = vpop.eup %9098 }
0x1162   : > { %3670 = vrot.lane.b32.xlu0 %v9099_v40, %s9700_s20 }
0x11bd   : > { %v3677_v56 = vpop.permute.xlu1 %3676 }
0x11be   : > { %v11276_v45 = vmul.f32 %v3677_v56, %v3645_v20 }
0x11c0   : > { %12429 = vst [vmem:[#allocation52_spill] sm:$0xff] %v11276_v45 }
0x11d4   : > { %v3671_v6 = vpop.permute.xlu0 %3670 }
0x11d5   : > { %v3673_v50 = vmul.f32 %v3671_v6, %v3630_v23 }
0x11d7   : > { %v3680_v31 = vsel %vm1091_vm0, %v3673_v50, %v11276_v45  ;;  %v11284_v0 = vsel %vm2676_vm14, %v4511_v48, %v3673_v50 }
0x11d8   : > { %v3693_v44 = vpack.c.bf16 %v3680_v31, %v3680_v31 }
0x11da   : > { %v3695_v17 = vrot.slane %v3693_v44, 1  ;;  %v12431_v44 = vld [vmem:[#allocation39_spill] sm:$0xff] }
0x11db   : > { %vm12432_vm2 = vcmp.lt.s32.totalorder %v12431_v44, 448 }
0x11dc   : > { %3705 = vmatmul.bf16.vlgmr.msra.gmra.mxu0 %v3695_v17  ;;  %3718 = vmatmul.bf16.vlgmr.msra.gmra.mxu1 %v3695_v17 }
0x11dd   : > { %3731 = vmatmul.bf16.vlgmr.msrb.gmra.mxu2 %v3695_v17  ;;  %3744 = vmatmul.bf16.vlgmr.msrb.gmra.mxu3 %v3695_v17  ;;  %v11330_v17 = vsel %vm12432_vm2, %v11112_v15, %v3684_v29 }
0x11de   : > { %4025 = vmatpush.bf16.msra.mxu0 %v10910_v47  ;;  %4038 = vmatpush.bf16.msra.mxu1 %v10904_v8 }
0x11df   : > { %4051 = vmatpush.bf16.msrb.mxu2 %v10906_v24  ;;  %4064 = vmatpush.bf16.msrb.mxu3 %v10908_v58 }
0x11e2   : > { %4026 = vmatpush.bf16.msra.mxu0 %v10916_v25  ;;  %4039 = vmatpush.bf16.msra.mxu1 %v10918_v39 }
0x11e3   : > { %4052 = vmatpush.bf16.msrb.mxu2 %v10920_v46  ;;  %4065 = vmatpush.bf16.msrb.mxu3 %v10922_v59 }
0x11e6   : > { %4027 = vmatpush.bf16.msra.mxu0 %v10928_v18  ;;  %4040 = vmatpush.bf16.msra.mxu1 %v10930_v26 }
0x11e7   : > { %4053 = vmatpush.bf16.msrb.mxu2 %v10932_v34  ;;  %4066 = vmatpush.bf16.msrb.mxu3 %v10934_v60 }
0x11ea   : > { %4028 = vmatpush.bf16.msra.mxu0 %v10944_v33  ;;  %4041 = vmatpush.bf16.msra.mxu1 %v10937_v11 }
0x11eb   : > { %4054 = vmatpush.bf16.msrb.mxu2 %v10941_v30  ;;  %4067 = vmatpush.bf16.msrb.mxu3 %v10946_v36 }
0x11ee   : > { %4029 = vmatpush.bf16.msra.mxu0 %v10952_v52  ;;  %4042 = vmatpush.bf16.msra.mxu1 %v10954_v22 }
0x11ef   : > { %4055 = vmatpush.bf16.msrb.mxu2 %v10956_v61  ;;  %4068 = vmatpush.bf16.msrb.mxu3 %v10958_v41 }
0x11f2   : > { %4030 = vmatpush.bf16.msra.mxu0 %v10968_v28  ;;  %4043 = vmatpush.bf16.msra.mxu1 %v10961_v54 }
0x11f3   : > { %4056 = vmatpush.bf16.msrb.mxu2 %v10965_v16  ;;  %4069 = vmatpush.bf16.msrb.mxu3 %v10970_v1 }
0x11f6   : > { %4031 = vmatpush.bf16.msra.mxu0 %v10982_v38  ;;  %4044 = vmatpush.bf16.msra.mxu1 %v10973_v42 }
0x11f7   : > { %4057 = vmatpush.bf16.msrb.mxu2 %v10977_v3  ;;  %4070 = vmatpush.bf16.msrb.mxu3 %v10979_v4 }
0x11fa   : > { %4032 = vmatpush.bf16.msra.mxu0 %v10994_v32  ;;  %4045 = vmatpush.bf16.msra.mxu1 %v10985_v37 }
0x11fb   : > { %4058 = vmatpush.bf16.msrb.mxu2 %v10989_v62  ;;  %4071 = vmatpush.bf16.msrb.mxu3 %v10991_v10 }
0x1259   : > { %v3706_v23 = vpop.f32.mrf.mxu0  ;;  %v3719_v51 = vpop.f32.mrf.mxu1 }
0x125a   : > { %v3753_v2 = vrot.slane %v3706_v23, 5  ;;  %v3754_v9 = vrot.slane %v3719_v51, 5 }
0x125c   : > { %v3761_v35 = vadd.f32 %v3753_v2, %v11102_v49  ;;  %v3762_v20 = vadd.f32 %v3754_v9, %v11322_v57 }
0x125e   : > { %v8099_v12 = vmul.f32 -1.442695, %v3761_v35  ;;  %v8100_v13 = vmul.f32 -1.442695, %v3762_v20 }
0x1260   : > { %9100 = vpow2.f32 %v8099_v12  ;;  %v3732_v5 = vpop.f32.mrf.mxu2  ;;  %v3745_v7 = vpop.f32.mrf.mxu3 }
0x1261   : > { %9102 = vpow2.f32 %v8100_v13  ;;  %v3708_v63 = vpop.f32.mrf.mxu0  ;;  %v3721_v40 = vpop.f32.mrf.mxu1  ;;  %v3756_v31 = vrot.slane %v3745_v7, 5 }
0x1263   : > { %v3764_v23 = vadd.f32 %v3756_v31, %v11330_v17 }
0x1266   : > { %v9101_v56 = vpop.eup %9100 }
0x1267   : > { %v9103_v6 = vpop.eup %9102  ;;  %v3774_v50 = vadd.f32 1.0, %v9101_v56 }
0x1268   : > { %v3775_v14 = vadd.f32 1.0, %v9103_v6  ;;  %v3734_v48 = vpop.f32.mrf.mxu2  ;;  %v3747_v43 = vpop.f32.mrf.mxu3 }
0x1269   : > { %9104 = vrcp.f32 %v3774_v50  ;;  %v3788_v12 = vand.u32 2147483648, %v3774_v50  ;;  %v3786_v40 = vand.u32 2147483647, %v3774_v50  ;;  %vm3782_vm11 = vweird.f32 %v3774_v50 }
0x126a   : > { %9106 = vrcp.f32 %v3775_v14  ;;  %v3803_v13 = vand.u32 2147483648, %v3775_v14  ;;  %v3801_v56 = vand.u32 2147483647, %v3775_v14  ;;  %vm3797_vm15 = vweird.f32 %v3775_v14 }
0x126b   : > { %9108 = vtanh.f32 %v3764_v23  ;;  %v3789_v48 = vor.u32 1.1754944e-38, %v3788_v12  ;;  %v3824_v43 = vrot.slane %v11272_v27, 7  ;;  %vm3787_vm7 = vcmp.eq.f32.partialorder %v3786_v40, 8.507059e+37 }
0x126c   : > { %v3804_v29 = vor.u32 1.1754944e-38, %v3803_v13  ;;  %vm3802_vm8 = vcmp.eq.f32.partialorder %v3801_v56, 8.507059e+37 }
0x126f   : > { %v9105_v55 = vpop.eup %9104 }
0x1270   : > { %v9107_v51 = vpop.eup %9106  ;;  %v3778_v2 = vmul.f32 %v9105_v55, %v3774_v50  ;;  %vm3783_vm9 = vweird.f32 %v9105_v55  ;;  %v3755_v50 = vrot.slane %v3732_v5, 5 }
0x1271   : > { %v3793_v9 = vmul.f32 %v9107_v51, %v3775_v14  ;;  %vm3798_vm12 = vweird.f32 %v9107_v51  ;;  %vm3784_vm4 = vmor %vm3782_vm11, %vm3783_vm9  ;;  %v9109_v44 = vpop.eup %9108  ;;  %v12338_v14 = vrot.slane %v11125_v53, 1 }
0x1272   : > { %v3779_v35 = vsub.f32 1.0, %v3778_v2  ;;  %vm3799_vm1 = vmor %vm3797_vm15, %vm3798_vm12 }
0x1273   : > { %v3794_v20 = vsub.f32 1.0, %v3793_v9  ;;  %v3763_v27 = vadd.f32 %v3755_v50, %v12338_v14 }
0x1274   : > { %v3780_v63 = vmul.f32 %v9105_v55, %v3779_v35 }
0x1275   : > { %v3795_v7 = vmul.f32 %v9107_v51, %v3794_v20 }
0x1276   : > { %v3781_v6 = vadd.f32 %v9105_v55, %v3780_v63 }
0x1277   : > { %v3796_v15 = vadd.f32 %v9107_v51, %v3795_v7 }
0x1278   : > { %v3785_v31 = vsel %vm3784_vm4, %v9105_v55, %v3781_v6  ;;  %v8101_v55 = vmul.f32 -1.442695, %v3763_v27 }
0x1279   : > { %v3800_v23 = vsel %vm3799_vm1, %v9107_v51, %v3796_v15  ;;  %v3790_v2 = vsel %vm3787_vm7, %v3789_v48, %v3785_v31 }
0x127a   : > { %v3805_v9 = vsel %vm3802_vm8, %v3804_v29, %v3800_v23  ;;  %v3827_v35 = vmul.f32 %v9109_v44, %v3790_v2  ;;  %v3826_v20 = vmul.f32 %v3824_v43, %v3790_v2  ;;  %9110 = vpow2.f32 %v8101_v55 }
0x127b   : > { %v3837_v21 = vmul.f32 %v9109_v44, %v3805_v9  ;;  %v3834_v44 = vrot.slane %v11268_v19, 7 }
0x127c   : > { %3829 = vrot.lane.b32.xlu2 %v3827_v35, %s9700_s20 }
0x127d   : > { %3839 = vrot.lane.b32.xlu0 %v3837_v21, %s9700_s20 }
0x1280   : > { %v9111_v12 = vpop.eup %9110 }
0x1281   : > { %v3776_v51 = vadd.f32 1.0, %v9111_v12 }
0x1283   : > { %9112 = vrcp.f32 %v3776_v51  ;;  %v3818_v15 = vand.u32 2147483648, %v3776_v51  ;;  %vm3812_vm9 = vweird.f32 %v3776_v51  ;;  %v3816_v48 = vand.u32 2147483647, %v3776_v51 }
0x1285   : > { %v3819_v29 = vor.u32 1.1754944e-38, %v3818_v15  ;;  %vm3817_vm11 = vcmp.eq.f32.partialorder %v3816_v48, 8.507059e+37 }
0x1289   : > { %v9113_v13 = vpop.eup %9112 }
0x128a   : > { %v3808_v7 = vmul.f32 %v9113_v13, %v3776_v51  ;;  %vm3813_vm2 = vweird.f32 %v9113_v13 }
0x128b   : > { %vm3814_vm12 = vmor %vm3812_vm9, %vm3813_vm2 }
0x128c   : > { %v3809_v56 = vsub.f32 1.0, %v3808_v7 }
0x128e   : > { %v3810_v5 = vmul.f32 %v9113_v13, %v3809_v56 }
0x1290   : > { %v3811_v6 = vadd.f32 %v9113_v13, %v3810_v5 }
0x1292   : > { %v3815_v43 = vsel %vm3814_vm12, %v9113_v13, %v3811_v6  ;;  %v12433_v6 = vld [vmem:[#allocation45_spill] sm:$0xff] }
0x1293   : > { %v3820_v31 = vsel %vm3817_vm11, %v3819_v29, %v3815_v43 }
0x1294   : > { %v3836_v23 = vmul.f32 %v3834_v44, %v3820_v31 }
0x12d6   : > { %v3830_v63 = vpop.permute.xlu2 %3829 }
0x12d7   : > { %v11339_v40 = vadd.f32 %v3830_v63, %v3826_v20 }
0x12d9   : > { %9114 = vtanh.f32 %v11339_v40 }
0x12df   : > { %v9115_v21 = vpop.eup %9114 }
0x12e0   : > { %3845 = vrot.lane.b32.xlu1 %v9115_v21, %s9700_s20 }
0x12ef   : > { %v3840_v2 = vpop.permute.xlu0 %3839 }
0x12f0   : > { %v11344_v35 = vadd.f32 %v3840_v2, %v3836_v23 }
0x12f2   : > { %9116 = vtanh.f32 %v11344_v35 }
0x12f8   : > { %v9117_v20 = vpop.eup %9116 }
0x12f9   : > { %3851 = vrot.lane.b32.xlu2 %v9117_v20, %s9700_s20 }
0x1352   : > { %v3846_v50 = vpop.permute.xlu1 %3845 }
0x1353   : > { %v3852_v27 = vpop.permute.xlu2 %3851  ;;  %v3848_v55 = vmul.f32 %v3846_v50, %v3805_v9 }
0x1354   : > { %v11348_v12 = vmul.f32 %v3852_v27, %v3820_v31 }
0x1355   : > { %v11352_v51 = vsel %vm2678_vm3, %v11284_v0, %v3848_v55 }
0x1356   : > { %v3855_v19 = vsel %vm1091_vm0, %v3848_v55, %v11348_v12 }
0x1357   : > { %v3856_v13 = vpack.c.bf16 %v3855_v19, %v3855_v19 }
0x1359   : > { %v3858_v63 = vshrl.u32 %v3856_v13, 16 }
0x135b   : > { %v3860_v7 = vrot.slane %v3858_v63, 1 }
0x135d   : > { %3870 = vmatmul.bf16.vlgmr.msrb.gmra.mxu0 %v3860_v7  ;;  %3883 = vmatmul.bf16.vlgmr.msrb.gmra.mxu1 %v3860_v7 }
0x135e   : > { %3896 = vmatmul.bf16.vlgmr.msra.gmra.mxu2 %v3860_v7  ;;  %3909 = vmatmul.bf16.vlgmr.msra.gmra.mxu3 %v3860_v7  ;;  %v12434_v7 = vld [vmem:[#allocation47_spill] sm:$0xff] }
0x135f   : > { %4190 = vmatpush.bf16.msrb.mxu0 %v10910_v47  ;;  %4203 = vmatpush.bf16.msrb.mxu1 %v10904_v8 }
0x1360   : > { %4216 = vmatpush.bf16.msra.mxu2 %v10906_v24  ;;  %4229 = vmatpush.bf16.msra.mxu3 %v10908_v58 }
0x1363   : > { %4191 = vmatpush.bf16.msrb.mxu0 %v10916_v25  ;;  %4204 = vmatpush.bf16.msrb.mxu1 %v10918_v39 }
0x1364   : > { %4217 = vmatpush.bf16.msra.mxu2 %v10920_v46  ;;  %4230 = vmatpush.bf16.msra.mxu3 %v10922_v59 }
0x1367   : > { %4192 = vmatpush.bf16.msrb.mxu0 %v10928_v18  ;;  %4205 = vmatpush.bf16.msrb.mxu1 %v10930_v26 }
0x1368   : > { %4218 = vmatpush.bf16.msra.mxu2 %v10932_v34  ;;  %4231 = vmatpush.bf16.msra.mxu3 %v10934_v60 }
0x136b   : > { %4193 = vmatpush.bf16.msrb.mxu0 %v10944_v33  ;;  %4206 = vmatpush.bf16.msrb.mxu1 %v10937_v11 }
0x136c   : > { %4219 = vmatpush.bf16.msra.mxu2 %v10941_v30  ;;  %4232 = vmatpush.bf16.msra.mxu3 %v10946_v36 }
0x136f   : > { %4194 = vmatpush.bf16.msrb.mxu0 %v10952_v52  ;;  %4207 = vmatpush.bf16.msrb.mxu1 %v10954_v22 }
0x1370   : > { %4220 = vmatpush.bf16.msra.mxu2 %v10956_v61  ;;  %4233 = vmatpush.bf16.msra.mxu3 %v10958_v41 }
0x1373   : > { %4195 = vmatpush.bf16.msrb.mxu0 %v10968_v28  ;;  %4208 = vmatpush.bf16.msrb.mxu1 %v10961_v54 }
0x1374   : > { %4221 = vmatpush.bf16.msra.mxu2 %v10965_v16  ;;  %4234 = vmatpush.bf16.msra.mxu3 %v10970_v1 }
0x1377   : > { %4196 = vmatpush.bf16.msrb.mxu0 %v10982_v38  ;;  %4209 = vmatpush.bf16.msrb.mxu1 %v10973_v42 }
0x1378   : > { %4222 = vmatpush.bf16.msra.mxu2 %v10977_v3  ;;  %4235 = vmatpush.bf16.msra.mxu3 %v10979_v4 }
0x137b   : > { %4197 = vmatpush.bf16.msrb.mxu0 %v10994_v32  ;;  %4210 = vmatpush.bf16.msrb.mxu1 %v10985_v37 }
0x137c   : > { %4223 = vmatpush.bf16.msra.mxu2 %v10989_v62  ;;  %4236 = vmatpush.bf16.msra.mxu3 %v10991_v10 }
0x13da   : > { %v3871_v0 = vpop.f32.mrf.mxu0  ;;  %v3884_v9 = vpop.f32.mrf.mxu1 }
0x13db   : > { %v3918_v56 = vrot.slane %v3871_v0, 4  ;;  %v3919_v21 = vrot.slane %v3884_v9, 4 }
0x13dd   : > { %v3926_v5 = vadd.f32 %v3918_v56, %v11102_v49  ;;  %v3927_v15 = vadd.f32 %v3919_v21, %v12433_v6 }
0x13df   : > { %v8102_v48 = vmul.f32 -1.442695, %v3926_v5  ;;  %v8103_v43 = vmul.f32 -1.442695, %v3927_v15 }
0x13e1   : > { %9118 = vpow2.f32 %v8102_v48  ;;  %v3897_v29 = vpop.f32.mrf.mxu2  ;;  %v3910_v31 = vpop.f32.mrf.mxu3 }
0x13e2   : > { %9120 = vpow2.f32 %v8103_v43  ;;  %v3873_v44 = vpop.f32.mrf.mxu0  ;;  %v3886_v23 = vpop.f32.mrf.mxu1  ;;  %v3921_v13 = vrot.slane %v3910_v31, 4 }
0x13e4   : > { %v3929_v0 = vadd.f32 %v3921_v13, %v12434_v7 }
0x13e7   : > { %v9119_v2 = vpop.eup %9118 }
0x13e8   : > { %v9121_v20 = vpop.eup %9120  ;;  %v3939_v50 = vadd.f32 1.0, %v9119_v2 }
0x13e9   : > { %v3940_v27 = vadd.f32 1.0, %v9121_v20  ;;  %v3899_v55 = vpop.f32.mrf.mxu2  ;;  %v3912_v19 = vpop.f32.mrf.mxu3 }
0x13ea   : > { %9122 = vrcp.f32 %v3939_v50  ;;  %v3953_v15 = vand.u32 2147483648, %v3939_v50  ;;  %v3951_v44 = vand.u32 2147483647, %v3939_v50  ;;  %vm3947_vm1 = vweird.f32 %v3939_v50 }
0x13eb   : > { %9124 = vrcp.f32 %v3940_v27  ;;  %v3968_v48 = vand.u32 2147483648, %v3940_v27  ;;  %v3966_v2 = vand.u32 2147483647, %v3940_v27  ;;  %vm3962_vm7 = vweird.f32 %v3940_v27 }
0x13ec   : > { %9126 = vtanh.f32 %v3929_v0  ;;  %v3954_v55 = vor.u32 1.1754944e-38, %v3953_v15  ;;  %v3989_v19 = vrot.slane %v11339_v40, 7  ;;  %vm3952_vm9 = vcmp.eq.f32.partialorder %v3951_v44, 8.507059e+37 }
0x13ed   : > { %v3969_v13 = vor.u32 1.1754944e-38, %v3968_v48  ;;  %vm3967_vm12 = vcmp.eq.f32.partialorder %v3966_v2, 8.507059e+37 }
0x13f0   : > { %v9123_v63 = vpop.eup %9122 }
0x13f1   : > { %v9125_v9 = vpop.eup %9124  ;;  %v3943_v56 = vmul.f32 %v9123_v63, %v3939_v50  ;;  %vm3948_vm15 = vweird.f32 %v9123_v63  ;;  %v3920_v50 = vrot.slane %v3897_v29, 4 }
0x13f2   : > { %v3958_v21 = vmul.f32 %v9125_v9, %v3940_v27  ;;  %vm3963_vm4 = vweird.f32 %v9125_v9  ;;  %vm3949_vm8 = vmor %vm3947_vm1, %vm3948_vm15  ;;  %v9127_v0 = vpop.eup %9126  ;;  %v12435_v27 = vrot.slane %v11125_v53, 7 }
0x13f3   : > { %v3944_v5 = vsub.f32 1.0, %v3943_v56  ;;  %vm3964_vm2 = vmor %vm3962_vm7, %vm3963_vm4 }
0x13f4   : > { %v3959_v6 = vsub.f32 1.0, %v3958_v21  ;;  %v3928_v40 = vadd.f32 %v3920_v50, %v12435_v27 }
0x13f5   : > { %v3945_v43 = vmul.f32 %v9123_v63, %v3944_v5 }
0x13f6   : > { %v3960_v23 = vmul.f32 %v9125_v9, %v3959_v6  ;;  %v8104_v15 = vmul.f32 -1.442695, %v3928_v40 }
0x13f7   : > { %v3946_v20 = vadd.f32 %v9123_v63, %v3945_v43 }
0x13f8   : > { %v3961_v31 = vadd.f32 %v9125_v9, %v3960_v23  ;;  %9128 = vpow2.f32 %v8104_v15 }
0x13f9   : > { %v3950_v7 = vsel %vm3949_vm8, %v9123_v63, %v3946_v20 }
0x13fa   : > { %v3965_v56 = vsel %vm3964_vm2, %v9125_v9, %v3961_v31  ;;  %v3955_v21 = vsel %vm3952_vm9, %v3954_v55, %v3950_v7 }
0x13fb   : > { %v3970_v5 = vsel %vm3967_vm12, %v3969_v13, %v3965_v56  ;;  %v3992_v6 = vmul.f32 %v9127_v0, %v3955_v21  ;;  %v3991_v14 = vmul.f32 %v3989_v19, %v3955_v21  ;;  %v3999_v19 = vrot.slane %v11344_v35, 7 }
0x13fc   : > { %v4002_v45 = vmul.f32 %v9127_v0, %v3970_v5 }
0x13fd   : > { %3994 = vrot.lane.b32.xlu0 %v3992_v6, %s9700_s20 }
0x13fe   : > { %4004 = vrot.lane.b32.xlu1 %v4002_v45, %s9700_s20  ;;  %v9129_v63 = vpop.eup %9128 }
0x13ff   : > { %v3941_v48 = vadd.f32 1.0, %v9129_v63 }
0x1401   : > { %9130 = vrcp.f32 %v3941_v48  ;;  %v3983_v20 = vand.u32 2147483648, %v3941_v48  ;;  %vm3977_vm15 = vweird.f32 %v3941_v48  ;;  %v3981_v31 = vand.u32 2147483647, %v3941_v48 }
0x1403   : > { %v3984_v29 = vor.u32 1.1754944e-38, %v3983_v20  ;;  %vm3982_vm1 = vcmp.eq.f32.partialorder %v3981_v31, 8.507059e+37 }
0x1407   : > { %v9131_v9 = vpop.eup %9130 }
0x1408   : > { %v3973_v43 = vmul.f32 %v9131_v9, %v3941_v48  ;;  %vm3978_vm11 = vweird.f32 %v9131_v9 }
0x1409   : > { %vm3979_vm4 = vmor %vm3977_vm15, %vm3978_vm11 }
0x140a   : > { %v3974_v44 = vsub.f32 1.0, %v3973_v43 }
0x140c   : > { %v3975_v23 = vmul.f32 %v9131_v9, %v3974_v44 }
0x140e   : > { %v3976_v2 = vadd.f32 %v9131_v9, %v3975_v23 }
0x1410   : > { %v3980_v45 = vsel %vm3979_vm4, %v9131_v9, %v3976_v2 }
0x1411   : > { %v3985_v55 = vsel %vm3982_vm1, %v3984_v29, %v3980_v45 }
0x1412   : > { %v4001_v13 = vmul.f32 %v3999_v19, %v3985_v55 }
0x146f   : > { %v3995_v7 = vpop.permute.xlu0 %3994 }
0x1470   : > { %v4005_v0 = vpop.permute.xlu1 %4004  ;;  %v11397_v56 = vadd.f32 %v3995_v7, %v3991_v14 }
0x1471   : > { %v11399_v21 = vadd.f32 %v4005_v0, %v4001_v13 }
0x1472   : > { %9132 = vtanh.f32 %v11397_v56  ;;  %v4152_v2 = vrot.slane %v11397_v56, 7 }
0x1473   : > { %9134 = vtanh.f32 %v11399_v21 }
0x1478   : > { %v9133_v6 = vpop.eup %9132 }
0x1479   : > { %v9135_v50 = vpop.eup %9134  ;;  %4010 = vrot.lane.b32.xlu2 %v9133_v6, %s9700_s20 }
0x147a   : > { %4016 = vrot.lane.b32.xlu0 %v9135_v50, %s9700_s20  ;;  %v12438_v50 = vrot.slane %v11125_v53, 5 }
0x14d3   : > { %v4011_v27 = vpop.permute.xlu2 %4010 }
0x14d4   : > { %v4013_v40 = vmul.f32 %v4011_v27, %v3970_v5 }
0x14d6   : > { %v11407_v35 = vsel %vm2680_vm6, %v11352_v51, %v4013_v40 }
0x14ec   : > { %v4017_v14 = vpop.permute.xlu0 %4016 }
0x14ed   : > { %v11409_v15 = vmul.f32 %v4017_v14, %v3985_v55 }
0x14ef   : > { %v4020_v63 = vsel %vm1091_vm0, %v4013_v40, %v11409_v15 }
0x14f0   : > { %v4021_v48 = vpack.c.bf16 %v4020_v63, %v4020_v63 }
0x14f2   : > { %v4023_v9 = vrot.slane %v4021_v48, 2 }
0x14f4   : > { %4033 = vmatmul.bf16.vlgmr.msra.gmra.mxu0 %v4023_v9  ;;  %4046 = vmatmul.bf16.vlgmr.msra.gmra.mxu1 %v4023_v9 }
0x14f5   : > { %4059 = vmatmul.bf16.vlgmr.msrb.gmra.mxu2 %v4023_v9  ;;  %4072 = vmatmul.bf16.vlgmr.msrb.gmra.mxu3 %v4023_v9 }
0x14f6   : > { %4353 = vmatpush.bf16.msra.mxu0 %v10910_v47  ;;  %4366 = vmatpush.bf16.msra.mxu1 %v10904_v8 }
0x14f7   : > { %4379 = vmatpush.bf16.msrb.mxu2 %v10906_v24  ;;  %4392 = vmatpush.bf16.msrb.mxu3 %v10908_v58 }
0x14fa   : > { %4354 = vmatpush.bf16.msra.mxu0 %v10916_v25  ;;  %4367 = vmatpush.bf16.msra.mxu1 %v10918_v39  ;;  %v12436_v39 = vld [vmem:[#allocation46_spill] sm:$0xff] }
0x14fb   : > { %4380 = vmatpush.bf16.msrb.mxu2 %v10920_v46  ;;  %4393 = vmatpush.bf16.msrb.mxu3 %v10922_v59 }
0x14fe   : > { %4355 = vmatpush.bf16.msra.mxu0 %v10928_v18  ;;  %4368 = vmatpush.bf16.msra.mxu1 %v10930_v26 }
0x14ff   : > { %4381 = vmatpush.bf16.msrb.mxu2 %v10932_v34  ;;  %4394 = vmatpush.bf16.msrb.mxu3 %v10934_v60 }
0x1502   : > { %4356 = vmatpush.bf16.msra.mxu0 %v10944_v33  ;;  %4369 = vmatpush.bf16.msra.mxu1 %v10937_v11 }
0x1503   : > { %4382 = vmatpush.bf16.msrb.mxu2 %v10941_v30  ;;  %4395 = vmatpush.bf16.msrb.mxu3 %v10946_v36 }
0x1506   : > { %4357 = vmatpush.bf16.msra.mxu0 %v10952_v52  ;;  %4370 = vmatpush.bf16.msra.mxu1 %v10954_v22 }
0x1507   : > { %4383 = vmatpush.bf16.msrb.mxu2 %v10956_v61  ;;  %4396 = vmatpush.bf16.msrb.mxu3 %v10958_v41 }
0x150a   : > { %4358 = vmatpush.bf16.msra.mxu0 %v10968_v28  ;;  %4371 = vmatpush.bf16.msra.mxu1 %v10961_v54 }
0x150b   : > { %4384 = vmatpush.bf16.msrb.mxu2 %v10965_v16  ;;  %4397 = vmatpush.bf16.msrb.mxu3 %v10970_v1  ;;  %v12437_v16 = vld [vmem:[#allocation43_spill] sm:$0xff] }
0x150e   : > { %4359 = vmatpush.bf16.msra.mxu0 %v10982_v38  ;;  %4372 = vmatpush.bf16.msra.mxu1 %v10973_v42 }
0x150f   : > { %4385 = vmatpush.bf16.msrb.mxu2 %v10977_v3  ;;  %4398 = vmatpush.bf16.msrb.mxu3 %v10979_v4 }
0x1512   : > { %4360 = vmatpush.bf16.msra.mxu0 %v10994_v32  ;;  %4373 = vmatpush.bf16.msra.mxu1 %v10985_v37 }
0x1513   : > { %4386 = vmatpush.bf16.msrb.mxu2 %v10989_v62  ;;  %4399 = vmatpush.bf16.msrb.mxu3 %v10991_v10 }
0x1571   : > { %v4034_v8 = vpop.f32.mrf.mxu0  ;;  %v4047_v24 = vpop.f32.mrf.mxu1 }
0x1572   : > { %v4081_v58 = vrot.slane %v4034_v8, 3  ;;  %v4082_v47 = vrot.slane %v4047_v24, 3 }
0x1574   : > { %v4089_v25 = vadd.f32 %v4081_v58, %v11102_v49  ;;  %v4090_v46 = vadd.f32 %v4082_v47, %v12436_v39 }
0x1576   : > { %v8105_v59 = vmul.f32 -1.442695, %v4089_v25  ;;  %v8106_v18 = vmul.f32 -1.442695, %v4090_v46 }
0x1578   : > { %9136 = vpow2.f32 %v8105_v59  ;;  %v4060_v26 = vpop.f32.mrf.mxu2  ;;  %v4073_v34 = vpop.f32.mrf.mxu3  ;;  %v4162_v59 = vrot.slane %v11399_v21, 7 }
0x1579   : > { %9138 = vpow2.f32 %v8106_v18  ;;  %v4036_v60 = vpop.f32.mrf.mxu0  ;;  %v4049_v11 = vpop.f32.mrf.mxu1  ;;  %v4084_v41 = vrot.slane %v4073_v34, 3  ;;  %v4083_v6 = vrot.slane %v4060_v26, 3 }
0x157b   : > { %v4092_v28 = vadd.f32 %v4084_v41, %v12437_v16  ;;  %v4091_v56 = vadd.f32 %v4083_v6, %v12438_v50 }
0x157d   : > { %v8107_v27 = vmul.f32 -1.442695, %v4091_v56 }
0x157e   : > { %v9137_v30 = vpop.eup %9136 }
0x157f   : > { %v9139_v33 = vpop.eup %9138  ;;  %v4102_v36 = vadd.f32 1.0, %v9137_v30 }
0x1580   : > { %v4103_v52 = vadd.f32 1.0, %v9139_v33  ;;  %v4062_v22 = vpop.f32.mrf.mxu2  ;;  %v4075_v61 = vpop.f32.mrf.mxu3 }
0x1581   : > { %9140 = vrcp.f32 %v4102_v36  ;;  %v4116_v37 = vand.u32 2147483648, %v4102_v36  ;;  %v4114_v32 = vand.u32 2147483647, %v4102_v36  ;;  %vm4110_vm2 = vweird.f32 %v4102_v36 }
0x1582   : > { %9142 = vrcp.f32 %v4103_v52  ;;  %v4131_v62 = vand.u32 2147483648, %v4103_v52  ;;  %v4129_v5 = vand.u32 2147483647, %v4103_v52  ;;  %vm4125_vm9 = vweird.f32 %v4103_v52 }
0x1583   : > { %9144 = vtanh.f32 %v4092_v28  ;;  %v4117_v23 = vor.u32 1.1754944e-38, %v4116_v37  ;;  %vm4115_vm15 = vcmp.eq.f32.partialorder %v4114_v32, 8.507059e+37  ;;  %v12439_v37 = vld [vmem:[#allocation50_spill] sm:$0xff] }
0x1584   : > { %v4132_v20 = vor.u32 1.1754944e-38, %v4131_v62  ;;  %vm4130_vm4 = vcmp.eq.f32.partialorder %v4129_v5, 8.507059e+37  ;;  %9146 = vpow2.f32 %v8107_v27 }
0x1587   : > { %v9141_v54 = vpop.eup %9140 }
0x1588   : > { %v9143_v1 = vpop.eup %9142  ;;  %v4106_v42 = vmul.f32 %v9141_v54, %v4102_v36  ;;  %vm4111_vm7 = vweird.f32 %v9141_v54 }
0x1589   : > { %v4121_v3 = vmul.f32 %v9143_v1, %v4103_v52  ;;  %vm4126_vm8 = vweird.f32 %v9143_v1  ;;  %vm4112_vm12 = vmor %vm4110_vm2, %vm4111_vm7  ;;  %v9145_v45 = vpop.eup %9144 }
0x158a   : > { %v4107_v4 = vsub.f32 1.0, %v4106_v42  ;;  %vm4127_vm11 = vmor %vm4125_vm9, %vm4126_vm8  ;;  %v9147_v40 = vpop.eup %9146 }
0x158b   : > { %v4122_v38 = vsub.f32 1.0, %v4121_v3  ;;  %v4104_v14 = vadd.f32 1.0, %v9147_v40 }
0x158c   : > { %v4108_v10 = vmul.f32 %v9141_v54, %v4107_v4 }
0x158d   : > { %v4123_v51 = vmul.f32 %v9143_v1, %v4122_v38  ;;  %9148 = vrcp.f32 %v4104_v14  ;;  %v4146_v58 = vand.u32 2147483648, %v4104_v14  ;;  %vm4140_vm7 = vweird.f32 %v4104_v14 }
0x158e   : > { %v4109_v43 = vadd.f32 %v9141_v54, %v4108_v10  ;;  %v4144_v47 = vand.u32 2147483647, %v4104_v14 }
0x158f   : > { %v4124_v44 = vadd.f32 %v9143_v1, %v4123_v51  ;;  %v4147_v39 = vor.u32 1.1754944e-38, %v4146_v58 }
0x1590   : > { %v4113_v31 = vsel %vm4112_vm12, %v9141_v54, %v4109_v43  ;;  %vm4145_vm2 = vcmp.eq.f32.partialorder %v4144_v47, 8.507059e+37 }
0x1591   : > { %v4128_v29 = vsel %vm4127_vm11, %v9143_v1, %v4124_v44  ;;  %v4118_v55 = vsel %vm4115_vm15, %v4117_v23, %v4113_v31 }
0x1592   : > { %v4133_v19 = vsel %vm4130_vm4, %v4132_v20, %v4128_v29  ;;  %v4155_v13 = vmul.f32 %v9145_v45, %v4118_v55  ;;  %v4154_v7 = vmul.f32 %v4152_v2, %v4118_v55 }
0x1593   : > { %v4165_v0 = vmul.f32 %v9145_v45, %v4133_v19  ;;  %v9149_v63 = vpop.eup %9148 }
0x1594   : > { %4157 = vrot.lane.b32.xlu1 %v4155_v13, %s9700_s20  ;;  %v4136_v48 = vmul.f32 %v9149_v63, %v4104_v14  ;;  %vm4141_vm1 = vweird.f32 %v9149_v63 }
0x1595   : > { %4167 = vrot.lane.b32.xlu2 %v4165_v0, %s9700_s20  ;;  %vm4142_vm8 = vmor %vm4140_vm7, %vm4141_vm1 }
0x1596   : > { %v4137_v9 = vsub.f32 1.0, %v4136_v48 }
0x1598   : > { %v4138_v8 = vmul.f32 %v9149_v63, %v4137_v9 }
0x159a   : > { %v4139_v24 = vadd.f32 %v9149_v63, %v4138_v8 }
0x159c   : > { %v4143_v25 = vsel %vm4142_vm8, %v9149_v63, %v4139_v24 }
0x159d   : > { %v4148_v46 = vsel %vm4145_vm2, %v4147_v39, %v4143_v25 }
0x159e   : > { %v4164_v18 = vmul.f32 %v4162_v59, %v4148_v46 }
0x15ef   : > { %v4168_v26 = vpop.permute.xlu2 %4167 }
0x15f0   : > { %v11454_v34 = vadd.f32 %v4168_v26, %v4164_v18 }
0x15f2   : > { %9150 = vtanh.f32 %v11454_v34 }
0x15f8   : > { %v9151_v60 = vpop.eup %9150 }
0x15f9   : > { %4179 = vrot.lane.b32.xlu1 %v9151_v60, %s9700_s20 }
0x1606   : > { %v4158_v11 = vpop.permute.xlu1 %4157 }
0x1607   : > { %v11458_v30 = vadd.f32 %v4158_v11, %v4154_v7 }
0x1609   : > { %9152 = vtanh.f32 %v11458_v30  ;;  %v4317_v47 = vrot.slane %v11458_v30, 7 }
0x160f   : > { %v9153_v33 = vpop.eup %9152 }
0x1610   : > { %4173 = vrot.lane.b32.xlu0 %v9153_v33, %s9700_s20 }
0x166b   : > { %v4180_v36 = vpop.permute.xlu1 %4179 }
0x166c   : > { %v11462_v21 = vmul.f32 %v4180_v36, %v4148_v46 }
0x1682   : > { %v4174_v52 = vpop.permute.xlu0 %4173 }
0x1683   : > { %v4176_v22 = vmul.f32 %v4174_v52, %v4133_v19  ;;  %v12440_v19 = vld [vmem:[#allocation51_spill] sm:$0xff]  ;;  %v12441_v52 = vrot.slane %v11125_v53, 3 }
0x1685   : > { %v4183_v61 = vsel %vm1091_vm0, %v4176_v22, %v11462_v21  ;;  %v11468_v41 = vsel %vm2682_vm10, %v11407_v35, %v4176_v22 }
0x1686   : > { %v4184_v54 = vpack.c.bf16 %v4183_v61, %v4183_v61 }
0x1688   : > { %v4186_v16 = vshrl.u32 %v4184_v54, 16 }
0x168a   : > { %v4188_v28 = vrot.slane %v4186_v16, 2 }
0x168c   : > { %4198 = vmatmul.bf16.vlgmr.msrb.gmra.mxu0 %v4188_v28  ;;  %4211 = vmatmul.bf16.vlgmr.msrb.gmra.mxu1 %v4188_v28 }
0x168d   : > { %4224 = vmatmul.bf16.vlgmr.msra.gmra.mxu2 %v4188_v28  ;;  %4237 = vmatmul.bf16.vlgmr.msra.gmra.mxu3 %v4188_v28 }
0x1709   : > { %v4199_v1 = vpop.f32.mrf.mxu0  ;;  %v4212_v42 = vpop.f32.mrf.mxu1 }
0x170a   : > { %v4246_v3 = vrot.slane %v4199_v1, 2  ;;  %v4247_v4 = vrot.slane %v4212_v42, 2 }
0x170c   : > { %v4254_v38 = vadd.f32 %v4246_v3, %v11102_v49  ;;  %v4255_v62 = vadd.f32 %v4247_v4, %v12439_v37 }
0x170e   : > { %v8108_v10 = vmul.f32 -1.442695, %v4254_v38  ;;  %v8109_v32 = vmul.f32 -1.442695, %v4255_v62 }
0x1710   : > { %9154 = vpow2.f32 %v8108_v10  ;;  %v4225_v35 = vpop.f32.mrf.mxu2  ;;  %v4238_v51 = vpop.f32.mrf.mxu3 }
0x1711   : > { %9156 = vpow2.f32 %v8109_v32  ;;  %v4201_v5 = vpop.f32.mrf.mxu0  ;;  %v4214_v43 = vpop.f32.mrf.mxu1  ;;  %v4249_v29 = vrot.slane %v4238_v51, 2  ;;  %v4248_v36 = vrot.slane %v4225_v35, 2 }
0x1712   : > { %v4327_v5 = vrot.slane %v11454_v34, 7 }
0x1713   : > { %v4257_v13 = vadd.f32 %v4249_v29, %v12440_v19  ;;  %v4256_v30 = vadd.f32 %v4248_v36, %v12441_v52 }
0x1715   : > { %v8110_v22 = vmul.f32 -1.442695, %v4256_v30 }
0x1716   : > { %v9155_v44 = vpop.eup %9154 }
0x1717   : > { %v9157_v23 = vpop.eup %9156  ;;  %v4267_v2 = vadd.f32 1.0, %v9155_v44 }
0x1718   : > { %v4268_v20 = vadd.f32 1.0, %v9157_v23  ;;  %v4227_v31 = vpop.f32.mrf.mxu2  ;;  %v4240_v45 = vpop.f32.mrf.mxu3 }
0x1719   : > { %9158 = vrcp.f32 %v4267_v2  ;;  %v4281_v27 = vand.u32 2147483648, %v4267_v2  ;;  %v4279_v63 = vand.u32 2147483647, %v4267_v2  ;;  %vm4275_vm11 = vweird.f32 %v4267_v2 }
0x171a   : > { %9160 = vrcp.f32 %v4268_v20  ;;  %v4296_v40 = vand.u32 2147483648, %v4268_v20  ;;  %v4294_v9 = vand.u32 2147483647, %v4268_v20  ;;  %vm4290_vm15 = vweird.f32 %v4268_v20 }
0x171b   : > { %9162 = vtanh.f32 %v4257_v13  ;;  %v4282_v58 = vor.u32 1.1754944e-38, %v4281_v27  ;;  %vm4280_vm7 = vcmp.eq.f32.partialorder %v4279_v63, 8.507059e+37 }
0x171c   : > { %v4297_v25 = vor.u32 1.1754944e-38, %v4296_v40  ;;  %vm4295_vm8 = vcmp.eq.f32.partialorder %v4294_v9, 8.507059e+37  ;;  %9164 = vpow2.f32 %v8110_v22 }
0x171f   : > { %v9159_v55 = vpop.eup %9158 }
0x1720   : > { %v9161_v7 = vpop.eup %9160  ;;  %v4271_v0 = vmul.f32 %v9159_v55, %v4267_v2  ;;  %vm4276_vm9 = vweird.f32 %v9159_v55 }
0x1721   : > { %v4286_v6 = vmul.f32 %v9161_v7, %v4268_v20  ;;  %vm4291_vm12 = vweird.f32 %v9161_v7  ;;  %vm4277_vm4 = vmor %vm4275_vm11, %vm4276_vm9  ;;  %v9163_v46 = vpop.eup %9162 }
0x1722   : > { %v4272_v50 = vsub.f32 1.0, %v4271_v0  ;;  %vm4292_vm1 = vmor %vm4290_vm15, %vm4291_vm12  ;;  %v9165_v61 = vpop.eup %9164 }
0x1723   : > { %v4287_v56 = vsub.f32 1.0, %v4286_v6  ;;  %v4269_v54 = vadd.f32 1.0, %v9165_v61 }
0x1724   : > { %v4273_v14 = vmul.f32 %v9159_v55, %v4272_v50 }
0x1725   : > { %v4288_v48 = vmul.f32 %v9161_v7, %v4287_v56  ;;  %9166 = vrcp.f32 %v4269_v54  ;;  %v4311_v62 = vand.u32 2147483648, %v4269_v54  ;;  %vm4305_vm9 = vweird.f32 %v4269_v54 }
0x1726   : > { %v4274_v8 = vadd.f32 %v9159_v55, %v4273_v14  ;;  %v4309_v10 = vand.u32 2147483647, %v4269_v54 }
0x1727   : > { %v4289_v24 = vadd.f32 %v9161_v7, %v4288_v48  ;;  %v4312_v35 = vor.u32 1.1754944e-38, %v4311_v62 }
0x1728   : > { %v4278_v39 = vsel %vm4277_vm4, %v9159_v55, %v4274_v8  ;;  %vm4310_vm11 = vcmp.eq.f32.partialorder %v4309_v10, 8.507059e+37 }
0x1729   : > { %v4293_v59 = vsel %vm4292_vm1, %v9161_v7, %v4289_v24  ;;  %v4283_v18 = vsel %vm4280_vm7, %v4282_v58, %v4278_v39 }
0x172a   : > { %v4298_v26 = vsel %vm4295_vm8, %v4297_v25, %v4293_v59  ;;  %v4320_v60 = vmul.f32 %v9163_v46, %v4283_v18  ;;  %v4319_v11 = vmul.f32 %v4317_v47, %v4283_v18 }
0x172b   : > { %v4330_v33 = vmul.f32 %v9163_v46, %v4298_v26  ;;  %v9167_v16 = vpop.eup %9166 }
0x172c   : > { %4322 = vrot.lane.b32.xlu2 %v4320_v60, %s9700_s20  ;;  %v4301_v42 = vmul.f32 %v9167_v16, %v4269_v54  ;;  %vm4306_vm2 = vweird.f32 %v9167_v16 }
0x172d   : > { %4332 = vrot.lane.b32.xlu0 %v4330_v33, %s9700_s20  ;;  %vm4307_vm12 = vmor %vm4305_vm9, %vm4306_vm2 }
0x172e   : > { %v4302_v3 = vsub.f32 1.0, %v4301_v42 }
0x1730   : > { %v4303_v38 = vmul.f32 %v9167_v16, %v4302_v3 }
0x1732   : > { %v4304_v37 = vadd.f32 %v9167_v16, %v4303_v38 }
0x1734   : > { %v4308_v32 = vsel %vm4307_vm12, %v9167_v16, %v4304_v37 }
0x1735   : > { %v4313_v51 = vsel %vm4310_vm11, %v4312_v35, %v4308_v32 }
0x1736   : > { %v4329_v43 = vmul.f32 %v4327_v5, %v4313_v51 }
0x1786   : > { %v4323_v28 = vpop.permute.xlu2 %4322 }
0x1787   : > { %v11478_v1 = vadd.f32 %v4323_v28, %v4319_v11 }
0x1789   : > { %9168 = vtanh.f32 %v11478_v1  ;;  %v4480_v28 = vrot.slane %v11478_v1, 7  ;;  %v12442_v1 = vrot.slane %v11125_v53, 1 }
0x178f   : > { %v9169_v4 = vpop.eup %9168 }
0x1790   : > { %4338 = vrot.lane.b32.xlu1 %v9169_v4, %s9700_s20 }
0x179f   : > { %v4333_v44 = vpop.permute.xlu0 %4332 }
0x17a0   : > { %v11483_v23 = vadd.f32 %v4333_v44, %v4329_v43 }
0x17a2   : > { %9170 = vtanh.f32 %v11483_v23 }
0x17a8   : > { %v9171_v2 = vpop.eup %9170 }
0x17a9   : > { %4344 = vrot.lane.b32.xlu2 %v9171_v2, %s9700_s20 }
0x1802   : > { %v4339_v20 = vpop.permute.xlu1 %4338 }
0x1803   : > { %v4345_v31 = vpop.permute.xlu2 %4344  ;;  %v4341_v45 = vmul.f32 %v4339_v20, %v4298_v26 }
0x1804   : > { %v11487_v29 = vmul.f32 %v4345_v31, %v4313_v51 }
0x1805   : > { %v11491_v55 = vsel %vm2684_vm5, %v11468_v41, %v4341_v45 }
0x1806   : > { %v4348_v34 = vsel %vm1091_vm0, %v4341_v45, %v11487_v29  ;;  %v8200_v45 = vld [vmem:[#allocation8 + $0xa8] sm:$0xf] }
0x1807   : > { %v4349_v19 = vpack.c.bf16 %v4348_v34, %v4348_v34  ;;  %v8590_v34 = vld [vmem:[#allocation8 + $0xb0] sm:$0xf0] }
0x1809   : > { %v4351_v13 = vrot.slane %v4349_v19, 3  ;;  %v8589_v19 = vld [vmem:[#allocation8 + $0xac] sm:$0xf] }
0x180b   : > { %4361 = vmatmul.bf16.vlgmr.msra.gmra.mxu0 %v4351_v13  ;;  %4374 = vmatmul.bf16.vlgmr.msra.gmra.mxu1 %v4351_v13 }
0x180c   : > { %4387 = vmatmul.bf16.vlgmr.msrb.gmra.mxu2 %v4351_v13  ;;  %4400 = vmatmul.bf16.vlgmr.msrb.gmra.mxu3 %v4351_v13  ;;  %v8201_v13 = vor.u32 %v8590_v34, %v8200_v45 }
0x180e   : > { %4744 = vmatpush.bf16.msrb.mxu0 %v8201_v13  ;;  %v8140_v13 = vld [vmem:[#allocation8 + $0x30] sm:$0xf] }
0x1888   : > { %v4362_v7 = vpop.f32.mrf.mxu0  ;;  %v4375_v0 = vpop.f32.mrf.mxu1 }
0x1889   : > { %v4409_v6 = vrot.slane %v4362_v7, 1  ;;  %v4410_v50 = vrot.slane %v4375_v0, 1  ;;  %v8202_v7 = vld [vmem:[#allocation8 + $0xb4] sm:$0xf0]  ;;  %v8208_v0 = vld [vmem:[#allocation8 + $0xb0] sm:$0xf] }
0x188b   : > { %v4417_v56 = vadd.f32 %v4409_v6, %v11102_v49  ;;  %v4418_v27 = vadd.f32 %v4410_v50, %v11322_v57  ;;  %v8591_v6 = vld [vmem:[#allocation8 + $0xb8] sm:$0xf0]  ;;  %v8205_v50 = vor.u32 %v8589_v19, %v8202_v7 }
0x188c   : > { %v8575_v7 = vld [vmem:[#allocation8 + $0x38] sm:$0xf0] }
0x188d   : > { %v8111_v40 = vmul.f32 -1.442695, %v4417_v56  ;;  %v8112_v41 = vmul.f32 -1.442695, %v4418_v27  ;;  %v8209_v56 = vor.u32 %v8591_v6, %v8208_v0  ;;  %4757 = vmatpush.bf16.msrb.mxu1 %v8205_v50  ;;  %v8574_v0 = vld [vmem:[#allocation8 + $0x34] sm:$0xf] }
0x188e   : > { %v8142_v6 = vld [vmem:[#allocation8 + $0x3c] sm:$0xf0]  ;;  %v8148_v50 = vld [vmem:[#allocation8 + $0x38] sm:$0xf] }
0x188f   : > { %9172 = vpow2.f32 %v8111_v40  ;;  %v4388_v14 = vpop.f32.mrf.mxu2  ;;  %v4401_v63 = vpop.f32.mrf.mxu3  ;;  %4770 = vmatpush.bf16.msra.mxu2 %v8209_v56  ;;  %v8576_v56 = vld [vmem:[#allocation8 + $0x40] sm:$0xf0] }
0x1890   : > { %9174 = vpow2.f32 %v8112_v41  ;;  %v4364_v48 = vpop.f32.mrf.mxu0  ;;  %v4377_v9 = vpop.f32.mrf.mxu1  ;;  %v4412_v46 = vrot.slane %v4401_v63, 1  ;;  %v4411_v51 = vrot.slane %v4388_v14, 1 }
0x1892   : > { %v4420_v57 = vadd.f32 %v4412_v46, %v11330_v17  ;;  %v4419_v5 = vadd.f32 %v4411_v51, %v12442_v1 }
0x1894   : > { %v8113_v43 = vmul.f32 -1.442695, %v4419_v5  ;;  %v8152_v5 = vld [vmem:[#allocation8 + $0x48] sm:$0xf] }
0x1895   : > { %v9173_v8 = vpop.eup %9172 }
0x1896   : > { %v9175_v24 = vpop.eup %9174  ;;  %v4430_v58 = vadd.f32 1.0, %v9173_v8  ;;  %v4490_v8 = vrot.slane %v11483_v23, 7  ;;  %v8587_v23 = vld [vmem:[#allocation8 + $0x98] sm:$0xf0] }
0x1897   : > { %v4431_v47 = vadd.f32 1.0, %v9175_v24  ;;  %v4390_v25 = vpop.f32.mrf.mxu2  ;;  %v4403_v39 = vpop.f32.mrf.mxu3 }
0x1898   : > { %9176 = vrcp.f32 %v4430_v58  ;;  %v4444_v33 = vand.u32 2147483648, %v4430_v58  ;;  %v4442_v30 = vand.u32 2147483647, %v4430_v58  ;;  %vm4438_vm1 = vweird.f32 %v4430_v58 }
0x1899   : > { %9178 = vrcp.f32 %v4431_v47  ;;  %v4459_v36 = vand.u32 2147483648, %v4431_v47  ;;  %v4457_v61 = vand.u32 2147483647, %v4431_v47  ;;  %vm4453_vm7 = vweird.f32 %v4431_v47 }
0x189a   : > { %9180 = vtanh.f32 %v4420_v57  ;;  %v4445_v17 = vor.u32 1.1754944e-38, %v4444_v33  ;;  %vm4443_vm9 = vcmp.eq.f32.partialorder %v4442_v30, 8.507059e+37  ;;  %v8188_v57 = vld [vmem:[#allocation8 + $0x90] sm:$0xf]  ;;  %v8584_v30 = vld [vmem:[#allocation8 + $0x80] sm:$0xf0] }
0x189b   : > { %v4460_v42 = vor.u32 1.1754944e-38, %v4459_v36  ;;  %vm4458_vm12 = vcmp.eq.f32.partialorder %v4457_v61, 8.507059e+37  ;;  %9182 = vpow2.f32 %v8113_v43  ;;  %v8578_v43 = vld [vmem:[#allocation8 + $0x50] sm:$0xf0] }
0x189c   : > { %v8153_v45 = vor.u32 %v8578_v43, %v8152_v5  ;;  %v11550_v43 = vld [vmem:[%s12448_s5] sm:$0x7]  ;;  %s8452_s5 = sshll.u32 %s9862_s7, 3 }
0x189e   : > { %v9177_v49 = vpop.eup %9176 }
0x189f   : > { %v9179_v59 = vpop.eup %9178  ;;  %v4434_v18 = vmul.f32 %v9177_v49, %v4430_v58  ;;  %vm4439_vm15 = vweird.f32 %v9177_v49 }
0x18a0   : > { %v4449_v26 = vmul.f32 %v9179_v59, %v4431_v47  ;;  %vm4454_vm4 = vweird.f32 %v9179_v59  ;;  %vm4440_vm8 = vmor %vm4438_vm1, %vm4439_vm15  ;;  %v9181_v4 = vpop.eup %9180 }
0x18a1   : > { %v4435_v60 = vsub.f32 1.0, %v4434_v18  ;;  %vm4455_vm2 = vmor %vm4453_vm7, %vm4454_vm4  ;;  %v9183_v44 = vpop.eup %9182  ;;  %v8189_v18 = vor.u32 %v8587_v23, %v8188_v57  ;;  %v8569_v57 = vld [vmem:[#allocation8 + $0x8] sm:$0xf0]  ;;  %v8568_v23 = vld [vmem:[#allocation8 + $0x4] sm:$0xf]  ;;  %vm12446_vm7 = vcmask 1046528  }
0x18a2   : > { %v4450_v11 = vsub.f32 1.0, %v4449_v26  ;;  %v4432_v2 = vadd.f32 1.0, %v9183_v44  ;;  %v8190_v26 = vld [vmem:[#allocation8 + $0x9c] sm:$0xf0]  ;;  %v8577_v44 = vld [vmem:[#allocation8 + $0x4c] sm:$0xf] }
0x18a3   : > { %v4436_v52 = vmul.f32 %v9177_v49, %v4435_v60  ;;  %v8196_v60 = vld [vmem:[#allocation8 + $0x98] sm:$0xf]  ;;  %4745 = vmatpush.bf16.msrb.mxu0 %v8189_v18  ;;  %v8118_v18 = vld [vmem:[#allocation8 + $0xc] sm:$0xf0] }
0x18a4   : > { %v4451_v22 = vmul.f32 %v9179_v59, %v4450_v11  ;;  %9184 = vrcp.f32 %v4432_v2  ;;  %v4474_v41 = vand.u32 2147483648, %v4432_v2  ;;  %vm4468_vm15 = vweird.f32 %v4432_v2  ;;  %v8588_v11 = vld [vmem:[#allocation8 + $0xa0] sm:$0xf0] }
0x18a5   : > { %v4437_v54 = vadd.f32 %v9177_v49, %v4436_v52  ;;  %v4472_v14 = vand.u32 2147483647, %v4432_v2  ;;  %v8197_v36 = vor.u32 %v8588_v11, %v8196_v60  ;;  %v8176_v52 = vld [vmem:[#allocation8 + $0x78] sm:$0xf]  ;;  %v8570_v60 = vld [vmem:[#allocation8 + $0x10] sm:$0xf0]  ;;  %v8121_v11 = vor.u32 %v8568_v23, %v8118_v18 }
0x18a6   : > { %v4452_v16 = vadd.f32 %v9179_v59, %v4451_v22  ;;  %v4475_v48 = vor.u32 1.1754944e-38, %v4474_v41  ;;  %v8583_v22 = vld [vmem:[#allocation8 + $0x7c] sm:$0xf]  ;;  %v8177_v61 = vor.u32 %v8584_v30, %v8176_v52  ;;  %v8128_v41 = vld [vmem:[#allocation8 + $0x18] sm:$0xf]  ;;  %v4522_v30 = vrot.slane %v11487_v29, 5 }
0x18a7   : > { %v4441_v3 = vsel %vm4440_vm8, %v9177_v49, %v4437_v54  ;;  %vm4473_vm1 = vcmp.eq.f32.partialorder %v4472_v14, 8.507059e+37  ;;  %4771 = vmatpush.bf16.msra.mxu2 %v8197_v36  ;;  %v8178_v54 = vld [vmem:[#allocation8 + $0x84] sm:$0xf0]  ;;  %v8572_v14 = vld [vmem:[#allocation8 + $0x20] sm:$0xf0]  ;;  %vm12447_vm8 = vmmov %vm12446_vm7 }
0x18a8   : > { %v4456_v38 = vsel %vm4455_vm2, %v9179_v59, %v4452_v16  ;;  %v4446_v37 = vsel %vm4443_vm9, %v4445_v17, %v4441_v3  ;;  %v8586_v59 = vld [vmem:[#allocation8 + $0x94] sm:$0xf]  ;;  %v8184_v16 = vld [vmem:[#allocation8 + $0x80] sm:$0xf]  ;;  %v8585_v17 = vld [vmem:[#allocation8 + $0x88] sm:$0xf0]  ;;  %4746 = vmatpush.bf16.msrb.mxu0 %v8177_v61 }
0x18a9   : > { %v11499_v62 = vsel %vm4458_vm12, %v4460_v42, %v4456_v38  ;;  %v4483_v10 = vmul.f32 %v9181_v4, %v4446_v37  ;;  %v4482_v32 = vmul.f32 %v4480_v28, %v4446_v37  ;;  %v8193_v33 = vor.u32 %v8586_v59, %v8190_v26  ;;  %v8164_v3 = vld [vmem:[#allocation8 + $0x60] sm:$0xf]  ;;  %v8580_v38 = vld [vmem:[#allocation8 + $0x64] sm:$0xf]  ;;  %v8124_v26 = vld [vmem:[#allocation8 + $0x8] sm:$0xf] }
0x18aa   : > { %v4493_v35 = vmul.f32 %v9181_v4, %v11499_v62  ;;  %v9185_v20 = vpop.eup %9184  ;;  %v8181_v28 = vor.u32 %v8583_v22, %v8178_v54  ;;  %v8185_v42 = vor.u32 %v8585_v17, %v8184_v16  ;;  %v8581_v4 = vld [vmem:[#allocation8 + $0x68] sm:$0xf0]  ;;  %v4525_v61 = vrot.slane %v11462_v21, 3 }
0x18ab   : > { %4485 = vrot.lane.b32.xlu1 %v4483_v10, %s9700_s20  ;;  %v4464_v31 = vmul.f32 %v9185_v20, %v4432_v2  ;;  %vm4469_vm11 = vweird.f32 %v9185_v20  ;;  %4758 = vmatpush.bf16.msrb.mxu1 %v8193_v33  ;;  %v8165_v37 = vor.u32 %v8581_v4, %v8164_v3  ;;  %v8166_v10 = vld [vmem:[#allocation8 + $0x6c] sm:$0xf0]  ;;  %v8154_v2 = vld [vmem:[#allocation8 + $0x54] sm:$0xf0]  ;;  %v8125_v33 = vor.u32 %v8570_v60, %v8124_v26 }
0x18ac   : > { %4495 = vrot.lane.b32.xlu0 %v4493_v35, %s9700_s20  ;;  %vm4470_vm4 = vmor %vm4468_vm15, %vm4469_vm11  ;;  %v8582_v35 = vld [vmem:[#allocation8 + $0x70] sm:$0xf0]  ;;  %4772 = vmatpush.bf16.msra.mxu2 %v8185_v42  ;;  %v8169_v51 = vor.u32 %v8580_v38, %v8166_v10  ;;  %v8157_v34 = vor.u32 %v8577_v44, %v8154_v2  ;;  %v4528_v54 = vrot.slane %v11409_v15, 1  ;;  %v4531_v17 = vrot.slane %v11348_v12, 7 }
0x18ad   : > { %v4465_v27 = vsub.f32 1.0, %v4464_v31  ;;  %v8579_v31 = vld [vmem:[#allocation8 + $0x58] sm:$0xf0]  ;;  %4747 = vmatpush.bf16.msrb.mxu0 %v8165_v37  ;;  %v12443_v42 = vld [vmem:[#allocation52_spill] sm:$0xff]  ;;  %v4611_v44 = vperm.slane %v11550_v43, 1  ;;  %vm6093_vm2 = vcmask 64512  }
0x18ae   : > { %v4534_v3 = vrot.slane %v12443_v42, 5  ;;  %v12445_v37 = vld [vmem:[#allocation49_spill] sm:$0xff]  ;;  %vm6675_vm9 = vcmask 261120   ;;  %vm6677_vm12 = vcmask 392192   ;;  %vm6680_vm11 = vcmask 654336  }
0x18af   : > { %v4466_v53 = vmul.f32 %v9185_v20, %v4465_v27  ;;  %4759 = vmatpush.bf16.msrb.mxu1 %v8181_v28  ;;  %v8141_v27 = vor.u32 %v8575_v7, %v8140_v13  ;;  %v4540_v10 = vrot.slane %v12445_v37, 1  ;;  %vm6682_vm15 = vcmask 785408  }
0x18b1   : > { %v4467_v40 = vadd.f32 %v9185_v20, %v4466_v53  ;;  %4748 = vmatpush.bf16.msrb.mxu0 %v8153_v45  ;;  %v8145_v53 = vor.u32 %v8574_v0, %v8142_v6 }
0x18b3   : > { %v4471_v63 = vsel %vm4470_vm4, %v9185_v20, %v4467_v40  ;;  %v8160_v20 = vld [vmem:[#allocation8 + $0x50] sm:$0xf]  ;;  %4760 = vmatpush.bf16.msrb.mxu1 %v8169_v51  ;;  %v8149_v40 = vor.u32 %v8576_v56, %v8148_v50  ;;  %vm6684_vm4 = vcmask 916480  }
0x18b4   : > { %v11506_v9 = vsel %vm4473_vm1, %v4475_v48, %v4471_v63  ;;  %v8161_v19 = vor.u32 %v8579_v31, %v8160_v20  ;;  %v8571_v63 = vld [vmem:[#allocation8 + $0x1c] sm:$0xf]  ;;  %v8130_v48 = vld [vmem:[#allocation8 + $0x24] sm:$0xf0] }
0x18b5   : > { %v4492_v24 = vmul.f32 %v4490_v8, %v11506_v9  ;;  %v8136_v8 = vld [vmem:[#allocation8 + $0x20] sm:$0xf]  ;;  %4749 = vmatpush.bf16.msrb.mxu0 %v8141_v27 }
0x18b7   : > { %4761 = vmatpush.bf16.msrb.mxu1 %v8157_v34 }
0x18bb   : > { %4762 = vmatpush.bf16.msrb.mxu1 %v8145_v53 }
0x191d   : > { %v4486_v58 = vpop.permute.xlu1 %4485 }
0x191e   : > { %v4496_v47 = vpop.permute.xlu0 %4495  ;;  %v11510_v25 = vadd.f32 %v4486_v58, %v4482_v32  ;;  %v8172_v32 = vld [vmem:[#allocation8 + $0x68] sm:$0xf]  ;;  %v8129_v58 = vor.u32 %v8572_v14, %v8128_v41  ;;  %v9707_v41 = vmov 1983009808  }
0x191f   : > { %v11512_v39 = vadd.f32 %v4496_v47, %v4492_v24  ;;  %v8173_v1 = vor.u32 %v8582_v35, %v8172_v32  ;;  %v8573_v24 = vld [vmem:[#allocation8 + $0x28] sm:$0xf0]  ;;  %v8133_v47 = vor.u32 %v8571_v63, %v8130_v48  ;;  %v4812_v14 = vunpack.c.l.s4 %v9707_v41 }
0x1920   : > { %9186 = vtanh.f32 %v11510_v25  ;;  %4750 = vmatpush.bf16.msrb.mxu0 %v8129_v58 }
0x1921   : > { %9188 = vtanh.f32 %v11512_v39  ;;  %4773 = vmatpush.bf16.msra.mxu2 %v8173_v1  ;;  %4763 = vmatpush.bf16.msrb.mxu1 %v8133_v47  ;;  %v11569_v47 = vunpack.c.0.s8 %v4812_v14 }
0x1925   : > { %4774 = vmatpush.bf16.msra.mxu2 %v8161_v19  ;;  %4764 = vmatpush.bf16.msrb.mxu1 %v8121_v11 }
0x1926   : > { %v9187_v46 = vpop.eup %9186 }
0x1927   : > { %v9189_v49 = vpop.eup %9188  ;;  %4501 = vrot.lane.b32.xlu0 %v9187_v46, %s9700_s20  ;;  %v8137_v46 = vor.u32 %v8573_v24, %v8136_v8 }
0x1928   : > { %4507 = vrot.lane.b32.xlu2 %v9189_v49, %s9700_s20  ;;  %v8116_v49 = vld [vmem:[#allocation8] sm:$0xf] }
0x1929   : > { %4775 = vmatpush.bf16.msra.mxu2 %v8149_v40  ;;  %v8117_v59 = vor.u32 %v8569_v57, %v8116_v49 }
0x192b   : > { %4751 = vmatpush.bf16.msrb.mxu0 %v8117_v59 }
0x192d   : > { %4776 = vmatpush.bf16.msra.mxu2 %v8137_v46 }
0x1931   : > { %4777 = vmatpush.bf16.msra.mxu2 %v8125_v33  ;;  %v9708_v33 = vmov 1934713408  }
0x1982   : > { %v4508_v36 = vpop.permute.xlu2 %4507 }
0x1983   : > { %v11519_v52 = vmul.f32 %v4508_v36, %v11506_v9  ;;  %v12444_v9 = vld [vmem:[#allocation41_spill] sm:$0xff]  ;;  %v4860_v36 = vunpack.c.l.s4 %v9708_v33 }
0x1984   : > { %v4537_v38 = vrot.slane %v12444_v9, 3 }
0x1985   : > { %v4519_v22 = vrot.slane %v11519_v52, 7 }
0x1987   : > { %v4542_v16 = vsel %vm2674_vm13, %v4519_v22, %v4522_v30 }
0x1988   : > { %v4543_v28 = vsel %vm2676_vm14, %v4542_v16, %v4525_v61 }
0x1989   : > { %v4544_v4 = vsel %vm2678_vm3, %v4543_v28, %v4528_v54 }
0x198a   : > { %v4545_v29 = vsel %vm2680_vm6, %v4544_v4, %v4531_v17 }
0x198b   : > { %v4546_v21 = vsel %vm2682_vm10, %v4545_v29, %v4534_v3  ;;  %vm4807_vm10 = vcmask 1047556  }
0x198c   : > { %v4547_v15 = vsel %vm2684_vm5, %v4546_v21, %v4537_v38  ;;  %vm5964_vm5 = vcmask 130048  }
0x198d   : > { %v4548_v32 = vsel %vm12446_vm7, %v4547_v15, %v4540_v10  ;;  %v11594_v10 = vunpack.c.0.s8 %v4860_v36 }
0x1999   : > { %v4502_v35 = vpop.permute.xlu0 %4501 }
0x199a   : > { %v11537_v12 = vmul.f32 %v4502_v35, %v11499_v62  ;;  %v4610_v62 = vperm.slane %v11550_v43, 0 }
0x199c   : > { %v4517_v51 = vsel %vm12447_vm8, %v11491_v55, %v11537_v12 }
0x199d   : > { %v11543_v1 = vsel %vm1091_vm0, %v4517_v51, %v4548_v32 }
0x199e   : > { %v4575_v5 = vpack.c.bf16 %v11543_v1, %v11543_v1 }
0x19a0   : > { %4752 = vmatmul.bf16.vlgmr.msrb.gmra.mxu0 %v4575_v5  ;;  %4765 = vmatmul.bf16.vlgmr.msrb.gmra.mxu1 %v4575_v5 }
0x19a1   : > { %4778 = vmatmul.bf16.vlgmr.msra.gmra.mxu2 %v4575_v5 }
0x1a1d   : > { %v4753_v2 = vpop.f32.mrf.mxu0  ;;  %v4766_v55 = vpop.f32.mrf.mxu1 }
0x1a1e   : > { %v4754_v20 = vadd.f32 %v4753_v2, %v4610_v62  ;;  %v11556_v45 = vadd.f32 %v4766_v55, %v4611_v44 }
0x1a20   : > { %v11554_v31 = vmul.f32 0.25, %v4754_v20  ;;  %v4951_v21 = vrot.slane %v11556_v45, 4 }
0x1a22   : > { %v8833_v34 = vpack.i.bf16 %v11554_v31, %v11556_v45  ;;  %v4809_v15 = vrot.slane %v11554_v31, 4 }
0x1a24   : > { %v11560_v19 = vpop.f32.mrf.mxu2  ;;  %8834 = vrot.lane.b32.xlu0 %v8833_v34, %s9701_s1  ;;  %8829 = vrot.lane.b32.xlu2 %v8833_v34, %s9702_s23 }
0x1a25   : > { %8824 = vrot.lane.b32.xlu1 %v8833_v34, %s9703_s6  ;;  %v4755_v13 = vpop.f32.mrf.mxu0  ;;  %v4768_v7 = vpop.f32.mrf.mxu1 }
0x1a2c   : > { %v4781_v0 = vpop.f32.mrf.mxu2  ;;  %8849 = vrot.lane.b32.xlu0 %v8833_v34, %s9704_s0  ;;  %8844 = vrot.lane.b32.xlu2 %v8833_v34, %s9705_s30 }
0x1a2d   : > { %8839 = vrot.lane.b32.xlu1 %v8833_v34, %s9706_s27 }
0x1a35   : > { %8854 = vrot.lane.b32.xlu1 %v8833_v34, %s9700_s20 }
0x1a7e   : > { %v8830_v6 = vpop.permute.xlu2 %8829 }
0x1a7f   : > { %v8832_v56 = vunpack.i.h.bf16 %v8830_v6  ;;  %v8831_v27 = vunpack.i.l.bf16 %v8830_v6 }
0x1a81   : > { %v4843_v63 = vrot.slane %v8832_v56, 4  ;;  %v4985_v48 = vrot.slane %v8831_v27, 4 }
0x1a86   : > { %v8845_v50 = vpop.permute.xlu2 %8844 }
0x1a87   : > { %v8847_v53 = vunpack.i.h.bf16 %v8845_v50  ;;  %v8846_v40 = vunpack.i.l.bf16 %v8845_v50 }
0x1a89   : > { %v4845_v8 = vrot.slane %v8847_v53, 4  ;;  %v4987_v24 = vrot.slane %v8846_v40, 4  ;;  %v4844_v23 = vsel %vm4807_vm10, %v4843_v63, %v8847_v53  ;;  %v4986_v59 = vsel %vm4807_vm10, %v4985_v48, %v8846_v40 }
0x1a8a   : > { %v11576_v16 = vperm.slane %v4844_v23, %v11569_v47  ;;  %v11579_v17 = vperm.slane %v4986_v59, %v11569_v47 }
0x1a8b   : > { %v4846_v30 = vsel %vm4807_vm10, %v8832_v56, %v4845_v8  ;;  %v4988_v22 = vsel %vm4807_vm10, %v8831_v27, %v4987_v24 }
0x1a8c   : > { %v11585_v4 = vperm.slane %v4846_v30, %v11569_v47  ;;  %v11588_v9 = vperm.slane %v4988_v22, %v11569_v47  ;;  %v4879_v32 = vrot.slane %v11576_v16, 4  ;;  %v5021_v35 = vrot.slane %v11579_v17, 4 }
0x1a8e   : > { %v4891_v34 = vrot.slane %v11585_v4, 4  ;;  %v5033_v13 = vrot.slane %v11588_v9, 4 }
0x1a96   : > { %v8835_v58 = vpop.permute.xlu0 %8834 }
0x1a97   : > { %v8837_v46 = vunpack.i.h.bf16 %v8835_v58  ;;  %v8836_v49 = vunpack.i.l.bf16 %v8835_v58  ;;  %v8825_v57 = vpop.permute.xlu1 %8824 }
0x1a98   : > { %v8827_v18 = vunpack.i.h.bf16 %v8825_v57  ;;  %v8826_v26 = vunpack.i.l.bf16 %v8825_v57 }
0x1a99   : > { %v4821_v60 = vrot.slane %v8837_v46, 4  ;;  %v4963_v11 = vrot.slane %v8836_v49, 4 }
0x1a9a   : > { %v4819_v61 = vrot.slane %v8827_v18, 4  ;;  %v4961_v54 = vrot.slane %v8826_v26, 4 }
0x1a9b   : > { %v4822_v28 = vsel %vm4807_vm10, %v8827_v18, %v4821_v60  ;;  %v4964_v3 = vsel %vm4807_vm10, %v8826_v26, %v4963_v11 }
0x1a9c   : > { %v4820_v42 = vsel %vm4807_vm10, %v4819_v61, %v8837_v46  ;;  %v4830_v38 = vperm.slane %v4822_v28, %v11569_v47  ;;  %v4962_v29 = vsel %vm4807_vm10, %v4961_v54, %v8836_v49  ;;  %v11602_v5 = vperm.slane %v4964_v3, %v11569_v47 }
0x1a9d   : > { %v4826_v51 = vperm.slane %v4820_v42, %v11569_v47  ;;  %v11605_v44 = vperm.slane %v4962_v29, %v11569_v47 }
0x1a9e   : > { %v11592_v37 = vpop.permute.xlu0 %8849  ;;  %v4867_v7 = vrot.slane %v4830_v38, 4  ;;  %v5009_v40 = vrot.slane %v11602_v5, 4 }
0x1a9f   : > { %v8840_v62 = vpop.permute.xlu1 %8839  ;;  %v8852_v2 = vunpack.i.h.bf16 %v11592_v37  ;;  %v8851_v0 = vunpack.i.l.bf16 %v11592_v37  ;;  %v4855_v53 = vrot.slane %v4826_v51, 4  ;;  %v4997_v63 = vrot.slane %v11605_v44, 4 }
0x1aa0   : > { %v8842_v55 = vunpack.i.h.bf16 %v8840_v62  ;;  %v8841_v20 = vunpack.i.l.bf16 %v8840_v62 }
0x1aa1   : > { %v4831_v48 = vrot.slane %v8852_v2, 4  ;;  %v4973_v23 = vrot.slane %v8851_v0, 4 }
0x1aa2   : > { %v4806_v6 = vrot.slane %v8842_v55, 4  ;;  %v4810_v50 = vsel %vm4807_vm10, %v8842_v55, %v4809_v15  ;;  %v4949_v56 = vrot.slane %v8841_v20, 4  ;;  %v4952_v27 = vsel %vm4807_vm10, %v8841_v20, %v4951_v21 }
0x1aa3   : > { %v4818_v41 = vperm.slane %v4810_v50, %v11569_v47  ;;  %v11616_v14 = vperm.slane %v4952_v27, %v11569_v47 }
0x1aa4   : > { %v4808_v8 = vsel %vm4807_vm10, %v4806_v6, %v11554_v31  ;;  %v4950_v24 = vsel %vm4807_vm10, %v4949_v56, %v11556_v45 }
0x1aa5   : > { %v4814_v58 = vperm.slane %v4808_v8, %v11569_v47  ;;  %v4868_v46 = vsel %vm4807_vm10, %v4867_v7, %v4818_v41  ;;  %v4869_v49 = vrot.slane %v4818_v41, 4  ;;  %v4956_v57 = vperm.slane %v4950_v24, %v11569_v47 }
0x1aa6   : > { %v4874_v59 = vperm.slane %v4868_v46, %v11594_v10  ;;  %v5011_v18 = vrot.slane %v11616_v14, 4  ;;  %v5010_v26 = vsel %vm4807_vm10, %v5009_v40, %v11616_v14 }
0x1aa7   : > { %v4857_v60 = vrot.slane %v4814_v58, 4  ;;  %v4856_v31 = vsel %vm4807_vm10, %v4855_v53, %v4814_v58  ;;  %v4870_v45 = vsel %vm4807_vm10, %v4830_v38, %v4869_v49  ;;  %v4999_v11 = vrot.slane %v4956_v57, 4  ;;  %v8855_v33 = vpop.permute.xlu1 %8854 }
0x1aa8   : > { %v4862_v36 = vperm.slane %v4856_v31, %v11594_v10  ;;  %v4878_v30 = vperm.slane %v4870_v45, %v11594_v10  ;;  %v4913_v22 = vrot.slane %v4874_v59, 4  ;;  %v8857_v61 = vunpack.i.h.bf16 %v8855_v33 }
0x1aa9   : > { %v4858_v54 = vsel %vm4807_vm10, %v4826_v51, %v4857_v60  ;;  %v8856_v28 = vunpack.i.l.bf16 %v8855_v33  ;;  %v4998_v42 = vsel %vm4807_vm10, %v4997_v63, %v4956_v57  ;;  %v11637_v3 = vperm.slane %v5010_v26, %v11594_v10 }
0x1aaa   : > { %v4866_v29 = vperm.slane %v4858_v54, %v11594_v10  ;;  %v4905_v37 = vrot.slane %v4862_v36, 4  ;;  %v4917_v38 = vrot.slane %v4878_v30, 4  ;;  %v4832_v21 = vsel %vm4807_vm10, %v4831_v48, %v8857_v61 }
0x1aab   : > { %v4833_v15 = vrot.slane %v8857_v61, 4  ;;  %v4838_v62 = vperm.slane %v4832_v21, %v11569_v47  ;;  %v4974_v55 = vsel %vm4807_vm10, %v4973_v23, %v8856_v28  ;;  %v4975_v20 = vrot.slane %v8856_v28, 4 }
0x1aac   : > { %v4909_v7 = vrot.slane %v4866_v29, 4  ;;  %v11644_v51 = vperm.slane %v4974_v55, %v11569_v47  ;;  %v5004_v6 = vperm.slane %v4998_v42, %v11594_v10  ;;  %v5055_v50 = vrot.slane %v11637_v3, 4 }
0x1aad   : > { %v4834_v56 = vsel %vm4807_vm10, %v8852_v2, %v4833_v15  ;;  %v4880_v27 = vsel %vm4807_vm10, %v4879_v32, %v4838_v62  ;;  %v4881_v53 = vrot.slane %v4838_v62, 4  ;;  %v4976_v40 = vsel %vm4807_vm10, %v8851_v0, %v4975_v20 }
0x1aae   : > { %v4842_v41 = vperm.slane %v4834_v56, %v11569_v47  ;;  %v4886_v63 = vperm.slane %v4880_v27, %v11594_v10  ;;  %v11654_v48 = vperm.slane %v4976_v40, %v11569_v47  ;;  %v5023_v8 = vrot.slane %v11644_v51, 4 }
0x1aaf   : > { %v4882_v24 = vsel %vm4807_vm10, %v11576_v16, %v4881_v53  ;;  %v5022_v32 = vsel %vm4807_vm10, %v5021_v35, %v11644_v51  ;;  %v5047_v2 = vrot.slane %v5004_v6, 4  ;;  %v5000_v0 = vsel %vm4807_vm10, %v11605_v44, %v4999_v11 }
0x1ab0   : > { %v4890_v58 = vperm.slane %v4882_v24, %v11594_v10  ;;  %v4892_v46 = vsel %vm4807_vm10, %v4891_v34, %v4842_v41  ;;  %v4893_v49 = vrot.slane %v4842_v41, 4  ;;  %v4903_v57 = vrot.slane %v4886_v63, 4 }
0x1ab1   : > { %v4898_v23 = vperm.slane %v4892_v46, %v11594_v10  ;;  %v4906_v16 = vsel %vm4807_vm10, %v4886_v63, %v4905_v37  ;;  %v5035_v26 = vrot.slane %v11654_v48, 4  ;;  %v5028_v35 = vperm.slane %v5022_v32, %v11594_v10 }
0x1ab2   : > { %v4894_v60 = vsel %vm4807_vm10, %v11585_v4, %v4893_v49  ;;  %v4907_v44 = vrot.slane %v4890_v58, 4  ;;  %v4904_v31 = vsel %vm4807_vm10, %v4903_v57, %v4862_v36  ;;  %v4910_v45 = vsel %vm4807_vm10, %v4890_v58, %v4909_v7 }
0x1ab3   : > { %v4902_v34 = vperm.slane %v4894_v60, %v11594_v10  ;;  %v4911_v11 = vrot.slane %v4898_v23, 4  ;;  %v4914_v33 = vsel %vm4807_vm10, %v4898_v23, %v4913_v22  ;;  %v4919_v61 = vpack.c.bf16 %v4904_v31, %v4904_v31 }
0x1ab4   : > { %v4908_v54 = vsel %vm4807_vm10, %v4907_v44, %v4866_v29  ;;  %v4920_v28 = vpack.c.bf16 %v4906_v16, %v4906_v16  ;;  %v4922_v42 = vpack.c.bf16 %v4910_v45, %v4910_v45  ;;  %v4924_v37 = vpack.c.bf16 %v4914_v33, %v4914_v33 }
0x1ab5   : > { %v4915_v21 = vrot.slane %v4902_v34, 4  ;;  %v4912_v15 = vsel %vm4807_vm10, %v4911_v11, %v4874_v59  ;;  %v4918_v4 = vsel %vm4807_vm10, %v4902_v34, %v4917_v38  ;;  %v4921_v62 = vpack.c.bf16 %v4908_v54, %v4908_v54 }
0x1ab6   : > { %v4923_v36 = vpack.c.bf16 %v4912_v15, %v4912_v15  ;;  %v4926_v55 = vpack.c.bf16 %v4918_v4, %v4918_v4  ;;  %v5240_v20 = vrot.slane %v4924_v37, 4  ;;  %v5045_v7 = vrot.slane %v5028_v35, 4 }
0x1ab7   : > { %v4916_v51 = vsel %vm4807_vm10, %v4915_v21, %v4878_v30  ;;  %v5048_v22 = vsel %vm4807_vm10, %v5028_v35, %v5047_v2  ;;  %v5034_v29 = vsel %vm4807_vm10, %v5033_v13, %v11654_v48  ;;  %v5008_v56 = vperm.slane %v5000_v0, %v11594_v10 }
0x1ab8   : > { %v4925_v27 = vpack.c.bf16 %v4916_v51, %v4916_v51  ;;  %v5211_v59 = vrot.slane %v4923_v36, 4  ;;  %v5241_v38 = vsel %vm4807_vm10, %v5240_v20, %v4920_v28  ;;  %v5246_v53 = vrot.slane %v4926_v55, 4 }
0x1ab9   : > { %v5245_v40 = vperm.slane %v5241_v38, %v11569_v47  ;;  %v5046_v41 = vsel %vm4807_vm10, %v5045_v7, %v5004_v6  ;;  %v5062_v63 = vpack.c.bf16 %v5048_v22, %v5048_v22  ;;  %v5040_v30 = vperm.slane %v5034_v29, %v11594_v10 }
0x1aba   : > { %v5213_v24 = vsel %vm4807_vm10, %v5211_v59, %v4919_v61  ;;  %v5218_v32 = vrot.slane %v4925_v27, 4  ;;  %v5247_v2 = vsel %vm4807_vm10, %v5246_v53, %v4922_v42  ;;  %v5061_v13 = vpack.c.bf16 %v5046_v41, %v5046_v41 }
0x1abb   : > { %v5217_v48 = vperm.slane %v5213_v24, %v11569_v47  ;;  %v5251_v0 = vperm.slane %v5247_v2, %v11569_v47  ;;  %v5254_v58 = vrot.slane %v5245_v40, 4  ;;  %v5053_v46 = vrot.slane %v5040_v30, 4 }
0x1abc   : > { %v5219_v49 = vsel %vm4807_vm10, %v5218_v32, %v4921_v62  ;;  %8858 = vxpose.binary.xlu2.c.b16.start.end [1/2] (short) (narrow) %v5062_v63, %v5061_v13, 16  ;;  %v5056_v6 = vsel %vm4807_vm10, %v5040_v30, %v5055_v50  ;;  %v5024_v57 = vsel %vm4807_vm10, %v11579_v17, %v5023_v8  ;;  %v5051_v23 = vrot.slane %v5008_v56, 4 }
0x1abd   : > { %v5223_v16 = vperm.slane %v5219_v49, %v11569_v47  ;;  %v5226_v35 = vrot.slane %v5217_v48, 4  ;;  %v5252_v60 = vrot.slane %v5251_v0, 4  ;;  %v5054_v44 = vsel %vm4807_vm10, %v5053_v46, %v11637_v3 }
0x1abe   : > { %v5065_v31 = vpack.c.bf16 %v5054_v44, %v5054_v44  ;;  %v5066_v45 = vpack.c.bf16 %v5056_v6, %v5056_v6  ;;  %v5032_v34 = vperm.slane %v5024_v57, %v11594_v10  ;;  %v5012_v50 = vsel %vm4807_vm10, %v11602_v5, %v5011_v18 }
0x1abf   : > { %v5020_v11 = vperm.slane %v5012_v50, %v11594_v10  ;;  %v5036_v17 = vsel %vm4807_vm10, %v11588_v9, %v5035_v26  ;;  %v5224_v8 = vrot.slane %v5223_v16, 4  ;;  %v5253_v33 = vsel %vm4807_vm10, %v5252_v60, %v5245_v40 }
0x1ac0   : > { %8864 = vxpose.binary.xlu1.c.b16.start.end [1/2] (short) (narrow) %v5066_v45, %v5065_v31, 16  ;;  %v5049_v61 = vrot.slane %v5032_v34, 4  ;;  %v5052_v3 = vsel %vm4807_vm10, %v5032_v34, %v5051_v23  ;;  %v5044_v54 = vperm.slane %v5036_v17, %v11594_v10  ;;  %v11718_v28 = vperm.slane %v5253_v33, %v11594_v10 }
0x1ac1   : > { %v5059_v14 = vrot.slane %v5020_v11, 4  ;;  %v5225_v5 = vsel %vm4807_vm10, %v5224_v8, %v5217_v48  ;;  %v5227_v18 = vsel %vm4807_vm10, %v5223_v16, %v5226_v35  ;;  %v5064_v15 = vpack.c.bf16 %v5052_v3, %v5052_v3 }
0x1ac2   : > { %v5050_v42 = vsel %vm4807_vm10, %v5049_v61, %v5008_v56  ;;  %v5057_v9 = vrot.slane %v5044_v54, 4  ;;  %v11724_v26 = vperm.slane %v5225_v5, %v11594_v10  ;;  %v5264_v37 = vrot.slane %v11718_v28, 4 }
0x1ac3   : > { %v5063_v21 = vpack.c.bf16 %v5050_v42, %v5050_v42  ;;  %v11728_v4 = vperm.slane %v5227_v18, %v11594_v10  ;;  %v5255_v62 = vsel %vm4807_vm10, %v5251_v0, %v5254_v58  ;;  %v5060_v36 = vsel %vm4807_vm10, %v5044_v54, %v5059_v14 }
0x1ac4   : > { %v5270_v55 = vpack.i.b16 %v11718_v28, %v11724_v26  ;;  %v5236_v20 = vrot.slane %v11724_v26, 4  ;;  %v5058_v7 = vsel %vm4807_vm10, %v5057_v9, %v5020_v11  ;;  %v11737_v51 = vsel %vm4807_vm10, 0, %v5264_v37 }
0x1ac5   : > { %8861 = vxpose.binary.xlu0.c.b16.start.end [1/2] (short) (narrow) %v5064_v15, %v5063_v21, 16  ;;  %v11740_v22 = vperm.slane %v5255_v62, %v11594_v10  ;;  %v5271_v29 = vshrl.u32 %v11724_v26, 16  ;;  %v5278_v27 = vshrl.u32 %v11737_v51, 16  ;;  %v5272_v59 = vshrl.u32 %v11718_v28, 16 }
0x1ac6   : > { %v11744_v56 = vsel %vm4807_vm10, 0, %v5236_v20  ;;  %v5238_v38 = vrot.slane %v11728_v4, 4  ;;  %v5283_v32 = vshrl.u32 %v11728_v4, 16  ;;  %v5068_v13 = vpack.c.bf16 %v5060_v36, %v5060_v36 }
0x1ac7   : > { %v5276_v53 = vpack.i.b16 %v11737_v51, %v11744_v56  ;;  %v5282_v40 = vpack.i.b16 %v11740_v22, %v11728_v4  ;;  %v5277_v41 = vshrl.u32 %v11744_v56, 16  ;;  %v5266_v63 = vrot.slane %v11740_v22, 4 }
0x1ac8   : > { %v11755_v30 = vpack.i.b16 %v5272_v59, %v5271_v29  ;;  %v11758_v24 = vsel %vm4807_vm10, 0, %v5238_v38  ;;  %v5284_v2 = vshrl.u32 %v11740_v22, 16  ;;  %v5067_v46 = vpack.c.bf16 %v5058_v7, %v5058_v7 }
0x1ac9   : > { %v11762_v48 = vpack.i.b16 %v5278_v27, %v5277_v41  ;;  %v11765_v0 = vsel %vm4807_vm10, 0, %v5266_v63  ;;  %v5289_v58 = vshrl.u32 %v11758_v24, 16 }
0x1aca   : > { %v5288_v49 = vpack.i.b16 %v11765_v0, %v11758_v24  ;;  %v5290_v6 = vshrl.u32 %v11765_v0, 16  ;;  %v11771_v57 = vpack.i.b16 %v5284_v2, %v5283_v32 }
0x1acc   : > { %8867 = vxpose.binary.xlu2.c.b16.start.end [1/2] (short) (narrow) %v5068_v13, %v5067_v46, 16  ;;  %v11773_v23 = vpack.i.b16 %v5290_v6, %v5289_v58 }
0x1b5d   : > { %v8859_v16 = vpop.trf.xlu2 }
0x1b5e   : > { %v5424_v45 = vshrl.u32 %v8859_v16, 16 }
0x1b65   : > { %v8860_v35 = vpop.trf.xlu2 }
0x1b66   : > { %v5425_v31 = vshrl.u32 %v8860_v35, 16  ;;  %v5422_v34 = vpack.i.b16 %v8860_v35, %v8859_v16 }
0x1b68   : > { %v5426_v11 = vpack.i.b16 %v5425_v31, %v5424_v45  ;;  %v5454_v8 = vrot.slane %v5422_v34, 4 }
0x1b6a   : > { %v5510_v42 = vrot.slane %v5426_v11, 4 }
0x1b6c   : > { %v8865_v60 = vpop.trf.xlu1 }
0x1b6d   : > { %v8868_v44 = vpop.trf.xlu2  ;;  %v5440_v33 = vshrl.u32 %v8865_v60, 16 }
0x1b6e   : > { %v5448_v14 = vshrl.u32 %v8868_v44, 16 }
0x1b71   : > { %v8862_v50 = vpop.trf.xlu0 }
0x1b72   : > { %v5432_v41 = vshrl.u32 %v8862_v50, 16 }
0x1b74   : > { %v8866_v17 = vpop.trf.xlu1 }
0x1b75   : > { %v5438_v61 = vpack.i.b16 %v8866_v17, %v8865_v60  ;;  %v5441_v3 = vshrl.u32 %v8866_v17, 16  ;;  %v8869_v54 = vpop.trf.xlu2 }
0x1b76   : > { %v5446_v5 = vpack.i.b16 %v8869_v54, %v8868_v44  ;;  %v5449_v18 = vshrl.u32 %v8869_v54, 16 }
0x1b77   : > { %v5442_v9 = vpack.i.b16 %v5441_v3, %v5440_v33  ;;  %v5452_v37 = vrot.slane %v5438_v61, 4  ;;  %v5455_v21 = vsel %vm4807_vm10, %v5438_v61, %v5454_v8 }
0x1b78   : > { %v5450_v15 = vpack.i.b16 %v5449_v18, %v5448_v14  ;;  %v5464_v62 = vrot.slane %v5446_v5, 4  ;;  %v5463_v20 = vperm.slane %v5455_v21, %v11569_v47 }
0x1b79   : > { %v5453_v36 = vsel %vm4807_vm10, %v5452_v37, %v5422_v34  ;;  %v5508_v7 = vrot.slane %v5442_v9, 4  ;;  %v5511_v29 = vsel %vm4807_vm10, %v5442_v9, %v5510_v42  ;;  %v8863_v27 = vpop.trf.xlu0 }
0x1b7a   : > { %v5459_v59 = vperm.slane %v5453_v36, %v11569_v47  ;;  %v5430_v38 = vpack.i.b16 %v8863_v27, %v8862_v50  ;;  %v5433_v32 = vshrl.u32 %v8863_v27, 16  ;;  %v5520_v2 = vrot.slane %v5450_v15, 4 }
0x1b7b   : > { %v5509_v63 = vsel %vm4807_vm10, %v5508_v7, %v5426_v11  ;;  %v5519_v58 = vperm.slane %v5511_v29, %v11569_v47  ;;  %v5490_v16 = vrot.slane %v5463_v20, 4 }
0x1b7c   : > { %v5515_v13 = vperm.slane %v5509_v63, %v11569_v47  ;;  %v5466_v46 = vrot.slane %v5430_v38, 4  ;;  %v5465_v6 = vsel %vm4807_vm10, %v5464_v62, %v5430_v38  ;;  %v5434_v35 = vpack.i.b16 %v5433_v32, %v5432_v41 }
0x1b7d   : > { %v5471_v60 = vperm.slane %v5465_v6, %v11569_v47  ;;  %v5478_v44 = vrot.slane %v5459_v59, 4  ;;  %v5546_v8 = vrot.slane %v5519_v58, 4 }
0x1b7e   : > { %v5467_v31 = vsel %vm4807_vm10, %v5446_v5, %v5466_v46  ;;  %v5534_v45 = vrot.slane %v5515_v13, 4  ;;  %v5522_v34 = vrot.slane %v5434_v35, 4  ;;  %v5521_v11 = vsel %vm4807_vm10, %v5520_v2, %v5434_v35 }
0x1b7f   : > { %v5475_v50 = vperm.slane %v5467_v31, %v11569_v47  ;;  %v5479_v17 = vsel %vm4807_vm10, %v5471_v60, %v5478_v44  ;;  %v5527_v61 = vperm.slane %v5521_v11, %v11569_v47  ;;  %v5476_v27 = vrot.slane %v5471_v60, 4 }
0x1b80   : > { %v5487_v33 = vperm.slane %v5479_v17, %v11594_v10  ;;  %v5523_v3 = vsel %vm4807_vm10, %v5450_v15, %v5522_v34 }
0x1b81   : > { %v5491_v54 = vsel %vm4807_vm10, %v5475_v50, %v5490_v16  ;;  %v5531_v14 = vperm.slane %v5523_v3, %v11569_v47  ;;  %v5535_v18 = vsel %vm4807_vm10, %v5527_v61, %v5534_v45  ;;  %v5532_v38 = vrot.slane %v5527_v61, 4 }
0x1b82   : > { %v5499_v5 = vperm.slane %v5491_v54, %v11594_v10  ;;  %v5502_v42 = vrot.slane %v5487_v33, 4  ;;  %v5543_v9 = vperm.slane %v5535_v18, %v11594_v10  ;;  %v5488_v32 = vrot.slane %v5475_v50, 4 }
0x1b83   : > { %v5547_v37 = vsel %vm4807_vm10, %v5531_v14, %v5546_v8  ;;  %v5544_v2 = vrot.slane %v5531_v14, 4  ;;  %v5477_v46 = vsel %vm4807_vm10, %v5476_v27, %v5459_v59  ;;  %v5533_v6 = vsel %vm4807_vm10, %v5532_v38, %v5515_v13 }
0x1b84   : > { %v5555_v21 = vperm.slane %v5547_v37, %v11594_v10  ;;  %v5506_v62 = vrot.slane %v5499_v5, 4  ;;  %v5558_v36 = vrot.slane %v5543_v9, 4  ;;  %v5503_v15 = vsel %vm4807_vm10, 0, %v5502_v42 }
0x1b85   : > { %v5489_v16 = vsel %vm4807_vm10, %v5488_v32, %v5463_v20  ;;  %v5545_v35 = vsel %vm4807_vm10, %v5544_v2, %v5519_v58  ;;  %v5483_v44 = vperm.slane %v5477_v46, %v11594_v10  ;;  %v5539_v60 = vperm.slane %v5533_v6, %v11594_v10 }
0x1b86   : > { %8870 = vxpose.binary.xlu1.c.b16.start.end [1/2] (short) (narrow) %v5555_v21, %v5499_v5, 16  ;;  %v5562_v7 = vrot.slane %v5555_v21, 4  ;;  %v5559_v29 = vsel %vm4807_vm10, 0, %v5558_v36  ;;  %v5507_v41 = vsel %vm4807_vm10, 0, %v5506_v62  ;;  %v5495_v31 = vperm.slane %v5489_v16, %v11594_v10 }
0x1b87   : > { %8876 = vxpose.binary.xlu2.c.b16.start.end [1/2] (short) (narrow) %v5559_v29, %v5503_v15, 16  ;;  %v5551_v45 = vperm.slane %v5545_v35, %v11594_v10  ;;  %v5500_v34 = vrot.slane %v5483_v44, 4  ;;  %v5556_v50 = vrot.slane %v5539_v60, 4  ;;  %v4612_v8 = vperm.slane %v11550_v43, 2 }
0x1b88   : > { %v5563_v63 = vsel %vm4807_vm10, 0, %v5562_v7  ;;  %v5504_v11 = vrot.slane %v5495_v31, 4 }
0x1b89   : > { %8873 = vxpose.binary.xlu0.c.b16.start.end [1/2] (short) (narrow) %v5563_v63, %v5507_v41, 16  ;;  %v5560_v17 = vrot.slane %v5551_v45, 4  ;;  %v5501_v59 = vsel %vm4807_vm10, 0, %v5500_v34  ;;  %v5557_v13 = vsel %vm4807_vm10, 0, %v5556_v50  ;;  %v11817_v61 = vadd.f32 %v11560_v19, %v4612_v8 }
0x1b8a   : > { %v5505_v20 = vsel %vm4807_vm10, 0, %v5504_v11 }
0x1b8b   : > { %v5561_v58 = vsel %vm4807_vm10, 0, %v5560_v17 }
0x1b96   : > { %8885 = vxpose.binary.xlu1.c.b16.start.end [1/2] (short) (narrow) %v5551_v45, %v5495_v31, 16 }
0x1b97   : > { %8888 = vxpose.binary.xlu2.c.b16.start.end [1/2] (short) (narrow) %v5557_v13, %v5501_v59, 16 }
0x1b99   : > { %8879 = vxpose.binary.xlu0.c.b16.start.end [1/2] (short) (narrow) %v5561_v58, %v5505_v20, 16 }
0x1ba7   : > { %8891 = vxpose.binary.xlu2.c.b16.start.end [1/2] (short) (narrow) %v5539_v60, %v5483_v44, 16 }
0x1ba9   : > { %8882 = vxpose.binary.xlu0.c.b16.start.end [1/2] (short) (narrow) %v5543_v9, %v5487_v33, 16 }
0x1bf0   : > { %5079 = vrot.lane.b32.xlu1 %v11817_v61, %s9700_s20 }
0x1bf8   : > { %5082 = vrot.lane.b32.xlu1 %v11817_v61, %s9705_s30 }
0x1c10   : > { %5070 = vrot.lane.b32.xlu2 %v11817_v61, %s9701_s1 }
0x1c17   : > { %5073 = vrot.lane.b32.xlu0 %v11817_v61, %s9706_s27 }
0x1c28   : > { %v8877_v3 = vpop.trf.xlu2 }
0x1c29   : > { %v5826_v15 = vrot.slane %v8877_v3, 4 }
0x1c30   : > { %v8878_v14 = vpop.trf.xlu2 }
0x1c31   : > { %v5882_v6 = vrot.slane %v8878_v14, 4 }
0x1c32   : > { %v8871_v54 = vpop.trf.xlu1 }
0x1c33   : > { %v5832_v62 = vrot.slane %v8871_v54, 4 }
0x1c35   : > { %v8874_v33 = vpop.trf.xlu0 }
0x1c36   : > { %v5838_v37 = vrot.slane %v8874_v33, 4 }
0x1c38   : > { %v8889_v19 = vpop.trf.xlu2 }
0x1c39   : > { %v5827_v38 = vsel %vm4807_vm10, %v5826_v15, %v8889_v19 }
0x1c3a   : > { %v8872_v43 = vpop.trf.xlu1  ;;  %v5831_v16 = vperm.slane %v5827_v38, %v11569_v47 }
0x1c3b   : > { %v5888_v36 = vrot.slane %v8872_v43, 4 }
0x1c3c   : > { %v5844_v17 = vrot.slane %v5831_v16, 4 }
0x1c3d   : > { %v8875_v5 = vpop.trf.xlu0 }
0x1c3e   : > { %v5894_v29 = vrot.slane %v8875_v5, 4 }
0x1c40   : > { %v8890_v9 = vpop.trf.xlu2 }
0x1c41   : > { %v5883_v50 = vsel %vm4807_vm10, %v5882_v6, %v8890_v9 }
0x1c42   : > { %v8886_v42 = vpop.trf.xlu1  ;;  %v5887_v3 = vperm.slane %v5883_v50, %v11569_v47 }
0x1c43   : > { %v5833_v32 = vsel %vm4807_vm10, %v5832_v62, %v8886_v42 }
0x1c44   : > { %v5837_v60 = vperm.slane %v5833_v32, %v11569_v47  ;;  %v5900_v62 = vrot.slane %v5887_v3, 4 }
0x1c45   : > { %v8880_v18 = vpop.trf.xlu0 }
0x1c46   : > { %v5839_v7 = vsel %vm4807_vm10, %v5838_v37, %v8880_v18  ;;  %v5858_v20 = vrot.slane %v5837_v60, 4 }
0x1c47   : > { %v5843_v41 = vperm.slane %v5839_v7, %v11569_v47 }
0x1c48   : > { %v8892_v46 = vpop.trf.xlu2 }
0x1c49   : > { %v5856_v31 = vrot.slane %v5843_v41, 4  ;;  %v5859_v9 = vsel %vm4807_vm10, %v5843_v41, %v5858_v20 }
0x1c4a   : > { %v8887_v27 = vpop.trf.xlu1 }
0x1c4b   : > { %v5889_v2 = vsel %vm4807_vm10, %v5888_v36, %v8887_v27  ;;  %v5857_v58 = vsel %vm4807_vm10, %v5856_v31, %v5837_v60  ;;  %v5867_v27 = vperm.slane %v5859_v9, %v11594_v10 }
0x1c4c   : > { %v5893_v45 = vperm.slane %v5889_v2, %v11569_v47  ;;  %v5863_v43 = vperm.slane %v5857_v58, %v11594_v10 }
0x1c4d   : > { %v8881_v21 = vpop.trf.xlu0  ;;  %v5872_v60 = vrot.slane %v5867_v27, 4 }
0x1c4e   : > { %v5895_v63 = vsel %vm4807_vm10, %v5894_v29, %v8881_v21  ;;  %v5914_v8 = vrot.slane %v5893_v45, 4  ;;  %v5868_v38 = vrot.slane %v5863_v43, 4 }
0x1c4f   : > { %v5899_v35 = vperm.slane %v5895_v63, %v11569_v47 }
0x1c50   : > { %v8893_v42 = vpop.trf.xlu2 }
0x1c51   : > { %v5912_v59 = vrot.slane %v5899_v35, 4  ;;  %v5915_v37 = vsel %vm4807_vm10, %v5899_v35, %v5914_v8 }
0x1c52   : > { %v5923_v63 = vperm.slane %v5915_v37, %v11594_v10 }
0x1c53   : > { %v5913_v5 = vsel %vm4807_vm10, %v5912_v59, %v5893_v45 }
0x1c54   : > { %v5919_v36 = vperm.slane %v5913_v5, %v11594_v10  ;;  %v5928_v31 = vrot.slane %v5923_v63, 4 }
0x1c55   : > { %v8883_v44 = vpop.trf.xlu0 }
0x1c56   : > { %v5820_v34 = vrot.slane %v8883_v44, 4  ;;  %v5924_v6 = vrot.slane %v5919_v36, 4 }
0x1c58   : > { %v5821_v11 = vsel %vm4807_vm10, %v5820_v34, %v8892_v46 }
0x1c59   : > { %v5825_v13 = vperm.slane %v5821_v11, %v11569_v47 }
0x1c5b   : > { %v5845_v54 = vsel %vm4807_vm10, %v5844_v17, %v5825_v13  ;;  %v5846_v33 = vrot.slane %v5825_v13, 4 }
0x1c5c   : > { %v5851_v14 = vperm.slane %v5845_v54, %v11594_v10 }
0x1c5d   : > { %v5847_v19 = vsel %vm4807_vm10, %v5831_v16, %v5846_v33  ;;  %v8884_v18 = vpop.trf.xlu0 }
0x1c5e   : > { %v5876_v21 = vrot.slane %v8884_v18, 4  ;;  %v5855_v7 = vperm.slane %v5847_v19, %v11594_v10  ;;  %v5870_v15 = vrot.slane %v5851_v14, 4  ;;  %v5869_v46 = vsel %vm4807_vm10, %v5868_v38, %v5851_v14 }
0x1c5f   : > { %v5936_v17 = vshrl.u32 %v5869_v46, 16 }
0x1c60   : > { %v5877_v29 = vsel %vm4807_vm10, %v5876_v21, %v8893_v42  ;;  %v5874_v16 = vrot.slane %v5855_v7, 4  ;;  %v5871_v44 = vsel %vm4807_vm10, %v5863_v43, %v5870_v15  ;;  %v5873_v20 = vsel %vm4807_vm10, %v5872_v60, %v5855_v7 }
0x1c61   : > { %v5881_v32 = vperm.slane %v5877_v29, %v11569_v47  ;;  %v5944_v58 = vshrl.u32 %v5871_v44, 16  ;;  %v5952_v18 = vshrl.u32 %v5873_v20, 16 }
0x1c62   : > { %v5875_v14 = vsel %vm4807_vm10, %v5867_v27, %v5874_v16 }
0x1c63   : > { %v5901_v41 = vsel %vm4807_vm10, %v5900_v62, %v5881_v32  ;;  %v5902_v2 = vrot.slane %v5881_v32, 4 }
0x1c64   : > { %v5907_v35 = vperm.slane %v5901_v41, %v11594_v10 }
0x1c65   : > { %v5903_v45 = vsel %vm4807_vm10, %v5887_v3, %v5902_v2 }
0x1c66   : > { %v5911_v34 = vperm.slane %v5903_v45, %v11594_v10  ;;  %v5926_v50 = vrot.slane %v5907_v35, 4  ;;  %v5925_v11 = vsel %vm4807_vm10, %v5924_v6, %v5907_v35  ;;  %v11911_v6 = vpop.permute.xlu1 %5079 }
0x1c67   : > { %v5934_v59 = vpack.i.b16 %v5925_v11, %v5869_v46  ;;  %v5937_v13 = vshrl.u32 %v5925_v11, 16 }
0x1c68   : > { %v5930_v8 = vrot.slane %v5911_v34, 4  ;;  %v5927_v54 = vsel %vm4807_vm10, %v5919_v36, %v5926_v50  ;;  %v5929_v33 = vsel %vm4807_vm10, %v5928_v31, %v5911_v34  ;;  %v5960_v36 = vshrl.u32 %v5875_v14, 16 }
0x1c69   : > { %5975 = vmatpush.bf16.msra.mxu3 %v5934_v59  ;;  %v5938_v3 = vpack.i.b16 %v5937_v13, %v5936_v17  ;;  %v5942_v43 = vpack.i.b16 %v5927_v54, %v5871_v44  ;;  %v5950_v5 = vpack.i.b16 %v5929_v33, %v5873_v20  ;;  %v5945_v19 = vshrl.u32 %v5927_v54, 16 }
0x1c6a   : > { %v5953_v42 = vshrl.u32 %v5929_v33, 16  ;;  %v5931_v9 = vsel %vm4807_vm10, %v5923_v63, %v5930_v8  ;;  %v5071_v16 = vpop.permute.xlu2 %5070 }
0x1c6b   : > { %6007 = vmatpush.bf16.msra.mxu0 %v5942_v43  ;;  %v5946_v37 = vpack.i.b16 %v5945_v19, %v5944_v58  ;;  %v5958_v21 = vpack.i.b16 %v5931_v9, %v5875_v14  ;;  %6039 = vmatpush.bf16.msrb.mxu2 %v5950_v5  ;;  %v5961_v7 = vshrl.u32 %v5931_v9, 16 }
0x1c6c   : > { %8210 = vmatmul.msk.bf16.vlgmr.msra.gmra.mxu3 %vm5964_vm5, %v5270_v55  ;;  %v5954_v62 = vpack.i.b16 %v5953_v42, %v5952_v18 }
0x1c6d   : > { %5991 = vmatpush.bf16.msrb.mxu3 %v5938_v3  ;;  %6023 = vmatpush.bf16.msra.mxu1 %v5946_v37  ;;  %v5962_v15 = vpack.i.b16 %v5961_v7, %v5960_v36 }
0x1c6e   : > { %8212 = vmatmul.msk.bf16.vlgmr.msra.gmra.mxu0 %vm5964_vm5, %v5276_v53  ;;  %8214 = vmatmul.msk.bf16.vlgmr.msrb.gmra.mxu2 %vm5964_vm5, %v5282_v40  ;;  %v11913_v35 = vpop.permute.xlu1 %5082 }
0x1c6f   : > { %6071 = vmatpush.bf16.msrb.mxu0 %v5958_v21 }
0x1c70   : > { %8213 = vmatmul.msk.bf16.vlgmr.msra.gmra.mxu1 %vm5964_vm5, %v11762_v48 }
0x1c71   : > { %6055 = vmatpush.bf16.msra.mxu3 %v5954_v62  ;;  %6087 = vmatpush.bf16.msrb.mxu1 %v5962_v15 }
0x1c7c   : > { %8211 = vmatmul.msk.bf16.vlgmr.msrb.gmra.mxu3 %vm5964_vm5, %v11755_v30 }
0x1c7e   : > { %8216 = vmatmul.msk.bf16.vlgmr.msrb.gmra.mxu0 %vm5964_vm5, %v5288_v49 }
0x1c80   : > { %8217 = vmatmul.msk.bf16.vlgmr.msrb.gmra.mxu1 %vm5964_vm5, %v11773_v23 }
0x1c89   : > { %v5074_v44 = vpop.permute.xlu0 %5073 }
0x1c8c   : > { %8215 = vmatmul.msk.bf16.vlgmr.msra.gmra.mxu3 %vm5964_vm5, %v11771_v57 }
0x1ceb   : > { %v6009_v28 = vpop.f32.mrf.mxu0 }
0x1cec   : > { %v6100_v26 = vsel %vm6093_vm2, %v6009_v28, -inf }
0x1ced   : > { %6101 = vmax.xlane.f32.xlu2 %v6100_v26  ;;  %v11892_v4 = vpop.f32.mrf.mxu1 }
0x1cee   : > { %v6103_v51 = vsel %vm6093_vm2, %v11892_v4, -inf }
0x1cef   : > { %v5977_v55 = vpop.f32.mrf.mxu3  ;;  %6104 = vmax.xlane.f32.xlu1 %v6103_v51 }
0x1cf0   : > { %v6094_v22 = vsel %vm6093_vm2, %v5977_v55, -inf }
0x1cf1   : > { %6095 = vmax.xlane.f32.xlu0 %v6094_v22  ;;  %v6041_v56 = vpop.f32.mrf.mxu2 }
0x1cf2   : > { %v6106_v24 = vsel %vm6093_vm2, %v6041_v56, -inf }
0x1cf3   : > { %v6011_v53 = vpop.f32.mrf.mxu0 }
0x1cf4   : > { %v5105_v53 = vrot.slane %v5071_v16, 4 }
0x1cf5   : > { %v6027_v40 = vpop.f32.mrf.mxu1 }
0x1cf6   : > { %v5091_v40 = vrot.slane %v5074_v44, 4 }
0x1cf7   : > { %v5979_v30 = vpop.f32.mrf.mxu3  ;;  %6107 = vmax.xlane.f32.xlu1 %v6106_v24 }
0x1cf9   : > { %v6043_v48 = vpop.f32.mrf.mxu2 }
0x1cfb   : > { %v11898_v0 = vpop.f32.mrf.mxu0 }
0x1cfc   : > { %v6112_v29 = vsel %vm6093_vm2, %v11898_v0, -inf }
0x1cfd   : > { %v6089_v49 = vpop.f32.mrf.mxu1 }
0x1cfe   : > { %v6115_v23 = vsel %vm6093_vm2, %v6089_v49, -inf }
0x1cff   : > { %v5993_v57 = vpop.f32.mrf.mxu3  ;;  %6116 = vmax.xlane.f32.xlu0 %v6115_v23  ;;  %6113 = vmax.xlane.f32.xlu1 %v6112_v29  ;;  %v5092_v23 = vsel %vm4807_vm10, %v5091_v40, %v11817_v61 }
0x1d00   : > { %v6097_v32 = vsel %vm6093_vm2, %v5993_v57, -inf }
0x1d03   : > { %v6075_v27 = vpop.f32.mrf.mxu0 }
0x1d05   : > { %5076 = vrot.lane.b32.xlu2 %v11817_v61, %s9703_s6  ;;  %v6091_v38 = vpop.f32.mrf.mxu1 }
0x1d07   : > { %v5995_v63 = vpop.f32.mrf.mxu3  ;;  %6098 = vmax.xlane.f32.xlu1 %v6097_v32 }
0x1d0f   : > { %v6057_v41 = vpop.f32.mrf.mxu3 }
0x1d10   : > { %v6109_v2 = vsel %vm6093_vm2, %v6057_v41, -inf }
0x1d11   : > { %6110 = vmax.xlane.f32.xlu0 %v6109_v2 }
0x1d17   : > { %v6059_v46 = vpop.f32.mrf.mxu3 }
0x1d20   : > { %5088 = vrot.lane.b32.xlu1 %v11817_v61, %s9702_s23 }
0x1d25   : > { %5085 = vrot.lane.b32.xlu0 %v11817_v61, %s9704_s0 }
0x1d60   : > { %v6102_v60 = vpop.xlane.xlu2 %6101 }
0x1d61   : > { %v6120_v31 = vsub.f32 %v6009_v28, %v6102_v60 }
0x1d62   : > { %v6105_v34 = vpop.xlane.xlu1 %6104 }
0x1d63   : > { %v6130_v45 = vmul.f32 1.442695, %v6120_v31  ;;  %v6121_v21 = vsub.f32 %v11892_v4, %v6105_v34 }
0x1d64   : > { %v6096_v50 = vpop.xlane.xlu0 %6095 }
0x1d65   : > { %9190 = vpow2.f32 %v6130_v45  ;;  %v6118_v11 = vsub.f32 %v5977_v55, %v6096_v50  ;;  %v6132_v7 = vmul.f32 1.442695, %v6121_v21 }
0x1d67   : > { %v6126_v17 = vmul.f32 1.442695, %v6118_v11 }
0x1d68   : > { %v5077_v15 = vpop.permute.xlu2 %5076 }
0x1d69   : > { %9192 = vpow2.f32 %v6126_v17  ;;  %v5103_v22 = vrot.slane %v5077_v15, 4  ;;  %v5106_v30 = vsel %vm4807_vm10, %v5077_v15, %v5105_v53 }
0x1d6a   : > { %v6108_v13 = vpop.xlane.xlu1 %6107 }
0x1d6b   : > { %v11915_v59 = vpop.eup %9190  ;;  %v6122_v20 = vsub.f32 %v6041_v56, %v6108_v13  ;;  %v5104_v48 = vsel %vm4807_vm10, %v5103_v22, %v5071_v16  ;;  %v5117_v13 = vrot.slane %v11911_v6, 4 }
0x1d6c   : > { %v6148_v58 = vsel %vm6093_vm2, %v11915_v59, 0.0  ;;  %v5110_v27 = vperm.slane %v5104_v48, %v11569_v47 }
0x1d6d   : > { %v6134_v8 = vmul.f32 1.442695, %v6122_v20  ;;  %6149 = vadd.xlane.f32.xlu1 %v6148_v58 }
0x1d6e   : > { %v5139_v16 = vrot.slane %v5110_v27, 4 }
0x1d6f   : > { %v11919_v54 = vpop.eup %9192  ;;  %9194 = vpow2.f32 %v6134_v8 }
0x1d70   : > { %v6142_v33 = vsel %vm6093_vm2, %v11919_v54, 0.0 }
0x1d71   : > { %6143 = vadd.xlane.f32.xlu0 %v6142_v33 }
0x1d72   : > { %v6117_v14 = vpop.xlane.xlu0 %6116  ;;  %v6114_v3 = vpop.xlane.xlu1 %6113 }
0x1d73   : > { %v6125_v43 = vsub.f32 %v6089_v49, %v6117_v14  ;;  %v6124_v51 = vsub.f32 %v11898_v0, %v6114_v3  ;;  %v5114_v0 = vperm.slane %v5106_v30, %v11569_v47 }
0x1d75   : > { %v11923_v5 = vpop.eup %9194  ;;  %v6140_v19 = vmul.f32 1.442695, %v6125_v43  ;;  %v6138_v24 = vmul.f32 1.442695, %v6124_v51  ;;  %v5151_v46 = vrot.slane %v5114_v0, 4 }
0x1d76   : > { %v6154_v18 = vsel %vm6093_vm2, %v11923_v5, 0.0 }
0x1d77   : > { %9196 = vpow2.f32 %v6140_v19 }
0x1d79   : > { %6155 = vadd.xlane.f32.xlu0 %v6154_v18 }
0x1d7a   : > { %v6099_v42 = vpop.xlane.xlu1 %6098 }
0x1d7b   : > { %v6119_v9 = vsub.f32 %v5993_v57, %v6099_v42  ;;  %v5093_v57 = vrot.slane %v11817_v61, 4  ;;  %v5129_v61 = vrot.slane %v11913_v35, 4 }
0x1d7d   : > { %v11927_v37 = vpop.eup %9196  ;;  %v6128_v62 = vmul.f32 1.442695, %v6119_v9  ;;  %v5094_v29 = vsel %vm4807_vm10, %v5074_v44, %v5093_v57 }
0x1d7e   : > { %v6163_v36 = vsel %vm6093_vm2, %v11927_v37, 0.0  ;;  %v5102_v2 = vperm.slane %v5094_v29, %v11569_v47 }
0x1d7f   : > { %9198 = vpow2.f32 %v6128_v62 }
0x1d80   : > { %9200 = vpow2.f32 %v6132_v7  ;;  %v5153_v50 = vrot.slane %v5102_v2, 4  ;;  %v5152_v11 = vsel %vm4807_vm10, %v5151_v46, %v5102_v2 }
0x1d81   : > { %6164 = vadd.xlane.f32.xlu0 %v6163_v36  ;;  %v5158_v19 = vperm.slane %v5152_v11, %v11594_v10 }
0x1d82   : > { %v5154_v33 = vsel %vm4807_vm10, %v5114_v0, %v5153_v50 }
0x1d83   : > { %v5162_v36 = vperm.slane %v5154_v33, %v11594_v10  ;;  %v5197_v22 = vrot.slane %v5158_v19, 4 }
0x1d84   : > { %v6111_v28 = vpop.xlane.xlu0 %6110 }
0x1d85   : > { %v6123_v26 = vsub.f32 %v6057_v41, %v6111_v28  ;;  %v11932_v55 = vpop.eup %9198  ;;  %v5098_v41 = vperm.slane %v5092_v23, %v11569_v47  ;;  %v5201_v23 = vrot.slane %v5162_v36, 4 }
0x1d86   : > { %v6145_v4 = vsel %vm6093_vm2, %v11932_v55, 0.0  ;;  %v11939_v49 = vpop.eup %9200 }
0x1d87   : > { %v6136_v56 = vmul.f32 1.442695, %v6123_v26  ;;  %6146 = vadd.xlane.f32.xlu2 %v6145_v4  ;;  %v6151_v63 = vsel %vm6093_vm2, %v11939_v49, 0.0  ;;  %v5141_v34 = vrot.slane %v5098_v41, 4  ;;  %v5140_v20 = vsel %vm4807_vm10, %v5139_v16, %v5098_v41 }
0x1d88   : > { %v5146_v9 = vperm.slane %v5140_v20, %v11594_v10 }
0x1d89   : > { %9202 = vpow2.f32 %v6136_v56  ;;  %v5142_v8 = vsel %vm4807_vm10, %v5110_v27, %v5141_v34 }
0x1d8a   : > { %9204 = vpow2.f32 %v6138_v24  ;;  %v5150_v62 = vperm.slane %v5142_v8, %v11594_v10  ;;  %v5189_v4 = vrot.slane %v5146_v9, 4 }
0x1d8c   : > { %v5193_v0 = vrot.slane %v5150_v62, 4 }
0x1d8f   : > { %v11947_v38 = vpop.eup %9202  ;;  %6152 = vadd.xlane.f32.xlu2 %v6151_v63 }
0x1d90   : > { %v6157_v32 = vsel %vm6093_vm2, %v11947_v38, 0.0  ;;  %v11956_v60 = vpop.eup %9204 }
0x1d91   : > { %6158 = vadd.xlane.f32.xlu1 %v6157_v32  ;;  %v6160_v43 = vsel %vm6093_vm2, %v11956_v60, 0.0 }
0x1d92   : > { %v5089_v44 = vpop.permute.xlu1 %5088 }
0x1d93   : > { %v5127_v31 = vrot.slane %v5089_v44, 4  ;;  %v5130_v45 = vsel %vm4807_vm10, %v5089_v44, %v5129_v61 }
0x1d94   : > { %v5138_v17 = vperm.slane %v5130_v45, %v11569_v47 }
0x1d95   : > { %v5128_v58 = vsel %vm4807_vm10, %v5127_v31, %v11913_v35 }
0x1d96   : > { %v5134_v14 = vperm.slane %v5128_v58, %v11569_v47  ;;  %v5175_v21 = vrot.slane %v5138_v17, 4 }
0x1d97   : > { %v5086_v3 = vpop.permute.xlu0 %5085  ;;  %6161 = vadd.xlane.f32.xlu2 %v6160_v43 }
0x1d98   : > { %v5115_v18 = vrot.slane %v5086_v3, 4  ;;  %v5118_v42 = vsel %vm4807_vm10, %v5086_v3, %v5117_v13  ;;  %v5163_v15 = vrot.slane %v5134_v14, 4 }
0x1d99   : > { %v5126_v35 = vperm.slane %v5118_v42, %v11569_v47 }
0x1d9a   : > { %v5116_v7 = vsel %vm4807_vm10, %v5115_v18, %v11911_v6 }
0x1d9b   : > { %v5122_v28 = vperm.slane %v5116_v7, %v11569_v47  ;;  %v5176_v26 = vsel %vm4807_vm10, %v5175_v21, %v5126_v35  ;;  %v5177_v51 = vrot.slane %v5126_v35, 4 }
0x1d9c   : > { %v5182_v56 = vperm.slane %v5176_v26, %v11594_v10 }
0x1d9d   : > { %v5164_v53 = vsel %vm4807_vm10, %v5163_v15, %v5122_v28  ;;  %v5165_v40 = vrot.slane %v5122_v28, 4  ;;  %v5178_v30 = vsel %vm4807_vm10, %v5138_v17, %v5177_v51 }
0x1d9e   : > { %v5170_v24 = vperm.slane %v5164_v53, %v11594_v10  ;;  %v5186_v48 = vperm.slane %v5178_v30, %v11594_v10  ;;  %v5195_v6 = vrot.slane %v5182_v56, 4  ;;  %v5198_v57 = vsel %vm4807_vm10, %v5182_v56, %v5197_v22 }
0x1d9f   : > { %v5166_v29 = vsel %vm4807_vm10, %v5134_v14, %v5165_v40  ;;  %v5208_v27 = vpack.c.bf16 %v5198_v57, %v5198_v57 }
0x1da0   : > { %v5174_v63 = vperm.slane %v5166_v29, %v11594_v10  ;;  %v5187_v32 = vrot.slane %v5170_v24, 4  ;;  %v5190_v41 = vsel %vm4807_vm10, %v5170_v24, %v5189_v4  ;;  %v5196_v2 = vsel %vm4807_vm10, %v5195_v6, %v5158_v19 }
0x1da1   : > { %v5199_v46 = vrot.slane %v5186_v48, 4  ;;  %v5202_v61 = vsel %vm4807_vm10, %v5186_v48, %v5201_v23  ;;  %v5204_v16 = vpack.c.bf16 %v5190_v41, %v5190_v41  ;;  %v5207_v44 = vpack.c.bf16 %v5196_v2, %v5196_v2 }
0x1da2   : > { %v5188_v31 = vsel %vm4807_vm10, %v5187_v32, %v5146_v9  ;;  %v5191_v45 = vrot.slane %v5174_v63, 4  ;;  %v5194_v34 = vsel %vm4807_vm10, %v5174_v63, %v5193_v0  ;;  %v5210_v50 = vpack.c.bf16 %v5202_v61, %v5202_v61 }
0x1da3   : > { %v5200_v11 = vsel %vm4807_vm10, %v5199_v46, %v5162_v36  ;;  %v5203_v17 = vpack.c.bf16 %v5188_v31, %v5188_v31  ;;  %v5206_v13 = vpack.c.bf16 %v5194_v34, %v5194_v34  ;;  %v6190_v20 = vrot.slane %v5207_v44, 4 }
0x1da4   : > { %v5192_v58 = vsel %vm4807_vm10, %v5191_v45, %v5150_v62  ;;  %v5209_v8 = vpack.c.bf16 %v5200_v11, %v5200_v11  ;;  %v6218_v33 = vrot.slane %v5208_v27, 4  ;;  %v6224_v14 = vrot.slane %v5210_v50, 4 }
0x1da5   : > { %v5205_v3 = vpack.c.bf16 %v5192_v58, %v5192_v58  ;;  %v6191_v43 = vsel %vm4807_vm10, %v6190_v20, %v5203_v17 }
0x1da6   : > { %v6196_v19 = vrot.slane %v5209_v8, 4  ;;  %v6195_v18 = vperm.slane %v6191_v43, %v11569_v47  ;;  %v6219_v42 = vsel %vm4807_vm10, %v6218_v33, %v5204_v16  ;;  %v6225_v9 = vsel %vm4807_vm10, %v6224_v14, %v5206_v13 }
0x1da7   : > { %v6223_v21 = vperm.slane %v6219_v42, %v11569_v47  ;;  %v6229_v35 = vperm.slane %v6225_v9, %v11569_v47 }
0x1da8   : > { %v6197_v36 = vsel %vm4807_vm10, %v6196_v19, %v5205_v3  ;;  %v6204_v62 = vrot.slane %v6195_v18, 4 }
0x1da9   : > { %v6201_v7 = vperm.slane %v6197_v36, %v11569_v47  ;;  %v6230_v15 = vrot.slane %v6229_v35, 4  ;;  %v6232_v28 = vrot.slane %v6223_v21, 4 }
0x1dab   : > { %v6202_v26 = vrot.slane %v6201_v7, 4  ;;  %v6231_v51 = vsel %vm4807_vm10, %v6230_v15, %v6223_v21  ;;  %v6205_v22 = vsel %vm4807_vm10, %v6201_v7, %v6204_v62  ;;  %v6233_v56 = vsel %vm4807_vm10, %v6229_v35, %v6232_v28 }
0x1dac   : > { %v6237_v4 = vperm.slane %v6231_v51, %v11594_v10  ;;  %v6213_v53 = vperm.slane %v6205_v22, %v11594_v10  ;;  %v6241_v40 = vperm.slane %v6233_v56, %v11594_v10 }
0x1dad   : > { %v6203_v30 = vsel %vm4807_vm10, %v6202_v26, %v6195_v18 }
0x1dae   : > { %v6209_v24 = vperm.slane %v6203_v30, %v11594_v10  ;;  %v6260_v48 = vpack.i.b16 %v6241_v40, %v6213_v53  ;;  %v6242_v6 = vrot.slane %v6237_v4, 4  ;;  %v6261_v57 = vshrl.u32 %v6213_v53, 16 }
0x1daf   : > { %v6262_v0 = vshrl.u32 %v6241_v40, 16  ;;  %v6216_v23 = vrot.slane %v6213_v53, 4  ;;  %v6244_v29 = vrot.slane %v6241_v40, 4  ;;  %v6250_v32 = vshrl.u32 %v6237_v4, 16 }
0x1db0   : > { %v6248_v27 = vpack.i.b16 %v6237_v4, %v6209_v24  ;;  %v6249_v63 = vshrl.u32 %v6209_v24, 16  ;;  %v6214_v41 = vrot.slane %v6209_v24, 4  ;;  %v6243_v2 = vsel %vm4807_vm10, 0, %v6242_v6 }
0x1db1   : > { %v6263_v46 = vpack.i.b16 %v6262_v0, %v6261_v57  ;;  %v6217_v61 = vsel %vm4807_vm10, 0, %v6216_v23  ;;  %v6245_v16 = vsel %vm4807_vm10, 0, %v6244_v29  ;;  %v6350_v50 = vsel %vm2680_vm6, %v6260_v48, 0 }
0x1db2   : > { %v6274_v44 = vsel %vm2680_vm6, %v6248_v27, 0  ;;  %v6251_v31 = vpack.i.b16 %v6250_v32, %v6249_v63  ;;  %v6215_v45 = vsel %vm4807_vm10, 0, %v6214_v41  ;;  %v6266_v34 = vpack.i.b16 %v6245_v16, %v6217_v61 }
0x1db3   : > { %6283 = vmatpush.bf16.msra.mxu2 %v6274_v44  ;;  %v6254_v11 = vpack.i.b16 %v6243_v2, %v6215_v45  ;;  %v6255_v17 = vshrl.u32 %v6215_v45, 16  ;;  %v6256_v13 = vshrl.u32 %v6243_v2, 16  ;;  %v6267_v58 = vshrl.u32 %v6217_v61, 16 }
0x1db4   : > { %v6293_v20 = vsel %vm2680_vm6, %v6251_v31, 0  ;;  %v6268_v8 = vshrl.u32 %v6245_v16, 16  ;;  %v6369_v14 = vsel %vm2680_vm6, %v6263_v46, 0  ;;  %v6388_v43 = vsel %vm2680_vm6, %v6266_v34, 0 }
0x1db5   : > { %6302 = vmatpush.bf16.msrb.mxu3 %v6293_v20  ;;  %v6312_v33 = vsel %vm2680_vm6, %v6254_v11, 0  ;;  %v6257_v3 = vpack.i.b16 %v6256_v13, %v6255_v17  ;;  %v9709_v53 = vmov 8.0  }
0x1db6   : > { %6321 = vmatpush.bf16.msra.mxu0 %v6312_v33  ;;  %v6269_v19 = vpack.i.b16 %v6268_v8, %v6267_v58 }
0x1db7   : > { %6359 = vmatpush.bf16.msrb.mxu2 %v6350_v50  ;;  %v6331_v18 = vsel %vm2680_vm6, %v6257_v3, 0 }
0x1db8   : > { %6340 = vmatpush.bf16.msra.mxu1 %v6331_v18  ;;  %v6407_v42 = vsel %vm2680_vm6, %v6269_v19, 0 }
0x1db9   : > { %6378 = vmatpush.bf16.msra.mxu3 %v6369_v14 }
0x1dba   : > { %6397 = vmatpush.bf16.msrb.mxu0 %v6388_v43 }
0x1dbc   : > { %6416 = vmatpush.bf16.msrb.mxu1 %v6407_v42 }
0x1de0   : > { %v6150_v9 = vpop.xlane.xlu1 %6149 }
0x1de1   : > { %9206 = vrcp.f32 %v6150_v9 }
0x1de4   : > { %v6144_v21 = vpop.xlane.xlu0 %6143 }
0x1de5   : > { %9208 = vrcp.f32 %v6144_v21 }
0x1de7   : > { %v9207_v35 = vpop.eup %9206 }
0x1de8   : > { %v6176_v36 = vmul.f32 %v9207_v35, %v11915_v59 }
0x1dea   : > { %v6184_v7 = vpack.c.bf16 %v6176_v36, %v6176_v36  ;;  %v6771_v27 = vsel %vm6093_vm2, %v6176_v36, 0.0 }
0x1deb   : > { %v9209_v62 = vpop.eup %9208 }
0x1dec   : > { %v6174_v15 = vmul.f32 %v9209_v62, %v11919_v54  ;;  %8220 = vmatmul.msk.bf16.vlgmr.msra.gmra.mxu0 %vm6093_vm2, %v6184_v7  ;;  %v6156_v26 = vpop.xlane.xlu0 %6155 }
0x1ded   : > { %9210 = vrcp.f32 %v6156_v26 }
0x1dee   : > { %v6182_v28 = vpack.c.bf16 %v6174_v15, %v6174_v15 }
0x1df0   : > { %8218 = vmatmul.msk.bf16.vlgmr.msra.gmra.mxu2 %vm6093_vm2, %v6182_v28 }
0x1df3   : > { %v9211_v51 = vpop.eup %9210 }
0x1df4   : > { %v6178_v22 = vmul.f32 %v9211_v51, %v11923_v5  ;;  %v6768_v5 = vsel %vm6093_vm2, %v6174_v15, 0.0  ;;  %v6165_v57 = vpop.xlane.xlu0 %6164 }
0x1df6   : > { %v6186_v4 = vpack.c.bf16 %v6178_v22, %v6178_v22  ;;  %v6775_v44 = vsel %vm6093_vm2, %v6178_v22, 0.0 }
0x1dfa   : > { %v6147_v56 = vpop.xlane.xlu2 %6146 }
0x1dfb   : > { %9212 = vrcp.f32 %v6147_v56 }
0x1dfc   : > { %9214 = vrcp.f32 %v9709_v53 }
0x1e00   : > { %8222 = vmatmul.msk.bf16.vlgmr.msrb.gmra.mxu2 %vm6093_vm2, %v6186_v4 }
0x1e01   : > { %v9213_v59 = vpop.eup %9212 }
0x1e02   : > { %v6175_v54 = vmul.f32 %v9213_v59, %v11932_v55  ;;  %v6153_v40 = vpop.xlane.xlu2 %6152  ;;  %v9215_v30 = vpop.eup %9214 }
0x1e03   : > { %9216 = vrcp.f32 %v6153_v40  ;;  %v6784_v0 = vmul.f32 8.0, %v9215_v30  ;;  %vm6788_vm6 = vweird.f32 %v9215_v30 }
0x1e04   : > { %v6159_v24 = vpop.xlane.xlu1 %6158  ;;  %v6183_v48 = vpack.c.bf16 %v6175_v54, %v6175_v54  ;;  %v6769_v6 = vsel %vm6093_vm2, %v6175_v54, 0.0 }
0x1e05   : > { %9218 = vrcp.f32 %v6159_v24  ;;  %v6770_v23 = vadd.f32 %v6769_v6, %v6768_v5  ;;  %v6785_v32 = vsub.f32 1.0, %v6784_v0 }
0x1e06   : > { %8219 = vmatmul.msk.bf16.vlgmr.msrb.gmra.mxu3 %vm6093_vm2, %v6183_v48  ;;  %9220 = vrcp.f32 %v6165_v57 }
0x1e07   : > { %v6772_v2 = vadd.f32 %v6771_v27, %v6770_v23  ;;  %v6786_v45 = vmul.f32 %v9215_v30, %v6785_v32 }
0x1e09   : > { %v9217_v29 = vpop.eup %9216  ;;  %v6787_v20 = vadd.f32 %v9215_v30, %v6786_v45 }
0x1e0a   : > { %v6177_v55 = vmul.f32 %v9217_v29, %v11939_v49  ;;  %v6162_v63 = vpop.xlane.xlu2 %6161 }
0x1e0b   : > { %v9219_v41 = vpop.eup %9218  ;;  %9222 = vrcp.f32 %v6162_v63 }
0x1e0c   : > { %v6185_v46 = vpack.c.bf16 %v6177_v55, %v6177_v55  ;;  %v6773_v61 = vsel %vm6093_vm2, %v6177_v55, 0.0  ;;  %v6179_v31 = vmul.f32 %v9219_v41, %v11947_v38  ;;  %v9221_v34 = vpop.eup %9220 }
0x1e0d   : > { %v6774_v16 = vadd.f32 %v6773_v61, %v6772_v2  ;;  %v6181_v11 = vmul.f32 %v9221_v34, %v11927_v37  ;;  %v6789_v37 = vsel %vm6788_vm6, %v9215_v30, %v6787_v20 }
0x1e0e   : > { %8221 = vmatmul.msk.bf16.vlgmr.msra.gmra.mxu1 %vm6093_vm2, %v6185_v46  ;;  %v6777_v17 = vsel %vm6093_vm2, %v6179_v31, 0.0  ;;  %v6187_v38 = vpack.c.bf16 %v6179_v31, %v6179_v31 }
0x1e0f   : > { %v6776_v50 = vadd.f32 %v6775_v44, %v6774_v16  ;;  %v6781_v3 = vsel %vm6093_vm2, %v6181_v11, 0.0  ;;  %v6189_v18 = vpack.c.bf16 %v6181_v11, %v6181_v11 }
0x1e11   : > { %v9223_v49 = vpop.eup %9222  ;;  %v6778_v58 = vadd.f32 %v6777_v17, %v6776_v50 }
0x1e12   : > { %v6180_v13 = vmul.f32 %v9223_v49, %v11956_v60 }
0x1e14   : > { %v6188_v8 = vpack.c.bf16 %v6180_v13, %v6180_v13  ;;  %v6779_v33 = vsel %vm6093_vm2, %v6180_v13, 0.0 }
0x1e15   : > { %v6780_v14 = vadd.f32 %v6779_v33, %v6778_v58 }
0x1e16   : > { %8223 = vmatmul.msk.bf16.vlgmr.msra.gmra.mxu3 %vm6093_vm2, %v6187_v38  ;;  %8224 = vmatmul.msk.bf16.vlgmr.msrb.gmra.mxu0 %vm6093_vm2, %v6188_v8 }
0x1e17   : > { %v6782_v60 = vadd.f32 %v6781_v3, %v6780_v14 }
0x1e19   : > { %v6790_v43 = vmul.f32 %v6789_v37, %v6782_v60 }
0x1e1b   : > { %v6791_v19 = vsel %vm6093_vm2, %v6790_v43, 0.0 }
0x1e1c   : > { %6792 = vst [vmem:[%s12053_s24] sm:$0xff] %v6791_v19 }
0x1e1e   : > { %8225 = vmatmul.msk.bf16.vlgmr.msrb.gmra.mxu1 %vm6093_vm2, %v6189_v18 }
0x1e69   : > { %v6323_v42 = vpop.f32.mrf.mxu0 }
0x1e6a   : > { %v6422_v22 = vrot.slane %v6323_v42, 4 }
0x1e71   : > { %v6325_v9 = vpop.f32.mrf.mxu0 }
0x1e73   : > { %v6285_v21 = vpop.f32.mrf.mxu2 }
0x1e74   : > { %v6424_v28 = vrot.slane %v6285_v21, 4  ;;  %v6423_v53 = vsel %vm4807_vm10, %v6422_v22, %v6285_v21 }
0x1e75   : > { %v6429_v6 = vperm.slane %v6423_v53, %v11569_v47 }
0x1e76   : > { %v6425_v56 = vsel %vm4807_vm10, %v6323_v42, %v6424_v28 }
0x1e77   : > { %v6433_v40 = vperm.slane %v6425_v56, %v11569_v47  ;;  %v6472_v55 = vrot.slane %v6429_v6, 4 }
0x1e79   : > { %v6484_v29 = vrot.slane %v6433_v40, 4 }
0x1e7b   : > { %v6287_v35 = vpop.f32.mrf.mxu2 }
0x1e83   : > { %v6361_v36 = vpop.f32.mrf.mxu2 }
0x1e84   : > { %v6448_v5 = vrot.slane %v6361_v36, 4 }
0x1e89   : > { %v6304_v62 = vpop.f32.mrf.mxu3 }
0x1e8a   : > { %v6436_v26 = vrot.slane %v6304_v62, 4 }
0x1e8b   : > { %v6363_v7 = vpop.f32.mrf.mxu2  ;;  %v6342_v15 = vpop.f32.mrf.mxu1 }
0x1e8c   : > { %v6434_v51 = vrot.slane %v6342_v15, 4  ;;  %v6437_v4 = vsel %vm4807_vm10, %v6342_v15, %v6436_v26 }
0x1e8d   : > { %v6445_v30 = vperm.slane %v6437_v4, %v11569_v47 }
0x1e8e   : > { %v6435_v54 = vsel %vm4807_vm10, %v6434_v51, %v6304_v62 }
0x1e8f   : > { %v6441_v0 = vperm.slane %v6435_v54, %v11569_v47  ;;  %v6482_v27 = vrot.slane %v6445_v30, 4  ;;  %v6485_v41 = vsel %vm4807_vm10, %v6445_v30, %v6484_v29 }
0x1e90   : > { %v6493_v50 = vperm.slane %v6485_v41, %v11594_v10 }
0x1e91   : > { %v6306_v59 = vpop.f32.mrf.mxu3  ;;  %v6470_v32 = vrot.slane %v6441_v0, 4  ;;  %v6473_v61 = vsel %vm4807_vm10, %v6441_v0, %v6472_v55  ;;  %v6483_v44 = vsel %vm4807_vm10, %v6482_v27, %v6433_v40 }
0x1e92   : > { %v6481_v13 = vperm.slane %v6473_v61, %v11594_v10  ;;  %v6489_v38 = vperm.slane %v6483_v44, %v11594_v10  ;;  %v6532_v43 = vrot.slane %v6493_v50, 4 }
0x1e93   : > { %v6344_v24 = vpop.f32.mrf.mxu1  ;;  %v6399_v48 = vpop.f32.mrf.mxu0  ;;  %v6471_v17 = vsel %vm4807_vm10, %v6470_v32, %v6429_v6 }
0x1e94   : > { %v6446_v57 = vrot.slane %v6399_v48, 4  ;;  %v6449_v23 = vsel %vm4807_vm10, %v6399_v48, %v6448_v5  ;;  %v6477_v60 = vperm.slane %v6471_v17, %v11594_v10  ;;  %v6524_v18 = vrot.slane %v6481_v13, 4 }
0x1e95   : > { %v6457_v2 = vperm.slane %v6449_v23, %v11569_v47  ;;  %v6528_v28 = vrot.slane %v6489_v38, 4 }
0x1e96   : > { %v6447_v63 = vsel %vm4807_vm10, %v6446_v57, %v6361_v36  ;;  %v6520_v54 = vrot.slane %v6477_v60, 4 }
0x1e97   : > { %v6453_v31 = vperm.slane %v6447_v63, %v11569_v47  ;;  %v6508_v20 = vrot.slane %v6457_v2, 4 }
0x1e99   : > { %v6380_v46 = vpop.f32.mrf.mxu3  ;;  %v6496_v33 = vrot.slane %v6453_v31, 4 }
0x1e9a   : > { %v6460_v16 = vrot.slane %v6380_v46, 4 }
0x1e9b   : > { %v6401_v45 = vpop.f32.mrf.mxu0  ;;  %v6418_v34 = vpop.f32.mrf.mxu1 }
0x1e9c   : > { %v6458_v49 = vrot.slane %v6418_v34, 4  ;;  %v6461_v11 = vsel %vm4807_vm10, %v6418_v34, %v6460_v16 }
0x1e9d   : > { %v6469_v58 = vperm.slane %v6461_v11, %v11569_v47 }
0x1e9e   : > { %v6459_v8 = vsel %vm4807_vm10, %v6458_v49, %v6380_v46 }
0x1e9f   : > { %v6465_v14 = vperm.slane %v6459_v8, %v11569_v47  ;;  %v6506_v3 = vrot.slane %v6469_v58, 4  ;;  %v6509_v37 = vsel %vm4807_vm10, %v6469_v58, %v6508_v20 }
0x1ea0   : > { %v6517_v19 = vperm.slane %v6509_v37, %v11594_v10 }
0x1ea1   : > { %v6494_v42 = vrot.slane %v6465_v14, 4  ;;  %v6497_v9 = vsel %vm4807_vm10, %v6465_v14, %v6496_v33  ;;  %v6507_v21 = vsel %vm4807_vm10, %v6506_v3, %v6457_v2  ;;  %v6382_v35 = vpop.f32.mrf.mxu3 }
0x1ea2   : > { %v6505_v36 = vperm.slane %v6497_v9, %v11594_v10  ;;  %v6513_v62 = vperm.slane %v6507_v21, %v11594_v10  ;;  %v6530_v7 = vrot.slane %v6517_v19, 4  ;;  %v6533_v15 = vsel %vm4807_vm10, %v6517_v19, %v6532_v43 }
0x1ea3   : > { %v6495_v26 = vsel %vm4807_vm10, %v6494_v42, %v6453_v31  ;;  %v6570_v51 = vrot.slane %v6533_v15, 4  ;;  %v6420_v22 = vpop.f32.mrf.mxu1 }
0x1ea4   : > { %v6501_v56 = vperm.slane %v6495_v26, %v11594_v10  ;;  %v6522_v4 = vrot.slane %v6505_v36, 4  ;;  %v6525_v53 = vsel %vm4807_vm10, %v6505_v36, %v6524_v18  ;;  %v6526_v59 = vrot.slane %v6513_v62, 4 }
0x1ea5   : > { %v6529_v40 = vsel %vm4807_vm10, %v6513_v62, %v6528_v28  ;;  %v6531_v30 = vsel %vm4807_vm10, %v6530_v7, %v6493_v50  ;;  %v6546_v24 = vrot.slane %v6525_v53, 4 }
0x1ea6   : > { %v6518_v48 = vrot.slane %v6501_v56, 4  ;;  %v6523_v6 = vsel %vm4807_vm10, %v6522_v4, %v6481_v13  ;;  %v6527_v5 = vsel %vm4807_vm10, %v6526_v59, %v6489_v38  ;;  %v6558_v57 = vrot.slane %v6531_v30, 4 }
0x1ea7   : > { %v6572_v0 = vrot.slane %v6529_v40, 4  ;;  %v6521_v23 = vsel %vm4807_vm10, %v6501_v56, %v6520_v54  ;;  %v6534_v29 = vrot.slane %v6523_v6, 4  ;;  %v6571_v27 = vsel %vm4807_vm10, %v6570_v51, %v6529_v40 }
0x1ea8   : > { %v6519_v55 = vsel %vm4807_vm10, %v6518_v48, %v6477_v60  ;;  %v6547_v63 = vsel %vm4807_vm10, %v6546_v24, %v6521_v23  ;;  %v6548_v32 = vrot.slane %v6521_v23, 4  ;;  %v6559_v41 = vsel %vm4807_vm10, %v6558_v57, %v6527_v5 }
0x1ea9   : > { %v6535_v2 = vsel %vm4807_vm10, %v6534_v29, %v6519_v55  ;;  %v6536_v46 = vrot.slane %v6519_v55, 4  ;;  %v6553_v61 = vperm.slane %v6547_v63, %v11569_v47  ;;  %v6565_v16 = vperm.slane %v6559_v41, %v11569_v47  ;;  %v8598_v63 = vld [vmem:[#allocation10 + $0x30] sm:$0xff]  ;;  %v8596_v41 = vld [vmem:[#allocation10 + $0x20] sm:$0xff] }
0x1eaa   : > { %v6541_v44 = vperm.slane %v6535_v2, %v11569_v47  ;;  %v6577_v31 = vperm.slane %v6571_v27, %v11569_v47  ;;  %v6549_v45 = vsel %vm4807_vm10, %v6525_v53, %v6548_v32  ;;  %v6560_v34 = vrot.slane %v6527_v5, 4  ;;  %v8597_v32 = vld [vmem:[#allocation10 + $0x28] sm:$0xff]  ;;  %v8595_v2 = vld [vmem:[#allocation10 + $0x18] sm:$0xff] }
0x1eab   : > { %v6608_v50 = vrot.slane %v6565_v16, 4  ;;  %v6582_v49 = vrot.slane %v6553_v61, 4  ;;  %v6537_v11 = vsel %vm4807_vm10, %v6523_v6, %v6536_v46  ;;  %v6557_v17 = vperm.slane %v6549_v45, %v11569_v47  ;;  %v8594_v46 = vld [vmem:[#allocation10 + $0x10] sm:$0xff] }
0x1eac   : > { %v6584_v13 = vrot.slane %v6541_v44, 4  ;;  %v6606_v20 = vrot.slane %v6577_v31, 4  ;;  %v6545_v58 = vperm.slane %v6537_v11, %v11569_v47  ;;  %v6561_v38 = vsel %vm4807_vm10, %v6531_v30, %v6560_v34 }
0x1ead   : > { %v6609_v8 = vsel %vm4807_vm10, %v6577_v31, %v6608_v50  ;;  %v6583_v33 = vsel %vm4807_vm10, %v6582_v49, %v6541_v44  ;;  %v6569_v14 = vperm.slane %v6561_v38, %v11569_v47  ;;  %v6573_v3 = vsel %vm4807_vm10, %v6533_v15, %v6572_v0 }
0x1eae   : > { %v6585_v37 = vsel %vm4807_vm10, %v6553_v61, %v6584_v13  ;;  %v6617_v60 = vperm.slane %v6609_v8, %v11594_v10  ;;  %v6589_v43 = vperm.slane %v6583_v33, %v11594_v10  ;;  %v6607_v19 = vsel %vm4807_vm10, %v6606_v20, %v6565_v16  ;;  %v8593_v61 = vld [vmem:[#allocation10 + $0x8] sm:$0xff]  ;;  %v8592_v16 = vld [vmem:[#allocation10] sm:$0xff] }
0x1eaf   : > { %v6593_v18 = vperm.slane %v6585_v37, %v11594_v10  ;;  %v6613_v42 = vperm.slane %v6607_v19, %v11594_v10  ;;  %v6581_v9 = vperm.slane %v6573_v3, %v11569_v47  ;;  %v6594_v21 = vrot.slane %v6557_v17, 4  ;;  %v8894_v3 = vld [vmem:[%s12449_s10] ss:$0 sm:$0xff] }
0x1eb0   : > { %v6634_v35 = vrot.slane %v6617_v60, 4  ;;  %v6632_v36 = vrot.slane %v6589_v43, 4  ;;  %v6596_v62 = vrot.slane %v6545_v58, 4  ;;  %v6620_v7 = vrot.slane %v6569_v14, 4 }
0x1eb1   : > { %v6630_v15 = vrot.slane %v6613_v42, 4  ;;  %v6636_v28 = vrot.slane %v6593_v18, 4  ;;  %v6595_v26 = vsel %vm4807_vm10, %v6594_v21, %v6545_v58  ;;  %v6618_v51 = vrot.slane %v6581_v9, 4 }
0x1eb2   : > { %v6635_v22 = vsel %vm4807_vm10, %v6634_v35, %v6593_v18  ;;  %v6633_v56 = vsel %vm4807_vm10, %v6613_v42, %v6632_v36  ;;  %v6601_v4 = vperm.slane %v6595_v26, %v11594_v10  ;;  %v6597_v59 = vsel %vm4807_vm10, %v6557_v17, %v6596_v62  ;;  %v8614_v26 = vld [vmem:[#allocation11 + $0x74] sm:$0xf] }
0x1eb3   : > { %6651 = vrot.lane.b32.xlu2 %v6635_v22, %s9704_s0  ;;  %6647 = vrot.lane.b32.xlu1 %v6633_v56, %s9702_s23  ;;  %v6637_v47 = vsel %vm4807_vm10, %v6617_v60, %v6636_v28  ;;  %v6619_v53 = vsel %vm4807_vm10, %v6618_v51, %v6569_v14  ;;  %v6621_v40 = vsel %vm4807_vm10, %v6581_v9, %v6620_v7  ;;  %v9710_v18 = vmov 128.0   ;;  %v8615_v28 = vld [vmem:[#allocation11 + $0x74] sm:$0xf0] }
0x1eb4   : > { %6655 = vrot.lane.b32.xlu0 %v6637_v47, %s9705_s30  ;;  %v6625_v54 = vperm.slane %v6619_v53, %v11594_v10  ;;  %v6631_v30 = vsel %vm4807_vm10, %v6630_v15, %v6589_v43  ;;  %v6629_v24 = vperm.slane %v6621_v40, %v11594_v10  ;;  %v6640_v48 = vrot.slane %v6601_v4, 4  ;;  %v8316_v15 = vld [vmem:[#allocation11 + $0x70] sm:$0xf]  ;;  %v12450_v53 = vld [vmem:[#allocation40_spill] sm:$0xff]  ;;  %v8612_v40 = vld [vmem:[#allocation11 + $0x64] sm:$0xf] }
0x1eb5   : > { %v6605_v6 = vperm.slane %v6597_v59, %v11594_v10  ;;  %v8599_v10 = vld [vmem:[#allocation10 + $0x38] sm:$0xff]  ;;  %9224 = vrcp.f32 %v9710_v18  ;;  %v8317_v22 = vor.u32 %v8615_v28, %v8316_v15  ;;  %v8308_v59 = vld [vmem:[#allocation11 + $0x60] sm:$0xf]  ;;  %v8629_v15 = vld [vmem:[#allocation13 + $0x68] sm:$0xff]  ;;  %s7358_s30 = sshll.u32 %s12053_s24, 4  ;;  %s7359_s30 = int_to_ptr.vmem [resolvable:$true] %s7358_s30 }
0x1eb6   : > { %v6642_v5 = vrot.slane %v6629_v24, 4  ;;  %v6638_v57 = vrot.slane %v6625_v54, 4  ;;  %v6641_v0 = vsel %vm4807_vm10, %v6625_v54, %v6640_v48  ;;  %6755 = vmatpush.bf16.msra.mxu2 %v8599_v10  ;;  %v8613_v54 = vld [vmem:[#allocation11 + $0x64] sm:$0xf0]  ;;  %v8608_v10 = vld [vmem:[#allocation11 + $0x44] sm:$0xf] }
0x1eb7   : > { %v6644_v27 = vrot.slane %v6605_v6, 4  ;;  %6934 = vmatpush.bf16.msrb.mxu3 %v8317_v22  ;;  %v8621_v28 = vld [vmem:[#allocation13 + $0x28] sm:$0xff] }
0x1eb8   : > { %v6643_v23 = vsel %vm4807_vm10, %v6642_v5, %v6605_v6  ;;  %v6639_v29 = vsel %vm4807_vm10, %v6638_v57, %v6601_v4  ;;  %v8300_v6 = vld [vmem:[#allocation11 + $0x50] sm:$0xf]  ;;  %v8611_v5 = vld [vmem:[#allocation11 + $0x54] sm:$0xf0]  ;;  %v8610_v57 = vld [vmem:[#allocation11 + $0x54] sm:$0xf] }
0x1eb9   : > { %v6645_v55 = vsel %vm4807_vm10, %v6629_v24, %v6644_v27  ;;  %v8310_v24 = vld [vmem:[#allocation11 + $0x68] sm:$0xf0]  ;;  %v8292_v27 = vld [vmem:[#allocation11 + $0x40] sm:$0xf] }
0x1eba   : > { %6756 = vmatpush.bf16.msra.mxu2 %v8598_v63  ;;  %v8313_v48 = vor.u32 %v8612_v40, %v8310_v24  ;;  %v8895_v24 = vld [vmem:[%s12267_s11] ss:$0 sm:$0xff] }
0x1ebb   : > { %6663 = vrot.lane.b32.xlu2 %v6641_v0, %s9703_s6  ;;  %6667 = vrot.lane.b32.xlu1 %v6643_v23, %s9706_s27  ;;  %v9225_v42 = vpop.eup %9224  ;;  %v8301_v0 = vor.u32 %v8611_v5, %v8300_v6  ;;  %v8302_v23 = vld [vmem:[#allocation11 + $0x58] sm:$0xf0]  ;;  %s12457_s6 = sld [smem:[#allocation69_spill]] }
0x1ebc   : > { %6659 = vrot.lane.b32.xlu0 %v6639_v29, %s9700_s20  ;;  %v6799_v9 = vmul.f32 128.0, %v9225_v42  ;;  %vm6803_vm1 = vweird.f32 %v9225_v42  ;;  %v8305_v29 = vor.u32 %v8610_v57, %v8302_v23  ;;  %v8896_v6 = vld [vmem:[%s12268_s12] ss:$0 sm:$0xff] }
0x1ebe   : > { %6757 = vmatpush.bf16.msra.mxu2 %v8597_v32  ;;  %v6800_v21 = vsub.f32 1.0, %v6799_v9  ;;  %v8294_v32 = vld [vmem:[#allocation11 + $0x48] sm:$0xf0] }
0x1ec0   : > { %v6801_v35 = vmul.f32 %v9225_v42, %v6800_v21 }
0x1ec1   : > { %s12458_s0 = smov %s12457_s6 }
0x1ec2   : > { %6758 = vmatpush.bf16.msra.mxu2 %v8596_v41  ;;  %v6802_v36 = vadd.f32 %v9225_v42, %v6801_v35  ;;  %v8297_v41 = vor.u32 %v8608_v10, %v8294_v32  ;;  %v8630_v35 = vld [vmem:[#allocation13 + $0x70] sm:$0xff]  ;;  %v8617_v10 = vld [vmem:[#allocation13 + $0x8] sm:$0xff]  ;;  %v6848_v32 = vld [vmem:[%s12270_s14] sm:$0x3]  ;;  %s9580_s7 = scalar_lea.hbm %s12458_s0, 16 }
0x1ec4   : > { %6671 = vrot.lane.b32.xlu0 %v6645_v55, %s9701_s1  ;;  %v12150_v62 = vsel %vm6803_vm1, %v9225_v42, %v6802_v36  ;;  %v8609_v55 = vld [vmem:[#allocation11 + $0x44] sm:$0xf0]  ;;  %v8622_v36 = vld [vmem:[#allocation13 + $0x30] sm:$0xff] }
0x1ec5   : > { %v8293_v63 = vor.u32 %v8609_v55, %v8292_v27  ;;  %v8618_v27 = vld [vmem:[#allocation13 + $0x10] sm:$0xff]  ;;  %v8624_v55 = vld [vmem:[#allocation13 + $0x40] sm:$0xff] }
0x1ec6   : > { %6759 = vmatpush.bf16.msra.mxu2 %v8595_v2  ;;  %v8284_v2 = vld [vmem:[#allocation11 + $0x30] sm:$0xf] }
0x1eca   : > { %6760 = vmatpush.bf16.msra.mxu2 %v8594_v46  ;;  %v8607_v46 = vld [vmem:[#allocation11 + $0x34] sm:$0xf0] }
0x1ece   : > { %6761 = vmatpush.bf16.msra.mxu2 %v8593_v61  ;;  %v8606_v61 = vld [vmem:[#allocation11 + $0x34] sm:$0xf] }
0x1ed2   : > { %6762 = vmatpush.bf16.msra.mxu2 %v8592_v16  ;;  %v8285_v16 = vor.u32 %v8607_v46, %v8284_v2 }
0x1f0d   : > { %v6652_v45 = vpop.permute.xlu2 %6651 }
0x1f15   : > { %v6664_v13 = vpop.permute.xlu2 %6663 }
0x1f25   : > { %v6648_v44 = vpop.permute.xlu1 %6647 }
0x1f26   : > { %v6656_v31 = vpop.permute.xlu0 %6655  ;;  %v6674_v34 = vsel %vm5964_vm5, %v6631_v30, %v6648_v44  ;;  %v8309_v30 = vor.u32 %v8613_v54, %v8308_v59  ;;  %v8286_v44 = vld [vmem:[#allocation11 + $0x38] sm:$0xf0]  ;;  %v8626_v54 = vld [vmem:[#allocation13 + $0x50] sm:$0xff] }
0x1f27   : > { %v6676_v50 = vsel %vm6675_vm9, %v6674_v34, %v6652_v45  ;;  %v8276_v45 = vld [vmem:[#allocation11 + $0x20] sm:$0xf]  ;;  %v8605_v34 = vld [vmem:[#allocation11 + $0x24] sm:$0xf0] }
0x1f28   : > { %v6678_v11 = vsel %vm6677_vm12, %v6676_v50, %v6656_v31  ;;  %6935 = vmatpush.bf16.msrb.mxu3 %v8309_v30  ;;  %v8289_v31 = vor.u32 %v8606_v61, %v8286_v44  ;;  %v8604_v50 = vld [vmem:[#allocation11 + $0x24] sm:$0xf]  ;;  %v6850_v61 = vperm.slane %v6848_v32, 0 }
0x1f2c   : > { %6936 = vmatpush.bf16.msrb.mxu3 %v8301_v0 }
0x1f2d   : > { %v6668_v58 = vpop.permute.xlu1 %6667 }
0x1f2e   : > { %v6660_v49 = vpop.permute.xlu0 %6659 }
0x1f2f   : > { %v6679_v17 = vsel %vm1091_vm0, %v6678_v11, %v6660_v49  ;;  %v8277_v49 = vor.u32 %v8605_v34, %v8276_v45  ;;  %v8278_v11 = vld [vmem:[#allocation11 + $0x28] sm:$0xf0] }
0x1f30   : > { %v6681_v20 = vsel %vm6680_vm11, %v6679_v17, %v6664_v13  ;;  %6937 = vmatpush.bf16.msrb.mxu3 %v8293_v63  ;;  %v8281_v17 = vor.u32 %v8604_v50, %v8278_v11  ;;  %v8268_v13 = vld [vmem:[#allocation11 + $0x10] sm:$0xf]  ;;  %v8616_v63 = vld [vmem:[#allocation13] sm:$0xff]  ;;  %v8897_v11 = vld [vmem:[%s12272_s16] ss:$0 sm:$0xff] }
0x1f31   : > { %v6683_v8 = vsel %vm6682_vm15, %v6681_v20, %v6668_v58  ;;  %v8603_v20 = vld [vmem:[#allocation11 + $0x14] sm:$0xf0]  ;;  %v8602_v58 = vld [vmem:[#allocation11 + $0x14] sm:$0xf] }
0x1f34   : > { %6938 = vmatpush.bf16.msrb.mxu3 %v8285_v16 }
0x1f36   : > { %v6672_v38 = vpop.permute.xlu0 %6671 }
0x1f37   : > { %v6685_v33 = vsel %vm6684_vm4, %v6683_v8, %v6672_v38  ;;  %v8269_v38 = vor.u32 %v8603_v20, %v8268_v13  ;;  %v8270_v8 = vld [vmem:[#allocation11 + $0x18] sm:$0xf0] }
0x1f38   : > { %v6686_v14 = vpack.c.bf16 %v6685_v33, %v6685_v33  ;;  %6939 = vmatpush.bf16.msrb.mxu3 %v8277_v49  ;;  %v8273_v33 = vor.u32 %v8602_v58, %v8270_v8 }
0x1f3a   : > { %6763 = vmatmul.bf16.vlgmr.msra.gmra.mxu2 %v6686_v14  ;;  %v8260_v14 = vld [vmem:[#allocation11] sm:$0xf] }
0x1f3c   : > { %6940 = vmatpush.bf16.msrb.mxu3 %v8269_v38 }
0x1fbd   : > { %v6764_v37 = vpop.f32.mrf.mxu2 }
0x1fbe   : > { %v6765_v60 = vadd.f32 %v8894_v3, %v6764_v37  ;;  %v8601_v3 = vld [vmem:[#allocation11 + $0x4] sm:$0xf0]  ;;  %v8600_v37 = vld [vmem:[#allocation11 + $0x4] sm:$0xf] }
0x1fbf   : > { %v8261_v42 = vor.u32 %v8601_v3, %v8260_v14  ;;  %v12451_v14 = vld [vmem:[#allocation42_spill] sm:$0xff]  ;;  %v8639_v3 = vld [vmem:[#allocation17 + $0x38] sm:$0xff] }
0x1fc0   : > { %v6793_v43 = vadd.f32 %v6765_v60, %v11543_v1  ;;  %v8318_v1 = vld [vmem:[#allocation11 + $0x78] sm:$0xf0]  ;;  %v8262_v60 = vld [vmem:[#allocation11 + $0x8] sm:$0xf0] }
0x1fc1   : > { %v8321_v56 = vor.u32 %v8614_v26, %v8318_v1  ;;  %v8265_v21 = vor.u32 %v8600_v37, %v8262_v60  ;;  %6941 = vmatpush.bf16.msrb.mxu3 %v8261_v42  ;;  %v8628_v26 = vld [vmem:[#allocation13 + $0x60] sm:$0xff]  ;;  %v12453_v42 = vld [vmem:[#allocation44_spill] sm:$0xff] }
0x1fc2   : > { %6796 = vadd.xlane.f32.xlu2 %v6793_v43 }
0x1fc3   : > { %6947 = vmatpush.bf16.msra.mxu0 %v8321_v56  ;;  %v8627_v56 = vld [vmem:[#allocation13 + $0x58] sm:$0xff] }
0x1fc5   : > { %v6766_v19 = vpop.f32.mrf.mxu2  ;;  %7222 = vmatpush.bf16.msra.mxu3 %v8639_v3 }
0x1fc6   : > { %v8623_v19 = vld [vmem:[#allocation13 + $0x38] sm:$0xff] }
0x1fc7   : > { %6948 = vmatpush.bf16.msra.mxu0 %v8313_v48  ;;  %7096 = vmatpush.bf16.msra.mxu1 %v8623_v19 }
0x1fcb   : > { %6949 = vmatpush.bf16.msra.mxu0 %v8305_v29  ;;  %7097 = vmatpush.bf16.msra.mxu1 %v8622_v36  ;;  %v8625_v29 = vld [vmem:[#allocation13 + $0x48] sm:$0xff] }
0x1fcf   : > { %6950 = vmatpush.bf16.msra.mxu0 %v8297_v41  ;;  %7098 = vmatpush.bf16.msra.mxu1 %v8621_v28 }
0x1fd3   : > { %6951 = vmatpush.bf16.msra.mxu0 %v8289_v31 }
0x1fd7   : > { %6952 = vmatpush.bf16.msra.mxu0 %v8281_v17 }
0x1fdb   : > { %6953 = vmatpush.bf16.msra.mxu0 %v8273_v33 }
0x1fdf   : > { %6954 = vmatpush.bf16.msra.mxu0 %v8265_v21  ;;  %v4550_v21 = vsel %vm1091_vm0, %v11537_v12, %v11510_v25  ;;  %v8635_v25 = vld [vmem:[#allocation17 + $0x18] sm:$0xff]  ;;  %v8634_v12 = vld [vmem:[#allocation17 + $0x10] sm:$0xff] }
0x1fe0   : > { %v4566_v28 = vrot.slane %v4550_v21, 5 }
0x2035   : > { %v6797_v7 = vpop.xlane.xlu2 %6796 }
0x2036   : > { %v6805_v51 = vmul.f32 %v12150_v62, %v6797_v7 }
0x2038   : > { %v12153_v4 = vsub.f32 %v6793_v43, %v6805_v51  ;;  %v8631_v43 = vld [vmem:[#allocation13 + $0x78] sm:$0xff]  ;;  %v8620_v51 = vld [vmem:[#allocation13 + $0x20] sm:$0xff] }
0x2039   : > { %7109 = vmatpush.bf16.msrb.mxu2 %v8631_v43  ;;  %7099 = vmatpush.bf16.msra.mxu1 %v8620_v51 }
0x203a   : > { %v6807_v47 = vmul.f32 %v12153_v4, %v12153_v4 }
0x203c   : > { %6808 = vadd.xlane.f32.xlu1 %v6807_v47 }
0x203d   : > { %7110 = vmatpush.bf16.msrb.mxu2 %v8630_v35 }
0x2041   : > { %7111 = vmatpush.bf16.msrb.mxu2 %v8629_v15 }
0x2045   : > { %7112 = vmatpush.bf16.msrb.mxu2 %v8628_v26 }
0x2049   : > { %7113 = vmatpush.bf16.msrb.mxu2 %v8627_v56  ;;  %v8636_v56 = vld [vmem:[#allocation17 + $0x20] sm:$0xff] }
0x204d   : > { %7114 = vmatpush.bf16.msrb.mxu2 %v8626_v54  ;;  %v8632_v54 = vld [vmem:[#allocation17] sm:$0xff] }
0x2051   : > { %7115 = vmatpush.bf16.msrb.mxu2 %v8625_v29 }
0x2055   : > { %2721 = vrot.lane.b32.xlu1 %v12450_v53, %s9700_s20  ;;  %v8619_v53 = vld [vmem:[#allocation13 + $0x18] sm:$0xff]  ;;  %7116 = vmatpush.bf16.msrb.mxu2 %v8624_v55 }
0x2056   : > { %7100 = vmatpush.bf16.msra.mxu1 %v8619_v53  ;;  %v8647_v53 = vld [vmem:[#allocation19 + $0x38] sm:$0xff] }
0x2057   : > { %7305 = vmatpush.bf16.msrb.mxu0 %v8647_v53 }
0x205a   : > { %7101 = vmatpush.bf16.msra.mxu1 %v8618_v27  ;;  %v8643_v27 = vld [vmem:[#allocation19 + $0x18] sm:$0xff] }
0x205e   : > { %7102 = vmatpush.bf16.msra.mxu1 %v8617_v10 }
0x2062   : > { %7103 = vmatpush.bf16.msra.mxu1 %v8616_v63  ;;  %v8642_v63 = vld [vmem:[#allocation19 + $0x10] sm:$0xff] }
0x20af   : > { %v6809_v18 = vpop.xlane.xlu1 %6808 }
0x20b0   : > { %v6810_v9 = vmul.f32 %v6809_v18, %v12150_v62  ;;  %v12452_v18 = vld [vmem:[#allocation38_spill] sm:$0xff] }
0x20b2   : > { %v6811_v7 = vadd.f32 1e-05, %v6810_v9  ;;  %v2720_v9 = vsel %vm1091_vm0, %v12453_v42, %v12452_v18 }
0x20b4   : > { %9226 = vrsqrt.f32 %v6811_v7  ;;  %vm6818_vm8 = vweird.f32 %v6811_v7 }
0x20ba   : > { %v9227_v22 = vpop.eup %9226 }
0x20bb   : > { %v6813_v1 = vmul.f32 %v9227_v22, %v6811_v7  ;;  %vm6819_vm7 = vweird.f32 %v9227_v22  ;;  %v4560_v7 = vrot.slane %v2720_v9, 7 }
0x20bc   : > { %vm6820_vm10 = vmor %vm6818_vm8, %vm6819_vm7 }
0x20bd   : > { %v6814_v47 = vmul.f32 %v9227_v22, %v6813_v1  ;;  %v8637_v1 = vld [vmem:[#allocation17 + $0x28] sm:$0xff] }
0x20bf   : > { %v6815_v59 = vmul.f32 0.5, %v6814_v47  ;;  %v8633_v47 = vld [vmem:[#allocation17 + $0x8] sm:$0xff] }
0x20c1   : > { %v6816_v40 = vsub.f32 1.5, %v6815_v59 }
0x20c3   : > { %v6817_v30 = vmul.f32 %v9227_v22, %v6816_v40 }
0x20c5   : > { %v6821_v48 = vsel %vm6820_vm10, %v9227_v22, %v6817_v30  ;;  %v8638_v22 = vld [vmem:[#allocation17 + $0x30] sm:$0xff] }
0x20c6   : > { %v6822_v5 = vmul.f32 %v6821_v48, %v12153_v4  ;;  %v6851_v4 = vperm.slane %v6848_v32, 1  ;;  %7223 = vmatpush.bf16.msra.mxu3 %v8638_v22 }
0x20c8   : > { %v6826_v57 = vmul.f32 %v8895_v24, %v6822_v5  ;;  %v8645_v24 = vld [vmem:[#allocation19 + $0x28] sm:$0xff] }
0x20ca   : > { %v6830_v0 = vadd.f32 %v8896_v6, %v6826_v57  ;;  %7224 = vmatpush.bf16.msra.mxu3 %v8637_v1  ;;  %v8644_v57 = vld [vmem:[#allocation19 + $0x20] sm:$0xff] }
0x20cc   : > { %v6831_v23 = vpack.c.bf16 %v6830_v0, %v6830_v0 }
0x20ce   : > { %6942 = vmatmul.bf16.vlgmr.msrb.gmra.mxu3 %v6831_v23  ;;  %6955 = vmatmul.bf16.vlgmr.msra.gmra.mxu0 %v6831_v23 }
0x20cf   : > { %7225 = vmatpush.bf16.msra.mxu3 %v8636_v56 }
0x20d3   : > { %7226 = vmatpush.bf16.msra.mxu3 %v8635_v25 }
0x20d7   : > { %7227 = vmatpush.bf16.msra.mxu3 %v8634_v12 }
0x20db   : > { %7228 = vmatpush.bf16.msra.mxu3 %v8633_v47 }
0x20df   : > { %7229 = vmatpush.bf16.msra.mxu3 %v8632_v54 }
0x214b   : > { %v6956_v41 = vpop.f32.mrf.mxu0 }
0x214c   : > { %v6957_v2 = vadd.f32 %v6956_v41, %v6851_v4  ;;  %v8898_v41 = vld [vmem:[#allocation14] ss:$0 sm:$0xff] }
0x214e   : > { %v6961_v46 = vmax.f32 %v6957_v2, 0.0 }
0x2150   : > { %v6963_v16 = vpack.c.bf16 %v6961_v46, %v6961_v46 }
0x2151   : > { %v6943_v44 = vpop.f32.mrf.mxu3 }
0x2152   : > { %v6944_v31 = vadd.f32 %v6943_v44, %v6850_v61  ;;  %7117 = vmatmul.bf16.vlgmr.msrb.gmra.mxu2 %v6963_v16  ;;  %v8899_v61 = vld [vmem:[#allocation16] ss:$0 sm:$0xff] }
0x2153   : > { %v6958_v45 = vpop.f32.mrf.mxu0 }
0x2154   : > { %v6960_v34 = vmax.f32 %v6944_v31, 0.0  ;;  %v8641_v45 = vld [vmem:[#allocation19 + $0x8] sm:$0xff] }
0x2156   : > { %v6962_v50 = vpack.c.bf16 %v6960_v34, %v6960_v34  ;;  %v8640_v34 = vld [vmem:[#allocation19] sm:$0xff] }
0x2158   : > { %7104 = vmatmul.bf16.vlgmr.msra.gmra.mxu1 %v6962_v50  ;;  %v8900_v50 = vld [vmem:[%s12455_s9] ss:$0 sm:$0xff] }
0x2159   : > { %v6945_v49 = vpop.f32.mrf.mxu3 }
0x21d5   : > { %v7105_v17 = vpop.f32.mrf.mxu1  ;;  %v7118_v13 = vpop.f32.mrf.mxu2 }
0x21d6   : > { %v7106_v20 = vadd.f32 %v8897_v11, %v7105_v17 }
0x21d8   : > { %v7119_v58 = vadd.f32 %v7118_v13, %v7106_v20 }
0x21da   : > { %v7122_v38 = vadd.f32 %v7119_v58, %v6830_v0 }
0x21dc   : > { %7125 = vadd.xlane.f32.xlu0 %v7122_v38 }
0x21dd   : > { %v7107_v8 = vpop.f32.mrf.mxu1  ;;  %v7120_v33 = vpop.f32.mrf.mxu2 }
0x21f0   : > { %2725 = vrot.lane.b32.xlu0 %v12451_v14, %s9700_s20 }
0x21f8   : > { %4555 = vrot.lane.b32.xlu0 %v11512_v39, %s9700_s20  ;;  %v2722_v39 = vpop.permute.xlu1 %2721 }
0x224f   : > { %v7126_v37 = vpop.xlane.xlu0 %7125 }
0x2250   : > { %v7127_v60 = vmul.f32 %v7126_v37, %v12150_v62 }
0x2252   : > { %v12178_v43 = vsub.f32 %v7122_v38, %v7127_v60 }
0x2254   : > { %v7129_v19 = vmul.f32 %v12178_v43, %v12178_v43 }
0x2256   : > { %7130 = vadd.xlane.f32.xlu2 %v7129_v19 }
0x2262   : > { %v2726_v35 = vpop.permute.xlu0 %2725 }
0x2263   : > { %v2728_v36 = vsel %vm1091_vm0, %v2722_v39, %v2726_v35 }
0x2264   : > { %v4563_v15 = vrot.slane %v2728_v36, 6 }
0x2266   : > { %v4571_v26 = vsel %vm2674_vm13, %v4560_v7, %v4563_v15 }
0x2267   : > { %v4572_v51 = vsel %vm2676_vm14, %v4571_v26, %v4566_v28 }
0x226a   : > { %v4556_v48 = vpop.permute.xlu0 %4555 }
0x226e   : > { %4551 = vrot.lane.b32.xlu2 %v11519_v52, %s9700_s20  ;;  %v8646_v52 = vld [vmem:[#allocation19 + $0x30] sm:$0xff]  ;;  %s7613_s20 = sshll.u32 %s10003_s28, 2 }
0x226f   : > { %7306 = vmatpush.bf16.msrb.mxu0 %v8646_v52  ;;  %s956_s29 = scalar_lea.vmem %s12454_s8, %s7613_s20  ;;  %s7356_s20 = scalar_lea.hbm %s12457_s6, %s8452_s5 }
0x2270   : > { %s7360_s27 = sshll.u32 %s7356_s20, 4  ;;  %s7329_s8 = scalar_lea.sflag [#allocation22], %s12043_s3  ;;  %s7361_s27 = int_to_ptr.hbm [resolvable:$true] %s7360_s27 }
0x2273   : > { %7307 = vmatpush.bf16.msrb.mxu0 %v8645_v24 }
0x2277   : > { %7308 = vmatpush.bf16.msrb.mxu0 %v8644_v57 }
0x227b   : > { %7309 = vmatpush.bf16.msrb.mxu0 %v8643_v27 }
0x227f   : > { %7310 = vmatpush.bf16.msrb.mxu0 %v8642_v63 }
0x2283   : > { %7311 = vmatpush.bf16.msrb.mxu0 %v8641_v45 }
0x2287   : > { %7312 = vmatpush.bf16.msrb.mxu0 %v8640_v34 }
0x22c9   : > { %v7131_v59 = vpop.xlane.xlu2 %7130 }
0x22ca   : > { %v7132_v40 = vmul.f32 %v7131_v59, %v12150_v62 }
0x22cc   : > { %v7133_v30 = vadd.f32 1e-05, %v7132_v40 }
0x22ce   : > { %9228 = vrsqrt.f32 %v7133_v30  ;;  %vm7140_vm13 = vweird.f32 %v7133_v30 }
0x22d1   : > { %v4552_v6 = vpop.permute.xlu2 %4551 }
0x22d2   : > { %v4558_v5 = vsel %vm1091_vm0, %v4552_v6, %v4556_v48 }
0x22d3   : > { %v4569_v0 = vrot.slane %v4558_v5, 4 }
0x22d4   : > { %v9229_v62 = vpop.eup %9228 }
0x22d5   : > { %v7135_v23 = vmul.f32 %v9229_v62, %v7133_v30  ;;  %v4573_v29 = vsel %vm2678_vm3, %v4572_v51, %v4569_v0  ;;  %vm7141_vm0 = vweird.f32 %v9229_v62 }
0x22d6   : > { %4574 = vst [vmem:[%s956_s29] sm:$0xf] %v4573_v29  ;;  %vm7142_vm14 = vmor %vm7140_vm13, %vm7141_vm0  ;;  %s9574_s29 = sshra.s32 %s7361_s27, 4  ;;  %s9575_s29 = int_to_ptr.hbm [resolvable:$true] %s9574_s29 }
0x22d7   : > { %v7136_v55 = vmul.f32 %v9229_v62, %v7135_v23  ;;  %s9576_s28 = scalar_lea.hbm %s9575_s29, 8  ;;  %p9581_p3 = scmp.lt.s32.totalorder %s9575_s29, %s12458_s0 }
0x22d8   : > { %p9577_p0 = scmp.ne.s32.totalorder %s9575_s29, %s9576_s28  ;;  %p9582_p4 = scmp.lt.s32.totalorder %s9580_s7, %s9576_s28 }
0x22d9   : > { %v7137_v10 = vmul.f32 0.5, %v7136_v55 }
0x22da   : > { %p9578_p1 = pnand %p9577_p0, %p9879_p5  ;;  %p9583_p7 = por %p9582_p4, %p9581_p3 }
0x22db   : > { %v7138_v32 = vsub.f32 1.5, %v7137_v10 }
0x22dc   : > { %p9579_p2 = pneg %p9578_p1 }
0x22dd   : > { %v7139_v4 = vmul.f32 %v9229_v62, %v7138_v32 }
0x22de   : > { %p9584_p8 = pnand %p9583_p7, %p9579_p2 }
0x22df   : > { %v7143_v2 = vsel %vm7142_vm14, %v9229_v62, %v7139_v4 }
0x22e0   : > { %v7144_v46 = vmul.f32 %v7143_v2, %v12178_v43 }
0x22e2   : > { %v7148_v16 = vmul.f32 %v8898_v41, %v7144_v46 }
0x22e4   : > { %v7152_v44 = vadd.f32 %v8899_v61, %v7148_v16 }
0x22e6   : > { %v7153_v31 = vpack.c.bf16 %v7152_v44, %v7152_v44 }
0x22e8   : > { %7230 = vmatmul.bf16.vlgmr.msra.gmra.mxu3 %v7153_v31 }
0x236b   : > { %v7231_v49 = vpop.f32.mrf.mxu3 }
0x236c   : > { %v7232_v11 = vadd.f32 %v8900_v50, %v7231_v49 }
0x236e   : > { %v7235_v17 = vmax.f32 %v7232_v11, 0.0 }
0x2370   : > { %v7236_v13 = vpack.c.bf16 %v7235_v17, %v7235_v17 }
0x2372   : > { %7313 = vmatmul.bf16.vlgmr.msrb.gmra.mxu0 %v7236_v13 }
0x2373   : > { %v7233_v20 = vpop.f32.mrf.mxu3 }
0x2374   : > { %9587 = shalt.err (!%p9584_p8)
}
0x2375   : > { %8693 = dma.vmem_to_hbm [thread:$0]  (%p9879_p5), %s7359_s30, 128, %s7361_s27, %s7329_s8  }
0x2376   : > { %s12459_s23 = sld [smem:[#allocation67_spill]]  ;;  %s12461_s10 = sshll.u32 %s12043_s3, 3 }
0x2377   : > { %s12460_s9 = sld [smem:[#allocation66_spill]]  ;;  %s935_s4 = scalar_lea.vmem [#allocation20], %s12461_s10 }
0x2378   : > { %s7341_s29 = sshll.u32 %s935_s4, 4  ;;  %s7320_s7 = scalar_lea.sflag [#allocation4], %s12043_s3  ;;  %s7342_s29 = int_to_ptr.vmem [resolvable:$true] %s7341_s29 }
0x237c   : > { %s7339_s6 = scalar_lea.hbm %s12459_s23, %s8452_s5  ;;  %s9608_s24 = scalar_lea.hbm %s12459_s23, 16 }
0x237d   : > { %v8901_v58 = vld [vmem:[%s12460_s9] ss:$0 sm:$0xff]  ;;  %s7343_s28 = sshll.u32 %s7339_s6, 4  ;;  %s7344_s28 = int_to_ptr.hbm [resolvable:$true] %s7343_s28 }
0x237e   : > { %s9602_s30 = sshra.s32 %s7344_s28, 4  ;;  %s9603_s30 = int_to_ptr.hbm [resolvable:$true] %s9602_s30 }
0x237f   : > { %s9604_s27 = scalar_lea.hbm %s9603_s30, 8  ;;  %p9609_p12 = scmp.lt.s32.totalorder %s9603_s30, %s12459_s23 }
0x2380   : > { %p9605_p9 = scmp.ne.s32.totalorder %s9603_s30, %s9604_s27  ;;  %p9610_p13 = scmp.lt.s32.totalorder %s9608_s24, %s9604_s27 }
0x2382   : > { %p9606_p10 = pnand %p9605_p9, %p9879_p5  ;;  %p9611_p0 = por %p9610_p13, %p9609_p12 }
0x2384   : > { %p9607_p11 = pneg %p9606_p10 }
0x2386   : > { %p9612_p1 = pnand %p9611_p0, %p9607_p11 }
0x23ef   : > { %v7314_v38 = vpop.f32.mrf.mxu0 }
0x23f0   : > { %v7315_v8 = vadd.f32 %v8901_v58, %v7314_v38 }
0x23f2   : > { %7318 = vst [vmem:[%s935_s4] sm:$0xff] %v7315_v8 }
0x23f3   : > { %9615 = shalt.err (!%p9612_p1)
}
0x23f4   : > { %8692 = dma.vmem_to_hbm [thread:$0]  (%p9879_p5), %s7342_s29, 128, %s7344_s28, %s7320_s7  }
0x23f7   : > { %v7316_v33 = vpop.f32.mrf.mxu0 }
0x23f8 PF: > { %s12462_s3 = sld [smem:[#allocation33_spill]] }
0x23f9   : > { %s12463_s6 = sld [smem:[#allocation31_spill]] }
0x23fe   : > { %p8759_p2 = scmp.ge.s32.totalorder %s12462_s3, 2 }
0x23ff   : > { %s7372_s9 = sand.u32 1, %s12463_s6  }
0x2400   : > { %p8731_p3 = pnand %p8759_p2, %p9883_p6  ;;  %s7373_s10 = scalar_lea.sflag [#allocation4], %s7372_s9 }
0x2402   : > { %p8732_p4 = pneg %p8731_p3 }
0x2404   : > { %9657 = dma.done.wait (%p8732_p4), %s7373_s10, 128  }
0x2405   : > { %9659 = vsyncadd (%p8732_p4), %s7373_s10, 4294967168  ;;  %s7390_s4 = scalar_lea.sflag [#allocation22], %s7372_s9 }
0x2406   : > { %9661 = dma.done.wait (%p8732_p4), %s7390_s4, 128  }
0x2407   : > { %9663 = vsyncadd (%p8732_p4), %s7390_s4, 4294967168  ;;  %s12465_s30 = sld [smem:[#allocation34_spill]]  ;;  %s12468_s29 = smov %s9670_s2 }
0x2408   : > { %s12466_s13 = sld [smem:[#allocation32_spill]] }
0x2409   : > { %s12467_s6 = sld [smem:[#allocation35_spill]] }
0x240d   : > { %p45_p5 = scmp.ge.s32.totalorder %s12465_s30, 4  }
0x240e   : > { %s12469_s2 = smov %s12466_s13 }
0x240f   :  { %47 = sbr.rel (!%p45_p5) target bundleno = 29 (0x1d), region = 221 }
0x2414   :  { %7396 = vsyncpa [#allocation3], 1 }
0x2415   :  { %7398 = vsyncpa [#allocation3 + $0x1], 1 }
0x2416   :  { %7399 = vsyncpa [#allocation6], 1 }
0x2417   :  { %7400 = vsyncpa [#allocation9], 1 }
0x2418   :  { %7401 = vsyncpa [#allocation12], 1 }
0x2419   :  { %7402 = vsyncpa [#allocation15], 1 }
0x241a   :  { %7403 = vsyncpa [#allocation18], 1 }
0x241b   :  { %7404 = vsyncpa [#allocation4], 1 }
0x241c   :  { %7406 = vsyncpa [#allocation4 + $0x1], 1 }
0x241d   :  { %7407 = vsyncpa [#allocation22], 1 }
0x241e   :  { %7409 = vsyncpa [#allocation22 + $0x1], 1 }

</bundles_post_ra>
